<compile_context>
chip_gen: v6e
topology: v6e:2x2x1
jax: 0.10.0
libtpu: 0.0.40
codegen_flags: <defaults>
</compile_context>

<pallas_src>
import jax
import jax.numpy as jnp
from jax.experimental import pallas as pl
from jax.experimental.pallas import tpu as pltpu

EPS = 1e-5
NEG_SLOPE = 0.2


def _make_gen_fc_kernel(channels_per_step):
    cps = int(channels_per_step)

    def kernel(x_ref, w1_ref, w2_ref, w3_ref, w4_ref, w5_ref,
               gamma_ref, beta_ref, out_ref):
        """One grid step == `cps` output channels' full MLP chains."""
        base = pl.program_id(0) * cps
        x = x_ref[...]  # (N, z_dim) f32, VMEM-resident across grid steps

        for k in range(cps):  # static unroll over the channels in this block
            c = base + k      # global channel index (for BN affine params in SMEM)

            def mm(h, w_ref):
                # Feed bf16 straight to the MXU; only the tiny activation is cast.
                # Weight tiles stay bf16 in VMEM (no full-tile f32 upcast).
                return jnp.dot(h.astype(jnp.bfloat16), w_ref[k],
                               preferred_element_type=jnp.float32)

            def bn_lrelu(h, j):
                # BatchNorm1d(num_features=1), training mode: stats over all N*L
                # elements of this activation (single channel), biased variance.
                # Shifted two-pass variance for numerical safety.
                g = gamma_ref[c, j]
                b = beta_ref[c, j]
                inv_n = 1.0 / float(h.shape[0] * h.shape[1])
                mean = jnp.sum(h) * inv_n
                d = h - mean
                var = jnp.sum(d * d) * inv_n
                hn = d * (jax.lax.rsqrt(var + EPS) * g) + b
                return jnp.where(hn > 0, hn, NEG_SLOPE * hn)

            h = bn_lrelu(mm(x, w1_ref), 0)
            h = bn_lrelu(mm(h, w2_ref), 1)
            h = bn_lrelu(mm(h, w3_ref), 2)
            h = bn_lrelu(mm(h, w4_ref), 3)
            out_ref[k] = jnp.tanh(mm(h, w5_ref))  # (N, S*S) f32

    return kernel


def gen_fc_forward(x, weights, gammas, betas, im_size, channels_per_step=2):
    """x: (N, 1, z_dim) f32; weights[k]: (C, in_k, out_k) bf16; gammas/betas: (C, 4) f32."""
    N = x.shape[0]
    z_dim = x.shape[2]
    C = weights[0].shape[0]
    S2 = im_size * im_size
    x2 = x[:, 0, :].astype(jnp.float32)  # (N, z_dim) -- squeeze the BN channel dim

    cps = int(channels_per_step)
    if cps < 1 or C % cps != 0:
        cps = 1

    # Full-extent last-two-dim blocks -> dense, unmasked DMA and stores.
    weight_specs = [
        pl.BlockSpec((cps, w.shape[1], w.shape[2]), lambda c: (c, 0, 0))
        for w in weights
    ]

    out = pl.pallas_call(
        _make_gen_fc_kernel(cps),
        out_shape=jax.ShapeDtypeStruct((C, N, S2), jnp.float32),
        grid_spec=pltpu.PrefetchScalarGridSpec(
            num_scalar_prefetch=0,
            grid=(C // cps,),
            in_specs=[
                pl.BlockSpec((N, z_dim), lambda c: (0, 0)),          # x, reused each step
                *weight_specs,                                        # bf16 weight blocks
                pl.BlockSpec(memory_space=pltpu.MemorySpace.SMEM),    # gammas (C, 4)
                pl.BlockSpec(memory_space=pltpu.MemorySpace.SMEM),    # betas  (C, 4)
            ],
            out_specs=pl.BlockSpec((cps, N, S2), lambda c: (c, 0, 0)),
        ),
        compiler_params=pltpu.CompilerParams(
            # Channel blocks are independent -> shard grid across TensorCores on v7x.
            dimension_semantics=("parallel",),
            # ~11 MiB working set (double-buffered bf16 weight blocks); 32 MiB fits
            # v5e/v6e (128 MiB physical) and v7x (64 MiB physical) with headroom.
            vmem_limit_bytes=32 * 1024 * 1024,
        ),
    )(x2, *weights, gammas, betas)

    # (C, N, S*S) -> (N, C, S, S)  (NCHW, matching PyTorch). Output is tiny, so this
    # wrapper transpose/reshape is negligible.
    return out.transpose(1, 0, 2).reshape(N, C, im_size, im_size)


def gen_fc_reference(x, weights, gammas, betas, im_size):
    """Pure-JAX reference mirroring the kernel's precision policy:
    bf16 matmul inputs, f32 accumulation, f32 BN/LeakyReLU/Tanh."""
    N = x.shape[0]
    C = weights[0].shape[0]
    x2 = x[:, 0, :].astype(jnp.float32)
    outs = []
    for c in range(C):
        h = x2
        for j in range(4):
            h = jnp.dot(h.astype(jnp.bfloat16), weights[j][c],
                        preferred_element_type=jnp.float32)
            m = jnp.mean(h)
            v = jnp.mean((h - m) * (h - m))
            h = (h - m) * jax.lax.rsqrt(v + EPS) * gammas[c, j] + betas[c, j]
            h = jnp.where(h > 0, h, NEG_SLOPE * h)
        h = jnp.tanh(jnp.dot(h.astype(jnp.bfloat16), weights[4][c],
                             preferred_element_type=jnp.float32))
        outs.append(h.reshape(N, im_size, im_size))
    return jnp.stack(outs, axis=1)


if __name__ == "__main__":
    # Small, deterministic configuration.
    N = 2          # batch
    Z_DIM = 32     # latent dim
    C = 4          # output channels (number of per-channel sub-models)
    S = 16         # image size -> final linear out = S*S = 256
    hidden = [256, 512, 1024, 512, S * S]
    dims = [Z_DIM] + hidden

    key = jax.random.PRNGKey(0)
    keys = jax.random.split(key, 8)

    # Per-channel Linear weights, pre-transposed as (C, in, out), bias=False,
    # stored in bfloat16 (the kernel is DMA-bound on the weight stream).
    weights = [
        (0.05 * jax.random.normal(keys[i], (C, dims[i], dims[i + 1]), jnp.float32)
         ).astype(jnp.bfloat16)
        for i in range(5)
    ]
    # BatchNorm1d(1) affine params (4 BN layers per channel model).
    gammas = 1.0 + 0.1 * jax.random.normal(keys[5], (C, 4), jnp.float32)
    betas = 0.1 * jax.random.normal(keys[6], (C, 4), jnp.float32)

    x = jax.random.normal(keys[7], (N, 1, Z_DIM), jnp.float32)

    out = gen_fc_forward(x, weights, gammas, betas, S, channels_per_step=2)
    out = jax.block_until_ready(out)

    ref = gen_fc_reference(x, weights, gammas, betas, S)
    assert out.shape == (N, C, S, S), out.shape
    assert out.dtype == jnp.float32, out.dtype
    err = float(jnp.max(jnp.abs(out - ref)))
    assert jnp.allclose(out, ref, atol=2e-2, rtol=2e-2), err

    print("KERNEL_OK")
</pallas_src>

<mosaic_0001>
module attributes {stable_mosaic.version = 11 : i64} {
  func.func @kernel(%arg0: i32, %arg1: memref<2x32xf32, #tpu.memory_space<vmem>>, %arg2: memref<2x32x256xbf16, #tpu.memory_space<vmem>>, %arg3: memref<2x256x512xbf16, #tpu.memory_space<vmem>>, %arg4: memref<2x512x1024xbf16, #tpu.memory_space<vmem>>, %arg5: memref<2x1024x512xbf16, #tpu.memory_space<vmem>>, %arg6: memref<2x512x256xbf16, #tpu.memory_space<vmem>>, %arg7: memref<4x4xf32, #tpu.memory_space<smem>>, %arg8: memref<4x4xf32, #tpu.memory_space<smem>>, %arg9: memref<2x2x256xf32, #tpu.memory_space<vmem>>) attributes {dimension_semantics = [#tpu.dimension_semantics<parallel>], iteration_bounds = array<i64: 2>, scalar_prefetch = 0 : i64, scratch_operands = 0 : i64, tpu.core_type = #tpu.core_type<tc>, window_params = [{pipeline_mode = #tpu.pipeline_mode<synchronous>, transform_indices = @transform_0, window_bounds = array<i64: 2, 32>}, {transform_indices = @transform_1, window_bounds = array<i64: 2, 32, 256>}, {transform_indices = @transform_2, window_bounds = array<i64: 2, 256, 512>}, {transform_indices = @transform_3, window_bounds = array<i64: 2, 512, 1024>}, {transform_indices = @transform_4, window_bounds = array<i64: 2, 1024, 512>}, {transform_indices = @transform_5, window_bounds = array<i64: 2, 512, 256>}, {transform_indices = @transform_6, window_bounds = array<i64: 4, 4>}, {transform_indices = @transform_7, window_bounds = array<i64: 4, 4>}, {transform_indices = @transform_8, window_bounds = array<i64: 2, 2, 256>}]} {
    %c2_i32 = arith.constant 2 : i32
    %0 = arith.muli %arg0, %c2_i32 : i32
    %c0 = arith.constant 0 : index
    %c0_0 = arith.constant 0 : index
    %1 = vector.load %arg1[%c0, %c0_0] : memref<2x32xf32, #tpu.memory_space<vmem>>, vector<2x32xf32>
    %c0_i32 = arith.constant 0 : i32
    %2 = arith.addi %0, %c0_i32 : i32
    %3 = arith.truncf %1 : vector<2x32xf32> to vector<2x32xbf16>
    %c0_1 = arith.constant 0 : index
    %c0_2 = arith.constant 0 : index
    %c0_3 = arith.constant 0 : index
    %4 = vector.load %arg2[%c0_1, %c0_2, %c0_3] : memref<2x32x256xbf16, #tpu.memory_space<vmem>>, vector<1x32x256xbf16>
    %5 = vector.shape_cast %4 : vector<1x32x256xbf16> to vector<32x256xbf16>
    %cst = arith.constant dense<0.000000e+00> : vector<2x256xf32>
    %6 = tpu.matmul %3, %5, %cst {dimension_numbers = #tpu.dot_dimension_numbers<[1], [0], [0], [1], [0, 0, 1, 1], [], []>} : vector<2x32xbf16>, vector<32x256xbf16>, vector<2x256xf32> -> vector<2x256xf32>
    %7 = arith.index_cast %2 : i32 to index
    %c0_4 = arith.constant 0 : index
    %8 = memref.load %arg7[%7, %c0_4] : memref<4x4xf32, #tpu.memory_space<smem>>
    %9 = arith.index_cast %2 : i32 to index
    %c0_5 = arith.constant 0 : index
    %10 = memref.load %arg8[%9, %c0_5] : memref<4x4xf32, #tpu.memory_space<smem>>
    %11 = vector.shape_cast %6 : vector<2x256xf32> to vector<1x2x256xf32>
    %cst_6 = arith.constant dense<0.000000e+00> : vector<1xf32>
    %12 = vector.multi_reduction <add>, %11, %cst_6 [1, 2] : vector<1x2x256xf32> to vector<1xf32>
    %13 = vector.shape_cast %12 : vector<1xf32> to vector<1x1x1xf32>
    %14 = vector.extract %13[0, 0, 0] : f32 from vector<1x1x1xf32>
    %cst_7 = arith.constant 0.001953125 : f32
    %15 = arith.mulf %14, %cst_7 : f32
    %16 = vector.broadcast %15 : f32 to vector<2x256xf32>
    %17 = arith.subf %6, %16 : vector<2x256xf32>
    %18 = arith.mulf %17, %17 : vector<2x256xf32>
    %19 = vector.shape_cast %18 : vector<2x256xf32> to vector<1x2x256xf32>
    %cst_8 = arith.constant dense<0.000000e+00> : vector<1xf32>
    %20 = vector.multi_reduction <add>, %19, %cst_8 [1, 2] : vector<1x2x256xf32> to vector<1xf32>
    %21 = vector.shape_cast %20 : vector<1xf32> to vector<1x1x1xf32>
    %22 = vector.extract %21[0, 0, 0] : f32 from vector<1x1x1xf32>
    %cst_9 = arith.constant 0.001953125 : f32
    %23 = arith.mulf %22, %cst_9 : f32
    %cst_10 = arith.constant 9.99999974E-6 : f32
    %24 = arith.addf %23, %cst_10 : f32
    %25 = math.rsqrt %24 : f32
    %26 = arith.mulf %25, %8 : f32
    %27 = vector.broadcast %26 : f32 to vector<2x256xf32>
    %28 = arith.mulf %17, %27 : vector<2x256xf32>
    %29 = vector.broadcast %10 : f32 to vector<2x256xf32>
    %30 = arith.addf %28, %29 : vector<2x256xf32>
    %cst_11 = arith.constant 0.000000e+00 : f32
    %31 = vector.broadcast %cst_11 : f32 to vector<2x256xf32>
    %32 = arith.cmpf ogt, %30, %31 : vector<2x256xf32>
    %cst_12 = arith.constant 2.000000e-01 : f32
    %33 = vector.broadcast %cst_12 : f32 to vector<2x256xf32>
    %34 = arith.mulf %33, %30 : vector<2x256xf32>
    %35 = arith.select %32, %30, %34 : vector<2x256xi1>, vector<2x256xf32>
    %36 = arith.truncf %35 : vector<2x256xf32> to vector<2x256xbf16>
    %c0_13 = arith.constant 0 : index
    %c0_14 = arith.constant 0 : index
    %c0_15 = arith.constant 0 : index
    %37 = vector.load %arg3[%c0_13, %c0_14, %c0_15] : memref<2x256x512xbf16, #tpu.memory_space<vmem>>, vector<1x256x512xbf16>
    %38 = vector.shape_cast %37 : vector<1x256x512xbf16> to vector<256x512xbf16>
    %cst_16 = arith.constant dense<0.000000e+00> : vector<2x512xf32>
    %39 = tpu.matmul %36, %38, %cst_16 {dimension_numbers = #tpu.dot_dimension_numbers<[1], [0], [0], [1], [0, 0, 1, 1], [], []>} : vector<2x256xbf16>, vector<256x512xbf16>, vector<2x512xf32> -> vector<2x512xf32>
    %40 = arith.index_cast %2 : i32 to index
    %c1 = arith.constant 1 : index
    %41 = memref.load %arg7[%40, %c1] : memref<4x4xf32, #tpu.memory_space<smem>>
    %42 = arith.index_cast %2 : i32 to index
    %c1_17 = arith.constant 1 : index
    %43 = memref.load %arg8[%42, %c1_17] : memref<4x4xf32, #tpu.memory_space<smem>>
    %44 = vector.shape_cast %39 : vector<2x512xf32> to vector<1x2x512xf32>
    %cst_18 = arith.constant dense<0.000000e+00> : vector<1xf32>
    %45 = vector.multi_reduction <add>, %44, %cst_18 [1, 2] : vector<1x2x512xf32> to vector<1xf32>
    %46 = vector.shape_cast %45 : vector<1xf32> to vector<1x1x1xf32>
    %47 = vector.extract %46[0, 0, 0] : f32 from vector<1x1x1xf32>
    %cst_19 = arith.constant 9.765625E-4 : f32
    %48 = arith.mulf %47, %cst_19 : f32
    %49 = vector.broadcast %48 : f32 to vector<2x512xf32>
    %50 = arith.subf %39, %49 : vector<2x512xf32>
    %51 = arith.mulf %50, %50 : vector<2x512xf32>
    %52 = vector.shape_cast %51 : vector<2x512xf32> to vector<1x2x512xf32>
    %cst_20 = arith.constant dense<0.000000e+00> : vector<1xf32>
    %53 = vector.multi_reduction <add>, %52, %cst_20 [1, 2] : vector<1x2x512xf32> to vector<1xf32>
    %54 = vector.shape_cast %53 : vector<1xf32> to vector<1x1x1xf32>
    %55 = vector.extract %54[0, 0, 0] : f32 from vector<1x1x1xf32>
    %cst_21 = arith.constant 9.765625E-4 : f32
    %56 = arith.mulf %55, %cst_21 : f32
    %cst_22 = arith.constant 9.99999974E-6 : f32
    %57 = arith.addf %56, %cst_22 : f32
    %58 = math.rsqrt %57 : f32
    %59 = arith.mulf %58, %41 : f32
    %60 = vector.broadcast %59 : f32 to vector<2x512xf32>
    %61 = arith.mulf %50, %60 : vector<2x512xf32>
    %62 = vector.broadcast %43 : f32 to vector<2x512xf32>
    %63 = arith.addf %61, %62 : vector<2x512xf32>
    %cst_23 = arith.constant 0.000000e+00 : f32
    %64 = vector.broadcast %cst_23 : f32 to vector<2x512xf32>
    %65 = arith.cmpf ogt, %63, %64 : vector<2x512xf32>
    %cst_24 = arith.constant 2.000000e-01 : f32
    %66 = vector.broadcast %cst_24 : f32 to vector<2x512xf32>
    %67 = arith.mulf %66, %63 : vector<2x512xf32>
    %68 = arith.select %65, %63, %67 : vector<2x512xi1>, vector<2x512xf32>
    %69 = arith.truncf %68 : vector<2x512xf32> to vector<2x512xbf16>
    %c0_25 = arith.constant 0 : index
    %c0_26 = arith.constant 0 : index
    %c0_27 = arith.constant 0 : index
    %70 = vector.load %arg4[%c0_25, %c0_26, %c0_27] : memref<2x512x1024xbf16, #tpu.memory_space<vmem>>, vector<1x512x1024xbf16>
    %71 = vector.shape_cast %70 : vector<1x512x1024xbf16> to vector<512x1024xbf16>
    %cst_28 = arith.constant dense<0.000000e+00> : vector<2x1024xf32>
    %72 = tpu.matmul %69, %71, %cst_28 {dimension_numbers = #tpu.dot_dimension_numbers<[1], [0], [0], [1], [0, 0, 1, 1], [], []>} : vector<2x512xbf16>, vector<512x1024xbf16>, vector<2x1024xf32> -> vector<2x1024xf32>
    %73 = arith.index_cast %2 : i32 to index
    %c2 = arith.constant 2 : index
    %74 = memref.load %arg7[%73, %c2] : memref<4x4xf32, #tpu.memory_space<smem>>
    %75 = arith.index_cast %2 : i32 to index
    %c2_29 = arith.constant 2 : index
    %76 = memref.load %arg8[%75, %c2_29] : memref<4x4xf32, #tpu.memory_space<smem>>
    %77 = vector.shape_cast %72 : vector<2x1024xf32> to vector<1x2x1024xf32>
    %cst_30 = arith.constant dense<0.000000e+00> : vector<1xf32>
    %78 = vector.multi_reduction <add>, %77, %cst_30 [1, 2] : vector<1x2x1024xf32> to vector<1xf32>
    %79 = vector.shape_cast %78 : vector<1xf32> to vector<1x1x1xf32>
    %80 = vector.extract %79[0, 0, 0] : f32 from vector<1x1x1xf32>
    %cst_31 = arith.constant 4.8828125E-4 : f32
    %81 = arith.mulf %80, %cst_31 : f32
    %82 = vector.broadcast %81 : f32 to vector<2x1024xf32>
    %83 = arith.subf %72, %82 : vector<2x1024xf32>
    %84 = arith.mulf %83, %83 : vector<2x1024xf32>
    %85 = vector.shape_cast %84 : vector<2x1024xf32> to vector<1x2x1024xf32>
    %cst_32 = arith.constant dense<0.000000e+00> : vector<1xf32>
    %86 = vector.multi_reduction <add>, %85, %cst_32 [1, 2] : vector<1x2x1024xf32> to vector<1xf32>
    %87 = vector.shape_cast %86 : vector<1xf32> to vector<1x1x1xf32>
    %88 = vector.extract %87[0, 0, 0] : f32 from vector<1x1x1xf32>
    %cst_33 = arith.constant 4.8828125E-4 : f32
    %89 = arith.mulf %88, %cst_33 : f32
    %cst_34 = arith.constant 9.99999974E-6 : f32
    %90 = arith.addf %89, %cst_34 : f32
    %91 = math.rsqrt %90 : f32
    %92 = arith.mulf %91, %74 : f32
    %93 = vector.broadcast %92 : f32 to vector<2x1024xf32>
    %94 = arith.mulf %83, %93 : vector<2x1024xf32>
    %95 = vector.broadcast %76 : f32 to vector<2x1024xf32>
    %96 = arith.addf %94, %95 : vector<2x1024xf32>
    %cst_35 = arith.constant 0.000000e+00 : f32
    %97 = vector.broadcast %cst_35 : f32 to vector<2x1024xf32>
    %98 = arith.cmpf ogt, %96, %97 : vector<2x1024xf32>
    %cst_36 = arith.constant 2.000000e-01 : f32
    %99 = vector.broadcast %cst_36 : f32 to vector<2x1024xf32>
    %100 = arith.mulf %99, %96 : vector<2x1024xf32>
    %101 = arith.select %98, %96, %100 : vector<2x1024xi1>, vector<2x1024xf32>
    %102 = arith.truncf %101 : vector<2x1024xf32> to vector<2x1024xbf16>
    %c0_37 = arith.constant 0 : index
    %c0_38 = arith.constant 0 : index
    %c0_39 = arith.constant 0 : index
    %103 = vector.load %arg5[%c0_37, %c0_38, %c0_39] : memref<2x1024x512xbf16, #tpu.memory_space<vmem>>, vector<1x1024x512xbf16>
    %104 = vector.shape_cast %103 : vector<1x1024x512xbf16> to vector<1024x512xbf16>
    %cst_40 = arith.constant dense<0.000000e+00> : vector<2x512xf32>
    %105 = tpu.matmul %102, %104, %cst_40 {dimension_numbers = #tpu.dot_dimension_numbers<[1], [0], [0], [1], [0, 0, 1, 1], [], []>} : vector<2x1024xbf16>, vector<1024x512xbf16>, vector<2x512xf32> -> vector<2x512xf32>
    %106 = arith.index_cast %2 : i32 to index
    %c3 = arith.constant 3 : index
    %107 = memref.load %arg7[%106, %c3] : memref<4x4xf32, #tpu.memory_space<smem>>
    %108 = arith.index_cast %2 : i32 to index
    %c3_41 = arith.constant 3 : index
    %109 = memref.load %arg8[%108, %c3_41] : memref<4x4xf32, #tpu.memory_space<smem>>
    %110 = vector.shape_cast %105 : vector<2x512xf32> to vector<1x2x512xf32>
    %cst_42 = arith.constant dense<0.000000e+00> : vector<1xf32>
    %111 = vector.multi_reduction <add>, %110, %cst_42 [1, 2] : vector<1x2x512xf32> to vector<1xf32>
    %112 = vector.shape_cast %111 : vector<1xf32> to vector<1x1x1xf32>
    %113 = vector.extract %112[0, 0, 0] : f32 from vector<1x1x1xf32>
    %cst_43 = arith.constant 9.765625E-4 : f32
    %114 = arith.mulf %113, %cst_43 : f32
    %115 = vector.broadcast %114 : f32 to vector<2x512xf32>
    %116 = arith.subf %105, %115 : vector<2x512xf32>
    %117 = arith.mulf %116, %116 : vector<2x512xf32>
    %118 = vector.shape_cast %117 : vector<2x512xf32> to vector<1x2x512xf32>
    %cst_44 = arith.constant dense<0.000000e+00> : vector<1xf32>
    %119 = vector.multi_reduction <add>, %118, %cst_44 [1, 2] : vector<1x2x512xf32> to vector<1xf32>
    %120 = vector.shape_cast %119 : vector<1xf32> to vector<1x1x1xf32>
    %121 = vector.extract %120[0, 0, 0] : f32 from vector<1x1x1xf32>
    %cst_45 = arith.constant 9.765625E-4 : f32
    %122 = arith.mulf %121, %cst_45 : f32
    %cst_46 = arith.constant 9.99999974E-6 : f32
    %123 = arith.addf %122, %cst_46 : f32
    %124 = math.rsqrt %123 : f32
    %125 = arith.mulf %124, %107 : f32
    %126 = vector.broadcast %125 : f32 to vector<2x512xf32>
    %127 = arith.mulf %116, %126 : vector<2x512xf32>
    %128 = vector.broadcast %109 : f32 to vector<2x512xf32>
    %129 = arith.addf %127, %128 : vector<2x512xf32>
    %cst_47 = arith.constant 0.000000e+00 : f32
    %130 = vector.broadcast %cst_47 : f32 to vector<2x512xf32>
    %131 = arith.cmpf ogt, %129, %130 : vector<2x512xf32>
    %cst_48 = arith.constant 2.000000e-01 : f32
    %132 = vector.broadcast %cst_48 : f32 to vector<2x512xf32>
    %133 = arith.mulf %132, %129 : vector<2x512xf32>
    %134 = arith.select %131, %129, %133 : vector<2x512xi1>, vector<2x512xf32>
    %135 = arith.truncf %134 : vector<2x512xf32> to vector<2x512xbf16>
    %c0_49 = arith.constant 0 : index
    %c0_50 = arith.constant 0 : index
    %c0_51 = arith.constant 0 : index
    %136 = vector.load %arg6[%c0_49, %c0_50, %c0_51] : memref<2x512x256xbf16, #tpu.memory_space<vmem>>, vector<1x512x256xbf16>
    %137 = vector.shape_cast %136 : vector<1x512x256xbf16> to vector<512x256xbf16>
    %cst_52 = arith.constant dense<0.000000e+00> : vector<2x256xf32>
    %138 = tpu.matmul %135, %137, %cst_52 {dimension_numbers = #tpu.dot_dimension_numbers<[1], [0], [0], [1], [0, 0, 1, 1], [], []>} : vector<2x512xbf16>, vector<512x256xbf16>, vector<2x256xf32> -> vector<2x256xf32>
    %139 = math.tanh %138 : vector<2x256xf32>
    %c0_53 = arith.constant 0 : index
    %c0_54 = arith.constant 0 : index
    %c0_55 = arith.constant 0 : index
    %140 = vector.load %arg9[%c0_53, %c0_54, %c0_55] : memref<2x2x256xf32, #tpu.memory_space<vmem>>, vector<1x2x256xf32>
    %141 = vector.shape_cast %140 : vector<1x2x256xf32> to vector<2x256xf32>
    %142 = vector.shape_cast %139 : vector<2x256xf32> to vector<1x2x256xf32>
    tpu.vector_store %arg9[%c0_53, %c0_54, %c0_55], %142 {strides = array<i32>} : memref<2x2x256xf32, #tpu.memory_space<vmem>>, vector<1x2x256xf32>,
    %c1_i32 = arith.constant 1 : i32
    %143 = arith.addi %0, %c1_i32 : i32
    %144 = arith.truncf %1 : vector<2x32xf32> to vector<2x32xbf16>
    %c1_56 = arith.constant 1 : index
    %c0_57 = arith.constant 0 : index
    %c0_58 = arith.constant 0 : index
    %145 = vector.load %arg2[%c1_56, %c0_57, %c0_58] : memref<2x32x256xbf16, #tpu.memory_space<vmem>>, vector<1x32x256xbf16>
    %146 = vector.shape_cast %145 : vector<1x32x256xbf16> to vector<32x256xbf16>
    %cst_59 = arith.constant dense<0.000000e+00> : vector<2x256xf32>
    %147 = tpu.matmul %144, %146, %cst_59 {dimension_numbers = #tpu.dot_dimension_numbers<[1], [0], [0], [1], [0, 0, 1, 1], [], []>} : vector<2x32xbf16>, vector<32x256xbf16>, vector<2x256xf32> -> vector<2x256xf32>
    %148 = arith.index_cast %143 : i32 to index
    %c0_60 = arith.constant 0 : index
    %149 = memref.load %arg7[%148, %c0_60] : memref<4x4xf32, #tpu.memory_space<smem>>
    %150 = arith.index_cast %143 : i32 to index
    %c0_61 = arith.constant 0 : index
    %151 = memref.load %arg8[%150, %c0_61] : memref<4x4xf32, #tpu.memory_space<smem>>
    %152 = vector.shape_cast %147 : vector<2x256xf32> to vector<1x2x256xf32>
    %cst_62 = arith.constant dense<0.000000e+00> : vector<1xf32>
    %153 = vector.multi_reduction <add>, %152, %cst_62 [1, 2] : vector<1x2x256xf32> to vector<1xf32>
    %154 = vector.shape_cast %153 : vector<1xf32> to vector<1x1x1xf32>
    %155 = vector.extract %154[0, 0, 0] : f32 from vector<1x1x1xf32>
    %cst_63 = arith.constant 0.001953125 : f32
    %156 = arith.mulf %155, %cst_63 : f32
    %157 = vector.broadcast %156 : f32 to vector<2x256xf32>
    %158 = arith.subf %147, %157 : vector<2x256xf32>
    %159 = arith.mulf %158, %158 : vector<2x256xf32>
    %160 = vector.shape_cast %159 : vector<2x256xf32> to vector<1x2x256xf32>
    %cst_64 = arith.constant dense<0.000000e+00> : vector<1xf32>
    %161 = vector.multi_reduction <add>, %160, %cst_64 [1, 2] : vector<1x2x256xf32> to vector<1xf32>
    %162 = vector.shape_cast %161 : vector<1xf32> to vector<1x1x1xf32>
    %163 = vector.extract %162[0, 0, 0] : f32 from vector<1x1x1xf32>
    %cst_65 = arith.constant 0.001953125 : f32
    %164 = arith.mulf %163, %cst_65 : f32
    %cst_66 = arith.constant 9.99999974E-6 : f32
    %165 = arith.addf %164, %cst_66 : f32
    %166 = math.rsqrt %165 : f32
    %167 = arith.mulf %166, %149 : f32
    %168 = vector.broadcast %167 : f32 to vector<2x256xf32>
    %169 = arith.mulf %158, %168 : vector<2x256xf32>
    %170 = vector.broadcast %151 : f32 to vector<2x256xf32>
    %171 = arith.addf %169, %170 : vector<2x256xf32>
    %cst_67 = arith.constant 0.000000e+00 : f32
    %172 = vector.broadcast %cst_67 : f32 to vector<2x256xf32>
    %173 = arith.cmpf ogt, %171, %172 : vector<2x256xf32>
    %cst_68 = arith.constant 2.000000e-01 : f32
    %174 = vector.broadcast %cst_68 : f32 to vector<2x256xf32>
    %175 = arith.mulf %174, %171 : vector<2x256xf32>
    %176 = arith.select %173, %171, %175 : vector<2x256xi1>, vector<2x256xf32>
    %177 = arith.truncf %176 : vector<2x256xf32> to vector<2x256xbf16>
    %c1_69 = arith.constant 1 : index
    %c0_70 = arith.constant 0 : index
    %c0_71 = arith.constant 0 : index
    %178 = vector.load %arg3[%c1_69, %c0_70, %c0_71] : memref<2x256x512xbf16, #tpu.memory_space<vmem>>, vector<1x256x512xbf16>
    %179 = vector.shape_cast %178 : vector<1x256x512xbf16> to vector<256x512xbf16>
    %cst_72 = arith.constant dense<0.000000e+00> : vector<2x512xf32>
    %180 = tpu.matmul %177, %179, %cst_72 {dimension_numbers = #tpu.dot_dimension_numbers<[1], [0], [0], [1], [0, 0, 1, 1], [], []>} : vector<2x256xbf16>, vector<256x512xbf16>, vector<2x512xf32> -> vector<2x512xf32>
    %181 = arith.index_cast %143 : i32 to index
    %c1_73 = arith.constant 1 : index
    %182 = memref.load %arg7[%181, %c1_73] : memref<4x4xf32, #tpu.memory_space<smem>>
    %183 = arith.index_cast %143 : i32 to index
    %c1_74 = arith.constant 1 : index
    %184 = memref.load %arg8[%183, %c1_74] : memref<4x4xf32, #tpu.memory_space<smem>>
    %185 = vector.shape_cast %180 : vector<2x512xf32> to vector<1x2x512xf32>
    %cst_75 = arith.constant dense<0.000000e+00> : vector<1xf32>
    %186 = vector.multi_reduction <add>, %185, %cst_75 [1, 2] : vector<1x2x512xf32> to vector<1xf32>
    %187 = vector.shape_cast %186 : vector<1xf32> to vector<1x1x1xf32>
    %188 = vector.extract %187[0, 0, 0] : f32 from vector<1x1x1xf32>
    %cst_76 = arith.constant 9.765625E-4 : f32
    %189 = arith.mulf %188, %cst_76 : f32
    %190 = vector.broadcast %189 : f32 to vector<2x512xf32>
    %191 = arith.subf %180, %190 : vector<2x512xf32>
    %192 = arith.mulf %191, %191 : vector<2x512xf32>
    %193 = vector.shape_cast %192 : vector<2x512xf32> to vector<1x2x512xf32>
    %cst_77 = arith.constant dense<0.000000e+00> : vector<1xf32>
    %194 = vector.multi_reduction <add>, %193, %cst_77 [1, 2] : vector<1x2x512xf32> to vector<1xf32>
    %195 = vector.shape_cast %194 : vector<1xf32> to vector<1x1x1xf32>
    %196 = vector.extract %195[0, 0, 0] : f32 from vector<1x1x1xf32>
    %cst_78 = arith.constant 9.765625E-4 : f32
    %197 = arith.mulf %196, %cst_78 : f32
    %cst_79 = arith.constant 9.99999974E-6 : f32
    %198 = arith.addf %197, %cst_79 : f32
    %199 = math.rsqrt %198 : f32
    %200 = arith.mulf %199, %182 : f32
    %201 = vector.broadcast %200 : f32 to vector<2x512xf32>
    %202 = arith.mulf %191, %201 : vector<2x512xf32>
    %203 = vector.broadcast %184 : f32 to vector<2x512xf32>
    %204 = arith.addf %202, %203 : vector<2x512xf32>
    %cst_80 = arith.constant 0.000000e+00 : f32
    %205 = vector.broadcast %cst_80 : f32 to vector<2x512xf32>
    %206 = arith.cmpf ogt, %204, %205 : vector<2x512xf32>
    %cst_81 = arith.constant 2.000000e-01 : f32
    %207 = vector.broadcast %cst_81 : f32 to vector<2x512xf32>
    %208 = arith.mulf %207, %204 : vector<2x512xf32>
    %209 = arith.select %206, %204, %208 : vector<2x512xi1>, vector<2x512xf32>
    %210 = arith.truncf %209 : vector<2x512xf32> to vector<2x512xbf16>
    %c1_82 = arith.constant 1 : index
    %c0_83 = arith.constant 0 : index
    %c0_84 = arith.constant 0 : index
    %211 = vector.load %arg4[%c1_82, %c0_83, %c0_84] : memref<2x512x1024xbf16, #tpu.memory_space<vmem>>, vector<1x512x1024xbf16>
    %212 = vector.shape_cast %211 : vector<1x512x1024xbf16> to vector<512x1024xbf16>
    %cst_85 = arith.constant dense<0.000000e+00> : vector<2x1024xf32>
    %213 = tpu.matmul %210, %212, %cst_85 {dimension_numbers = #tpu.dot_dimension_numbers<[1], [0], [0], [1], [0, 0, 1, 1], [], []>} : vector<2x512xbf16>, vector<512x1024xbf16>, vector<2x1024xf32> -> vector<2x1024xf32>
    %214 = arith.index_cast %143 : i32 to index
    %c2_86 = arith.constant 2 : index
    %215 = memref.load %arg7[%214, %c2_86] : memref<4x4xf32, #tpu.memory_space<smem>>
    %216 = arith.index_cast %143 : i32 to index
    %c2_87 = arith.constant 2 : index
    %217 = memref.load %arg8[%216, %c2_87] : memref<4x4xf32, #tpu.memory_space<smem>>
    %218 = vector.shape_cast %213 : vector<2x1024xf32> to vector<1x2x1024xf32>
    %cst_88 = arith.constant dense<0.000000e+00> : vector<1xf32>
    %219 = vector.multi_reduction <add>, %218, %cst_88 [1, 2] : vector<1x2x1024xf32> to vector<1xf32>
    %220 = vector.shape_cast %219 : vector<1xf32> to vector<1x1x1xf32>
    %221 = vector.extract %220[0, 0, 0] : f32 from vector<1x1x1xf32>
    %cst_89 = arith.constant 4.8828125E-4 : f32
    %222 = arith.mulf %221, %cst_89 : f32
    %223 = vector.broadcast %222 : f32 to vector<2x1024xf32>
    %224 = arith.subf %213, %223 : vector<2x1024xf32>
    %225 = arith.mulf %224, %224 : vector<2x1024xf32>
    %226 = vector.shape_cast %225 : vector<2x1024xf32> to vector<1x2x1024xf32>
    %cst_90 = arith.constant dense<0.000000e+00> : vector<1xf32>
    %227 = vector.multi_reduction <add>, %226, %cst_90 [1, 2] : vector<1x2x1024xf32> to vector<1xf32>
    %228 = vector.shape_cast %227 : vector<1xf32> to vector<1x1x1xf32>
    %229 = vector.extract %228[0, 0, 0] : f32 from vector<1x1x1xf32>
    %cst_91 = arith.constant 4.8828125E-4 : f32
    %230 = arith.mulf %229, %cst_91 : f32
    %cst_92 = arith.constant 9.99999974E-6 : f32
    %231 = arith.addf %230, %cst_92 : f32
    %232 = math.rsqrt %231 : f32
    %233 = arith.mulf %232, %215 : f32
    %234 = vector.broadcast %233 : f32 to vector<2x1024xf32>
    %235 = arith.mulf %224, %234 : vector<2x1024xf32>
    %236 = vector.broadcast %217 : f32 to vector<2x1024xf32>
    %237 = arith.addf %235, %236 : vector<2x1024xf32>
    %cst_93 = arith.constant 0.000000e+00 : f32
    %238 = vector.broadcast %cst_93 : f32 to vector<2x1024xf32>
    %239 = arith.cmpf ogt, %237, %238 : vector<2x1024xf32>
    %cst_94 = arith.constant 2.000000e-01 : f32
    %240 = vector.broadcast %cst_94 : f32 to vector<2x1024xf32>
    %241 = arith.mulf %240, %237 : vector<2x1024xf32>
    %242 = arith.select %239, %237, %241 : vector<2x1024xi1>, vector<2x1024xf32>
    %243 = arith.truncf %242 : vector<2x1024xf32> to vector<2x1024xbf16>
    %c1_95 = arith.constant 1 : index
    %c0_96 = arith.constant 0 : index
    %c0_97 = arith.constant 0 : index
    %244 = vector.load %arg5[%c1_95, %c0_96, %c0_97] : memref<2x1024x512xbf16, #tpu.memory_space<vmem>>, vector<1x1024x512xbf16>
    %245 = vector.shape_cast %244 : vector<1x1024x512xbf16> to vector<1024x512xbf16>
    %cst_98 = arith.constant dense<0.000000e+00> : vector<2x512xf32>
    %246 = tpu.matmul %243, %245, %cst_98 {dimension_numbers = #tpu.dot_dimension_numbers<[1], [0], [0], [1], [0, 0, 1, 1], [], []>} : vector<2x1024xbf16>, vector<1024x512xbf16>, vector<2x512xf32> -> vector<2x512xf32>
    %247 = arith.index_cast %143 : i32 to index
    %c3_99 = arith.constant 3 : index
    %248 = memref.load %arg7[%247, %c3_99] : memref<4x4xf32, #tpu.memory_space<smem>>
    %249 = arith.index_cast %143 : i32 to index
    %c3_100 = arith.constant 3 : index
    %250 = memref.load %arg8[%249, %c3_100] : memref<4x4xf32, #tpu.memory_space<smem>>
    %251 = vector.shape_cast %246 : vector<2x512xf32> to vector<1x2x512xf32>
    %cst_101 = arith.constant dense<0.000000e+00> : vector<1xf32>
    %252 = vector.multi_reduction <add>, %251, %cst_101 [1, 2] : vector<1x2x512xf32> to vector<1xf32>
    %253 = vector.shape_cast %252 : vector<1xf32> to vector<1x1x1xf32>
    %254 = vector.extract %253[0, 0, 0] : f32 from vector<1x1x1xf32>
    %cst_102 = arith.constant 9.765625E-4 : f32
    %255 = arith.mulf %254, %cst_102 : f32
    %256 = vector.broadcast %255 : f32 to vector<2x512xf32>
    %257 = arith.subf %246, %256 : vector<2x512xf32>
    %258 = arith.mulf %257, %257 : vector<2x512xf32>
    %259 = vector.shape_cast %258 : vector<2x512xf32> to vector<1x2x512xf32>
    %cst_103 = arith.constant dense<0.000000e+00> : vector<1xf32>
    %260 = vector.multi_reduction <add>, %259, %cst_103 [1, 2] : vector<1x2x512xf32> to vector<1xf32>
    %261 = vector.shape_cast %260 : vector<1xf32> to vector<1x1x1xf32>
    %262 = vector.extract %261[0, 0, 0] : f32 from vector<1x1x1xf32>
    %cst_104 = arith.constant 9.765625E-4 : f32
    %263 = arith.mulf %262, %cst_104 : f32
    %cst_105 = arith.constant 9.99999974E-6 : f32
    %264 = arith.addf %263, %cst_105 : f32
    %265 = math.rsqrt %264 : f32
    %266 = arith.mulf %265, %248 : f32
    %267 = vector.broadcast %266 : f32 to vector<2x512xf32>
    %268 = arith.mulf %257, %267 : vector<2x512xf32>
    %269 = vector.broadcast %250 : f32 to vector<2x512xf32>
    %270 = arith.addf %268, %269 : vector<2x512xf32>
    %cst_106 = arith.constant 0.000000e+00 : f32
    %271 = vector.broadcast %cst_106 : f32 to vector<2x512xf32>
    %272 = arith.cmpf ogt, %270, %271 : vector<2x512xf32>
    %cst_107 = arith.constant 2.000000e-01 : f32
    %273 = vector.broadcast %cst_107 : f32 to vector<2x512xf32>
    %274 = arith.mulf %273, %270 : vector<2x512xf32>
    %275 = arith.select %272, %270, %274 : vector<2x512xi1>, vector<2x512xf32>
    %276 = arith.truncf %275 : vector<2x512xf32> to vector<2x512xbf16>
    %c1_108 = arith.constant 1 : index
    %c0_109 = arith.constant 0 : index
    %c0_110 = arith.constant 0 : index
    %277 = vector.load %arg6[%c1_108, %c0_109, %c0_110] : memref<2x512x256xbf16, #tpu.memory_space<vmem>>, vector<1x512x256xbf16>
    %278 = vector.shape_cast %277 : vector<1x512x256xbf16> to vector<512x256xbf16>
    %cst_111 = arith.constant dense<0.000000e+00> : vector<2x256xf32>
    %279 = tpu.matmul %276, %278, %cst_111 {dimension_numbers = #tpu.dot_dimension_numbers<[1], [0], [0], [1], [0, 0, 1, 1], [], []>} : vector<2x512xbf16>, vector<512x256xbf16>, vector<2x256xf32> -> vector<2x256xf32>
    %280 = math.tanh %279 : vector<2x256xf32>
    %c1_112 = arith.constant 1 : index
    %c0_113 = arith.constant 0 : index
    %c0_114 = arith.constant 0 : index
    %281 = vector.load %arg9[%c1_112, %c0_113, %c0_114] : memref<2x2x256xf32, #tpu.memory_space<vmem>>, vector<1x2x256xf32>
    %282 = vector.shape_cast %281 : vector<1x2x256xf32> to vector<2x256xf32>
    %283 = vector.shape_cast %280 : vector<2x256xf32> to vector<1x2x256xf32>
    tpu.vector_store %arg9[%c1_112, %c0_113, %c0_114], %283 {strides = array<i32>} : memref<2x2x256xf32, #tpu.memory_space<vmem>>, vector<1x2x256xf32>,
    return
  }
  func.func @transform_0(%arg0: i32) -> (i32, i32) {
    %c0_i32 = arith.constant 0 : i32
    %c0_i32_0 = arith.constant 0 : i32
    %c0_i32_1 = arith.constant 0 : i32
    return %c0_i32, %c0_i32_0 : i32, i32
  }
  func.func @transform_1(%arg0: i32) -> (i32, i32, i32) {
    %c0_i32 = arith.constant 0 : i32
    %c0_i32_0 = arith.constant 0 : i32
    %c0_i32_1 = arith.constant 0 : i32
    return %arg0, %c0_i32, %c0_i32_0 : i32, i32, i32
  }
  func.func @transform_2(%arg0: i32) -> (i32, i32, i32) {
    %c0_i32 = arith.constant 0 : i32
    %c0_i32_0 = arith.constant 0 : i32
    %c0_i32_1 = arith.constant 0 : i32
    return %arg0, %c0_i32, %c0_i32_0 : i32, i32, i32
  }
  func.func @transform_3(%arg0: i32) -> (i32, i32, i32) {
    %c0_i32 = arith.constant 0 : i32
    %c0_i32_0 = arith.constant 0 : i32
    %c0_i32_1 = arith.constant 0 : i32
    return %arg0, %c0_i32, %c0_i32_0 : i32, i32, i32
  }
  func.func @transform_4(%arg0: i32) -> (i32, i32, i32) {
    %c0_i32 = arith.constant 0 : i32
    %c0_i32_0 = arith.constant 0 : i32
    %c0_i32_1 = arith.constant 0 : i32
    return %arg0, %c0_i32, %c0_i32_0 : i32, i32, i32
  }
  func.func @transform_5(%arg0: i32) -> (i32, i32, i32) {
    %c0_i32 = arith.constant 0 : i32
    %c0_i32_0 = arith.constant 0 : i32
    %c0_i32_1 = arith.constant 0 : i32
    return %arg0, %c0_i32, %c0_i32_0 : i32, i32, i32
  }
  func.func @transform_6(%arg0: i32) -> (i32, i32) {
    %c0_i32 = arith.constant 0 : i32
    %c0_i32_0 = arith.constant 0 : i32
    %c0_i32_1 = arith.constant 0 : i32
    return %c0_i32, %c0_i32_0 : i32, i32
  }
  func.func @transform_7(%arg0: i32) -> (i32, i32) {
    %c0_i32 = arith.constant 0 : i32
    %c0_i32_0 = arith.constant 0 : i32
    %c0_i32_1 = arith.constant 0 : i32
    return %c0_i32, %c0_i32_0 : i32, i32
  }
  func.func @transform_8(%arg0: i32) -> (i32, i32, i32) {
    %c0_i32 = arith.constant 0 : i32
    %c0_i32_0 = arith.constant 0 : i32
    %c0_i32_1 = arith.constant 0 : i32
    return %arg0, %c0_i32, %c0_i32_0 : i32, i32, i32
  }
}

</mosaic_0001>

<bundles_post_ra>
// kernel: tpu_custom_call.1
= control target key start
LH: loop header
LB: loop body
LE: loop exit
PB: predicated region body
PF: predicated region fallthrough
CT: control target
= control target key end

     0   :  { %s16684_s0 = inlined_call_operand.hbm [shape: f32[2,32], index: 0, kind: input, shape index: {}]   ;;  %s16685_s1 = inlined_call_operand.hbm [shape: bf16[4,32,256], index: 1, kind: input, shape index: {}]   ;;  %s16686_s2 = inlined_call_operand.hbm [shape: bf16[4,256,512], index: 2, kind: input, shape index: {}]   ;;  %s16687_s3 = inlined_call_operand.hbm [shape: bf16[4,512,1024], index: 3, kind: input, shape index: {}]   ;;  %s16688_s4 = inlined_call_operand.hbm [shape: bf16[4,1024,512], index: 4, kind: input, shape index: {}]   ;;  %s16689_s5 = inlined_call_operand.hbm [shape: bf16[4,512,256], index: 5, kind: input, shape index: {}]   ;;  %s16690_s6 = inlined_call_operand.hbm [shape: f32[4,4], index: 6, kind: input, shape index: {}]   ;;  %s16691_s7 = inlined_call_operand.hbm [shape: f32[4,4], index: 7, kind: input, shape index: {}]   ;;  %s16692_s8 = inlined_call_operand.hbm [shape: f32[4,2,256], index: 8, kind: output, shape index: {}]  }
   0x1   :  { %16712 = sst [smem:[#allocation32_spill]] %s16684_s0 }
   0x2   :  { %16713 = sst [smem:[#allocation33_spill]] %s16685_s1 }
   0x3   :  { %16714 = sst [smem:[#allocation34_spill]] %s16687_s3 }
   0x4   :  { %16715 = sst [smem:[#allocation35_spill]] %s16692_s8 }
   0x5   :  { %13 = vsyncpa [#allocation3], 0 }
   0x6   :  { %14 = vsyncpa [#allocation7], 0 }
   0x7   :  { %16 = vsyncpa [#allocation7 + $0x1], 0 }
   0x8   :  { %17 = vsyncpa [#allocation10], 0 }
   0x9   :  { %19 = vsyncpa [#allocation10 + $0x1], 0 }
   0xa   :  { %20 = vsyncpa [#allocation13], 0 }
   0xb   :  { %22 = vsyncpa [#allocation13 + $0x1], 0 }
   0xc   :  { %23 = vsyncpa [#allocation5], 0 }
   0xd   :  { %24 = vsyncpa [#allocation16], 0 }
   0xe   :  { %25 = vsyncpa [#allocation4], 0 }
   0xf   :  { %27 = vsyncpa [#allocation4 + $0x1], 0  ;;  %s14568_s27 = smov 0   ;;  %s14570_s28 = smov 0  }
  0x10   :  { %s14572_s29 = smov 0   ;;  %s14574_s30 = smov 0  }
  0x11 LB: > { %16716 = sst [smem:[#allocation25_spill]] %s14491_s27  ;;  %s14589_s9 = sadd.s32 1, %s14503_s30   ;;  %s14503_s30 = sphi %s14574_s30, %s16754_s30   ;;  %s14499_s29 = sphi %s14572_s29, %s16756_s29   ;;  %s14495_s28 = sphi %s14570_s28, %s16758_s28   ;;  %s14491_s27 = sphi %s14568_s27, %s16757_s27  }
  0x12   : > { %16717 = sst [smem:[#allocation26_spill]] %s14499_s29  ;;  %s61_s10 = sadd.s32 1, %s14499_s29 }
  0x13   : > { %16718 = sst [smem:[#allocation27_spill]] %s14589_s9  ;;  %s58_s11 = ssub.s32 %s14503_s30, %s14589_s9 }
  0x14   : > { %p16693_p0 = scmp.ne.s32.totalorder %s14499_s29, %s14495_s28  ;;  %p59_p1 = scmp.eq.s32.totalorder %s58_s11, 0 }
  0x15   : > { %p69_p2 = scmp.eq.s32.totalorder %s14503_s30, 0  ;;  %p12994_p4 = scmp.lt.s32.totalorder %s14503_s30, 2 }
  0x16   : > { %s14600_s12 = scalar_select %p59_p1, %s14499_s29, %s61_s10  }
  0x17   : > { %p70_p5 = por %p69_p2, %p16693_p0  ;;  %s299_s13 = sand.u32 1, %s14503_s30  }
  0x18   : > { %16719 = sst [smem:[#allocation28_spill]] %s14600_s12  ;;  %s14607_s14 = sand.u32 1, %s14499_s29  }
  0x19   : > { %s10897_s15 = sshll.u32 %s14607_s14, 6  ;;  %s12873_s16 = sshll.u32 %s14503_s30, 10 }
  0x1a   : > { %s16720_s1 = sld [smem:[#allocation33_spill]]  ;;  %s303_s20 = scalar_lea.vmem [#allocation6], %s10897_s15 }
  0x1b   : > { %s311_s21 = sshll.u32 %s303_s20, 4  ;;  %p14616_p6 = pnand %p12994_p4, %p70_p5  ;;  %s14620_s21 = int_to_ptr.vmem [resolvable:$true] %s311_s21 }
  0x1c   : > { %s14624_s23 = scalar_lea.sflag [#allocation7], %s299_s13 }
  0x1d   : > { %p14630_p8 = pneg %p14616_p6 }
  0x20   : > { %s14614_s19 = scalar_lea.hbm %s16720_s1, %s12873_s16  ;;  %s14236_s11 = scalar_lea.hbm %s16720_s1, 2048 }
  0x21   : > { %s14231_s24 = scalar_lea.hbm %s14614_s19, 1024  ;;  %p14237_p11 = scmp.lt.s32.totalorder %s14614_s19, %s16720_s1 }
  0x22   : > { %p14232_p7 = scmp.ne.s32.totalorder %s14614_s19, %s14231_s24  ;;  %p14238_p12 = scmp.lt.s32.totalorder %s14236_s11, %s14231_s24 }
  0x24   : > { %p14234_p9 = pnand %p14630_p8, %p14232_p7  ;;  %p14239_p13 = por %p14238_p12, %p14237_p11 }
  0x26   : > { %p14235_p10 = pneg %p14234_p9 }
  0x28   : > { %p14240_p1 = pnand %p14239_p13, %p14235_p10 }
  0x2a   : > { %14243 = shalt.err (!%p14240_p1)
}
  0x2b   : > { %s14244_s17 = scalar_lea.vmem %s14620_s21, 1024  ;;  %s14505_s18 = smov [#allocation6]  }
  0x2c   : > { %p14245_p2 = scmp.ne.s32.totalorder %s14620_s21, %s14244_s17  ;;  %s14249_s20 = sshll.u32 %s14505_s18, 4  ;;  %s14250_s20 = int_to_ptr.vmem [resolvable:$false] %s14249_s20 }
  0x2d   : > { %s14251_s26 = scalar_lea.vmem %s14250_s20, 2048  ;;  %p14252_p7 = scmp.lt.s32.totalorder %s14620_s21, %s14250_s20 }
  0x2e   : > { %p14247_p4 = pnand %p14245_p2, %p14630_p8  ;;  %p14253_p9 = scmp.lt.s32.totalorder %s14251_s26, %s14244_s17 }
  0x30   : > { %p14248_p5 = pneg %p14247_p4  ;;  %p14254_p3 = por %p14253_p9, %p14252_p7 }
  0x32   : > { %p14255_p0 = pnand %p14254_p3, %p14248_p5 }
  0x34   : > { %14258 = shalt.err (!%p14255_p0)
}
  0x35   : > { %s16694_s24 = smov 128   ;;  %s16695_s10 = smov 8  }
  0x36   : > { %12974 = dma.hbm_to_vmem [thread:$0]  (!%p14616_p6), %s14614_s19, 1024, %s14620_s21, %s14624_s23, %s16694_s24, %s16694_s24, %s16695_s10  }
  0x37   : > { %s10905_s11 = sshll.u32 %s14607_s14, 12  ;;  %s12877_s15 = sshll.u32 %s14503_s30, 16 }
  0x38   : > { %s16723_s3 = sld [smem:[#allocation34_spill]]  ;;  %s347_s20 = scalar_lea.vmem [#allocation9], %s10905_s11 }
  0x39   : > { %s355_s26 = sshll.u32 %s347_s20, 4  ;;  %s14671_s1 = scalar_lea.sflag [#allocation10], %s299_s13  ;;  %s14667_s26 = int_to_ptr.vmem [resolvable:$true] %s355_s26 }
  0x3e   : > { %s14663_s18 = scalar_lea.hbm %s16723_s3, %s12877_s15  ;;  %s14264_s17 = scalar_lea.hbm %s16723_s3, 131072 }
  0x3f   : > { %s14259_s19 = scalar_lea.hbm %s14663_s18, 65536  ;;  %p14265_p11 = scmp.lt.s32.totalorder %s14663_s18, %s16723_s3 }
  0x40   : > { %p14260_p0 = scmp.ne.s32.totalorder %s14663_s18, %s14259_s19  ;;  %p14266_p12 = scmp.lt.s32.totalorder %s14264_s17, %s14259_s19 }
  0x42   : > { %p14262_p3 = pnand %p14260_p0, %p14630_p8  ;;  %p14267_p13 = por %p14266_p12, %p14265_p11 }
  0x44   : > { %p14263_p10 = pneg %p14262_p3 }
  0x46   : > { %p14268_p1 = pnand %p14267_p13, %p14263_p10 }
  0x48   : > { %14271 = shalt.err (!%p14268_p1)
}
  0x49   : > { %s14272_s13 = scalar_lea.vmem %s14667_s26, 65536  ;;  %s14508_s20 = smov [#allocation9]  }
  0x4a   : > { %p14273_p2 = scmp.ne.s32.totalorder %s14667_s26, %s14272_s13  ;;  %s14277_s21 = sshll.u32 %s14508_s20, 4  ;;  %s14278_s21 = int_to_ptr.vmem [resolvable:$false] %s14277_s21 }
  0x4b   : > { %s14279_s16 = scalar_lea.vmem %s14278_s21, 131072  ;;  %p14280_p7 = scmp.lt.s32.totalorder %s14667_s26, %s14278_s21 }
  0x4c   : > { %p14275_p4 = pnand %p14273_p2, %p14630_p8  ;;  %p14281_p9 = scmp.lt.s32.totalorder %s14279_s16, %s14272_s13 }
  0x4e   : > { %p14276_p5 = pneg %p14275_p4  ;;  %p14282_p0 = por %p14281_p9, %p14280_p7 }
  0x50   : > { %p14283_p3 = pnand %p14282_p0, %p14276_p5 }
  0x52   : > { %14286 = shalt.err (!%p14283_p3)
}
  0x53   : > { %s14509_s24 = smov 512   ;;  %s14510_s10 = smov 32  }
  0x54   : > { %12980 = dma.hbm_to_vmem [thread:$0]  (!%p14616_p6), %s14663_s18, 65536, %s14667_s26, %s14671_s1, %s14509_s24, %s14509_s24, %s14510_s10  }
  0x55   : > { %s14699_s13 = scalar_lea.hbm %s16688_s4, %s12877_s15  ;;  %s369_s20 = scalar_lea.vmem [#allocation11], %s10905_s11 }
  0x56   : > { %s377_s21 = sshll.u32 %s369_s20, 4  ;;  %s14706_s16 = sadd.s32 4294967295, %s14503_s30   ;;  %s14703_s21 = int_to_ptr.vmem [resolvable:$true] %s377_s21 }
  0x57   : > { %s10891_s3 = sadd.s32 4294967294, %s14503_s30   ;;  %p74_p10 = scmp.ne.s32.totalorder %s14495_s28, %s14491_s27 }
  0x58   : > { %p16700_p11 = scmp.eq.s32.totalorder %s14706_s16, 0  ;;  %p244_p12 = scmp.eq.s32.totalorder %s14706_s16, 1 }
  0x59   : > { %p250_p13 = scmp.eq.s32.totalorder %s10891_s3, 1  ;;  %p10892_p1 = scmp.ge.s32.totalorder %s14503_s30, 1 }
  0x5a   : > { %p14716_p2 = por %p16700_p11, %p74_p10  ;;  %p16726_p4 = scmp.ne.s32.totalorder %s14499_s29, %s14495_s28 }
  0x5b   : > { %p14727_p7 = por %p250_p13, %p74_p10  ;;  %p257_p9 = scmp.lt.s32.totalorder %s14503_s30, 3 }
  0x5c   : > { %s16724_s11 = scalar_select %p14716_p2, 1, 0 }
  0x5d   : > { %p14723_p5 = por %p244_p12, %p16726_p4  ;;  %p14732_p0 = pnand %p10892_p1, %p257_p9 }
  0x5e   : > { %16725 = sst [smem:[#allocation29_spill]] %s16724_s11  ;;  %s14511_s3 = smov [#allocation2]  }
  0x5f   : > { %s16727_s15 = scalar_select %p14723_p5, 1, 0 }
  0x60   : > { %s16729_s18 = scalar_select %p14727_p7, 1, 0 }
  0x61   : > { %16728 = sst [smem:[#allocation30_spill]] %s16727_s15  ;;  %s270_s24 = sshll.u32 %s14511_s3, 4  ;;  %s271_s24 = int_to_ptr.vmem [resolvable:$true] %s270_s24 }
  0x62   : > { %16730 = sst [smem:[#allocation31_spill]] %s16729_s18  ;;  %p12961_p3 = pneg %p14732_p0 }
  0x63   : > { %s16731_s26 = scalar_select %p14732_p0, 1, 0 }
  0x64   : > { %s16701_s10 = sshll.u32 %s14607_s14, 10  ;;  %s16702_s19 = sshll.u32 %s14503_s30, 14 }
  0x65   : > { %p14742_p12 = pnand %p12961_p3, %p16700_p11  ;;  %s14751_s29 = scalar_lea.hbm %s16686_s2, %s16702_s19 }
  0x66   : > { %s325_s9 = scalar_lea.vmem [#allocation8], %s16701_s10  ;;  %s14298_s18 = scalar_lea.vmem %s271_s24, 32 }
  0x67   : > { %s333_s3 = sshll.u32 %s325_s9, 4  ;;  %p14289_p10 = pneg %p14742_p12  ;;  %s14755_s3 = int_to_ptr.vmem [resolvable:$true] %s333_s3 }
  0x68   : > { %p14299_p13 = scmp.ne.s32.totalorder %s271_s24, %s14298_s18  ;;  %p14306_p9 = scmp.lt.s32.totalorder %s271_s24, %s271_s24 }
  0x69   : > { %p14307_p3 = scmp.lt.s32.totalorder %s14298_s18, %s14298_s18 }
  0x6a   : > { %p14301_p1 = pnand %p14299_p13, %p14289_p10 }
  0x6b   : > { %p14308_p11 = por %p14307_p3, %p14306_p9 }
  0x6c   : > { %p14302_p4 = pneg %p14301_p1 }
  0x6e   : > { %p14309_p7 = pnand %p14308_p11, %p14302_p4 }
  0x70   : > { %14312 = shalt.err (!%p14309_p7)
}
  0x71   : > { %s16733_s0 = sld [smem:[#allocation32_spill]]  ;;  %s14512_s9 = smov [#allocation14]  }
  0x72   : > { %12967 = dma.hbm_to_smem (!%p14742_p12), %s16690_s6, 64, %s14512_s9, [#allocation5]  }
  0x73   : > { %s14513_s18 = smov [#allocation15]   ;;  %s14335_s12 = scalar_lea.hbm %s14751_s29, 16384 }
  0x74   : > { %12970 = dma.hbm_to_smem (!%p14742_p12), %s16691_s7, 64, %s14513_s18, [#allocation16]  }
  0x75   : > { %p14336_p11 = scmp.ne.s32.totalorder %s14751_s29, %s14335_s12  ;;  %p14341_p13 = scmp.lt.s32.totalorder %s14751_s29, %s16686_s2 }
  0x77   : > { %12964 = dma.hbm_to_vmem [thread:$0]  (!%p14742_p12), %s16733_s0, 32, %s271_s24, [#allocation3]  }
  0x78   : > { %p14338_p7 = pnand %p14336_p11, %p14630_p8  ;;  %s14340_s24 = scalar_lea.hbm %s16686_s2, 32768 }
  0x79   : > { %p14342_p1 = scmp.lt.s32.totalorder %s14340_s24, %s14335_s12 }
  0x7a   : > { %p14339_p10 = pneg %p14338_p7 }
  0x7b   : > { %p14343_p4 = por %p14342_p1, %p14341_p13 }
  0x7d   : > { %p14344_p9 = pnand %p14343_p4, %p14339_p10 }
  0x7f   : > { %14347 = shalt.err (!%p14344_p9)
}
  0x80   : > { %s14348_s8 = scalar_lea.vmem %s14755_s3, 16384  ;;  %s14514_s27 = smov [#allocation8]  }
  0x81   : > { %p14349_p12 = scmp.ne.s32.totalorder %s14755_s3, %s14348_s8  ;;  %s14353_s15 = sshll.u32 %s14514_s27, 4  ;;  %s14354_s15 = int_to_ptr.vmem [resolvable:$false] %s14353_s15 }
  0x82   : > { %s14355_s10 = scalar_lea.vmem %s14354_s15, 32768  ;;  %p14356_p7 = scmp.lt.s32.totalorder %s14755_s3, %s14354_s15 }
  0x83   : > { %p14351_p3 = pnand %p14349_p12, %p14630_p8  ;;  %p14357_p5 = scmp.lt.s32.totalorder %s14355_s10, %s14348_s8 }
  0x85   : > { %p14352_p11 = pneg %p14351_p3  ;;  %p14358_p2 = por %p14357_p5, %p14356_p7 }
  0x87   : > { %p14359_p0 = pnand %p14358_p2, %p14352_p11 }
  0x89   : > { %14362 = shalt.err (!%p14359_p0)
}
  0x8a   : > { %s14515_s0 = smov 256   ;;  %s14516_s11 = smov 16  }
  0x8b   : > { %12977 = dma.hbm_to_vmem [thread:$0]  (!%p14616_p6), %s14751_s29, 16384, %s14755_s3, %s14624_s23, %s14515_s0, %s14515_s0, %s14516_s11  }
  0x8c   : > { %s14363_s19 = scalar_lea.hbm %s14699_s13, 65536  ;;  %s14368_s18 = scalar_lea.hbm %s16688_s4, 131072 }
  0x8d   : > { %p14364_p10 = scmp.ne.s32.totalorder %s14699_s13, %s14363_s19  ;;  %p14369_p0 = scmp.lt.s32.totalorder %s14699_s13, %s16688_s4 }
  0x8e   : > { %p14370_p13 = scmp.lt.s32.totalorder %s14368_s18, %s14363_s19 }
  0x8f   : > { %p14366_p2 = pnand %p14364_p10, %p14630_p8 }
  0x90   : > { %p14371_p1 = por %p14370_p13, %p14369_p0 }
  0x91   : > { %p14367_p5 = pneg %p14366_p2 }
  0x93   : > { %p14372_p4 = pnand %p14371_p1, %p14367_p5 }
  0x95   : > { %14375 = shalt.err (!%p14372_p4)
}
  0x96   : > { %s14376_s29 = scalar_lea.vmem %s14703_s21, 65536  ;;  %s14517_s23 = smov [#allocation11]  }
  0x97   : > { %p14377_p9 = scmp.ne.s32.totalorder %s14703_s21, %s14376_s29  ;;  %s14381_s3 = sshll.u32 %s14517_s23, 4  ;;  %s14382_s3 = int_to_ptr.vmem [resolvable:$false] %s14381_s3 }
  0x98   : > { %s14383_s24 = scalar_lea.vmem %s14382_s3, 131072  ;;  %p14384_p11 = scmp.lt.s32.totalorder %s14703_s21, %s14382_s3 }
  0x99   : > { %p14379_p12 = pnand %p14377_p9, %p14630_p8  ;;  %p14385_p7 = scmp.lt.s32.totalorder %s14383_s24, %s14376_s29 }
  0x9b   : > { %p14380_p3 = pneg %p14379_p12  ;;  %p14386_p10 = por %p14385_p7, %p14384_p11 }
  0x9d   : > { %p14387_p2 = pnand %p14386_p10, %p14380_p3 }
  0x9f   : > { %14390 = shalt.err (!%p14387_p2)
}
  0xa0   : > { %12983 = dma.hbm_to_vmem [thread:$0]  (!%p14616_p6), %s14699_s13, 65536, %s14703_s21, %s14671_s1, %s14515_s0, %s14515_s0, %s14516_s11  }
  0xa1   : > { %s16734_s8 = sshll.u32 %s14503_s30, 14  ;;  %s16735_s19 = sshll.u32 %s14607_s14, 10 }
  0xa2   : > { %s14827_s10 = scalar_lea.hbm %s16689_s5, %s16734_s8  ;;  %s391_s17 = scalar_lea.vmem [#allocation12], %s16735_s19 }
  0xa3   : > { %s399_s9 = sshll.u32 %s391_s17, 4  ;;  %s388_s18 = scalar_lea.sflag [#allocation13], %s14607_s14  ;;  %s14831_s9 = int_to_ptr.vmem [resolvable:$true] %s399_s9 }
  0xa4   : > { %s14391_s12 = scalar_lea.hbm %s14827_s10, 16384  ;;  %s14396_s21 = scalar_lea.hbm %s16689_s5, 32768 }
  0xa5   : > { %p14392_p5 = scmp.ne.s32.totalorder %s14827_s10, %s14391_s12  ;;  %p14397_p1 = scmp.lt.s32.totalorder %s14827_s10, %s16689_s5 }
  0xa6   : > { %p14398_p4 = scmp.lt.s32.totalorder %s14396_s21, %s14391_s12 }
  0xa7   : > { %p14394_p0 = pnand %p14392_p5, %p14630_p8 }
  0xa8   : > { %p14399_p9 = por %p14398_p4, %p14397_p1 }
  0xa9   : > { %p14395_p13 = pneg %p14394_p0 }
  0xab   : > { %p14400_p12 = pnand %p14399_p9, %p14395_p13 }
  0xad   : > { %14403 = shalt.err (!%p14400_p12)
}
  0xae   : > { %s14404_s14 = scalar_lea.vmem %s14831_s9, 16384  ;;  %s14518_s20 = smov [#allocation12]  }
  0xaf   : > { %p14405_p3 = scmp.ne.s32.totalorder %s14831_s9, %s14404_s14  ;;  %s14409_s29 = sshll.u32 %s14518_s20, 4  ;;  %s14410_s29 = int_to_ptr.vmem [resolvable:$false] %s14409_s29 }
  0xb0   : > { %s14411_s23 = scalar_lea.vmem %s14410_s29, 32768  ;;  %p14412_p10 = scmp.lt.s32.totalorder %s14831_s9, %s14410_s29 }
  0xb1   : > { %p14407_p11 = pnand %p14405_p3, %p14630_p8  ;;  %p14413_p2 = scmp.lt.s32.totalorder %s14411_s23, %s14404_s14 }
  0xb3   : > { %p14408_p7 = pneg %p14407_p11  ;;  %p14414_p5 = por %p14413_p2, %p14412_p10 }
  0xb5   : > { %p14415_p0 = pnand %p14414_p5, %p14408_p7 }
  0xb7   : > { %14418 = shalt.err (!%p14415_p0)
}
  0xb8   : > { %s16736_s3 = smov 8   ;;  %s16737_s24 = smov 128  }
  0xb9   : > { %12986 = dma.hbm_to_vmem [thread:$0]  (!%p14616_p6), %s14827_s10, 16384, %s14831_s9, %s388_s18, %s16737_s24, %s16737_s24, %s16736_s3  }
  0xba   : > { %p16738_p8 = scmp.ne.s32.totalorder %s16731_s26, 0 }
  0xbb   : > { %p16739_p13 = scmp.eq.s32.totalorder (!%p16738_p8), %s14706_s16, 0 }
  0xbc   : > { %411 = sbr.rel (%p16738_p8) target bundleno = 6814 (0x1a9e), region = 52 }
  0xc1   : > { %14462 = dma.done.wait (%p16739_p13), [#allocation3], 32   ;;  %p16740_p1 = pmov %p16739_p13 }
  0xc2   : > { %s16741_s25 = sld [smem:[#allocation29_spill]]  ;;  %s417_s8 = sand.u32 1, %s14706_s16  }
  0xc3   : > { %14464 = vsyncadd (%p16740_p1), [#allocation3], 4294967264  ;;  %s14865_s22 = sand.u32 1, %s14495_s28   ;;  %s418_s15 = scalar_lea.sflag [#allocation7], %s417_s8 }
  0xc4   : > { %s10919_s27 = sshll.u32 %s14865_s22, 6 }
  0xc5   : > { %s14868_s19 = scalar_lea.vmem [#allocation6], %s10919_s27 }
  0xc8   : > { %p16742_p6 = scmp.ne.s32.totalorder %s16741_s25, 0 }
  0xca   : > { %14466 = dma.done.wait (%p16742_p6), %s418_s15, 17408  }
  0xcb   : > { %14468 = vsyncadd (%p16742_p6), %s418_s15, 4294949888  ;;  %s10920_s26 = sshll.u32 %s14865_s22, 10  ;;  %s10921_s10 = sshll.u32 %s14865_s22, 12 }
  0xcc   : > { %s14876_s17 = scalar_lea.vmem [#allocation8], %s10920_s26  ;;  %s436_s9 = scalar_lea.sflag [#allocation10], %s417_s8 }
  0xcd   : > { %s14878_s18 = scalar_lea.vmem [#allocation9], %s10921_s10 }
  0xce   : > { %14470 = dma.done.wait (%p16742_p6), %s436_s9, 131072  }
  0xcf   : > { %14472 = vsyncadd (%p16742_p6), %s436_s9, 4294836224  ;;  %s14884_s12 = scalar_lea.vmem [#allocation11], %s10921_s10  ;;  %s454_s1 = scalar_lea.sflag [#allocation13], %s14865_s22 }
  0xd0   : > { %s14887_s13 = scalar_lea.vmem [#allocation12], %s10920_s26 }
  0xd1   : > { %14474 = dma.done.wait (%p16742_p6), %s454_s1, 16384  }
  0xd2   : > { %14476 = vsyncadd (%p16742_p6), %s454_s1, 4294950912  ;;  %p16743_p4 = pmov %p16740_p1 }
  0xd3   : > { %p16744_p9 = pmov %p16740_p1 }
  0xd4   : > { %14478 = dma.done.wait (%p16743_p4), [#allocation5], 64  }
  0xd5   : > { %14480 = vsyncadd (%p16744_p9), [#allocation5], 4294967232  ;;  %p16745_p12 = pmov %p16740_p1 }
  0xd6   : > { %p16746_p3 = pmov %p16740_p1 }
  0xd7   : > { %14482 = dma.done.wait (%p16745_p12), [#allocation16], 64  }
  0xd8   : > { %14484 = vsyncadd (%p16746_p3), [#allocation16], 4294967232 }
  0xd9   : > { %470 = sfence }
  0xda   : > { %v13043_v0 = vld [vmem:[%s14868_s19 + $0x14] ss:$8 sps:$4 sm:$0xff]   ;;  %v13045_v1 = vld [vmem:[%s14868_s19 + $0x10] ss:$8 sps:$4 sm:$0xff]   ;;  %v14519_v2 = vmov 0   ;;  %vm553_vm0 = vcmask 261120  }
  0xdb   : > { %589 = vmatprep.mubr.bf16.mxu0 %v14519_v2  ;;  %569 = vmatprep.subr.bf16.mxu0 %v13043_v0  ;;  %v13046_v3 = vld [vmem:[%s14868_s19 + $0x4] ss:$8 sps:$4 sm:$0xff]   ;;  %v13048_v4 = vld [vmem:[%s14868_s19] ss:$8 sps:$4 sm:$0xff]   ;;  %v527_v5 = vld [vmem:[#allocation2] sm:$0x3] }
  0xdc   : > { %570 = vmatpush1.bf16.msra.mxu0 %v13045_v1  ;;  %v14906_v6 = vpack.c.bf16 %v527_v5, %v527_v5  ;;  %vm601_vm1 = vcmask 1041408   ;;  %v13049_v29 = vld [vmem:[%s14876_s17 + $0xe4] ss:$16 sps:$4 sm:$0xff]   ;;  %v13051_v30 = vld [vmem:[%s14876_s17 + $0xe8] ss:$16 sps:$4 sm:$0xff]   ;;  %s14987_s29 = sshll.u32 %s14706_s16, 8 }
  0xdd   : > { %571 = vmatprep.subr.bf16.mxu0 %v13046_v3  ;;  %v13053_v31 = vld [vmem:[%s14876_s17 + $0xec] ss:$16 sps:$4 sm:$0xff]   ;;  %1036 = vmatprep.subr.bf16.mxu1 %v13049_v29  ;;  %v13054_v32 = vld [vmem:[%s14876_s17 + $0xe0] ss:$16 sps:$4 sm:$0xff]   ;;  %v13055_v33 = vld [vmem:[%s14876_s17 + $0xc4] ss:$16 sps:$4 sm:$0xff]  }
  0xde   : > { %1037 = vmatpush1.bf16.msra.mxu1 %v13054_v32  ;;  %v13057_v34 = vld [vmem:[%s14876_s17 + $0xc8] ss:$16 sps:$4 sm:$0xff]   ;;  %v13059_v35 = vld [vmem:[%s14876_s17 + $0xcc] ss:$16 sps:$4 sm:$0xff]   ;;  %v13060_v36 = vld [vmem:[%s14876_s17 + $0xc0] ss:$16 sps:$4 sm:$0xff]  }
  0xdf   : > { %v13061_v37 = vld [vmem:[%s14876_s17 + $0xa4] ss:$16 sps:$4 sm:$0xff]   ;;  %1038 = vmatprep.subr.bf16.mxu1 %v13055_v33  ;;  %v13065_v38 = vld [vmem:[%s14876_s17 + $0xac] ss:$16 sps:$4 sm:$0xff]   ;;  %v13063_v39 = vld [vmem:[%s14876_s17 + $0xa8] ss:$16 sps:$4 sm:$0xff]  }
  0xe0   : > { %572 = vmatpush1.bf16.msra.mxu0 %v13048_v4  ;;  %v13066_v40 = vld [vmem:[%s14876_s17 + $0xa0] ss:$16 sps:$4 sm:$0xff]   ;;  %v13071_v41 = vld [vmem:[%s14876_s17 + $0x8c] ss:$16 sps:$4 sm:$0xff]   ;;  %v13067_v42 = vld [vmem:[%s14876_s17 + $0x84] ss:$16 sps:$4 sm:$0xff]  }
  0xe1   : > { %1077 = vmatprep.subr.bf16.mxu0 %v13053_v31  ;;  %v13069_v43 = vld [vmem:[%s14876_s17 + $0x88] ss:$16 sps:$4 sm:$0xff]   ;;  %v13072_v44 = vld [vmem:[%s14876_s17 + $0x80] ss:$16 sps:$4 sm:$0xff]   ;;  %v13077_v45 = vld [vmem:[%s14876_s17 + $0x6c] ss:$16 sps:$4 sm:$0xff]  }
  0xe2   : > { %1039 = vmatpush1.bf16.msra.mxu1 %v13060_v36  ;;  %v13073_v46 = vld [vmem:[%s14876_s17 + $0x64] ss:$16 sps:$4 sm:$0xff]   ;;  %v13075_v47 = vld [vmem:[%s14876_s17 + $0x68] ss:$16 sps:$4 sm:$0xff]   ;;  %v13078_v48 = vld [vmem:[%s14876_s17 + $0x60] ss:$16 sps:$4 sm:$0xff]  }
  0xe3   : > { %10932 = vmatmul.mubr.msk.bf16.vlgmr.msra.gmra.mxu0 %vm553_vm0, %v14906_v6  ;;  %1040 = vmatprep.subr.bf16.mxu1 %v13061_v37  ;;  %v13083_v49 = vld [vmem:[%s14876_s17 + $0x4c] ss:$16 sps:$4 sm:$0xff]   ;;  %v13079_v50 = vld [vmem:[%s14876_s17 + $0x44] ss:$16 sps:$4 sm:$0xff]   ;;  %v13081_v51 = vld [vmem:[%s14876_s17 + $0x48] ss:$16 sps:$4 sm:$0xff]  }
  0xe4   : > { %1078 = vmatpush1.bf16.msra.mxu0 %v13051_v30  ;;  %v13084_v52 = vld [vmem:[%s14876_s17 + $0x40] ss:$16 sps:$4 sm:$0xff]   ;;  %v13089_v53 = vld [vmem:[%s14876_s17 + $0x2c] ss:$16 sps:$4 sm:$0xff]   ;;  %v13085_v54 = vld [vmem:[%s14876_s17 + $0x24] ss:$16 sps:$4 sm:$0xff]  }
  0xe5   : > { %1079 = vmatprep.subr.bf16.mxu0 %v13059_v35  ;;  %v13087_v55 = vld [vmem:[%s14876_s17 + $0x28] ss:$16 sps:$4 sm:$0xff]   ;;  %v13090_v56 = vld [vmem:[%s14876_s17 + $0x20] ss:$16 sps:$4 sm:$0xff]   ;;  %v13095_v57 = vld [vmem:[%s14876_s17 + $0xc] ss:$16 sps:$4 sm:$0xff]  }
  0xe6   : > { %1041 = vmatpush1.bf16.msra.mxu1 %v13066_v40  ;;  %v13091_v58 = vld [vmem:[%s14876_s17 + $0x4] ss:$16 sps:$4 sm:$0xff]   ;;  %v13093_v59 = vld [vmem:[%s14876_s17 + $0x8] ss:$16 sps:$4 sm:$0xff]   ;;  %v13096_v60 = vld [vmem:[%s14876_s17] ss:$16 sps:$4 sm:$0xff]  }
  0xe7   : > { %1042 = vmatprep.subr.bf16.mxu1 %v13067_v42  ;;  %v13101_v61 = vld [vmem:[%s14876_s17 + $0x1ec] ss:$16 sps:$4 sm:$0xff]   ;;  %v13097_v62 = vld [vmem:[%s14876_s17 + $0x1e4] ss:$16 sps:$4 sm:$0xff]   ;;  %v13099_v63 = vld [vmem:[%s14876_s17 + $0x1e8] ss:$16 sps:$4 sm:$0xff]  }
  0xe8   : > { %1080 = vmatpush1.bf16.msra.mxu0 %v13057_v34  ;;  %v13102_v0 = vld [vmem:[%s14876_s17 + $0x1e0] ss:$16 sps:$4 sm:$0xff]   ;;  %v13107_v1 = vld [vmem:[%s14876_s17 + $0x1cc] ss:$16 sps:$4 sm:$0xff]   ;;  %v13103_v3 = vld [vmem:[%s14876_s17 + $0x1c4] ss:$16 sps:$4 sm:$0xff]  }
  0xe9   : > { %1081 = vmatprep.subr.bf16.mxu0 %v13065_v38  ;;  %v13105_v4 = vld [vmem:[%s14876_s17 + $0x1c8] ss:$16 sps:$4 sm:$0xff]   ;;  %v13108_v5 = vld [vmem:[%s14876_s17 + $0x1c0] ss:$16 sps:$4 sm:$0xff]   ;;  %v13133_v30 = vld [vmem:[%s14876_s17 + $0x124] ss:$16 sps:$4 sm:$0xff]  }
  0xea   : > { %1043 = vmatpush1.bf16.msra.mxu1 %v13072_v44  ;;  %v13137_v31 = vld [vmem:[%s14876_s17 + $0x12c] ss:$16 sps:$4 sm:$0xff]   ;;  %v13135_v32 = vld [vmem:[%s14876_s17 + $0x128] ss:$16 sps:$4 sm:$0xff]   ;;  %v13138_v33 = vld [vmem:[%s14876_s17 + $0x120] ss:$16 sps:$4 sm:$0xff]  }
  0xeb   : > { %1044 = vmatprep.subr.bf16.mxu1 %v13073_v46  ;;  %v13139_v36 = vld [vmem:[%s14876_s17 + $0x104] ss:$16 sps:$4 sm:$0xff]   ;;  %v13141_v37 = vld [vmem:[%s14876_s17 + $0x108] ss:$16 sps:$4 sm:$0xff]   ;;  %v13143_v38 = vld [vmem:[%s14876_s17 + $0x10c] ss:$16 sps:$4 sm:$0xff]  }
  0xec   : > { %1082 = vmatpush1.bf16.msra.mxu0 %v13063_v39  ;;  %v13144_v39 = vld [vmem:[%s14876_s17 + $0x100] ss:$16 sps:$4 sm:$0xff]   ;;  %s599_s23 = sld [smem:[#allocation14 + %s14987_s29]]  ;;  %s1118_s9 = sadd.s32 1, %s14987_s29 }
  0xed   : > { %1083 = vmatprep.subr.bf16.mxu0 %v13071_v41  ;;  %s600_s3 = sld [smem:[#allocation15 + %s14987_s29]] }
  0xee   : > { %1045 = vmatpush1.bf16.msra.mxu1 %v13078_v48  ;;  %s1119_s1 = sld [smem:[#allocation14 + %s1118_s9]] }
  0xef   : > { %1046 = vmatprep.subr.bf16.mxu1 %v13079_v50 }
  0xf0   : > { %1084 = vmatpush1.bf16.msra.mxu0 %v13069_v43 }
  0xf1   : > { %1085 = vmatprep.subr.bf16.mxu0 %v13077_v45 }
  0xf2   : > { %1047 = vmatpush1.bf16.msra.mxu1 %v13084_v52 }
  0xf3   : > { %1048 = vmatprep.subr.bf16.mxu1 %v13085_v54  ;;  %v641_v43 = vstv %s600_s3 }
  0xf4   : > { %1086 = vmatpush1.bf16.msra.mxu0 %v13075_v47 }
  0xf5   : > { %1087 = vmatprep.subr.bf16.mxu0 %v13083_v49 }
  0xf6   : > { %1049 = vmatpush1.bf16.msra.mxu1 %v13090_v56 }
  0xf7   : > { %1050 = vmatprep.subr.bf16.mxu1 %v13091_v58 }
  0xf8   : > { %1088 = vmatpush1.bf16.msra.mxu0 %v13081_v51 }
  0xf9   : > { %1089 = vmatprep.subr.bf16.mxu0 %v13089_v53 }
  0xfa   : > { %1051 = vmatpush1.bf16.msra.mxu1 %v13096_v60 }
  0xfb   : > { %1052 = vmatprep.subr.bf16.mxu1 %v13097_v62 }
  0xfc   : > { %1090 = vmatpush1.bf16.msra.mxu0 %v13087_v55 }
  0xfd   : > { %1091 = vmatprep.subr.bf16.mxu0 %v13095_v57 }
  0xfe   : > { %1053 = vmatpush2.bf16.msra.mxu1 %v13102_v0 }
  0xff   : > { %1054 = vmatprep.subr.bf16.mxu1 %v13103_v3 }
 0x100   : > { %1092 = vmatpush1.bf16.msra.mxu0 %v13093_v59 }
 0x101   : > { %1093 = vmatprep.subr.bf16.mxu0 %v13101_v61 }
 0x102   : > { %1055 = vmatpush2.bf16.msra.mxu1 %v13108_v5 }
 0x104   : > { %1094 = vmatpush2.bf16.msra.mxu0 %v13099_v63 }
 0x105   : > { %1095 = vmatprep.subr.bf16.mxu0 %v13107_v1 }
 0x108   : > { %1096 = vmatpush2.bf16.msra.mxu0 %v13105_v4 }
 0x1a3   : > { %v591_v7 = vpop.f32.mrf.mxu0 }
 0x1a4   : > { %v602_v9 = vsel %vm601_vm1, %v591_v7, 0.0 }
 0x1a5   : > { %v593_v8 = vpop.f32.mrf.mxu0 }
 0x1a6   : > { %v603_v10 = vsel %vm601_vm1, %v593_v8, 0.0 }
 0x1a7   : > { %v595_v11 = vpop.f32.mrf.mxu0  ;;  %v604_v12 = vadd.f32 %v603_v10, %v602_v9  ;;  %v13111_v9 = vld [vmem:[%s14876_s17 + $0x1a8] ss:$16 sps:$4 sm:$0xff]   ;;  %v13114_v10 = vld [vmem:[%s14876_s17 + $0x1a0] ss:$16 sps:$4 sm:$0xff]  }
 0x1a8   : > { %v13119_v11 = vld [vmem:[%s14876_s17 + $0x18c] ss:$16 sps:$4 sm:$0xff]  }
 0x1a9   : > { %605 = vadd.xlane.f32.xlu0 %v604_v12  ;;  %v596_v13 = vpop.f32.mrf.mxu0  ;;  %v13115_v12 = vld [vmem:[%s14876_s17 + $0x184] ss:$16 sps:$4 sm:$0xff]  }
 0x1aa   : > { %v13117_v13 = vld [vmem:[%s14876_s17 + $0x188] ss:$16 sps:$4 sm:$0xff]  }
 0x232   : > { %v606_v14 = vpop.xlane.xlu0 %605 }
 0x233   : > { %v607_v15 = vrot.slane %v606_v14, 4 }
 0x235   : > { %v608_v16 = vadd.f32 %v607_v15, %v606_v14  ;;  %v13120_v14 = vld [vmem:[%s14876_s17 + $0x180] ss:$16 sps:$4 sm:$0xff]   ;;  %v13125_v15 = vld [vmem:[%s14876_s17 + $0x16c] ss:$16 sps:$4 sm:$0xff]  }
 0x237   : > { %v609_v17 = vrot.slane %v608_v16, 2 }
 0x239   : > { %v610_v18 = vadd.f32 %v609_v17, %v608_v16  ;;  %v13121_v16 = vld [vmem:[%s14876_s17 + $0x164] ss:$16 sps:$4 sm:$0xff]   ;;  %v13123_v17 = vld [vmem:[%s14876_s17 + $0x168] ss:$16 sps:$4 sm:$0xff]  }
 0x23b   : > { %v611_v19 = vrot.slane %v610_v18, 1 }
 0x23d   : > { %v612_v20 = vadd.f32 %v611_v19, %v610_v18  ;;  %v13126_v18 = vld [vmem:[%s14876_s17 + $0x160] ss:$16 sps:$4 sm:$0xff]  }
 0x23f   : > { %12889 = vpush %v612_v20 }
 0x270   : > { %s12890_s21 = spop %12889 }
 0x271   : > { %s614_s0 = smul.f32 0.001953125, %s12890_s21  ;;  %s1120_s21 = sld [smem:[#allocation15 + %s1118_s9]] }
 0x273   : > { %v615_v21 = vstv %s614_s0 }
 0x274   : > { %v14912_v22 = vsub.f32 %v591_v7, %v615_v21  ;;  %v14914_v23 = vsub.f32 %v593_v8, %v615_v21  ;;  %v13113_v7 = vld [vmem:[%s14876_s17 + $0x1ac] ss:$16 sps:$4 sm:$0xff]   ;;  %v13109_v8 = vld [vmem:[%s14876_s17 + $0x1a4] ss:$16 sps:$4 sm:$0xff]  }
 0x275   : > { %1097 = vmatprep.subr.bf16.mxu0 %v13113_v7  ;;  %1056 = vmatprep.subr.bf16.mxu1 %v13109_v8 }
 0x276   : > { %v618_v24 = vmul.f32 %v14912_v22, %v14912_v22  ;;  %v619_v25 = vmul.f32 %v14914_v23, %v14914_v23  ;;  %1098 = vmatpush2.bf16.msra.mxu0 %v13111_v9  ;;  %1057 = vmatpush2.bf16.msra.mxu1 %v13114_v10 }
 0x277   : > { %1099 = vmatprep.subr.bf16.mxu0 %v13119_v11  ;;  %1058 = vmatprep.subr.bf16.mxu1 %v13115_v12 }
 0x278   : > { %v620_v26 = vsel %vm601_vm1, %v618_v24, 0.0  ;;  %v621_v27 = vsel %vm601_vm1, %v619_v25, 0.0  ;;  %v13127_v24 = vld [vmem:[%s14876_s17 + $0x144] ss:$16 sps:$4 sm:$0xff]   ;;  %v13131_v25 = vld [vmem:[%s14876_s17 + $0x14c] ss:$16 sps:$4 sm:$0xff]  }
 0x279   : > { %v622_v28 = vadd.f32 %v621_v27, %v620_v26  ;;  %v13129_v26 = vld [vmem:[%s14876_s17 + $0x148] ss:$16 sps:$4 sm:$0xff]   ;;  %v13132_v27 = vld [vmem:[%s14876_s17 + $0x140] ss:$16 sps:$4 sm:$0xff]  }
 0x27a   : > { %1100 = vmatpush2.bf16.msra.mxu0 %v13117_v13  ;;  %1059 = vmatpush2.bf16.msra.mxu1 %v13120_v14 }
 0x27b   : > { %623 = vadd.xlane.f32.xlu0 %v622_v28  ;;  %1101 = vmatprep.subr.bf16.mxu0 %v13125_v15 }
 0x27c   : > { %1060 = vmatprep.subr.bf16.mxu1 %v13121_v16 }
 0x27e   : > { %1102 = vmatpush2.bf16.msra.mxu0 %v13123_v17  ;;  %1061 = vmatpush2.bf16.msra.mxu1 %v13126_v18 }
 0x27f   : > { %1062 = vmatprep.subr.bf16.mxu1 %v13127_v24  ;;  %1103 = vmatprep.subr.bf16.mxu0 %v13131_v25 }
 0x282   : > { %1063 = vmatpush2.bf16.msra.mxu1 %v13132_v27  ;;  %1104 = vmatpush2.bf16.msra.mxu0 %v13129_v26 }
 0x283   : > { %1064 = vmatprep.subr.bf16.mxu1 %v13133_v30  ;;  %1105 = vmatprep.subr.bf16.mxu0 %v13137_v31  ;;  %v1251_v30 = vld [vmem:[%s14878_s18 + $0x1c0] sm:$0xff] }
 0x284   : > { %v1255_v31 = vld [vmem:[%s14878_s18 + $0x1e0] sm:$0xff] }
 0x286   : > { %1065 = vmatpush2.bf16.msra.mxu1 %v13138_v33  ;;  %1106 = vmatpush2.bf16.msra.mxu0 %v13135_v32  ;;  %v1379_v32 = vld [vmem:[%s14878_s18 + $0x5c0] sm:$0xff]  ;;  %v11054_v33 = vcombine.low %v1251_v30, %v1255_v31 }
 0x287   : > { %1066 = vmatprep.subr.bf16.mxu1 %v13139_v36  ;;  %1107 = vmatprep.subr.bf16.mxu0 %v13143_v38  ;;  %v1243_v38 = vld [vmem:[%s14878_s18 + $0x180] sm:$0xff] }
 0x28a   : > { %1067 = vmatpush2.bf16.msra.mxu1 %v13144_v39  ;;  %1108 = vmatpush2.bf16.msra.mxu0 %v13141_v37  ;;  %v1247_v39 = vld [vmem:[%s14878_s18 + $0x1a0] sm:$0xff] }
 0x304   : > { %v624_v19 = vpop.xlane.xlu0 %623 }
 0x305   : > { %v625_v20 = vrot.slane %v624_v19, 4 }
 0x307   : > { %v626_v21 = vadd.f32 %v625_v20, %v624_v19 }
 0x309   : > { %v627_v28 = vrot.slane %v626_v21, 2 }
 0x30b   : > { %v628_v29 = vadd.f32 %v627_v28, %v626_v21 }
 0x30d   : > { %v629_v34 = vrot.slane %v628_v29, 1 }
 0x30f   : > { %v630_v35 = vadd.f32 %v629_v34, %v628_v29  ;;  %v11055_v34 = vcombine.high %v1251_v30, %v1255_v31 }
 0x311   : > { %12891 = vpush %v630_v35  ;;  %v1383_v35 = vld [vmem:[%s14878_s18 + $0x5e0] sm:$0xff]  ;;  %2731 = vmatprep.subr.bf16.mxu1 %v11055_v34 }
 0x312   : > { %v11182_v36 = vcombine.low %v1379_v32, %v1383_v35  ;;  %v11183_v37 = vcombine.high %v1379_v32, %v1383_v35  ;;  %v1315_v34 = vld [vmem:[%s14878_s18 + $0x3c0] sm:$0xff] }
 0x313   : > { %v1319_v35 = vld [vmem:[%s14878_s18 + $0x3e0] sm:$0xff] }
 0x314   : > { %2772 = vmatprep.subr.bf16.mxu0 %v11183_v37  ;;  %v1447_v37 = vld [vmem:[%s14878_s18 + $0x7e0] sm:$0xff] }
 0x342   : > { %s12892_s11 = spop %12891 }
 0x343   : > { %s632_s14 = smul.f32 0.001953125, %s12892_s11 }
 0x345   : > { %s633_s20 = sadd.f32 1e-05, %s632_s14 }
 0x347   : > { %v634_v40 = vstv %s633_s20 }
 0x348   : > { %14207 = vrsqrt.f32 %v634_v40  ;;  %v1371_v40 = vld [vmem:[%s14878_s18 + $0x580] sm:$0xff] }
 0x355   : > { %v14208_v41 = vpop.eup %14207 }
 0x356   : > { %12893 = vpush %v14208_v41  ;;  %v11046_v41 = vcombine.low %v1243_v38, %v1247_v39 }
 0x387   : > { %s12894_s24 = spop %12893 }
 0x388   : > { %s637_s25 = smul.f32 %s12894_s24, %s599_s23 }
 0x38a   : > { %v638_v42 = vstv %s637_s25  ;;  %s3059_s25 = sadd.s32 2, %s14987_s29 }
 0x38b   : > { %v639_v44 = vmul.f32 %v638_v42, %v14912_v22  ;;  %v640_v45 = vmul.f32 %v638_v42, %v14914_v23  ;;  %v11047_v42 = vcombine.high %v1243_v38, %v1247_v39 }
 0x38d   : > { %v642_v46 = vadd.f32 %v641_v43, %v639_v44  ;;  %v643_v47 = vadd.f32 %v641_v43, %v640_v45  ;;  %v1375_v43 = vld [vmem:[%s14878_s18 + $0x5a0] sm:$0xff] }
 0x38e   : > { %v1235_v44 = vld [vmem:[%s14878_s18 + $0x140] sm:$0xff] }
 0x38f   : > { %v646_v48 = vmul.f32 0.2, %v642_v46  ;;  %vm645_vm2 = vcmp.gt.f32.partialorder %v643_v47, 0.0  ;;  %v647_v49 = vmul.f32 0.2, %v643_v47  ;;  %vm644_vm3 = vcmp.gt.f32.partialorder %v642_v46, 0.0 }
 0x390   : > { %v1239_v45 = vld [vmem:[%s14878_s18 + $0x160] sm:$0xff] }
 0x391   : > { %v649_v50 = vsel %vm645_vm2, %v643_v47, %v647_v49  ;;  %v648_v51 = vsel %vm644_vm3, %v642_v46, %v646_v48  ;;  %v11174_v46 = vcombine.low %v1371_v40, %v1375_v43  ;;  %v11175_v47 = vcombine.high %v1371_v40, %v1375_v43  ;;  %v1363_v49 = vld [vmem:[%s14878_s18 + $0x540] sm:$0xff] }
 0x392   : > { %v651_v52 = vpack.c.bf16 %v649_v50, %v649_v50  ;;  %v650_v53 = vpack.c.bf16 %v648_v51, %v648_v51  ;;  %v11039_v48 = vcombine.high %v1235_v44, %v1239_v45  ;;  %v1367_v50 = vld [vmem:[%s14878_s18 + $0x560] sm:$0xff]  ;;  %v11119_v40 = vcombine.high %v1315_v34, %v1319_v35 }
 0x393   : > { %v1227_v51 = vld [vmem:[%s14878_s18 + $0x100] sm:$0xff] }
 0x394   : > { %1068 = vmatprep.mubr.bf16.mxu1 %v651_v52  ;;  %1109 = vmatprep.mubr.bf16.mxu0 %v651_v52  ;;  %v11167_v52 = vcombine.high %v1363_v49, %v1367_v50  ;;  %v1311_v43 = vld [vmem:[%s14878_s18 + $0x3a0] sm:$0xff] }
 0x395   : > { %1069 = vmatmul.mubr.bf16.vlgmr.msra.gmra.mxu1 %v650_v53  ;;  %1110 = vmatmul.mubr.bf16.vlgmr.msra.gmra.mxu0 %v650_v53  ;;  %v1231_v53 = vld [vmem:[%s14878_s18 + $0x120] sm:$0xff] }
 0x396   : > { %2732 = vmatpush1.bf16.msra.mxu1 %v11054_v33  ;;  %2773 = vmatpush1.bf16.msra.mxu0 %v11182_v36  ;;  %v1443_v36 = vld [vmem:[%s14878_s18 + $0x7c0] sm:$0xff] }
 0x397   : > { %2733 = vmatprep.subr.bf16.mxu1 %v11047_v42  ;;  %2774 = vmatprep.subr.bf16.mxu0 %v11175_v47  ;;  %v1307_v42 = vld [vmem:[%s14878_s18 + $0x380] sm:$0xff]  ;;  %v11246_v47 = vcombine.low %v1443_v36, %v1447_v37 }
 0x39a   : > { %2734 = vmatpush1.bf16.msra.mxu1 %v11046_v41  ;;  %2775 = vmatpush1.bf16.msra.mxu0 %v11174_v46  ;;  %v11247_v41 = vcombine.high %v1443_v36, %v1447_v37  ;;  %v11118_v46 = vcombine.low %v1315_v34, %v1319_v35  ;;  %v1399_v35 = vld [vmem:[%s14878_s18 + $0x660] sm:$0xff] }
 0x39b   : > { %2735 = vmatprep.subr.bf16.mxu1 %v11039_v48  ;;  %2776 = vmatprep.subr.bf16.mxu0 %v11167_v52  ;;  %v11111_v48 = vcombine.high %v1307_v42, %v1311_v43  ;;  %v1427_v52 = vld [vmem:[%s14878_s18 + $0x740] sm:$0xff] }
 0x455   : > { %v1070_v54 = vpop.f32.mrf.mxu1  ;;  %v1111_v55 = vpop.f32.mrf.mxu0 }
 0x456   : > { %v1121_v23 = vsel %vm601_vm1, %v1070_v54, 0.0  ;;  %v1124_v61 = vsel %vm601_vm1, %v1111_v55, 0.0 }
 0x457   : > { %v1072_v56 = vpop.f32.mrf.mxu1  ;;  %v1113_v22 = vpop.f32.mrf.mxu0 }
 0x458   : > { %v1122_v57 = vsel %vm601_vm1, %v1072_v56, 0.0  ;;  %v1126_v1 = vsel %vm601_vm1, %v1113_v22, 0.0 }
 0x459   : > { %v1123_v58 = vadd.f32 %v1122_v57, %v1121_v23  ;;  %v1074_v59 = vpop.f32.mrf.mxu1  ;;  %v1115_v60 = vpop.f32.mrf.mxu0  ;;  %v11031_v23 = vcombine.high %v1227_v51, %v1231_v53 }
 0x45a   : > { %v1223_v59 = vld [vmem:[%s14878_s18 + $0xe0] sm:$0xff] }
 0x45b   : > { %v1075_v62 = vpop.f32.mrf.mxu1  ;;  %v1116_v63 = vpop.f32.mrf.mxu0  ;;  %v1125_v0 = vadd.f32 %v1124_v61, %v1123_v58  ;;  %v1219_v58 = vld [vmem:[%s14878_s18 + $0xc0] sm:$0xff] }
 0x45c   : > { %v1347_v60 = vld [vmem:[%s14878_s18 + $0x4c0] sm:$0xff]  ;;  %v11030_v62 = vcombine.low %v1227_v51, %v1231_v53 }
 0x45d   : > { %v1127_v3 = vadd.f32 %v1126_v1, %v1125_v0  ;;  %v1351_v61 = vld [vmem:[%s14878_s18 + $0x4e0] sm:$0xff]  ;;  %v11023_v0 = vcombine.high %v1219_v58, %v1223_v59 }
 0x45e   : > { %v11151_v1 = vcombine.high %v1347_v60, %v1351_v61  ;;  %v1303_v51 = vld [vmem:[%s14878_s18 + $0x360] sm:$0xff] }
 0x45f   : > { %1128 = vadd.xlane.f32.xlu1 %v1127_v3  ;;  %v1211_v3 = vld [vmem:[%s14878_s18 + $0x80] sm:$0xff] }
 0x460   : > { %v1431_v53 = vld [vmem:[%s14878_s18 + $0x760] sm:$0xff] }
 0x4e8   : > { %v1129_v4 = vpop.xlane.xlu1 %1128 }
 0x4e9   : > { %v1130_v5 = vrot.slane %v1129_v4, 4 }
 0x4eb   : > { %v1131_v7 = vadd.f32 %v1130_v5, %v1129_v4  ;;  %v1215_v4 = vld [vmem:[%s14878_s18 + $0xa0] sm:$0xff] }
 0x4ec   : > { %v1339_v5 = vld [vmem:[%s14878_s18 + $0x480] sm:$0xff] }
 0x4ed   : > { %v1132_v8 = vrot.slane %v1131_v7, 2 }
 0x4ef   : > { %v1133_v9 = vadd.f32 %v1132_v8, %v1131_v7  ;;  %v1343_v7 = vld [vmem:[%s14878_s18 + $0x4a0] sm:$0xff]  ;;  %v11022_v8 = vcombine.low %v1219_v58, %v1223_v59 }
 0x4f0   : > { %v1419_v58 = vld [vmem:[%s14878_s18 + $0x700] sm:$0xff] }
 0x4f1   : > { %v1134_v10 = vrot.slane %v1133_v9, 1  ;;  %v1423_v59 = vld [vmem:[%s14878_s18 + $0x720] sm:$0xff] }
 0x4f3   : > { %v1135_v11 = vadd.f32 %v1134_v10, %v1133_v9  ;;  %v11150_v9 = vcombine.low %v1347_v60, %v1351_v61  ;;  %v11015_v10 = vcombine.high %v1211_v3, %v1215_v4  ;;  %v11230_v61 = vcombine.low %v1427_v52, %v1431_v53 }
 0x4f5   : > { %12895 = vpush %v1135_v11  ;;  %v11143_v11 = vcombine.high %v1339_v5, %v1343_v7 }
 0x526   : > { %s12896_s8 = spop %12895 }
 0x527   : > { %s1137_s27 = smul.f32 0.0009765625, %s12896_s8  ;;  %s3060_s8 = sld [smem:[#allocation14 + %s3059_s25]] }
 0x529   : > { %v1138_v12 = vstv %s1137_s27  ;;  %s3061_s27 = sld [smem:[#allocation15 + %s3059_s25]] }
 0x52a   : > { %v14997_v13 = vsub.f32 %v1070_v54, %v1138_v12  ;;  %v14999_v14 = vsub.f32 %v1072_v56, %v1138_v12  ;;  %v15001_v15 = vsub.f32 %v1111_v55, %v1138_v12  ;;  %v15003_v16 = vsub.f32 %v1113_v22, %v1138_v12  ;;  %v1355_v54 = vld [vmem:[%s14878_s18 + $0x500] sm:$0xff] }
 0x52b   : > { %v1359_v55 = vld [vmem:[%s14878_s18 + $0x520] sm:$0xff]  ;;  %v11038_v56 = vcombine.low %v1235_v44, %v1239_v45  ;;  %v11166_v22 = vcombine.low %v1363_v49, %v1367_v50 }
 0x52c   : > { %v1143_v17 = vmul.f32 %v14997_v13, %v14997_v13  ;;  %v1144_v18 = vmul.f32 %v14999_v14, %v14999_v14  ;;  %v1145_v19 = vmul.f32 %v15001_v15, %v15001_v15  ;;  %v1146_v20 = vmul.f32 %v15003_v16, %v15003_v16  ;;  %v1203_v12 = vld [vmem:[%s14878_s18 + $0x40] sm:$0xff] }
 0x52d   : > { %v11159_v57 = vcombine.high %v1355_v54, %v1359_v55  ;;  %2736 = vmatpush1.bf16.msra.mxu1 %v11038_v56  ;;  %2777 = vmatpush1.bf16.msra.mxu0 %v11166_v22  ;;  %v11158_v63 = vcombine.low %v1355_v54, %v1359_v55  ;;  %v1435_v44 = vld [vmem:[%s14878_s18 + $0x780] sm:$0xff]  ;;  %v11110_v54 = vcombine.low %v1307_v42, %v1311_v43 }
 0x52e   : > { %v1147_v21 = vsel %vm601_vm1, %v1143_v17, 0.0  ;;  %v1148_v24 = vsel %vm601_vm1, %v1144_v18, 0.0  ;;  %v1150_v26 = vsel %vm601_vm1, %v1145_v19, 0.0  ;;  %v1152_v28 = vsel %vm601_vm1, %v1146_v20, 0.0  ;;  %2737 = vmatprep.subr.bf16.mxu1 %v11031_v23  ;;  %v1207_v17 = vld [vmem:[%s14878_s18 + $0x60] sm:$0xff] }
 0x52f   : > { %v1149_v25 = vadd.f32 %v1148_v24, %v1147_v21  ;;  %2778 = vmatprep.subr.bf16.mxu0 %v11159_v57  ;;  %v1331_v18 = vld [vmem:[%s14878_s18 + $0x440] sm:$0xff]  ;;  %v11014_v20 = vcombine.low %v1211_v3, %v1215_v4  ;;  %v11142_v21 = vcombine.low %v1339_v5, %v1343_v7  ;;  %v11007_v24 = vcombine.high %v1203_v12, %v1207_v17 }
 0x530   : > { %v1335_v19 = vld [vmem:[%s14878_s18 + $0x460] sm:$0xff]  ;;  %v11006_v30 = vcombine.low %v1203_v12, %v1207_v17  ;;  %v11231_v22 = vcombine.high %v1427_v52, %v1431_v53  ;;  %v11222_v7 = vcombine.low %v1419_v58, %v1423_v59  ;;  %v1384_v53 = vld [vmem:[%s14878_s18 + $0x5e8] sm:$0xff] }
 0x531   : > { %v1151_v27 = vadd.f32 %v1150_v26, %v1149_v25  ;;  %2738 = vmatpush1.bf16.msra.mxu1 %v11030_v62  ;;  %2779 = vmatpush1.bf16.msra.mxu0 %v11158_v63  ;;  %v11135_v25 = vcombine.high %v1331_v18, %v1335_v19  ;;  %v1195_v26 = vld [vmem:[%s14878_s18] sm:$0xff]  ;;  %v11134_v31 = vcombine.low %v1331_v18, %v1335_v19 }
 0x532   : > { %2739 = vmatprep.subr.bf16.mxu1 %v11023_v0  ;;  %2780 = vmatprep.subr.bf16.mxu0 %v11151_v1  ;;  %v1439_v45 = vld [vmem:[%s14878_s18 + $0x7a0] sm:$0xff]  ;;  %v11223_v63 = vcombine.high %v1419_v58, %v1423_v59  ;;  %v1174_v58 = vstv %s1120_s21 }
 0x533   : > { %v1153_v29 = vadd.f32 %v1152_v28, %v1151_v27  ;;  %v1199_v27 = vld [vmem:[%s14878_s18 + $0x20] sm:$0xff]  ;;  %v11239_v49 = vcombine.high %v1435_v44, %v1439_v45  ;;  %v11238_v55 = vcombine.low %v1435_v44, %v1439_v45 }
 0x534   : > { %v1323_v28 = vld [vmem:[%s14878_s18 + $0x400] sm:$0xff]  ;;  %v10999_v32 = vcombine.high %v1195_v26, %v1199_v27  ;;  %v10998_v38 = vcombine.low %v1195_v26, %v1199_v27 }
 0x535   : > { %1154 = vadd.xlane.f32.xlu1 %v1153_v29  ;;  %2740 = vmatpush1.bf16.msra.mxu1 %v11022_v8  ;;  %v1327_v29 = vld [vmem:[%s14878_s18 + $0x420] sm:$0xff] }
 0x536   : > { %2781 = vmatpush1.bf16.msra.mxu0 %v11150_v9  ;;  %2741 = vmatprep.subr.bf16.mxu1 %v11015_v10  ;;  %v11127_v33 = vcombine.high %v1323_v28, %v1327_v29  ;;  %v11126_v39 = vcombine.low %v1323_v28, %v1327_v29  ;;  %v1299_v50 = vld [vmem:[%s14878_s18 + $0x340] sm:$0xff] }
 0x537   : > { %2782 = vmatprep.subr.bf16.mxu0 %v11143_v11  ;;  %v11103_v56 = vcombine.high %v1299_v50, %v1303_v51  ;;  %v1291_v23 = vld [vmem:[%s14878_s18 + $0x300] sm:$0xff]  ;;  %v11102_v60 = vcombine.low %v1299_v50, %v1303_v51  ;;  %v1256_v50 = vld [vmem:[%s14878_s18 + $0x1e8] sm:$0xff] }
 0x538   : > { %v1295_v57 = vld [vmem:[%s14878_s18 + $0x320] sm:$0xff]  ;;  %v15086_v51 = vld [vmem:[%s14878_s18 + $0x5c8] sm:$0xff] }
 0x539   : > { %2742 = vmatpush1.bf16.msra.mxu1 %v11014_v20  ;;  %v11095_v62 = vcombine.high %v1291_v23, %v1295_v57  ;;  %v1283_v0 = vld [vmem:[%s14878_s18 + $0x2c0] sm:$0xff]  ;;  %v11094_v5 = vcombine.low %v1291_v23, %v1295_v57 }
 0x53a   : > { %2783 = vmatpush1.bf16.msra.mxu0 %v11142_v21  ;;  %2743 = vmatprep.subr.bf16.mxu1 %v11007_v24  ;;  %v1287_v1 = vld [vmem:[%s14878_s18 + $0x2e0] sm:$0xff] }
 0x53b   : > { %2784 = vmatprep.subr.bf16.mxu0 %v11135_v25  ;;  %v1411_v3 = vld [vmem:[%s14878_s18 + $0x6c0] sm:$0xff]  ;;  %v11087_v8 = vcombine.high %v1283_v0, %v1287_v1  ;;  %v11086_v10 = vcombine.low %v1283_v0, %v1287_v1 }
 0x53c   : > { %v1415_v4 = vld [vmem:[%s14878_s18 + $0x6e0] sm:$0xff] }
 0x53d   : > { %2744 = vmatpush1.bf16.msra.mxu1 %v11006_v30  ;;  %v11215_v9 = vcombine.high %v1411_v3, %v1415_v4  ;;  %v11214_v11 = vcombine.low %v1411_v3, %v1415_v4  ;;  %v1275_v18 = vld [vmem:[%s14878_s18 + $0x280] sm:$0xff] }
 0x53e   : > { %2785 = vmatpush1.bf16.msra.mxu0 %v11134_v31  ;;  %2745 = vmatprep.subr.bf16.mxu1 %v10999_v32  ;;  %v1279_v19 = vld [vmem:[%s14878_s18 + $0x2a0] sm:$0xff] }
 0x53f   : > { %2786 = vmatprep.subr.bf16.mxu0 %v11127_v33  ;;  %v1403_v20 = vld [vmem:[%s14878_s18 + $0x680] sm:$0xff]  ;;  %v11079_v24 = vcombine.high %v1275_v18, %v1279_v19  ;;  %v11078_v26 = vcombine.low %v1275_v18, %v1279_v19  ;;  %v1376_v18 = vld [vmem:[%s14878_s18 + $0x5a8] sm:$0xff] }
 0x540   : > { %v1407_v25 = vld [vmem:[%s14878_s18 + $0x6a0] sm:$0xff] }
 0x541   : > { %2746 = vmatpush1.bf16.msra.mxu1 %v10998_v38  ;;  %v11206_v27 = vcombine.low %v1403_v20, %v1407_v25  ;;  %v11207_v28 = vcombine.high %v1403_v20, %v1407_v25  ;;  %v1267_v30 = vld [vmem:[%s14878_s18 + $0x240] sm:$0xff]  ;;  %v1240_v25 = vld [vmem:[%s14878_s18 + $0x168] sm:$0xff] }
 0x542   : > { %2787 = vmatpush1.bf16.msra.mxu0 %v11126_v39  ;;  %2747 = vmatprep.subr.bf16.mxu1 %v11119_v40  ;;  %v1271_v31 = vld [vmem:[%s14878_s18 + $0x260] sm:$0xff] }
 0x543   : > { %2788 = vmatprep.subr.bf16.mxu0 %v11247_v41  ;;  %v1395_v32 = vld [vmem:[%s14878_s18 + $0x640] sm:$0xff]  ;;  %v11071_v34 = vcombine.high %v1267_v30, %v1271_v31  ;;  %v11070_v36 = vcombine.low %v1267_v30, %v1271_v31 }
 0x544   : > { %v11198_v37 = vcombine.low %v1395_v32, %v1399_v35  ;;  %v11199_v38 = vcombine.high %v1395_v32, %v1399_v35  ;;  %v1259_v40 = vld [vmem:[%s14878_s18 + $0x200] sm:$0xff]  ;;  %v1356_v35 = vld [vmem:[%s14878_s18 + $0x508] sm:$0xff] }
 0x545   : > { %2748 = vmatpush2.bf16.msra.mxu1 %v11118_v46  ;;  %v1263_v41 = vld [vmem:[%s14878_s18 + $0x220] sm:$0xff] }
 0x546   : > { %2789 = vmatpush2.bf16.msra.mxu0 %v11246_v47  ;;  %2749 = vmatprep.subr.bf16.mxu1 %v11111_v48  ;;  %v1387_v42 = vld [vmem:[%s14878_s18 + $0x600] sm:$0xff]  ;;  %v11063_v44 = vcombine.high %v1259_v40, %v1263_v41  ;;  %v11062_v46 = vcombine.low %v1259_v40, %v1263_v41  ;;  %v1220_v41 = vld [vmem:[%s14878_s18 + $0xc8] sm:$0xff] }
 0x547   : > { %2790 = vmatprep.subr.bf16.mxu0 %v11239_v49  ;;  %v1391_v45 = vld [vmem:[%s14878_s18 + $0x620] sm:$0xff]  ;;  %v15082_v49 = vld [vmem:[%s14878_s18 + $0x1c8] sm:$0xff] }
 0x548   : > { %v11190_v47 = vcombine.low %v1387_v42, %v1391_v45  ;;  %v11191_v48 = vcombine.high %v1387_v42, %v1391_v45  ;;  %v11057_v52 = vcombine.high %v15082_v49, %v1256_v50  ;;  %v1224_v42 = vld [vmem:[%s14878_s18 + $0xe8] sm:$0xff] }
 0x549   : > { %2750 = vmatpush2.bf16.msra.mxu1 %v11110_v54  ;;  %v11056_v54 = vcombine.low %v15082_v49, %v1256_v50  ;;  %v1212_v49 = vld [vmem:[%s14878_s18 + $0x88] sm:$0xff] }
 0x54a   : > { %2791 = vmatpush2.bf16.msra.mxu0 %v11238_v55  ;;  %2751 = vmatprep.subr.bf16.mxu1 %v11103_v56  ;;  %v11184_v55 = vcombine.low %v15086_v51, %v1384_v53  ;;  %v11185_v56 = vcombine.high %v15086_v51, %v1384_v53  ;;  %v1216_v50 = vld [vmem:[%s14878_s18 + $0xa8] sm:$0xff]  ;;  %v11024_v53 = vcombine.low %v1220_v41, %v1224_v42 }
 0x54b   : > { %2792 = vmatprep.subr.bf16.mxu0 %v11231_v22  ;;  %v1340_v51 = vld [vmem:[%s14878_s18 + $0x488] sm:$0xff] }
 0x54d   : > { %2752 = vmatpush2.bf16.msra.mxu1 %v11102_v60 }
 0x54e   : > { %2793 = vmatpush2.bf16.msra.mxu0 %v11230_v61  ;;  %2753 = vmatprep.subr.bf16.mxu1 %v11095_v62 }
 0x54f   : > { %2794 = vmatprep.subr.bf16.mxu0 %v11223_v63 }
 0x551   : > { %2754 = vmatpush2.bf16.msra.mxu1 %v11094_v5 }
 0x552   : > { %2795 = vmatpush2.bf16.msra.mxu0 %v11222_v7  ;;  %2755 = vmatprep.subr.bf16.mxu1 %v11087_v8 }
 0x553   : > { %2796 = vmatprep.subr.bf16.mxu0 %v11215_v9 }
 0x555   : > { %2756 = vmatpush2.bf16.msra.mxu1 %v11086_v10 }
 0x556   : > { %2797 = vmatpush2.bf16.msra.mxu0 %v11214_v11  ;;  %2757 = vmatprep.subr.bf16.mxu1 %v11079_v24  ;;  %v1236_v24 = vld [vmem:[%s14878_s18 + $0x148] sm:$0xff] }
 0x557   : > { %2798 = vmatprep.subr.bf16.mxu0 %v11207_v28  ;;  %v1368_v28 = vld [vmem:[%s14878_s18 + $0x568] sm:$0xff]  ;;  %v11041_v31 = vcombine.high %v1236_v24, %v1240_v25 }
 0x559   : > { %2758 = vmatpush2.bf16.msra.mxu1 %v11078_v26 }
 0x55a   : > { %2799 = vmatpush2.bf16.msra.mxu0 %v11206_v27  ;;  %2759 = vmatprep.subr.bf16.mxu1 %v11071_v34  ;;  %v1364_v27 = vld [vmem:[%s14878_s18 + $0x548] sm:$0xff] }
 0x55b   : > { %2800 = vmatprep.subr.bf16.mxu0 %v11199_v38  ;;  %v11169_v32 = vcombine.high %v1364_v27, %v1368_v28  ;;  %v1232_v34 = vld [vmem:[%s14878_s18 + $0x128] sm:$0xff]  ;;  %v11168_v38 = vcombine.low %v1364_v27, %v1368_v28 }
 0x55d   : > { %2760 = vmatpush2.bf16.msra.mxu1 %v11070_v36  ;;  %v1360_v36 = vld [vmem:[%s14878_s18 + $0x528] sm:$0xff] }
 0x55e   : > { %2801 = vmatpush2.bf16.msra.mxu0 %v11198_v37  ;;  %2761 = vmatprep.subr.bf16.mxu1 %v11063_v44  ;;  %v11040_v37 = vcombine.low %v1236_v24, %v1240_v25  ;;  %v11161_v40 = vcombine.high %v1356_v35, %v1360_v36  ;;  %v1352_v44 = vld [vmem:[%s14878_s18 + $0x4e8] sm:$0xff] }
 0x55f   : > { %2802 = vmatprep.subr.bf16.mxu0 %v11191_v48  ;;  %v1312_v24 = vld [vmem:[%s14878_s18 + $0x3a8] sm:$0xff] }
 0x560   : > { %v1436_v25 = vld [vmem:[%s14878_s18 + $0x788] sm:$0xff] }
 0x561   : > { %2762 = vmatpush2.bf16.msra.mxu1 %v11062_v46  ;;  %v11160_v46 = vcombine.low %v1356_v35, %v1360_v36 }
 0x562   : > { %2803 = vmatpush2.bf16.msra.mxu0 %v11190_v47  ;;  %2813 = vmatprep.subr.bf16.mxu1 %v11057_v52  ;;  %v11025_v47 = vcombine.high %v1220_v41, %v1224_v42  ;;  %v1344_v52 = vld [vmem:[%s14878_s18 + $0x4a8] sm:$0xff] }
 0x563   : > { %2854 = vmatprep.subr.bf16.mxu0 %v11185_v56  ;;  %v11145_v56 = vcombine.high %v1340_v51, %v1344_v52  ;;  %v1420_v41 = vld [vmem:[%s14878_s18 + $0x708] sm:$0xff] }
 0x564   : > { %v1424_v42 = vld [vmem:[%s14878_s18 + $0x728] sm:$0xff] }
 0x5be   : > { %v1155_v12 = vpop.xlane.xlu1 %1154 }
 0x5bf   : > { %v1156_v17 = vrot.slane %v1155_v12, 4 }
 0x5c1   : > { %v1157_v21 = vadd.f32 %v1156_v17, %v1155_v12  ;;  %v1372_v17 = vld [vmem:[%s14878_s18 + $0x588] sm:$0xff] }
 0x5c2   : > { %v11177_v26 = vcombine.high %v1372_v17, %v1376_v18  ;;  %v11176_v30 = vcombine.low %v1372_v17, %v1376_v18 }
 0x5c3   : > { %v1158_v29 = vrot.slane %v1157_v21, 2 }
 0x5c5   : > { %v1159_v33 = vadd.f32 %v1158_v29, %v1157_v21 }
 0x5c7   : > { %v1160_v39 = vrot.slane %v1159_v33, 1 }
 0x5c9   : > { %v1161_v43 = vadd.f32 %v1160_v39, %v1159_v33  ;;  %v1228_v33 = vld [vmem:[%s14878_s18 + $0x108] sm:$0xff] }
 0x5ca   : > { %v11033_v39 = vcombine.high %v1228_v33, %v1232_v34  ;;  %v11032_v45 = vcombine.low %v1228_v33, %v1232_v34  ;;  %v1428_v33 = vld [vmem:[%s14878_s18 + $0x748] sm:$0xff] }
 0x5cb   : > { %12897 = vpush %v1161_v43  ;;  %v1348_v43 = vld [vmem:[%s14878_s18 + $0x4c8] sm:$0xff] }
 0x5cc   : > { %v11153_v48 = vcombine.high %v1348_v43, %v1352_v44  ;;  %v1432_v34 = vld [vmem:[%s14878_s18 + $0x768] sm:$0xff] }
 0x5fc   : > { %s12898_s15 = spop %12897 }
 0x5fd   : > { %s1163_s26 = smul.f32 0.0009765625, %s12898_s15 }
 0x5ff   : > { %s1164_s10 = sadd.f32 1e-05, %s1163_s26 }
 0x601   : > { %v1165_v22 = vstv %s1164_s10 }
 0x602   : > { %14209 = vrsqrt.f32 %v1165_v22  ;;  %v1204_v22 = vld [vmem:[%s14878_s18 + $0x48] sm:$0xff] }
 0x60f   : > { %v14210_v23 = vpop.eup %14209 }
 0x610   : > { %12899 = vpush %v14210_v23  ;;  %v1208_v23 = vld [vmem:[%s14878_s18 + $0x68] sm:$0xff] }
 0x641   : > { %s12900_s0 = spop %12899 }
 0x642   : > { %s1168_s11 = smul.f32 %s12900_s0, %s1119_s1 }
 0x644   : > { %v1169_v57 = vstv %s1168_s11  ;;  %s5048_s11 = sadd.s32 3, %s14987_s29 }
 0x645   : > { %v1170_v59 = vmul.f32 %v1169_v57, %v14997_v13  ;;  %v1171_v60 = vmul.f32 %v1169_v57, %v14999_v14  ;;  %v1172_v61 = vmul.f32 %v1169_v57, %v15001_v15  ;;  %v1173_v62 = vmul.f32 %v1169_v57, %v15003_v16  ;;  %v1244_v15 = vld [vmem:[%s14878_s18 + $0x188] sm:$0xff] }
 0x646   : > { %v1248_v16 = vld [vmem:[%s14878_s18 + $0x1a8] sm:$0xff] }
 0x647   : > { %v1175_v63 = vadd.f32 %v1174_v58, %v1170_v59  ;;  %v1176_v0 = vadd.f32 %v1174_v58, %v1171_v60  ;;  %v1177_v1 = vadd.f32 %v1174_v58, %v1172_v61  ;;  %v1178_v3 = vadd.f32 %v1174_v58, %v1173_v62  ;;  %v1332_v57 = vld [vmem:[%s14878_s18 + $0x448] sm:$0xff] }
 0x648   : > { %v11049_v21 = vcombine.high %v1244_v15, %v1248_v16  ;;  %v11048_v29 = vcombine.low %v1244_v15, %v1248_v16  ;;  %v1336_v58 = vld [vmem:[%s14878_s18 + $0x468] sm:$0xff]  ;;  %v11016_v59 = vcombine.low %v1212_v49, %v1216_v50  ;;  %v11144_v60 = vcombine.low %v1340_v51, %v1344_v52 }
 0x649   : > { %v1183_v4 = vmul.f32 0.2, %v1175_v63  ;;  %v1184_v5 = vmul.f32 0.2, %v1176_v0  ;;  %v1185_v7 = vmul.f32 0.2, %v1177_v1  ;;  %v11009_v61 = vcombine.high %v1204_v22, %v1208_v23 }
 0x64a   : > { %v1186_v8 = vmul.f32 0.2, %v1178_v3  ;;  %vm1180_vm4 = vcmp.gt.f32.partialorder %v1176_v0, 0.0  ;;  %vm1182_vm5 = vcmp.gt.f32.partialorder %v1178_v3, 0.0  ;;  %vm1179_vm6 = vcmp.gt.f32.partialorder %v1175_v63, 0.0  ;;  %v1444_v15 = vld [vmem:[%s14878_s18 + $0x7c8] sm:$0xff] }
 0x64b   : > { %v1188_v13 = vsel %vm1180_vm4, %v1176_v0, %v1184_v5  ;;  %v1187_v14 = vsel %vm1179_vm6, %v1175_v63, %v1183_v4  ;;  %vm1181_vm7 = vcmp.gt.f32.partialorder %v1177_v1, 0.0  ;;  %v11137_v62 = vcombine.high %v1332_v57, %v1336_v58  ;;  %v1196_v63 = vld [vmem:[%s14878_s18 + $0x8] sm:$0xff] }
 0x64c   : > { %v15100_v9 = vpack.c.bf16 %v1188_v13, %v1188_v13  ;;  %v1190_v10 = vsel %vm1182_vm5, %v1178_v3, %v1186_v8  ;;  %v15102_v11 = vpack.c.bf16 %v1187_v14, %v1187_v14  ;;  %v1189_v12 = vsel %vm1181_vm7, %v1177_v1, %v1185_v7  ;;  %v1200_v0 = vld [vmem:[%s14878_s18 + $0x28] sm:$0xff] }
 0x64d   : > { %v15106_v19 = vpack.c.bf16 %v1190_v10, %v1190_v10  ;;  %v15108_v20 = vpack.c.bf16 %v1189_v12, %v1189_v12  ;;  %v1324_v1 = vld [vmem:[%s14878_s18 + $0x408] sm:$0xff]  ;;  %v11008_v4 = vcombine.low %v1204_v22, %v1208_v23  ;;  %v11136_v5 = vcombine.low %v1332_v57, %v1336_v58 }
 0x64e   : > { %2763 = vmatprep.mubr.bf16.mxu1 %v15100_v9  ;;  %v1328_v3 = vld [vmem:[%s14878_s18 + $0x428] sm:$0xff]  ;;  %v11001_v7 = vcombine.high %v1196_v63, %v1200_v0  ;;  %v11000_v10 = vcombine.low %v1196_v63, %v1200_v0  ;;  %v11224_v52 = vcombine.low %v1420_v41, %v1424_v42 }
 0x64f   : > { %2804 = vmatprep.mubr.bf16.mxu0 %v15106_v19  ;;  %2764 = vmatmul.mubr.bf16.vlgmr.msra.gmra.mxu1 %v15102_v11  ;;  %v11129_v8 = vcombine.high %v1324_v1, %v1328_v3  ;;  %v1316_v13 = vld [vmem:[%s14878_s18 + $0x3c8] sm:$0xff]  ;;  %v11128_v12 = vcombine.low %v1324_v1, %v1328_v3 }
 0x650   : > { %2805 = vmatmul.mubr.bf16.vlgmr.msra.gmra.mxu0 %v15108_v20  ;;  %2814 = vmatpush1.bf16.msra.mxu1 %v11056_v54  ;;  %v11152_v54 = vcombine.low %v1348_v43, %v1352_v44  ;;  %v1320_v14 = vld [vmem:[%s14878_s18 + $0x3e8] sm:$0xff]  ;;  %v11232_v44 = vcombine.low %v1428_v33, %v1432_v34 }
 0x651   : > { %2855 = vmatpush1.bf16.msra.mxu0 %v11184_v55  ;;  %2845 = vmatprep.mubr.bf16.mxu1 %v15100_v9  ;;  %v11017_v55 = vcombine.high %v1212_v49, %v1216_v50  ;;  %v1448_v16 = vld [vmem:[%s14878_s18 + $0x7e8] sm:$0xff]  ;;  %v11121_v17 = vcombine.high %v1316_v13, %v1320_v14  ;;  %v11120_v27 = vcombine.low %v1316_v13, %v1320_v14 }
 0x652   : > { %2886 = vmatprep.mubr.bf16.mxu0 %v15106_v19  ;;  %2815 = vmatprep.subr.bf16.mxu1 %v11049_v21  ;;  %v11249_v18 = vcombine.high %v1444_v15, %v1448_v16  ;;  %v1308_v21 = vld [vmem:[%s14878_s18 + $0x388] sm:$0xff]  ;;  %v11248_v28 = vcombine.low %v1444_v15, %v1448_v16 }
 0x653   : > { %2856 = vmatprep.subr.bf16.mxu0 %v11177_v26  ;;  %v1440_v26 = vld [vmem:[%s14878_s18 + $0x7a8] sm:$0xff]  ;;  %v11112_v35 = vcombine.low %v1308_v21, %v1312_v24 }
 0x654   : > { %2816 = vmatpush1.bf16.msra.mxu1 %v11048_v29  ;;  %v11113_v29 = vcombine.high %v1308_v21, %v1312_v24  ;;  %v11240_v36 = vcombine.low %v1436_v25, %v1440_v26  ;;  %v1412_v49 = vld [vmem:[%s14878_s18 + $0x6c8] sm:$0xff]  ;;  %v1381_v21 = vld [vmem:[%s14878_s18 + $0x5d0] sm:$0xff] }
 0x655   : > { %2857 = vmatpush1.bf16.msra.mxu0 %v11176_v30  ;;  %2817 = vmatprep.subr.bf16.mxu1 %v11041_v31  ;;  %v11241_v30 = vcombine.high %v1436_v25, %v1440_v26  ;;  %v1300_v31 = vld [vmem:[%s14878_s18 + $0x348] sm:$0xff]  ;;  %v1385_v24 = vld [vmem:[%s14878_s18 + $0x5f0] sm:$0xff] }
 0x656   : > { %2858 = vmatprep.subr.bf16.mxu0 %v11169_v32  ;;  %v1304_v32 = vld [vmem:[%s14878_s18 + $0x368] sm:$0xff] }
 0x657   : > { %v11104_v43 = vcombine.low %v1300_v31, %v1304_v32  ;;  %v1416_v50 = vld [vmem:[%s14878_s18 + $0x6e8] sm:$0xff] }
 0x658   : > { %2818 = vmatpush1.bf16.msra.mxu1 %v11040_v37  ;;  %v11105_v37 = vcombine.high %v1300_v31, %v1304_v32  ;;  %v1404_v22 = vld [vmem:[%s14878_s18 + $0x688] sm:$0xff]  ;;  %v11216_v58 = vcombine.low %v1412_v49, %v1416_v50  ;;  %v1373_v32 = vld [vmem:[%s14878_s18 + $0x590] sm:$0xff] }
 0x659   : > { %2859 = vmatpush1.bf16.msra.mxu0 %v11168_v38  ;;  %2819 = vmatprep.subr.bf16.mxu1 %v11033_v39  ;;  %v11233_v38 = vcombine.high %v1428_v33, %v1432_v34  ;;  %v1292_v39 = vld [vmem:[%s14878_s18 + $0x308] sm:$0xff]  ;;  %v1377_v33 = vld [vmem:[%s14878_s18 + $0x5b0] sm:$0xff]  ;;  %v11186_v34 = vcombine.low %v1381_v21, %v1385_v24 }
 0x65a   : > { %2860 = vmatprep.subr.bf16.mxu0 %v11161_v40  ;;  %v1296_v40 = vld [vmem:[%s14878_s18 + $0x328] sm:$0xff] }
 0x65b   : > { %v11096_v51 = vcombine.low %v1292_v39, %v1296_v40  ;;  %v1408_v23 = vld [vmem:[%s14878_s18 + $0x6a8] sm:$0xff] }
 0x65c   : > { %2820 = vmatpush1.bf16.msra.mxu1 %v11032_v45  ;;  %v11097_v45 = vcombine.high %v1292_v39, %v1296_v40  ;;  %v1396_v63 = vld [vmem:[%s14878_s18 + $0x648] sm:$0xff]  ;;  %v11208_v3 = vcombine.low %v1404_v22, %v1408_v23  ;;  %v1365_v39 = vld [vmem:[%s14878_s18 + $0x550] sm:$0xff] }
 0x65d   : > { %2861 = vmatpush1.bf16.msra.mxu0 %v11160_v46  ;;  %2821 = vmatprep.subr.bf16.mxu1 %v11025_v47  ;;  %v11225_v46 = vcombine.high %v1420_v41, %v1424_v42  ;;  %v1284_v47 = vld [vmem:[%s14878_s18 + $0x2c8] sm:$0xff]  ;;  %v1369_v40 = vld [vmem:[%s14878_s18 + $0x570] sm:$0xff]  ;;  %v11178_v42 = vcombine.low %v1373_v32, %v1377_v33 }
 0x65e   : > { %2862 = vmatprep.subr.bf16.mxu0 %v11153_v48  ;;  %v1288_v48 = vld [vmem:[%s14878_s18 + $0x2e8] sm:$0xff] }
 0x65f   : > { %v11088_v57 = vcombine.low %v1284_v47, %v1288_v48  ;;  %v1400_v0 = vld [vmem:[%s14878_s18 + $0x668] sm:$0xff] }
 0x660   : > { %2822 = vmatpush1.bf16.msra.mxu1 %v11024_v53  ;;  %v11089_v53 = vcombine.high %v1284_v47, %v1288_v48  ;;  %v1388_v13 = vld [vmem:[%s14878_s18 + $0x608] sm:$0xff]  ;;  %v11200_v16 = vcombine.low %v1396_v63, %v1400_v0  ;;  %v1357_v47 = vld [vmem:[%s14878_s18 + $0x510] sm:$0xff] }
 0x661   : > { %2863 = vmatpush1.bf16.msra.mxu0 %v11152_v54  ;;  %2823 = vmatprep.subr.bf16.mxu1 %v11017_v55  ;;  %v11217_v54 = vcombine.high %v1412_v49, %v1416_v50  ;;  %v1276_v55 = vld [vmem:[%s14878_s18 + $0x288] sm:$0xff]  ;;  %v1361_v48 = vld [vmem:[%s14878_s18 + $0x530] sm:$0xff]  ;;  %v11170_v50 = vcombine.low %v1365_v39, %v1369_v40 }
 0x662   : > { %2864 = vmatprep.subr.bf16.mxu0 %v11145_v56  ;;  %v1280_v56 = vld [vmem:[%s14878_s18 + $0x2a8] sm:$0xff] }
 0x663   : > { %v11080_v1 = vcombine.low %v1276_v55, %v1280_v56  ;;  %v1392_v14 = vld [vmem:[%s14878_s18 + $0x628] sm:$0xff] }
 0x664   : > { %2824 = vmatpush1.bf16.msra.mxu1 %v11016_v59  ;;  %v11081_v59 = vcombine.high %v1276_v55, %v1280_v56  ;;  %v11192_v26 = vcombine.low %v1388_v13, %v1392_v14  ;;  %v1349_v55 = vld [vmem:[%s14878_s18 + $0x4d0] sm:$0xff] }
 0x665   : > { %2865 = vmatpush1.bf16.msra.mxu0 %v11144_v60  ;;  %2825 = vmatprep.subr.bf16.mxu1 %v11009_v61  ;;  %v11209_v60 = vcombine.high %v1404_v22, %v1408_v23  ;;  %v1268_v61 = vld [vmem:[%s14878_s18 + $0x248] sm:$0xff]  ;;  %v1353_v56 = vld [vmem:[%s14878_s18 + $0x4f0] sm:$0xff]  ;;  %v11162_v23 = vcombine.low %v1357_v47, %v1361_v48 }
 0x666   : > { %2866 = vmatprep.subr.bf16.mxu0 %v11137_v62  ;;  %v1272_v62 = vld [vmem:[%s14878_s18 + $0x268] sm:$0xff] }
 0x667   : > { %v11072_v15 = vcombine.low %v1268_v61, %v1272_v62 }
 0x668   : > { %2826 = vmatpush1.bf16.msra.mxu1 %v11008_v4  ;;  %v11073_v4 = vcombine.high %v1268_v61, %v1272_v62  ;;  %v1341_v61 = vld [vmem:[%s14878_s18 + $0x490] sm:$0xff] }
 0x669   : > { %2867 = vmatpush1.bf16.msra.mxu0 %v11136_v5  ;;  %2827 = vmatprep.subr.bf16.mxu1 %v11001_v7  ;;  %v11201_v5 = vcombine.high %v1396_v63, %v1400_v0  ;;  %v1260_v7 = vld [vmem:[%s14878_s18 + $0x208] sm:$0xff]  ;;  %v1345_v62 = vld [vmem:[%s14878_s18 + $0x4b0] sm:$0xff]  ;;  %v11154_v0 = vcombine.low %v1349_v55, %v1353_v56 }
 0x66a   : > { %2868 = vmatprep.subr.bf16.mxu0 %v11129_v8  ;;  %v1264_v8 = vld [vmem:[%s14878_s18 + $0x228] sm:$0xff] }
 0x66b   : > { %v11064_v25 = vcombine.low %v1260_v7, %v1264_v8 }
 0x66c   : > { %2828 = vmatpush1.bf16.msra.mxu1 %v11000_v10  ;;  %v11065_v10 = vcombine.high %v1260_v7, %v1264_v8  ;;  %v1333_v7 = vld [vmem:[%s14878_s18 + $0x450] sm:$0xff] }
 0x66d   : > { %2869 = vmatpush1.bf16.msra.mxu0 %v11128_v12  ;;  %2829 = vmatprep.subr.bf16.mxu1 %v11121_v17  ;;  %v11193_v12 = vcombine.high %v1388_v13, %v1392_v14  ;;  %v1253_v17 = vld [vmem:[%s14878_s18 + $0x1d0] sm:$0xff]  ;;  %v11146_v14 = vcombine.low %v1341_v61, %v1345_v62 }
 0x66e   : > { %2870 = vmatprep.subr.bf16.mxu0 %v11249_v18  ;;  %v1257_v18 = vld [vmem:[%s14878_s18 + $0x1f0] sm:$0xff] }
 0x66f   : > { %v11058_v31 = vcombine.low %v1253_v17, %v1257_v18  ;;  %v1337_v8 = vld [vmem:[%s14878_s18 + $0x470] sm:$0xff] }
 0x670   : > { %2830 = vmatpush2.bf16.msra.mxu1 %v11120_v27  ;;  %v11059_v27 = vcombine.high %v1253_v17, %v1257_v18  ;;  %v1325_v17 = vld [vmem:[%s14878_s18 + $0x410] sm:$0xff] }
 0x671   : > { %2871 = vmatpush2.bf16.msra.mxu0 %v11248_v28  ;;  %2831 = vmatprep.subr.bf16.mxu1 %v11113_v29  ;;  %v11187_v28 = vcombine.high %v1381_v21, %v1385_v24  ;;  %v1245_v29 = vld [vmem:[%s14878_s18 + $0x190] sm:$0xff]  ;;  %v11138_v24 = vcombine.low %v1333_v7, %v1337_v8 }
 0x672   : > { %2872 = vmatprep.subr.bf16.mxu0 %v11241_v30  ;;  %v1249_v30 = vld [vmem:[%s14878_s18 + $0x1b0] sm:$0xff] }
 0x673   : > { %v11050_v41 = vcombine.low %v1245_v29, %v1249_v30  ;;  %v1329_v18 = vld [vmem:[%s14878_s18 + $0x430] sm:$0xff] }
 0x674   : > { %2832 = vmatpush2.bf16.msra.mxu1 %v11112_v35  ;;  %v11051_v35 = vcombine.high %v1245_v29, %v1249_v30  ;;  %v1445_v29 = vld [vmem:[%s14878_s18 + $0x7d0] sm:$0xff] }
 0x675   : > { %2873 = vmatpush2.bf16.msra.mxu0 %v11240_v36  ;;  %2833 = vmatprep.subr.bf16.mxu1 %v11105_v37  ;;  %v1237_v36 = vld [vmem:[%s14878_s18 + $0x150] sm:$0xff] }
 0x676   : > { %2874 = vmatprep.subr.bf16.mxu0 %v11233_v38  ;;  %v1241_v37 = vld [vmem:[%s14878_s18 + $0x170] sm:$0xff]  ;;  %v11179_v38 = vcombine.high %v1373_v32, %v1377_v33  ;;  %v11130_v32 = vcombine.low %v1325_v17, %v1329_v18 }
 0x677   : > { %v11042_v49 = vcombine.low %v1237_v36, %v1241_v37  ;;  %v1449_v30 = vld [vmem:[%s14878_s18 + $0x7f0] sm:$0xff] }
 0x678   : > { %2834 = vmatpush2.bf16.msra.mxu1 %v11104_v43  ;;  %v11043_v43 = vcombine.high %v1237_v36, %v1241_v37  ;;  %v1313_v36 = vld [vmem:[%s14878_s18 + $0x3b0] sm:$0xff] }
 0x679   : > { %2875 = vmatpush2.bf16.msra.mxu0 %v11232_v44  ;;  %2835 = vmatprep.subr.bf16.mxu1 %v11097_v45  ;;  %v11171_v44 = vcombine.high %v1365_v39, %v1369_v40  ;;  %v1229_v45 = vld [vmem:[%s14878_s18 + $0x110] sm:$0xff]  ;;  %v11250_v40 = vcombine.low %v1445_v29, %v1449_v30 }
 0x67a   : > { %2876 = vmatprep.subr.bf16.mxu0 %v11225_v46  ;;  %v1233_v46 = vld [vmem:[%s14878_s18 + $0x130] sm:$0xff] }
 0x67b   : > { %v11034_v22 = vcombine.low %v1229_v45, %v1233_v46  ;;  %v1437_v37 = vld [vmem:[%s14878_s18 + $0x790] sm:$0xff] }
 0x67c   : > { %2836 = vmatpush2.bf16.msra.mxu1 %v11096_v51  ;;  %v11035_v51 = vcombine.high %v1229_v45, %v1233_v46  ;;  %v1429_v45 = vld [vmem:[%s14878_s18 + $0x750] sm:$0xff] }
 0x67d   : > { %2877 = vmatpush2.bf16.msra.mxu0 %v11224_v52  ;;  %2837 = vmatprep.subr.bf16.mxu1 %v11089_v53  ;;  %v11163_v52 = vcombine.high %v1357_v47, %v1361_v48  ;;  %v1221_v53 = vld [vmem:[%s14878_s18 + $0xd0] sm:$0xff] }
 0x67e   : > { %2878 = vmatprep.subr.bf16.mxu0 %v11217_v54  ;;  %v1225_v54 = vld [vmem:[%s14878_s18 + $0xf0] sm:$0xff] }
 0x67f   : > { %v11026_v63 = vcombine.low %v1221_v53, %v1225_v54  ;;  %v1433_v46 = vld [vmem:[%s14878_s18 + $0x770] sm:$0xff] }
 0x680   : > { %2838 = vmatpush2.bf16.msra.mxu1 %v11088_v57  ;;  %v11027_v57 = vcombine.high %v1221_v53, %v1225_v54  ;;  %v1421_v53 = vld [vmem:[%s14878_s18 + $0x710] sm:$0xff] }
 0x681   : > { %2879 = vmatpush2.bf16.msra.mxu0 %v11216_v58  ;;  %2839 = vmatprep.subr.bf16.mxu1 %v11081_v59  ;;  %v11155_v58 = vcombine.high %v1349_v55, %v1353_v56  ;;  %v1213_v59 = vld [vmem:[%s14878_s18 + $0x90] sm:$0xff]  ;;  %v11234_v56 = vcombine.low %v1429_v45, %v1433_v46 }
 0x682   : > { %2880 = vmatprep.subr.bf16.mxu0 %v11209_v60  ;;  %v1217_v60 = vld [vmem:[%s14878_s18 + $0xb0] sm:$0xff] }
 0x683   : > { %v11018_v13 = vcombine.low %v1213_v59, %v1217_v60  ;;  %v1425_v54 = vld [vmem:[%s14878_s18 + $0x730] sm:$0xff] }
 0x684   : > { %2840 = vmatpush2.bf16.msra.mxu1 %v11080_v1  ;;  %v11019_v1 = vcombine.high %v1213_v59, %v1217_v60  ;;  %v1413_v59 = vld [vmem:[%s14878_s18 + $0x6d0] sm:$0xff] }
 0x685   : > { %2881 = vmatpush2.bf16.msra.mxu0 %v11208_v3  ;;  %2841 = vmatprep.subr.bf16.mxu1 %v11073_v4  ;;  %v11147_v3 = vcombine.high %v1341_v61, %v1345_v62  ;;  %v1205_v4 = vld [vmem:[%s14878_s18 + $0x50] sm:$0xff]  ;;  %v11226_v62 = vcombine.low %v1421_v53, %v1425_v54 }
 0x686   : > { %2882 = vmatprep.subr.bf16.mxu0 %v11201_v5  ;;  %v1209_v5 = vld [vmem:[%s14878_s18 + $0x70] sm:$0xff] }
 0x687   : > { %v11010_v21 = vcombine.low %v1205_v4, %v1209_v5  ;;  %v1417_v60 = vld [vmem:[%s14878_s18 + $0x6f0] sm:$0xff] }
 0x688   : > { %2842 = vmatpush2.bf16.msra.mxu1 %v11072_v15  ;;  %v11011_v15 = vcombine.high %v1205_v4, %v1209_v5  ;;  %v1405_v4 = vld [vmem:[%s14878_s18 + $0x690] sm:$0xff] }
 0x689   : > { %2883 = vmatpush2.bf16.msra.mxu0 %v11200_v16  ;;  %2843 = vmatprep.subr.bf16.mxu1 %v11065_v10  ;;  %v11139_v16 = vcombine.high %v1333_v7, %v1337_v8  ;;  %v1197_v10 = vld [vmem:[%s14878_s18 + $0x10] sm:$0xff]  ;;  %v11218_v8 = vcombine.low %v1413_v59, %v1417_v60 }
 0x68a   : > { %2884 = vmatprep.subr.bf16.mxu0 %v11193_v12  ;;  %v1201_v12 = vld [vmem:[%s14878_s18 + $0x30] sm:$0xff] }
 0x68b   : > { %v1409_v5 = vld [vmem:[%s14878_s18 + $0x6b0] sm:$0xff] }
 0x68c   : > { %2844 = vmatpush2.bf16.msra.mxu1 %v11064_v25  ;;  %v11003_v25 = vcombine.high %v1197_v10, %v1201_v12 }
 0x68d   : > { %2885 = vmatpush2.bf16.msra.mxu0 %v11192_v26  ;;  %2895 = vmatprep.subr.bf16.mxu1 %v11059_v27  ;;  %v11131_v26 = vcombine.high %v1325_v17, %v1329_v18  ;;  %v1317_v27 = vld [vmem:[%s14878_s18 + $0x3d0] sm:$0xff]  ;;  %v11210_v18 = vcombine.low %v1405_v4, %v1409_v5 }
 0x68e   : > { %2936 = vmatprep.subr.bf16.mxu0 %v11187_v28  ;;  %v1321_v28 = vld [vmem:[%s14878_s18 + $0x3f0] sm:$0xff] }
 0x68f   : > { %2846 = vmatmul.mubr.bf16.vlgmr.msra.gmra.mxu1 %v15102_v11  ;;  %v11123_v33 = vcombine.high %v1317_v27, %v1321_v28  ;;  %v11122_v39 = vcombine.low %v1317_v27, %v1321_v28  ;;  %v1389_v27 = vld [vmem:[%s14878_s18 + $0x610] sm:$0xff] }
 0x690   : > { %2887 = vmatmul.mubr.bf16.vlgmr.msra.gmra.mxu0 %v15108_v20  ;;  %2896 = vmatpush1.bf16.msra.mxu1 %v11058_v31  ;;  %v11002_v31 = vcombine.low %v1197_v10, %v1201_v12  ;;  %v1397_v10 = vld [vmem:[%s14878_s18 + $0x650] sm:$0xff] }
 0x691   : > { %2927 = vmatprep.mubr.bf16.mxu1 %v15100_v9  ;;  %2937 = vmatpush1.bf16.msra.mxu0 %v11186_v34  ;;  %v11251_v34 = vcombine.high %v1445_v29, %v1449_v30  ;;  %v1401_v12 = vld [vmem:[%s14878_s18 + $0x670] sm:$0xff] }
 0x692   : > { %2968 = vmatprep.mubr.bf16.mxu0 %v15106_v19  ;;  %2897 = vmatprep.subr.bf16.mxu1 %v11051_v35  ;;  %v1309_v35 = vld [vmem:[%s14878_s18 + $0x390] sm:$0xff]  ;;  %v11202_v30 = vcombine.low %v1397_v10, %v1401_v12 }
 0x693   : > { %2938 = vmatprep.subr.bf16.mxu0 %v11179_v38  ;;  %v1441_v38 = vld [vmem:[%s14878_s18 + $0x7b0] sm:$0xff]  ;;  %v11114_v47 = vcombine.low %v1309_v35, %v1313_v36 }
 0x694   : > { %2898 = vmatpush1.bf16.msra.mxu1 %v11050_v41  ;;  %v11115_v41 = vcombine.high %v1309_v35, %v1313_v36  ;;  %v11242_v48 = vcombine.low %v1437_v37, %v1441_v38  ;;  %v1393_v28 = vld [vmem:[%s14878_s18 + $0x630] sm:$0xff]  ;;  %v1382_v35 = vld [vmem:[%s14878_s18 + $0x5d8] sm:$0xff] }
 0x695   : > { %2939 = vmatpush1.bf16.msra.mxu0 %v11178_v42  ;;  %2899 = vmatprep.subr.bf16.mxu1 %v11043_v43  ;;  %v11243_v42 = vcombine.high %v1437_v37, %v1441_v38  ;;  %v1301_v43 = vld [vmem:[%s14878_s18 + $0x350] sm:$0xff]  ;;  %v1386_v36 = vld [vmem:[%s14878_s18 + $0x5f8] sm:$0xff]  ;;  %v11194_v38 = vcombine.low %v1389_v27, %v1393_v28 }
 0x696   : > { %2940 = vmatprep.subr.bf16.mxu0 %v11171_v44  ;;  %v1305_v44 = vld [vmem:[%s14878_s18 + $0x370] sm:$0xff] }
 0x697   : > { %v11106_v55 = vcombine.low %v1301_v43, %v1305_v44 }
 0x698   : > { %2900 = vmatpush1.bf16.msra.mxu1 %v11042_v49  ;;  %v11107_v49 = vcombine.high %v1301_v43, %v1305_v44  ;;  %v1374_v44 = vld [vmem:[%s14878_s18 + $0x598] sm:$0xff] }
 0x699   : > { %2941 = vmatpush1.bf16.msra.mxu0 %v11170_v50  ;;  %2901 = vmatprep.subr.bf16.mxu1 %v11035_v51  ;;  %v11235_v50 = vcombine.high %v1429_v45, %v1433_v46  ;;  %v1293_v51 = vld [vmem:[%s14878_s18 + $0x310] sm:$0xff]  ;;  %v1378_v45 = vld [vmem:[%s14878_s18 + $0x5b8] sm:$0xff]  ;;  %v11188_v46 = vcombine.low %v1382_v35, %v1386_v36 }
 0x69a   : > { %2942 = vmatprep.subr.bf16.mxu0 %v11163_v52  ;;  %v1297_v52 = vld [vmem:[%s14878_s18 + $0x330] sm:$0xff] }
 0x69b   : > { %v11098_v61 = vcombine.low %v1293_v51, %v1297_v52 }
 0x69c   : > { %2902 = vmatpush1.bf16.msra.mxu1 %v11034_v22  ;;  %v11099_v22 = vcombine.high %v1293_v51, %v1297_v52  ;;  %v1366_v51 = vld [vmem:[%s14878_s18 + $0x558] sm:$0xff] }
 0x69d   : > { %2943 = vmatpush1.bf16.msra.mxu0 %v11162_v23  ;;  %2903 = vmatprep.subr.bf16.mxu1 %v11027_v57  ;;  %v11227_v23 = vcombine.high %v1421_v53, %v1425_v54  ;;  %v1285_v57 = vld [vmem:[%s14878_s18 + $0x2d0] sm:$0xff]  ;;  %v1370_v52 = vld [vmem:[%s14878_s18 + $0x578] sm:$0xff]  ;;  %v11180_v54 = vcombine.low %v1374_v44, %v1378_v45 }
 0x69e   : > { %2944 = vmatprep.subr.bf16.mxu0 %v11155_v58  ;;  %v1289_v58 = vld [vmem:[%s14878_s18 + $0x2f0] sm:$0xff] }
 0x69f   : > { %v11090_v7 = vcombine.low %v1285_v57, %v1289_v58 }
 0x6a0   : > { %2904 = vmatpush1.bf16.msra.mxu1 %v11026_v63  ;;  %v11091_v63 = vcombine.high %v1285_v57, %v1289_v58  ;;  %v1358_v57 = vld [vmem:[%s14878_s18 + $0x518] sm:$0xff] }
 0x6a1   : > { %2945 = vmatpush1.bf16.msra.mxu0 %v11154_v0  ;;  %2905 = vmatprep.subr.bf16.mxu1 %v11019_v1  ;;  %v11219_v0 = vcombine.high %v1413_v59, %v1417_v60  ;;  %v1277_v1 = vld [vmem:[%s14878_s18 + $0x290] sm:$0xff]  ;;  %v1362_v58 = vld [vmem:[%s14878_s18 + $0x538] sm:$0xff] }
 0x6a2   : > { %2946 = vmatprep.subr.bf16.mxu0 %v11147_v3  ;;  %v1281_v3 = vld [vmem:[%s14878_s18 + $0x2b0] sm:$0xff] }
 0x6a3   : > { %v11082_v17 = vcombine.low %v1277_v1, %v1281_v3 }
 0x6a4   : > { %2906 = vmatpush1.bf16.msra.mxu1 %v11018_v13  ;;  %v11083_v13 = vcombine.high %v1277_v1, %v1281_v3  ;;  %v11164_v3 = vcombine.low %v1358_v57, %v1362_v58 }
 0x6a5   : > { %2947 = vmatpush1.bf16.msra.mxu0 %v11146_v14  ;;  %2907 = vmatprep.subr.bf16.mxu1 %v11011_v15  ;;  %v11211_v14 = vcombine.high %v1405_v4, %v1409_v5  ;;  %v1269_v15 = vld [vmem:[%s14878_s18 + $0x250] sm:$0xff] }
 0x6a6   : > { %2948 = vmatprep.subr.bf16.mxu0 %v11139_v16  ;;  %v1273_v16 = vld [vmem:[%s14878_s18 + $0x270] sm:$0xff] }
 0x6a7   : > { %v11074_v29 = vcombine.low %v1269_v15, %v1273_v16 }
 0x6a8   : > { %2908 = vmatpush1.bf16.msra.mxu1 %v11010_v21  ;;  %v11075_v21 = vcombine.high %v1269_v15, %v1273_v16 }
 0x6a9   : > { %2949 = vmatpush1.bf16.msra.mxu0 %v11138_v24  ;;  %2909 = vmatprep.subr.bf16.mxu1 %v11003_v25  ;;  %v11203_v24 = vcombine.high %v1397_v10, %v1401_v12  ;;  %v1261_v25 = vld [vmem:[%s14878_s18 + $0x210] sm:$0xff] }
 0x6aa   : > { %2950 = vmatprep.subr.bf16.mxu0 %v11131_v26  ;;  %v1265_v26 = vld [vmem:[%s14878_s18 + $0x230] sm:$0xff] }
 0x6ab   : > { %v11066_v37 = vcombine.low %v1261_v25, %v1265_v26 }
 0x6ac   : > { %2910 = vmatpush1.bf16.msra.mxu1 %v11002_v31  ;;  %v11067_v31 = vcombine.high %v1261_v25, %v1265_v26 }
 0x6ad   : > { %2951 = vmatpush1.bf16.msra.mxu0 %v11130_v32  ;;  %2911 = vmatprep.subr.bf16.mxu1 %v11123_v33  ;;  %v11195_v32 = vcombine.high %v1389_v27, %v1393_v28  ;;  %v1254_v33 = vld [vmem:[%s14878_s18 + $0x1d8] sm:$0xff] }
 0x6ae   : > { %2952 = vmatprep.subr.bf16.mxu0 %v11251_v34  ;;  %v1258_v34 = vld [vmem:[%s14878_s18 + $0x1f8] sm:$0xff] }
 0x6af   : > { %v11060_v43 = vcombine.low %v1254_v33, %v1258_v34 }
 0x6b0   : > { %2912 = vmatpush2.bf16.msra.mxu1 %v11122_v39  ;;  %v11061_v39 = vcombine.high %v1254_v33, %v1258_v34 }
 0x6b1   : > { %2953 = vmatpush2.bf16.msra.mxu0 %v11250_v40  ;;  %2913 = vmatprep.subr.bf16.mxu1 %v11115_v41  ;;  %v11189_v40 = vcombine.high %v1382_v35, %v1386_v36  ;;  %v1246_v41 = vld [vmem:[%s14878_s18 + $0x198] sm:$0xff] }
 0x6b2   : > { %2954 = vmatprep.subr.bf16.mxu0 %v11243_v42  ;;  %v1250_v42 = vld [vmem:[%s14878_s18 + $0x1b8] sm:$0xff] }
 0x6b3   : > { %v11052_v53 = vcombine.low %v1246_v41, %v1250_v42 }
 0x6b4   : > { %2914 = vmatpush2.bf16.msra.mxu1 %v11114_v47  ;;  %v11053_v47 = vcombine.high %v1246_v41, %v1250_v42 }
 0x6b5   : > { %2955 = vmatpush2.bf16.msra.mxu0 %v11242_v48  ;;  %2915 = vmatprep.subr.bf16.mxu1 %v11107_v49  ;;  %v1238_v48 = vld [vmem:[%s14878_s18 + $0x158] sm:$0xff] }
 0x6b6   : > { %2956 = vmatprep.subr.bf16.mxu0 %v11235_v50  ;;  %v1242_v49 = vld [vmem:[%s14878_s18 + $0x178] sm:$0xff]  ;;  %v11181_v50 = vcombine.high %v1374_v44, %v1378_v45 }
 0x6b7   : > { %v11044_v59 = vcombine.low %v1238_v48, %v1242_v49  ;;  %v1310_v45 = vld [vmem:[%s14878_s18 + $0x398] sm:$0xff] }
 0x6b8   : > { %2916 = vmatpush2.bf16.msra.mxu1 %v11106_v55  ;;  %v11045_v55 = vcombine.high %v1238_v48, %v1242_v49  ;;  %v1442_v48 = vld [vmem:[%s14878_s18 + $0x7b8] sm:$0xff] }
 0x6b9   : > { %2957 = vmatpush2.bf16.msra.mxu0 %v11234_v56  ;;  %2917 = vmatprep.subr.bf16.mxu1 %v11099_v22  ;;  %v11173_v56 = vcombine.high %v1366_v51, %v1370_v52  ;;  %v1230_v22 = vld [vmem:[%s14878_s18 + $0x118] sm:$0xff] }
 0x6ba   : > { %2958 = vmatprep.subr.bf16.mxu0 %v11227_v23  ;;  %v1234_v23 = vld [vmem:[%s14878_s18 + $0x138] sm:$0xff] }
 0x6bb   : > { %v11037_v60 = vcombine.high %v1230_v22, %v1234_v23  ;;  %v11036_v1 = vcombine.low %v1230_v22, %v1234_v23 }
 0x6bc   : > { %2918 = vmatpush2.bf16.msra.mxu1 %v11098_v61  ;;  %v1222_v61 = vld [vmem:[%s14878_s18 + $0xd8] sm:$0xff] }
 0x6bd   : > { %2959 = vmatpush2.bf16.msra.mxu0 %v11226_v62  ;;  %2919 = vmatprep.subr.bf16.mxu1 %v11091_v63  ;;  %v1226_v62 = vld [vmem:[%s14878_s18 + $0xf8] sm:$0xff] }
 0x6be   : > { %2960 = vmatprep.subr.bf16.mxu0 %v11219_v0  ;;  %v1350_v63 = vld [vmem:[%s14878_s18 + $0x4d8] sm:$0xff]  ;;  %v11029_v4 = vcombine.high %v1222_v61, %v1226_v62  ;;  %v11028_v15 = vcombine.low %v1222_v61, %v1226_v62 }
 0x6bf   : > { %v1354_v0 = vld [vmem:[%s14878_s18 + $0x4f8] sm:$0xff] }
 0x6c0   : > { %2920 = vmatpush2.bf16.msra.mxu1 %v11090_v7  ;;  %v11157_v5 = vcombine.high %v1350_v63, %v1354_v0  ;;  %v1214_v7 = vld [vmem:[%s14878_s18 + $0x98] sm:$0xff]  ;;  %v11156_v16 = vcombine.low %v1350_v63, %v1354_v0 }
 0x6c1   : > { %2961 = vmatpush2.bf16.msra.mxu0 %v11218_v8  ;;  %2921 = vmatprep.subr.bf16.mxu1 %v11083_v13  ;;  %v1218_v8 = vld [vmem:[%s14878_s18 + $0xb8] sm:$0xff] }
 0x6c2   : > { %2962 = vmatprep.subr.bf16.mxu0 %v11211_v14  ;;  %v1342_v13 = vld [vmem:[%s14878_s18 + $0x498] sm:$0xff]  ;;  %v11021_v10 = vcombine.high %v1214_v7, %v1218_v8  ;;  %v11020_v25 = vcombine.low %v1214_v7, %v1218_v8 }
 0x6c3   : > { %v1346_v14 = vld [vmem:[%s14878_s18 + $0x4b8] sm:$0xff] }
 0x6c4   : > { %2922 = vmatpush2.bf16.msra.mxu1 %v11082_v17  ;;  %v11149_v12 = vcombine.high %v1342_v13, %v1346_v14  ;;  %v1206_v17 = vld [vmem:[%s14878_s18 + $0x58] sm:$0xff]  ;;  %v11148_v26 = vcombine.low %v1342_v13, %v1346_v14 }
 0x6c5   : > { %2963 = vmatpush2.bf16.msra.mxu0 %v11210_v18  ;;  %2923 = vmatprep.subr.bf16.mxu1 %v11075_v21  ;;  %v1210_v18 = vld [vmem:[%s14878_s18 + $0x78] sm:$0xff] }
 0x6c6   : > { %2964 = vmatprep.subr.bf16.mxu0 %v11203_v24  ;;  %v1334_v21 = vld [vmem:[%s14878_s18 + $0x458] sm:$0xff]  ;;  %v11013_v27 = vcombine.high %v1206_v17, %v1210_v18  ;;  %v11012_v33 = vcombine.low %v1206_v17, %v1210_v18 }
 0x6c7   : > { %v1338_v24 = vld [vmem:[%s14878_s18 + $0x478] sm:$0xff] }
 0x6c8   : > { %2924 = vmatpush2.bf16.msra.mxu1 %v11074_v29  ;;  %v11141_v28 = vcombine.high %v1334_v21, %v1338_v24  ;;  %v1198_v29 = vld [vmem:[%s14878_s18 + $0x18] sm:$0xff]  ;;  %v11140_v34 = vcombine.low %v1334_v21, %v1338_v24 }
 0x6c9   : > { %2965 = vmatpush2.bf16.msra.mxu0 %v11202_v30  ;;  %2925 = vmatprep.subr.bf16.mxu1 %v11067_v31  ;;  %v1202_v30 = vld [vmem:[%s14878_s18 + $0x38] sm:$0xff] }
 0x6ca   : > { %2966 = vmatprep.subr.bf16.mxu0 %v11195_v32  ;;  %v1326_v31 = vld [vmem:[%s14878_s18 + $0x418] sm:$0xff]  ;;  %v11005_v35 = vcombine.high %v1198_v29, %v1202_v30  ;;  %v11004_v41 = vcombine.low %v1198_v29, %v1202_v30 }
 0x6cb   : > { %v1330_v32 = vld [vmem:[%s14878_s18 + $0x438] sm:$0xff] }
 0x6cc   : > { %2926 = vmatpush2.bf16.msra.mxu1 %v11066_v37  ;;  %v11133_v36 = vcombine.high %v1326_v31, %v1330_v32  ;;  %v1318_v37 = vld [vmem:[%s14878_s18 + $0x3d8] sm:$0xff]  ;;  %v11132_v42 = vcombine.low %v1326_v31, %v1330_v32 }
 0x6cd   : > { %2967 = vmatpush2.bf16.msra.mxu0 %v11194_v38  ;;  %2977 = vmatprep.subr.bf16.mxu1 %v11061_v39  ;;  %v1322_v38 = vld [vmem:[%s14878_s18 + $0x3f8] sm:$0xff] }
 0x6ce   : > { %3018 = vmatprep.subr.bf16.mxu0 %v11189_v40  ;;  %v1446_v39 = vld [vmem:[%s14878_s18 + $0x7d8] sm:$0xff]  ;;  %v11124_v49 = vcombine.low %v1318_v37, %v1322_v38 }
 0x6cf   : > { %2928 = vmatmul.mubr.bf16.vlgmr.msra.gmra.mxu1 %v15102_v11  ;;  %v1450_v40 = vld [vmem:[%s14878_s18 + $0x7f8] sm:$0xff] }
 0x6d0   : > { %2969 = vmatmul.mubr.bf16.vlgmr.msra.gmra.mxu0 %v15108_v20  ;;  %2978 = vmatpush1.bf16.msra.mxu1 %v11060_v43  ;;  %v11125_v43 = vcombine.high %v1318_v37, %v1322_v38  ;;  %v11253_v44 = vcombine.high %v1446_v39, %v1450_v40 }
 0x6d1   : > { %3009 = vmatprep.mubr.bf16.mxu1 %v15100_v9  ;;  %3019 = vmatpush1.bf16.msra.mxu0 %v11188_v46  ;;  %v11172_v9 = vcombine.low %v1366_v51, %v1370_v52  ;;  %v1314_v46 = vld [vmem:[%s14878_s18 + $0x3b8] sm:$0xff] }
 0x6d2   : > { %3050 = vmatprep.mubr.bf16.mxu0 %v15106_v19  ;;  %2979 = vmatprep.subr.bf16.mxu1 %v11053_v47  ;;  %v11165_v19 = vcombine.high %v1358_v57, %v1362_v58  ;;  %v1438_v47 = vld [vmem:[%s14878_s18 + $0x798] sm:$0xff]  ;;  %v11117_v51 = vcombine.high %v1310_v45, %v1314_v46  ;;  %v11116_v22 = vcombine.low %v1310_v45, %v1314_v46 }
 0x6d3   : > { %3020 = vmatprep.subr.bf16.mxu0 %v11181_v50  ;;  %v11252_v50 = vcombine.low %v1446_v39, %v1450_v40  ;;  %v11245_v52 = vcombine.high %v1438_v47, %v1442_v48  ;;  %v11244_v23 = vcombine.low %v1438_v47, %v1442_v48 }
 0x6d4   : > { %2980 = vmatpush1.bf16.msra.mxu1 %v11052_v53  ;;  %v1302_v53 = vld [vmem:[%s14878_s18 + $0x358] sm:$0xff] }
 0x6d5   : > { %3021 = vmatpush1.bf16.msra.mxu0 %v11180_v54  ;;  %2981 = vmatprep.subr.bf16.mxu1 %v11045_v55  ;;  %v1306_v54 = vld [vmem:[%s14878_s18 + $0x378] sm:$0xff] }
 0x6d6   : > { %3022 = vmatprep.subr.bf16.mxu0 %v11173_v56  ;;  %v1430_v55 = vld [vmem:[%s14878_s18 + $0x758] sm:$0xff]  ;;  %v11109_v57 = vcombine.high %v1302_v53, %v1306_v54  ;;  %v11108_v61 = vcombine.low %v1302_v53, %v1306_v54 }
 0x6d7   : > { %v1434_v56 = vld [vmem:[%s14878_s18 + $0x778] sm:$0xff] }
 0x6d8   : > { %2982 = vmatpush1.bf16.msra.mxu1 %v11044_v59  ;;  %v11237_v58 = vcombine.high %v1430_v55, %v1434_v56  ;;  %v1294_v59 = vld [vmem:[%s14878_s18 + $0x318] sm:$0xff]  ;;  %v11236_v62 = vcombine.low %v1430_v55, %v1434_v56 }
 0x6d9   : > { %3023 = vmatpush1.bf16.msra.mxu0 %v11172_v9  ;;  %2983 = vmatprep.subr.bf16.mxu1 %v11037_v60  ;;  %v1298_v9 = vld [vmem:[%s14878_s18 + $0x338] sm:$0xff] }
 0x6da   : > { %3024 = vmatprep.subr.bf16.mxu0 %v11165_v19  ;;  %v1422_v60 = vld [vmem:[%s14878_s18 + $0x718] sm:$0xff]  ;;  %v11101_v63 = vcombine.high %v1294_v59, %v1298_v9  ;;  %v11100_v7 = vcombine.low %v1294_v59, %v1298_v9 }
 0x6db   : > { %v1426_v19 = vld [vmem:[%s14878_s18 + $0x738] sm:$0xff] }
 0x6dc   : > { %2984 = vmatpush1.bf16.msra.mxu1 %v11036_v1  ;;  %v11229_v0 = vcombine.high %v1422_v60, %v1426_v19  ;;  %v1286_v1 = vld [vmem:[%s14878_s18 + $0x2d8] sm:$0xff]  ;;  %v11228_v8 = vcombine.low %v1422_v60, %v1426_v19 }
 0x6dd   : > { %3025 = vmatpush1.bf16.msra.mxu0 %v11164_v3  ;;  %2985 = vmatprep.subr.bf16.mxu1 %v11029_v4  ;;  %v1290_v3 = vld [vmem:[%s14878_s18 + $0x2f8] sm:$0xff] }
 0x6de   : > { %3026 = vmatprep.subr.bf16.mxu0 %v11157_v5  ;;  %v1414_v4 = vld [vmem:[%s14878_s18 + $0x6d8] sm:$0xff]  ;;  %v11093_v13 = vcombine.high %v1286_v1, %v1290_v3  ;;  %v11092_v17 = vcombine.low %v1286_v1, %v1290_v3 }
 0x6df   : > { %v1418_v5 = vld [vmem:[%s14878_s18 + $0x6f8] sm:$0xff] }
 0x6e0   : > { %2986 = vmatpush1.bf16.msra.mxu1 %v11028_v15  ;;  %v11221_v14 = vcombine.high %v1414_v4, %v1418_v5  ;;  %v1278_v15 = vld [vmem:[%s14878_s18 + $0x298] sm:$0xff]  ;;  %v11220_v18 = vcombine.low %v1414_v4, %v1418_v5 }
 0x6e1   : > { %3027 = vmatpush1.bf16.msra.mxu0 %v11156_v16  ;;  %2987 = vmatprep.subr.bf16.mxu1 %v11021_v10  ;;  %v1282_v16 = vld [vmem:[%s14878_s18 + $0x2b8] sm:$0xff] }
 0x6e2   : > { %3028 = vmatprep.subr.bf16.mxu0 %v11149_v12  ;;  %v1406_v10 = vld [vmem:[%s14878_s18 + $0x698] sm:$0xff]  ;;  %v11085_v21 = vcombine.high %v1278_v15, %v1282_v16  ;;  %v11084_v29 = vcombine.low %v1278_v15, %v1282_v16 }
 0x6e3   : > { %v1410_v12 = vld [vmem:[%s14878_s18 + $0x6b8] sm:$0xff] }
 0x6e4   : > { %2988 = vmatpush1.bf16.msra.mxu1 %v11020_v25  ;;  %v11213_v24 = vcombine.high %v1406_v10, %v1410_v12  ;;  %v1270_v25 = vld [vmem:[%s14878_s18 + $0x258] sm:$0xff]  ;;  %v11212_v30 = vcombine.low %v1406_v10, %v1410_v12 }
 0x6e5   : > { %3029 = vmatpush1.bf16.msra.mxu0 %v11148_v26  ;;  %2989 = vmatprep.subr.bf16.mxu1 %v11013_v27  ;;  %v1274_v26 = vld [vmem:[%s14878_s18 + $0x278] sm:$0xff] }
 0x6e6   : > { %3030 = vmatprep.subr.bf16.mxu0 %v11141_v28  ;;  %v1398_v27 = vld [vmem:[%s14878_s18 + $0x658] sm:$0xff]  ;;  %v11077_v31 = vcombine.high %v1270_v25, %v1274_v26  ;;  %v11076_v37 = vcombine.low %v1270_v25, %v1274_v26 }
 0x6e7   : > { %v1402_v28 = vld [vmem:[%s14878_s18 + $0x678] sm:$0xff] }
 0x6e8   : > { %2990 = vmatpush1.bf16.msra.mxu1 %v11012_v33  ;;  %v11205_v32 = vcombine.high %v1398_v27, %v1402_v28  ;;  %v1262_v33 = vld [vmem:[%s14878_s18 + $0x218] sm:$0xff]  ;;  %v11204_v38 = vcombine.low %v1398_v27, %v1402_v28 }
 0x6e9   : > { %3031 = vmatpush1.bf16.msra.mxu0 %v11140_v34  ;;  %2991 = vmatprep.subr.bf16.mxu1 %v11005_v35  ;;  %v1266_v34 = vld [vmem:[%s14878_s18 + $0x238] sm:$0xff] }
 0x6ea   : > { %3032 = vmatprep.subr.bf16.mxu0 %v11133_v36  ;;  %v1390_v35 = vld [vmem:[%s14878_s18 + $0x618] sm:$0xff]  ;;  %v11069_v39 = vcombine.high %v1262_v33, %v1266_v34 }
 0x6eb   : > { %v1394_v36 = vld [vmem:[%s14878_s18 + $0x638] sm:$0xff] }
 0x6ec   : > { %2992 = vmatpush1.bf16.msra.mxu1 %v11004_v41  ;;  %v11197_v40 = vcombine.high %v1390_v35, %v1394_v36  ;;  %v11068_v41 = vcombine.low %v1262_v33, %v1266_v34 }
 0x6ed   : > { %3033 = vmatpush1.bf16.msra.mxu0 %v11132_v42  ;;  %2993 = vmatprep.subr.bf16.mxu1 %v11125_v43  ;;  %v11196_v42 = vcombine.low %v1390_v35, %v1394_v36 }
 0x6ee   : > { %3034 = vmatprep.subr.bf16.mxu0 %v11253_v44 }
 0x6f0   : > { %2994 = vmatpush2.bf16.msra.mxu1 %v11124_v49 }
 0x6f1   : > { %3035 = vmatpush2.bf16.msra.mxu0 %v11252_v50  ;;  %2995 = vmatprep.subr.bf16.mxu1 %v11117_v51 }
 0x6f2   : > { %3036 = vmatprep.subr.bf16.mxu0 %v11245_v52 }
 0x6f4   : > { %2996 = vmatpush2.bf16.msra.mxu1 %v11116_v22 }
 0x6f5   : > { %3037 = vmatpush2.bf16.msra.mxu0 %v11244_v23  ;;  %2997 = vmatprep.subr.bf16.mxu1 %v11109_v57 }
 0x6f6   : > { %3038 = vmatprep.subr.bf16.mxu0 %v11237_v58 }
 0x6f8   : > { %2998 = vmatpush2.bf16.msra.mxu1 %v11108_v61 }
 0x6f9   : > { %3039 = vmatpush2.bf16.msra.mxu0 %v11236_v62  ;;  %2999 = vmatprep.subr.bf16.mxu1 %v11101_v63 }
 0x6fa   : > { %3040 = vmatprep.subr.bf16.mxu0 %v11229_v0 }
 0x6fc   : > { %3000 = vmatpush2.bf16.msra.mxu1 %v11100_v7 }
 0x6fd   : > { %3041 = vmatpush2.bf16.msra.mxu0 %v11228_v8  ;;  %3001 = vmatprep.subr.bf16.mxu1 %v11093_v13 }
 0x6fe   : > { %3042 = vmatprep.subr.bf16.mxu0 %v11221_v14 }
 0x700   : > { %3002 = vmatpush2.bf16.msra.mxu1 %v11092_v17 }
 0x701   : > { %3043 = vmatpush2.bf16.msra.mxu0 %v11220_v18  ;;  %3003 = vmatprep.subr.bf16.mxu1 %v11085_v21 }
 0x702   : > { %3044 = vmatprep.subr.bf16.mxu0 %v11213_v24 }
 0x704   : > { %3004 = vmatpush2.bf16.msra.mxu1 %v11084_v29 }
 0x705   : > { %3045 = vmatpush2.bf16.msra.mxu0 %v11212_v30  ;;  %3005 = vmatprep.subr.bf16.mxu1 %v11077_v31 }
 0x706   : > { %3046 = vmatprep.subr.bf16.mxu0 %v11205_v32 }
 0x708   : > { %3006 = vmatpush2.bf16.msra.mxu1 %v11076_v37 }
 0x709   : > { %3047 = vmatpush2.bf16.msra.mxu0 %v11204_v38  ;;  %3007 = vmatprep.subr.bf16.mxu1 %v11069_v39 }
 0x70a   : > { %3048 = vmatprep.subr.bf16.mxu0 %v11197_v40 }
 0x70c   : > { %3008 = vmatpush2.bf16.msra.mxu1 %v11068_v41 }
 0x70d   : > { %3049 = vmatpush2.bf16.msra.mxu0 %v11196_v42 }
 0x70f   : > { %3010 = vmatmul.mubr.bf16.vlgmr.msra.gmra.mxu1 %v15102_v11  ;;  %v2765_v43 = vpop.f32.mrf.mxu1 }
 0x710   : > { %3051 = vmatmul.mubr.bf16.vlgmr.msra.gmra.mxu0 %v15108_v20  ;;  %v2806_v44 = vpop.f32.mrf.mxu0 }
 0x711   : > { %v15310_v45 = vadd.f32 %v2806_v44, %v2765_v43  ;;  %v2767_v46 = vpop.f32.mrf.mxu1 }
 0x712   : > { %v2808_v47 = vpop.f32.mrf.mxu0 }
 0x713   : > { %v15312_v48 = vadd.f32 %v2808_v47, %v2767_v46  ;;  %v2769_v49 = vpop.f32.mrf.mxu1  ;;  %v3062_v3 = vsel %vm601_vm1, %v15310_v45, 0.0 }
 0x714   : > { %v2810_v50 = vpop.f32.mrf.mxu0 }
 0x715   : > { %v2770_v51 = vpop.f32.mrf.mxu1  ;;  %v3063_v1 = vsel %vm601_vm1, %v15312_v48, 0.0 }
 0x716   : > { %v2811_v52 = vpop.f32.mrf.mxu0  ;;  %v3064_v5 = vadd.f32 %v3063_v1, %v3062_v3 }
 0x74f   : > { %v2847_v53 = vpop.f32.mrf.mxu1 }
 0x750   : > { %v2888_v54 = vpop.f32.mrf.mxu0 }
 0x751   : > { %v2889_v55 = vadd.f32 %v2888_v54, %v2847_v53  ;;  %v2849_v56 = vpop.f32.mrf.mxu1 }
 0x752   : > { %v2890_v22 = vpop.f32.mrf.mxu0 }
 0x753   : > { %v2891_v11 = vadd.f32 %v2890_v22, %v2849_v56  ;;  %v2851_v23 = vpop.f32.mrf.mxu1  ;;  %v3065_v4 = vsel %vm601_vm1, %v2889_v55, 0.0 }
 0x754   : > { %v2892_v57 = vpop.f32.mrf.mxu0  ;;  %v3066_v8 = vadd.f32 %v3065_v4, %v3064_v5 }
 0x755   : > { %v2852_v20 = vpop.f32.mrf.mxu1  ;;  %v3067_v13 = vsel %vm601_vm1, %v2891_v11, 0.0 }
 0x756   : > { %v2893_v58 = vpop.f32.mrf.mxu0  ;;  %v3068_v16 = vadd.f32 %v3067_v13, %v3066_v8  ;;  %v13147_v8 = vld [vmem:[%s14884_s12 + $0xe4] ss:$16 sps:$4 sm:$0xff]   ;;  %v13148_v13 = vld [vmem:[%s14884_s12 + $0x2e0] ss:$16 sps:$4 sm:$0xff]  }
 0x757   : > { %4720 = vmatprep.subr.bf16.mxu1 %v13147_v8  ;;  %v13225_v8 = vld [vmem:[%s14884_s12 + $0x144] ss:$16 sps:$4 sm:$0xff]  }
 0x78f   : > { %v2929_v59 = vpop.f32.mrf.mxu1 }
 0x790   : > { %v2970_v9 = vpop.f32.mrf.mxu0 }
 0x791   : > { %v2931_v60 = vpop.f32.mrf.mxu1  ;;  %v2971_v7 = vadd.f32 %v2970_v9, %v2929_v59 }
 0x792   : > { %v2972_v19 = vpop.f32.mrf.mxu0 }
 0x793   : > { %v2933_v61 = vpop.f32.mrf.mxu1  ;;  %v3069_v14 = vsel %vm601_vm1, %v2971_v7, 0.0  ;;  %v2973_v15 = vadd.f32 %v2972_v19, %v2931_v60 }
 0x794   : > { %v2974_v62 = vpop.f32.mrf.mxu0  ;;  %v3070_v10 = vadd.f32 %v3069_v14, %v3068_v16  ;;  %v13150_v14 = vld [vmem:[%s14884_s12 + $0x2e4] ss:$16 sps:$4 sm:$0xff]  }
 0x795   : > { %v2934_v63 = vpop.f32.mrf.mxu1  ;;  %v3071_v12 = vsel %vm601_vm1, %v2973_v15, 0.0  ;;  %4761 = vmatprep.subr.bf16.mxu0 %v13150_v14  ;;  %v13153_v16 = vld [vmem:[%s14884_s12 + $0xc4] ss:$16 sps:$4 sm:$0xff]  }
 0x796   : > { %v2975_v0 = vpop.f32.mrf.mxu0  ;;  %v3072_v25 = vadd.f32 %v3071_v12, %v3070_v10  ;;  %4762 = vmatpush1.bf16.msra.mxu0 %v13148_v13  ;;  %v13154_v10 = vld [vmem:[%s14884_s12 + $0x2c0] ss:$16 sps:$4 sm:$0xff]   ;;  %v13156_v12 = vld [vmem:[%s14884_s12 + $0x2c4] ss:$16 sps:$4 sm:$0xff]  }
 0x797   : > { %4763 = vmatprep.subr.bf16.mxu0 %v13156_v12  ;;  %v13228_v13 = vld [vmem:[%s14884_s12 + $0x344] ss:$16 sps:$4 sm:$0xff]  }
 0x79a   : > { %4764 = vmatpush1.bf16.msra.mxu0 %v13154_v10  ;;  %v13231_v10 = vld [vmem:[%s14884_s12 + $0x124] ss:$16 sps:$4 sm:$0xff]  }
 0x7cf   : > { %v3011_v17 = vpop.f32.mrf.mxu1 }
 0x7d0   : > { %v3052_v18 = vpop.f32.mrf.mxu0 }
 0x7d1   : > { %v3053_v21 = vadd.f32 %v3052_v18, %v3011_v17  ;;  %v3013_v24 = vpop.f32.mrf.mxu1  ;;  %v13159_v17 = vld [vmem:[%s14884_s12 + $0xa4] ss:$16 sps:$4 sm:$0xff]  }
 0x7d2   : > { %v3054_v26 = vpop.f32.mrf.mxu0  ;;  %v13162_v18 = vld [vmem:[%s14884_s12 + $0x2a4] ss:$16 sps:$4 sm:$0xff]  }
 0x7d3   : > { %v3073_v27 = vsel %vm601_vm1, %v3053_v21, 0.0  ;;  %v3055_v28 = vadd.f32 %v3054_v26, %v3013_v24  ;;  %v3015_v29 = vpop.f32.mrf.mxu1  ;;  %v13160_v24 = vld [vmem:[%s14884_s12 + $0x2a0] ss:$16 sps:$4 sm:$0xff]   ;;  %4765 = vmatprep.subr.bf16.mxu0 %v13162_v18  ;;  %v13168_v26 = vld [vmem:[%s14884_s12 + $0x284] ss:$16 sps:$4 sm:$0xff]  }
 0x7d4   : > { %v3056_v30 = vpop.f32.mrf.mxu0  ;;  %v3074_v31 = vadd.f32 %v3073_v27, %v3072_v25  ;;  %v13165_v25 = vld [vmem:[%s14884_s12 + $0x84] ss:$16 sps:$4 sm:$0xff]   ;;  %v13163_v27 = vld [vmem:[%s14884_s12 + $0x80] ss:$16 sps:$4 sm:$0xff]   ;;  %4766 = vmatpush1.bf16.msra.mxu0 %v13160_v24 }
 0x7d5   : > { %v3016_v32 = vpop.f32.mrf.mxu1  ;;  %v3075_v33 = vsel %vm601_vm1, %v3055_v28, 0.0  ;;  %v13171_v29 = vld [vmem:[%s14884_s12 + $0x64] ss:$16 sps:$4 sm:$0xff]   ;;  %4767 = vmatprep.subr.bf16.mxu0 %v13168_v26  ;;  %v13232_v18 = vld [vmem:[%s14884_s12 + $0x320] ss:$16 sps:$4 sm:$0xff]  }
 0x7d6   : > { %v3057_v34 = vpop.f32.mrf.mxu0  ;;  %v3076_v35 = vadd.f32 %v3075_v33, %v3074_v31  ;;  %v13174_v30 = vld [vmem:[%s14884_s12 + $0x264] ss:$16 sps:$4 sm:$0xff]   ;;  %v13169_v31 = vld [vmem:[%s14884_s12 + $0x60] ss:$16 sps:$4 sm:$0xff]  }
 0x7d7   : > { %v13172_v32 = vld [vmem:[%s14884_s12 + $0x260] ss:$16 sps:$4 sm:$0xff]   ;;  %v13177_v33 = vld [vmem:[%s14884_s12 + $0x44] ss:$16 sps:$4 sm:$0xff]  }
 0x7d8   : > { %3077 = vadd.xlane.f32.xlu0 %v3076_v35  ;;  %v13180_v34 = vld [vmem:[%s14884_s12 + $0x244] ss:$16 sps:$4 sm:$0xff]   ;;  %v13175_v35 = vld [vmem:[%s14884_s12 + $0x40] ss:$16 sps:$4 sm:$0xff]  }
 0x7d9   : > { %v13237_v24 = vld [vmem:[%s14884_s12 + $0x104] ss:$16 sps:$4 sm:$0xff]  }
 0x861   : > { %v3078_v36 = vpop.xlane.xlu0 %3077 }
 0x862   : > { %v3079_v37 = vrot.slane %v3078_v36, 4 }
 0x864   : > { %v3080_v38 = vadd.f32 %v3079_v37, %v3078_v36  ;;  %v13178_v36 = vld [vmem:[%s14884_s12 + $0x240] ss:$16 sps:$4 sm:$0xff]   ;;  %v13183_v37 = vld [vmem:[%s14884_s12 + $0x24] ss:$16 sps:$4 sm:$0xff]  }
 0x866   : > { %v3081_v39 = vrot.slane %v3080_v38, 2 }
 0x868   : > { %v3082_v40 = vadd.f32 %v3081_v39, %v3080_v38  ;;  %v13186_v38 = vld [vmem:[%s14884_s12 + $0x224] ss:$16 sps:$4 sm:$0xff]   ;;  %v13181_v39 = vld [vmem:[%s14884_s12 + $0x20] ss:$16 sps:$4 sm:$0xff]  }
 0x86a   : > { %v3083_v41 = vrot.slane %v3082_v40, 1 }
 0x86c   : > { %v3084_v42 = vadd.f32 %v3083_v41, %v3082_v40  ;;  %v13184_v40 = vld [vmem:[%s14884_s12 + $0x220] ss:$16 sps:$4 sm:$0xff]   ;;  %v13189_v41 = vld [vmem:[%s14884_s12 + $0x4] ss:$16 sps:$4 sm:$0xff]  }
 0x86e   : > { %12901 = vpush %v3084_v42  ;;  %v13192_v42 = vld [vmem:[%s14884_s12 + $0x204] ss:$16 sps:$4 sm:$0xff]  }
 0x89f   : > { %s12902_s14 = spop %12901 }
 0x8a0   : > { %s3086_s20 = smul.f32 0.00048828125, %s12902_s14  ;;  %s5049_s14 = sld [smem:[#allocation14 + %s5048_s11]] }
 0x8a2   : > { %v3087_v43 = vstv %s3086_s20  ;;  %s5050_s20 = sld [smem:[#allocation15 + %s5048_s11]] }
 0x8a3   : > { %v15325_v44 = vsub.f32 %v15310_v45, %v3087_v43  ;;  %v15328_v46 = vsub.f32 %v15312_v48, %v3087_v43  ;;  %v15330_v47 = vsub.f32 %v2889_v55, %v3087_v43  ;;  %v15332_v49 = vsub.f32 %v2891_v11, %v3087_v43 }
 0x8a4   : > { %v15334_v50 = vsub.f32 %v2971_v7, %v3087_v43  ;;  %v15342_v45 = vsub.f32 %v2973_v15, %v3087_v43  ;;  %v15348_v22 = vsub.f32 %v3053_v21, %v3087_v43  ;;  %v15353_v20 = vsub.f32 %v3055_v28, %v3087_v43  ;;  %v13145_v7 = vld [vmem:[%s14884_s12 + $0xe0] ss:$16 sps:$4 sm:$0xff]  }
 0x8a5   : > { %v3096_v51 = vmul.f32 %v15325_v44, %v15325_v44  ;;  %v3097_v52 = vmul.f32 %v15328_v46, %v15328_v46  ;;  %v3098_v53 = vmul.f32 %v15330_v47, %v15330_v47  ;;  %v3099_v48 = vmul.f32 %v15332_v49, %v15332_v49  ;;  %4721 = vmatpush1.bf16.msra.mxu1 %v13145_v7  ;;  %v13151_v15 = vld [vmem:[%s14884_s12 + $0xc0] ss:$16 sps:$4 sm:$0xff]  }
 0x8a6   : > { %v3100_v11 = vmul.f32 %v15334_v50, %v15334_v50  ;;  %v3101_v58 = vmul.f32 %v15342_v45, %v15342_v45  ;;  %v3102_v60 = vmul.f32 %v15348_v22, %v15348_v22  ;;  %v3103_v62 = vmul.f32 %v15353_v20, %v15353_v20  ;;  %4722 = vmatprep.subr.bf16.mxu1 %v13153_v16  ;;  %v13157_v21 = vld [vmem:[%s14884_s12 + $0xa0] ss:$16 sps:$4 sm:$0xff]  }
 0x8a7   : > { %v3104_v54 = vsel %vm601_vm1, %v3096_v51, 0.0  ;;  %v3105_v55 = vsel %vm601_vm1, %v3097_v52, 0.0  ;;  %v3107_v23 = vsel %vm601_vm1, %v3098_v53, 0.0  ;;  %v3109_v59 = vsel %vm601_vm1, %v3099_v48, 0.0  ;;  %v13166_v28 = vld [vmem:[%s14884_s12 + $0x280] ss:$16 sps:$4 sm:$0xff]  }
 0x8a8   : > { %v3106_v56 = vadd.f32 %v3105_v55, %v3104_v54  ;;  %v3111_v19 = vsel %vm601_vm1, %v3100_v11, 0.0  ;;  %v3113_v63 = vsel %vm601_vm1, %v3101_v58, 0.0  ;;  %v3115_v1 = vsel %vm601_vm1, %v3102_v60, 0.0  ;;  %4768 = vmatpush1.bf16.msra.mxu0 %v13166_v28  ;;  %v13187_v43 = vld [vmem:[%s14884_s12] ss:$16 sps:$4 sm:$0xff]  }
 0x8a9   : > { %v3117_v4 = vsel %vm601_vm1, %v3103_v62, 0.0  ;;  %4723 = vmatpush1.bf16.msra.mxu1 %v13151_v15  ;;  %4769 = vmatprep.subr.bf16.mxu0 %v13174_v30  ;;  %v13190_v51 = vld [vmem:[%s14884_s12 + $0x200] ss:$16 sps:$4 sm:$0xff]   ;;  %v13195_v52 = vld [vmem:[%s14884_s12 + $0x1e4] ss:$16 sps:$4 sm:$0xff]  }
 0x8aa   : > { %v3108_v57 = vadd.f32 %v3107_v23, %v3106_v56  ;;  %4724 = vmatprep.subr.bf16.mxu1 %v13159_v17  ;;  %v13198_v53 = vld [vmem:[%s14884_s12 + $0x3e4] ss:$16 sps:$4 sm:$0xff]   ;;  %v13193_v48 = vld [vmem:[%s14884_s12 + $0x1e0] ss:$16 sps:$4 sm:$0xff]  }
 0x8ab   : > { %v13196_v54 = vld [vmem:[%s14884_s12 + $0x3e0] ss:$16 sps:$4 sm:$0xff]   ;;  %v13201_v55 = vld [vmem:[%s14884_s12 + $0x1c4] ss:$16 sps:$4 sm:$0xff]  }
 0x8ac   : > { %v3110_v9 = vadd.f32 %v3109_v59, %v3108_v57  ;;  %4770 = vmatpush1.bf16.msra.mxu0 %v13172_v32  ;;  %v13204_v56 = vld [vmem:[%s14884_s12 + $0x3c4] ss:$16 sps:$4 sm:$0xff]   ;;  %v13199_v11 = vld [vmem:[%s14884_s12 + $0x1c0] ss:$16 sps:$4 sm:$0xff]  }
 0x8ad   : > { %4725 = vmatpush1.bf16.msra.mxu1 %v13157_v21  ;;  %4771 = vmatprep.subr.bf16.mxu0 %v13180_v34  ;;  %v13202_v23 = vld [vmem:[%s14884_s12 + $0x3c0] ss:$16 sps:$4 sm:$0xff]   ;;  %v13207_v57 = vld [vmem:[%s14884_s12 + $0x1a4] ss:$16 sps:$4 sm:$0xff]  }
 0x8ae   : > { %v3112_v61 = vadd.f32 %v3111_v19, %v3110_v9  ;;  %4726 = vmatprep.subr.bf16.mxu1 %v13165_v25  ;;  %v13210_v58 = vld [vmem:[%s14884_s12 + $0x3a4] ss:$16 sps:$4 sm:$0xff]   ;;  %v13205_v59 = vld [vmem:[%s14884_s12 + $0x1a0] ss:$16 sps:$4 sm:$0xff]  }
 0x8af   : > { %v13208_v9 = vld [vmem:[%s14884_s12 + $0x3a0] ss:$16 sps:$4 sm:$0xff]   ;;  %v13213_v60 = vld [vmem:[%s14884_s12 + $0x184] ss:$16 sps:$4 sm:$0xff]  }
 0x8b0   : > { %v3114_v0 = vadd.f32 %v3113_v63, %v3112_v61  ;;  %4772 = vmatpush1.bf16.msra.mxu0 %v13178_v36  ;;  %v13216_v19 = vld [vmem:[%s14884_s12 + $0x384] ss:$16 sps:$4 sm:$0xff]   ;;  %v13211_v61 = vld [vmem:[%s14884_s12 + $0x180] ss:$16 sps:$4 sm:$0xff]  }
 0x8b1   : > { %4727 = vmatpush1.bf16.msra.mxu1 %v13163_v27  ;;  %4773 = vmatprep.subr.bf16.mxu0 %v13186_v38  ;;  %v13214_v62 = vld [vmem:[%s14884_s12 + $0x380] ss:$16 sps:$4 sm:$0xff]   ;;  %v13219_v63 = vld [vmem:[%s14884_s12 + $0x164] ss:$16 sps:$4 sm:$0xff]  }
 0x8b2   : > { %v3116_v3 = vadd.f32 %v3115_v1, %v3114_v0  ;;  %4728 = vmatprep.subr.bf16.mxu1 %v13171_v29  ;;  %v13222_v0 = vld [vmem:[%s14884_s12 + $0x364] ss:$16 sps:$4 sm:$0xff]   ;;  %v13217_v1 = vld [vmem:[%s14884_s12 + $0x160] ss:$16 sps:$4 sm:$0xff]  }
 0x8b3   : > { %v13223_v15 = vld [vmem:[%s14884_s12 + $0x140] ss:$16 sps:$4 sm:$0xff]   ;;  %v13234_v21 = vld [vmem:[%s14884_s12 + $0x324] ss:$16 sps:$4 sm:$0xff]  }
 0x8b4   : > { %v3118_v5 = vadd.f32 %v3117_v4, %v3116_v3  ;;  %4774 = vmatpush1.bf16.msra.mxu0 %v13184_v40  ;;  %v13220_v3 = vld [vmem:[%s14884_s12 + $0x360] ss:$16 sps:$4 sm:$0xff]   ;;  %v13240_v25 = vld [vmem:[%s14884_s12 + $0x304] ss:$16 sps:$4 sm:$0xff]  }
 0x8b5   : > { %4729 = vmatpush1.bf16.msra.mxu1 %v13169_v31  ;;  %4775 = vmatprep.subr.bf16.mxu0 %v13192_v42  ;;  %v13226_v16 = vld [vmem:[%s14884_s12 + $0x340] ss:$16 sps:$4 sm:$0xff]   ;;  %v13243_v30 = vld [vmem:[%s14884_s12 + $0x4e4] ss:$16 sps:$4 sm:$0xff]  }
 0x8b6   : > { %3119 = vadd.xlane.f32.xlu1 %v3118_v5  ;;  %4730 = vmatprep.subr.bf16.mxu1 %v13177_v33  ;;  %v13229_v17 = vld [vmem:[%s14884_s12 + $0x120] ss:$16 sps:$4 sm:$0xff]   ;;  %v13246_v31 = vld [vmem:[%s14884_s12 + $0x6e4] ss:$16 sps:$4 sm:$0xff]  }
 0x8b7   : > { %v13235_v28 = vld [vmem:[%s14884_s12 + $0x100] ss:$16 sps:$4 sm:$0xff]  }
 0x8b8   : > { %4776 = vmatpush1.bf16.msra.mxu0 %v13190_v51  ;;  %v13238_v29 = vld [vmem:[%s14884_s12 + $0x300] ss:$16 sps:$4 sm:$0xff]  }
 0x8b9   : > { %4731 = vmatpush1.bf16.msra.mxu1 %v13175_v35  ;;  %4777 = vmatprep.subr.bf16.mxu0 %v13198_v53  ;;  %v3143_v35 = vstv %s3061_s27 }
 0x8ba   : > { %4732 = vmatprep.subr.bf16.mxu1 %v13183_v37 }
 0x8bc   : > { %4778 = vmatpush2.bf16.msra.mxu0 %v13196_v54 }
 0x8bd   : > { %4733 = vmatpush1.bf16.msra.mxu1 %v13181_v39  ;;  %4779 = vmatprep.subr.bf16.mxu0 %v13204_v56 }
 0x8be   : > { %4734 = vmatprep.subr.bf16.mxu1 %v13189_v41 }
 0x8c0   : > { %4780 = vmatpush2.bf16.msra.mxu0 %v13202_v23 }
 0x8c1   : > { %4735 = vmatpush1.bf16.msra.mxu1 %v13187_v43  ;;  %4781 = vmatprep.subr.bf16.mxu0 %v13210_v58  ;;  %v13244_v58 = vld [vmem:[%s14884_s12 + $0x6e0] ss:$16 sps:$4 sm:$0xff]  }
 0x8c2   : > { %4736 = vmatprep.subr.bf16.mxu1 %v13195_v52 }
 0x8c4   : > { %4782 = vmatpush2.bf16.msra.mxu0 %v13208_v9 }
 0x8c5   : > { %4737 = vmatpush2.bf16.msra.mxu1 %v13193_v48  ;;  %4783 = vmatprep.subr.bf16.mxu0 %v13216_v19 }
 0x8c6   : > { %4738 = vmatprep.subr.bf16.mxu1 %v13201_v55 }
 0x8c8   : > { %4784 = vmatpush2.bf16.msra.mxu0 %v13214_v62  ;;  %v13249_v62 = vld [vmem:[%s14884_s12 + $0x4c4] ss:$16 sps:$4 sm:$0xff]  }
 0x8c9   : > { %4739 = vmatpush2.bf16.msra.mxu1 %v13199_v11  ;;  %4785 = vmatprep.subr.bf16.mxu0 %v13222_v0  ;;  %v13252_v0 = vld [vmem:[%s14884_s12 + $0x6c4] ss:$16 sps:$4 sm:$0xff]  }
 0x8ca   : > { %4740 = vmatprep.subr.bf16.mxu1 %v13207_v57  ;;  %v13241_v57 = vld [vmem:[%s14884_s12 + $0x4e0] ss:$16 sps:$4 sm:$0xff]  }
 0x8cc   : > { %4786 = vmatpush2.bf16.msra.mxu0 %v13220_v3 }
 0x8cd   : > { %4741 = vmatpush2.bf16.msra.mxu1 %v13205_v59  ;;  %4787 = vmatprep.subr.bf16.mxu0 %v13228_v13  ;;  %v13258_v13 = vld [vmem:[%s14884_s12 + $0x6a4] ss:$16 sps:$4 sm:$0xff]  }
 0x8ce   : > { %4742 = vmatprep.subr.bf16.mxu1 %v13213_v60 }
 0x8d0   : > { %4788 = vmatpush2.bf16.msra.mxu0 %v13226_v16  ;;  %v13261_v16 = vld [vmem:[%s14884_s12 + $0x484] ss:$16 sps:$4 sm:$0xff]  }
 0x8d1   : > { %4743 = vmatpush2.bf16.msra.mxu1 %v13211_v61  ;;  %4789 = vmatprep.subr.bf16.mxu0 %v13234_v21  ;;  %v13270_v21 = vld [vmem:[%s14884_s12 + $0x664] ss:$16 sps:$4 sm:$0xff]  }
 0x8d2   : > { %4744 = vmatprep.subr.bf16.mxu1 %v13219_v63 }
 0x8d4   : > { %4790 = vmatpush2.bf16.msra.mxu0 %v13232_v18  ;;  %v13267_v18 = vld [vmem:[%s14884_s12 + $0x464] ss:$16 sps:$4 sm:$0xff]  }
 0x8d5   : > { %4745 = vmatpush2.bf16.msra.mxu1 %v13217_v1  ;;  %4791 = vmatprep.subr.bf16.mxu0 %v13240_v25  ;;  %v13268_v25 = vld [vmem:[%s14884_s12 + $0x660] ss:$16 sps:$4 sm:$0xff]  }
 0x8d6   : > { %4746 = vmatprep.subr.bf16.mxu1 %v13225_v8  ;;  %v13255_v8 = vld [vmem:[%s14884_s12 + $0x4a4] ss:$16 sps:$4 sm:$0xff]  }
 0x8d8   : > { %4792 = vmatpush2.bf16.msra.mxu0 %v13238_v29  ;;  %v13274_v29 = vld [vmem:[%s14884_s12 + $0x640] ss:$16 sps:$4 sm:$0xff]  }
 0x8d9   : > { %4747 = vmatpush2.bf16.msra.mxu1 %v13223_v15  ;;  %4843 = vmatprep.subr.bf16.mxu0 %v13246_v31  ;;  %v13256_v15 = vld [vmem:[%s14884_s12 + $0x6a0] ss:$16 sps:$4 sm:$0xff]   ;;  %v13282_v31 = vld [vmem:[%s14884_s12 + $0x624] ss:$16 sps:$4 sm:$0xff]  }
 0x8da   : > { %4748 = vmatprep.subr.bf16.mxu1 %v13231_v10  ;;  %v13264_v10 = vld [vmem:[%s14884_s12 + $0x684] ss:$16 sps:$4 sm:$0xff]  }
 0x8dd   : > { %4749 = vmatpush2.bf16.msra.mxu1 %v13229_v17  ;;  %v13262_v17 = vld [vmem:[%s14884_s12 + $0x680] ss:$16 sps:$4 sm:$0xff]  }
 0x8de   : > { %4750 = vmatprep.subr.bf16.mxu1 %v13237_v24  ;;  %v13265_v24 = vld [vmem:[%s14884_s12 + $0x460] ss:$16 sps:$4 sm:$0xff]  }
 0x8e1   : > { %4751 = vmatpush2.bf16.msra.mxu1 %v13235_v28  ;;  %v13271_v28 = vld [vmem:[%s14884_s12 + $0x440] ss:$16 sps:$4 sm:$0xff]  }
 0x8e2   : > { %4802 = vmatprep.subr.bf16.mxu1 %v13243_v30  ;;  %v13279_v30 = vld [vmem:[%s14884_s12 + $0x424] ss:$16 sps:$4 sm:$0xff]  }
 0x93f   : > { %v3120_v4 = vpop.xlane.xlu1 %3119 }
 0x940   : > { %v3121_v5 = vrot.slane %v3120_v4, 4 }
 0x942   : > { %v3122_v7 = vadd.f32 %v3121_v5, %v3120_v4  ;;  %v13247_v4 = vld [vmem:[%s14884_s12 + $0x4c0] ss:$16 sps:$4 sm:$0xff]  }
 0x943   : > { %v13250_v5 = vld [vmem:[%s14884_s12 + $0x6c0] ss:$16 sps:$4 sm:$0xff]  }
 0x944   : > { %v3123_v14 = vrot.slane %v3122_v7, 2 }
 0x946   : > { %v3124_v12 = vadd.f32 %v3123_v14, %v3122_v7  ;;  %v13253_v14 = vld [vmem:[%s14884_s12 + $0x4a0] ss:$16 sps:$4 sm:$0xff]  }
 0x948   : > { %v3125_v26 = vrot.slane %v3124_v12, 1 }
 0x94a   : > { %v3126_v27 = vadd.f32 %v3125_v26, %v3124_v12  ;;  %v13259_v12 = vld [vmem:[%s14884_s12 + $0x480] ss:$16 sps:$4 sm:$0xff]   ;;  %v13273_v26 = vld [vmem:[%s14884_s12 + $0x444] ss:$16 sps:$4 sm:$0xff]  }
 0x94c   : > { %12903 = vpush %v3126_v27  ;;  %v13276_v27 = vld [vmem:[%s14884_s12 + $0x644] ss:$16 sps:$4 sm:$0xff]  }
 0x97d   : > { %s12904_s23 = spop %12903 }
 0x97e   : > { %s3128_s3 = smul.f32 0.00048828125, %s12904_s23 }
 0x980   : > { %s3129_s24 = sadd.f32 1e-05, %s3128_s3 }
 0x982   : > { %v3130_v32 = vstv %s3129_s24 }
 0x983   : > { %14211 = vrsqrt.f32 %v3130_v32  ;;  %v13277_v32 = vld [vmem:[%s14884_s12 + $0x420] ss:$16 sps:$4 sm:$0xff]  }
 0x990   : > { %v14212_v33 = vpop.eup %14211 }
 0x991   : > { %12905 = vpush %v14212_v33  ;;  %v13280_v33 = vld [vmem:[%s14884_s12 + $0x620] ss:$16 sps:$4 sm:$0xff]  }
 0x9c2   : > { %s12906_s15 = spop %12905 }
 0x9c3   : > { %s3133_s26 = smul.f32 %s12906_s15, %s3060_s8 }
 0x9c5   : > { %v3134_v34 = vstv %s3133_s26 }
 0x9c6   : > { %v3136_v36 = vmul.f32 %v3134_v34, %v15328_v46  ;;  %v3138_v37 = vmul.f32 %v3134_v34, %v15332_v49  ;;  %v3135_v38 = vmul.f32 %v3134_v34, %v15325_v44  ;;  %v3137_v39 = vmul.f32 %v3134_v34, %v15330_v47 }
 0x9c7   : > { %v3140_v40 = vmul.f32 %v3134_v34, %v15342_v45  ;;  %v3142_v41 = vmul.f32 %v3134_v34, %v15353_v20  ;;  %v3139_v42 = vmul.f32 %v3134_v34, %v15334_v50  ;;  %v3141_v43 = vmul.f32 %v3134_v34, %v15348_v22  ;;  %v13285_v34 = vld [vmem:[%s14884_s12 + $0x404] ss:$16 sps:$4 sm:$0xff]  }
 0x9c8   : > { %v3145_v51 = vadd.f32 %v3143_v35, %v3136_v36  ;;  %v3147_v52 = vadd.f32 %v3143_v35, %v3138_v37  ;;  %v3144_v53 = vadd.f32 %v3143_v35, %v3135_v38  ;;  %v3146_v48 = vadd.f32 %v3143_v35, %v3137_v39  ;;  %v13283_v36 = vld [vmem:[%s14884_s12 + $0x400] ss:$16 sps:$4 sm:$0xff]   ;;  %v13291_v38 = vld [vmem:[%s14884_s12 + $0x5e4] ss:$16 sps:$4 sm:$0xff]  }
 0x9c9   : > { %v3149_v54 = vadd.f32 %v3143_v35, %v3140_v40  ;;  %v3151_v46 = vadd.f32 %v3143_v35, %v3142_v41  ;;  %v15441_v55 = vadd.f32 %v3143_v35, %v3139_v42  ;;  %v15443_v44 = vadd.f32 %v3143_v35, %v3141_v43  ;;  %v13288_v35 = vld [vmem:[%s14884_s12 + $0x604] ss:$16 sps:$4 sm:$0xff]   ;;  %v13286_v37 = vld [vmem:[%s14884_s12 + $0x600] ss:$16 sps:$4 sm:$0xff]  }
 0x9ca   : > { %vm3153_vm8 = vcmp.gt.f32.partialorder %v3145_v51, 0.0  ;;  %v3161_v47 = vmul.f32 0.2, %v3145_v51  ;;  %vm3155_vm9 = vcmp.gt.f32.partialorder %v3147_v52, 0.0  ;;  %v3163_v49 = vmul.f32 0.2, %v3147_v52 }
 0x9cb   : > { %vm3152_vm10 = vcmp.gt.f32.partialorder %v3144_v53, 0.0  ;;  %v3160_v50 = vmul.f32 0.2, %v3144_v53  ;;  %vm3154_vm11 = vcmp.gt.f32.partialorder %v3146_v48, 0.0  ;;  %v3162_v45 = vmul.f32 0.2, %v3146_v48 }
 0x9cc   : > { %v3169_v22 = vsel %vm3153_vm8, %v3145_v51, %v3161_v47  ;;  %v3171_v20 = vsel %vm3155_vm9, %v3147_v52, %v3163_v49  ;;  %vm3157_vm12 = vcmp.gt.f32.partialorder %v3149_v54, 0.0  ;;  %v3165_v56 = vmul.f32 0.2, %v3149_v54  ;;  %v13294_v39 = vld [vmem:[%s14884_s12 + $0x7e4] ss:$16 sps:$4 sm:$0xff]  }
 0x9cd   : > { %v15445_v11 = vpack.c.bf16 %v3169_v22, %v3169_v22  ;;  %v15447_v23 = vpack.c.bf16 %v3171_v20, %v3171_v20  ;;  %v3168_v59 = vsel %vm3152_vm10, %v3144_v53, %v3160_v50  ;;  %v3170_v9 = vsel %vm3154_vm11, %v3146_v48, %v3162_v45  ;;  %v13289_v40 = vld [vmem:[%s14884_s12 + $0x5e0] ss:$16 sps:$4 sm:$0xff]   ;;  %v13297_v42 = vld [vmem:[%s14884_s12 + $0x5c4] ss:$16 sps:$4 sm:$0xff]  }
 0x9ce   : > { %v15451_v60 = vpack.c.bf16 %v3168_v59, %v3168_v59  ;;  %v15453_v19 = vpack.c.bf16 %v3170_v9, %v3170_v9  ;;  %v3173_v61 = vsel %vm3157_vm12, %v3149_v54, %v3165_v56  ;;  %vm3159_vm13 = vcmp.gt.f32.partialorder %v3151_v46, 0.0  ;;  %v13292_v41 = vld [vmem:[%s14884_s12 + $0x7e0] ss:$16 sps:$4 sm:$0xff]   ;;  %v13300_v43 = vld [vmem:[%s14884_s12 + $0x7c4] ss:$16 sps:$4 sm:$0xff]  }
 0x9cf   : > { %4752 = vmatprep.mubr.bf16.mxu1 %v15445_v11  ;;  %4793 = vmatprep.mubr.bf16.mxu0 %v15447_v23  ;;  %v3167_v63 = vmul.f32 0.2, %v3151_v46  ;;  %v15461_v1 = vpack.c.bf16 %v3173_v61, %v3173_v61  ;;  %v13295_v51 = vld [vmem:[%s14884_s12 + $0x5c0] ss:$16 sps:$4 sm:$0xff]   ;;  %v13303_v53 = vld [vmem:[%s14884_s12 + $0x5a4] ss:$16 sps:$4 sm:$0xff]  }
 0x9d0   : > { %4753 = vmatmul.mubr.bf16.vlgmr.msra.gmra.mxu1 %v15451_v60  ;;  %4794 = vmatmul.mubr.bf16.vlgmr.msra.gmra.mxu0 %v15453_v19  ;;  %v13298_v52 = vld [vmem:[%s14884_s12 + $0x7c0] ss:$16 sps:$4 sm:$0xff]   ;;  %v13306_v48 = vld [vmem:[%s14884_s12 + $0x7a4] ss:$16 sps:$4 sm:$0xff]   ;;  %vm3156_vm14 = vcmp.gt.f32.partialorder %v15441_v55, 0.0  ;;  %vm3158_vm15 = vcmp.gt.f32.partialorder %v15443_v44, 0.0 }
 0x9d1   : > { %4803 = vmatpush1.bf16.msra.mxu1 %v13241_v57  ;;  %4844 = vmatpush1.bf16.msra.mxu0 %v13244_v58  ;;  %v3175_v3 = vsel %vm3159_vm13, %v3151_v46, %v3167_v63  ;;  %v13301_v54 = vld [vmem:[%s14884_s12 + $0x5a0] ss:$16 sps:$4 sm:$0xff]   ;;  %v13309_v47 = vld [vmem:[%s14884_s12 + $0x584] ss:$16 sps:$4 sm:$0xff]  }
 0x9d2   : > { %4834 = vmatprep.mubr.bf16.mxu1 %v15461_v1  ;;  %v15466_v7 = vpack.c.bf16 %v3175_v3, %v3175_v3  ;;  %4804 = vmatprep.subr.bf16.mxu1 %v13249_v62  ;;  %v13304_v46 = vld [vmem:[%s14884_s12 + $0x7a0] ss:$16 sps:$4 sm:$0xff]   ;;  %v13312_v49 = vld [vmem:[%s14884_s12 + $0x784] ss:$16 sps:$4 sm:$0xff]  }
 0x9d3   : > { %4845 = vmatprep.subr.bf16.mxu0 %v13252_v0  ;;  %v13307_v50 = vld [vmem:[%s14884_s12 + $0x580] ss:$16 sps:$4 sm:$0xff]   ;;  %v13315_v22 = vld [vmem:[%s14884_s12 + $0x564] ss:$16 sps:$4 sm:$0xff]  }
 0x9d4   : > { %4875 = vmatprep.mubr.bf16.mxu0 %v15466_v7  ;;  %v13310_v45 = vld [vmem:[%s14884_s12 + $0x780] ss:$16 sps:$4 sm:$0xff]   ;;  %v13318_v20 = vld [vmem:[%s14884_s12 + $0x764] ss:$16 sps:$4 sm:$0xff]  }
 0x9d5   : > { %4805 = vmatpush1.bf16.msra.mxu1 %v13247_v4  ;;  %4846 = vmatpush1.bf16.msra.mxu0 %v13250_v5  ;;  %v13313_v56 = vld [vmem:[%s14884_s12 + $0x560] ss:$16 sps:$4 sm:$0xff]   ;;  %v13321_v58 = vld [vmem:[%s14884_s12 + $0x544] ss:$16 sps:$4 sm:$0xff]  }
 0x9d6   : > { %4806 = vmatprep.subr.bf16.mxu1 %v13255_v8  ;;  %4847 = vmatprep.subr.bf16.mxu0 %v13258_v13  ;;  %v13316_v57 = vld [vmem:[%s14884_s12 + $0x760] ss:$16 sps:$4 sm:$0xff]   ;;  %v13324_v59 = vld [vmem:[%s14884_s12 + $0x744] ss:$16 sps:$4 sm:$0xff]   ;;  %v3164_v8 = vmul.f32 0.2, %v15441_v55 }
 0x9d7   : > { %v13319_v9 = vld [vmem:[%s14884_s12 + $0x540] ss:$16 sps:$4 sm:$0xff]   ;;  %v13327_v62 = vld [vmem:[%s14884_s12 + $0x524] ss:$16 sps:$4 sm:$0xff]   ;;  %v3166_v13 = vmul.f32 0.2, %v15443_v44 }
 0x9d8   : > { %v13322_v61 = vld [vmem:[%s14884_s12 + $0x740] ss:$16 sps:$4 sm:$0xff]   ;;  %v13330_v63 = vld [vmem:[%s14884_s12 + $0x724] ss:$16 sps:$4 sm:$0xff]  }
 0x9d9   : > { %4807 = vmatpush1.bf16.msra.mxu1 %v13253_v14  ;;  %4848 = vmatpush1.bf16.msra.mxu0 %v13256_v15  ;;  %v13325_v0 = vld [vmem:[%s14884_s12 + $0x520] ss:$16 sps:$4 sm:$0xff]   ;;  %v13333_v4 = vld [vmem:[%s14884_s12 + $0x504] ss:$16 sps:$4 sm:$0xff]  }
 0x9da   : > { %4808 = vmatprep.subr.bf16.mxu1 %v13261_v16  ;;  %4849 = vmatprep.subr.bf16.mxu0 %v13264_v10  ;;  %v13328_v3 = vld [vmem:[%s14884_s12 + $0x720] ss:$16 sps:$4 sm:$0xff]   ;;  %v13336_v5 = vld [vmem:[%s14884_s12 + $0x704] ss:$16 sps:$4 sm:$0xff]   ;;  %v13339_v16 = vld [vmem:[%s14884_s12 + $0xec] ss:$16 sps:$4 sm:$0xff]  }
 0x9db   : > { %v13331_v14 = vld [vmem:[%s14884_s12 + $0x500] ss:$16 sps:$4 sm:$0xff]   ;;  %v13342_v10 = vld [vmem:[%s14884_s12 + $0x2ec] ss:$16 sps:$4 sm:$0xff]  }
 0x9dc   : > { %v13334_v15 = vld [vmem:[%s14884_s12 + $0x700] ss:$16 sps:$4 sm:$0xff]  }
 0x9dd   : > { %4809 = vmatpush1.bf16.msra.mxu1 %v13259_v12  ;;  %4850 = vmatpush1.bf16.msra.mxu0 %v13262_v17  ;;  %v3172_v12 = vsel %vm3156_vm14, %v15441_v55, %v3164_v8  ;;  %v3174_v17 = vsel %vm3158_vm15, %v15443_v44, %v3166_v13  ;;  %v13343_v55 = vld [vmem:[%s14884_s12 + $0xc8] ss:$16 sps:$4 sm:$0xff]  }
 0x9de   : > { %4810 = vmatprep.subr.bf16.mxu1 %v13267_v18  ;;  %4851 = vmatprep.subr.bf16.mxu0 %v13270_v21  ;;  %v13337_v18 = vld [vmem:[%s14884_s12 + $0xe8] ss:$16 sps:$4 sm:$0xff]   ;;  %v15534_v21 = vpack.c.bf16 %v3172_v12, %v3172_v12  ;;  %v13423_v12 = vld [vmem:[%s14884_s12 + $0x12c] ss:$16 sps:$4 sm:$0xff]  }
 0x9df   : > { %v13346_v44 = vld [vmem:[%s14884_s12 + $0x2c8] ss:$16 sps:$4 sm:$0xff]  }
 0x9e0   : > { %v13409_v8 = vld [vmem:[%s14884_s12 + $0x168] ss:$16 sps:$4 sm:$0xff]  }
 0x9e1   : > { %4811 = vmatpush1.bf16.msra.mxu1 %v13265_v24  ;;  %4852 = vmatpush1.bf16.msra.mxu0 %v13268_v25  ;;  %v15536_v24 = vpack.c.bf16 %v3174_v17, %v3174_v17  ;;  %v13340_v25 = vld [vmem:[%s14884_s12 + $0x2e8] ss:$16 sps:$4 sm:$0xff]   ;;  %v13426_v17 = vld [vmem:[%s14884_s12 + $0x32c] ss:$16 sps:$4 sm:$0xff]  }
 0x9e2   : > { %4812 = vmatprep.subr.bf16.mxu1 %v13273_v26  ;;  %4853 = vmatprep.subr.bf16.mxu0 %v13276_v27  ;;  %v13345_v26 = vld [vmem:[%s14884_s12 + $0xcc] ss:$16 sps:$4 sm:$0xff]   ;;  %v13412_v13 = vld [vmem:[%s14884_s12 + $0x368] ss:$16 sps:$4 sm:$0xff]  }
 0x9e3   : > { %v13348_v27 = vld [vmem:[%s14884_s12 + $0x2cc] ss:$16 sps:$4 sm:$0xff]  }
 0x9e5   : > { %4813 = vmatpush1.bf16.msra.mxu1 %v13271_v28  ;;  %4854 = vmatpush1.bf16.msra.mxu0 %v13274_v29  ;;  %v13351_v28 = vld [vmem:[%s14884_s12 + $0xac] ss:$16 sps:$4 sm:$0xff]  }
 0x9e6   : > { %4814 = vmatprep.subr.bf16.mxu1 %v13279_v30  ;;  %4855 = vmatprep.subr.bf16.mxu0 %v13282_v31  ;;  %v13354_v29 = vld [vmem:[%s14884_s12 + $0x2ac] ss:$16 sps:$4 sm:$0xff]   ;;  %v13349_v30 = vld [vmem:[%s14884_s12 + $0xa8] ss:$16 sps:$4 sm:$0xff]  }
 0x9e7   : > { %v13357_v31 = vld [vmem:[%s14884_s12 + $0x8c] ss:$16 sps:$4 sm:$0xff]  }
 0x9e9   : > { %4815 = vmatpush1.bf16.msra.mxu1 %v13277_v32  ;;  %4856 = vmatpush1.bf16.msra.mxu0 %v13280_v33  ;;  %v13360_v32 = vld [vmem:[%s14884_s12 + $0x28c] ss:$16 sps:$4 sm:$0xff]   ;;  %v13358_v33 = vld [vmem:[%s14884_s12 + $0x288] ss:$16 sps:$4 sm:$0xff]  }
 0x9ea   : > { %4816 = vmatprep.subr.bf16.mxu1 %v13285_v34  ;;  %4857 = vmatprep.subr.bf16.mxu0 %v13288_v35  ;;  %v13363_v34 = vld [vmem:[%s14884_s12 + $0x6c] ss:$16 sps:$4 sm:$0xff]  }
 0x9eb   : > { %v13366_v35 = vld [vmem:[%s14884_s12 + $0x26c] ss:$16 sps:$4 sm:$0xff]  }
 0x9ed   : > { %4817 = vmatpush1.bf16.msra.mxu1 %v13283_v36  ;;  %4858 = vmatpush1.bf16.msra.mxu0 %v13286_v37  ;;  %v13361_v36 = vld [vmem:[%s14884_s12 + $0x68] ss:$16 sps:$4 sm:$0xff]  }
 0x9ee   : > { %4818 = vmatprep.subr.bf16.mxu1 %v13291_v38  ;;  %4859 = vmatprep.subr.bf16.mxu0 %v13294_v39  ;;  %v13364_v37 = vld [vmem:[%s14884_s12 + $0x268] ss:$16 sps:$4 sm:$0xff]   ;;  %v13369_v38 = vld [vmem:[%s14884_s12 + $0x4c] ss:$16 sps:$4 sm:$0xff]  }
 0x9ef   : > { %v13372_v39 = vld [vmem:[%s14884_s12 + $0x24c] ss:$16 sps:$4 sm:$0xff]  }
 0x9f1   : > { %4819 = vmatpush2.bf16.msra.mxu1 %v13289_v40  ;;  %4860 = vmatpush2.bf16.msra.mxu0 %v13292_v41  ;;  %v13367_v40 = vld [vmem:[%s14884_s12 + $0x48] ss:$16 sps:$4 sm:$0xff]  }
 0x9f2   : > { %4820 = vmatprep.subr.bf16.mxu1 %v13297_v42  ;;  %4861 = vmatprep.subr.bf16.mxu0 %v13300_v43  ;;  %v13370_v41 = vld [vmem:[%s14884_s12 + $0x248] ss:$16 sps:$4 sm:$0xff]   ;;  %v13375_v42 = vld [vmem:[%s14884_s12 + $0x2c] ss:$16 sps:$4 sm:$0xff]  }
 0x9f3   : > { %v13378_v43 = vld [vmem:[%s14884_s12 + $0x22c] ss:$16 sps:$4 sm:$0xff]  }
 0x9f5   : > { %4821 = vmatpush2.bf16.msra.mxu1 %v13295_v51  ;;  %4862 = vmatpush2.bf16.msra.mxu0 %v13298_v52  ;;  %v13373_v51 = vld [vmem:[%s14884_s12 + $0x28] ss:$16 sps:$4 sm:$0xff]  }
 0x9f6   : > { %4822 = vmatprep.subr.bf16.mxu1 %v13303_v53  ;;  %4863 = vmatprep.subr.bf16.mxu0 %v13306_v48  ;;  %v13376_v52 = vld [vmem:[%s14884_s12 + $0x228] ss:$16 sps:$4 sm:$0xff]   ;;  %v13381_v53 = vld [vmem:[%s14884_s12 + $0xc] ss:$16 sps:$4 sm:$0xff]  }
 0x9f7   : > { %v13384_v48 = vld [vmem:[%s14884_s12 + $0x20c] ss:$16 sps:$4 sm:$0xff]  }
 0x9f9   : > { %4823 = vmatpush2.bf16.msra.mxu1 %v13301_v54  ;;  %4864 = vmatpush2.bf16.msra.mxu0 %v13304_v46  ;;  %v13379_v54 = vld [vmem:[%s14884_s12 + $0x8] ss:$16 sps:$4 sm:$0xff]  }
 0x9fa   : > { %4824 = vmatprep.subr.bf16.mxu1 %v13309_v47  ;;  %4865 = vmatprep.subr.bf16.mxu0 %v13312_v49  ;;  %v13382_v46 = vld [vmem:[%s14884_s12 + $0x208] ss:$16 sps:$4 sm:$0xff]   ;;  %v13387_v47 = vld [vmem:[%s14884_s12 + $0x1ec] ss:$16 sps:$4 sm:$0xff]  }
 0x9fb   : > { %v13390_v49 = vld [vmem:[%s14884_s12 + $0x3ec] ss:$16 sps:$4 sm:$0xff]  }
 0x9fd   : > { %4825 = vmatpush2.bf16.msra.mxu1 %v13307_v50  ;;  %4866 = vmatpush2.bf16.msra.mxu0 %v13310_v45  ;;  %v13385_v50 = vld [vmem:[%s14884_s12 + $0x1e8] ss:$16 sps:$4 sm:$0xff]  }
 0x9fe   : > { %4826 = vmatprep.subr.bf16.mxu1 %v13315_v22  ;;  %4867 = vmatprep.subr.bf16.mxu0 %v13318_v20  ;;  %v13388_v45 = vld [vmem:[%s14884_s12 + $0x3e8] ss:$16 sps:$4 sm:$0xff]   ;;  %v13393_v22 = vld [vmem:[%s14884_s12 + $0x1cc] ss:$16 sps:$4 sm:$0xff]  }
 0x9ff   : > { %v13396_v20 = vld [vmem:[%s14884_s12 + $0x3cc] ss:$16 sps:$4 sm:$0xff]  }
 0xa01   : > { %4827 = vmatpush2.bf16.msra.mxu1 %v13313_v56  ;;  %4868 = vmatpush2.bf16.msra.mxu0 %v13316_v57  ;;  %v13391_v56 = vld [vmem:[%s14884_s12 + $0x1c8] ss:$16 sps:$4 sm:$0xff]  }
 0xa02   : > { %4828 = vmatprep.subr.bf16.mxu1 %v13321_v58  ;;  %4869 = vmatprep.subr.bf16.mxu0 %v13324_v59  ;;  %v13394_v57 = vld [vmem:[%s14884_s12 + $0x3c8] ss:$16 sps:$4 sm:$0xff]   ;;  %v13399_v58 = vld [vmem:[%s14884_s12 + $0x1ac] ss:$16 sps:$4 sm:$0xff]  }
 0xa03   : > { %v13402_v59 = vld [vmem:[%s14884_s12 + $0x3ac] ss:$16 sps:$4 sm:$0xff]  }
 0xa05   : > { %4829 = vmatpush2.bf16.msra.mxu1 %v13319_v9  ;;  %4870 = vmatpush2.bf16.msra.mxu0 %v13322_v61  ;;  %v13397_v9 = vld [vmem:[%s14884_s12 + $0x1a8] ss:$16 sps:$4 sm:$0xff]  }
 0xa06   : > { %4830 = vmatprep.subr.bf16.mxu1 %v13327_v62  ;;  %4871 = vmatprep.subr.bf16.mxu0 %v13330_v63  ;;  %v13400_v61 = vld [vmem:[%s14884_s12 + $0x3a8] ss:$16 sps:$4 sm:$0xff]   ;;  %v13405_v62 = vld [vmem:[%s14884_s12 + $0x18c] ss:$16 sps:$4 sm:$0xff]  }
 0xa07   : > { %v13408_v63 = vld [vmem:[%s14884_s12 + $0x38c] ss:$16 sps:$4 sm:$0xff]  }
 0xa09   : > { %4831 = vmatpush2.bf16.msra.mxu1 %v13325_v0  ;;  %4872 = vmatpush2.bf16.msra.mxu0 %v13328_v3  ;;  %v13403_v0 = vld [vmem:[%s14884_s12 + $0x188] ss:$16 sps:$4 sm:$0xff]  }
 0xa0a   : > { %4832 = vmatprep.subr.bf16.mxu1 %v13333_v4  ;;  %4873 = vmatprep.subr.bf16.mxu0 %v13336_v5  ;;  %v13406_v3 = vld [vmem:[%s14884_s12 + $0x388] ss:$16 sps:$4 sm:$0xff]   ;;  %v13411_v4 = vld [vmem:[%s14884_s12 + $0x16c] ss:$16 sps:$4 sm:$0xff]  }
 0xa0b   : > { %v13414_v5 = vld [vmem:[%s14884_s12 + $0x36c] ss:$16 sps:$4 sm:$0xff]  }
 0xa0d   : > { %4833 = vmatpush2.bf16.msra.mxu1 %v13331_v14  ;;  %4874 = vmatpush2.bf16.msra.mxu0 %v13334_v15  ;;  %v13417_v14 = vld [vmem:[%s14884_s12 + $0x14c] ss:$16 sps:$4 sm:$0xff]  }
 0xa0e   : > { %4884 = vmatprep.subr.bf16.mxu1 %v13339_v16  ;;  %4925 = vmatprep.subr.bf16.mxu0 %v13342_v10  ;;  %v13420_v15 = vld [vmem:[%s14884_s12 + $0x34c] ss:$16 sps:$4 sm:$0xff]   ;;  %v13415_v16 = vld [vmem:[%s14884_s12 + $0x148] ss:$16 sps:$4 sm:$0xff]  }
 0xa0f   : > { %v13418_v10 = vld [vmem:[%s14884_s12 + $0x348] ss:$16 sps:$4 sm:$0xff]  }
 0xa10   : > { %4835 = vmatmul.mubr.bf16.vlgmr.msra.gmra.mxu1 %v15534_v21  ;;  %4876 = vmatmul.mubr.bf16.vlgmr.msra.gmra.mxu0 %v15536_v24 }
 0xa11   : > { %4885 = vmatpush1.bf16.msra.mxu1 %v13337_v18  ;;  %4916 = vmatprep.mubr.bf16.mxu1 %v15445_v11  ;;  %v13352_v11 = vld [vmem:[%s14884_s12 + $0x2a8] ss:$16 sps:$4 sm:$0xff]  }
 0xa12   : > { %4926 = vmatpush1.bf16.msra.mxu0 %v13340_v25  ;;  %4957 = vmatprep.mubr.bf16.mxu0 %v15447_v23  ;;  %v13355_v23 = vld [vmem:[%s14884_s12 + $0x88] ss:$16 sps:$4 sm:$0xff]  }
 0xa13   : > { %4886 = vmatprep.subr.bf16.mxu1 %v13345_v26  ;;  %4927 = vmatprep.subr.bf16.mxu0 %v13348_v27  ;;  %v13421_v18 = vld [vmem:[%s14884_s12 + $0x128] ss:$16 sps:$4 sm:$0xff]   ;;  %v13429_v26 = vld [vmem:[%s14884_s12 + $0x10c] ss:$16 sps:$4 sm:$0xff]  }
 0xa14   : > { %v13424_v25 = vld [vmem:[%s14884_s12 + $0x328] ss:$16 sps:$4 sm:$0xff]   ;;  %v13432_v27 = vld [vmem:[%s14884_s12 + $0x30c] ss:$16 sps:$4 sm:$0xff]  }
 0xa15   : > { %4887 = vmatpush1.bf16.msra.mxu1 %v13343_v55  ;;  %v13427_v55 = vld [vmem:[%s14884_s12 + $0x108] ss:$16 sps:$4 sm:$0xff]  }
 0xa16   : > { %4928 = vmatpush1.bf16.msra.mxu0 %v13346_v44  ;;  %4888 = vmatprep.subr.bf16.mxu1 %v13351_v28  ;;  %v13430_v44 = vld [vmem:[%s14884_s12 + $0x308] ss:$16 sps:$4 sm:$0xff]   ;;  %v13435_v28 = vld [vmem:[%s14884_s12 + $0x4ec] ss:$16 sps:$4 sm:$0xff]  }
 0xa17   : > { %4929 = vmatprep.subr.bf16.mxu0 %v13354_v29  ;;  %v13438_v29 = vld [vmem:[%s14884_s12 + $0x6ec] ss:$16 sps:$4 sm:$0xff]  }
 0xa19   : > { %4889 = vmatpush1.bf16.msra.mxu1 %v13349_v30  ;;  %v13433_v30 = vld [vmem:[%s14884_s12 + $0x4e8] ss:$16 sps:$4 sm:$0xff]  }
 0xa1a   : > { %4930 = vmatpush1.bf16.msra.mxu0 %v13352_v11  ;;  %4890 = vmatprep.subr.bf16.mxu1 %v13357_v31  ;;  %v13436_v11 = vld [vmem:[%s14884_s12 + $0x6e8] ss:$16 sps:$4 sm:$0xff]   ;;  %v13441_v31 = vld [vmem:[%s14884_s12 + $0x4cc] ss:$16 sps:$4 sm:$0xff]  }
 0xa1b   : > { %4931 = vmatprep.subr.bf16.mxu0 %v13360_v32  ;;  %v13444_v32 = vld [vmem:[%s14884_s12 + $0x6cc] ss:$16 sps:$4 sm:$0xff]  }
 0xa1d   : > { %4891 = vmatpush1.bf16.msra.mxu1 %v13355_v23  ;;  %v13439_v23 = vld [vmem:[%s14884_s12 + $0x4c8] ss:$16 sps:$4 sm:$0xff]  }
 0xa1e   : > { %4932 = vmatpush1.bf16.msra.mxu0 %v13358_v33  ;;  %4892 = vmatprep.subr.bf16.mxu1 %v13363_v34  ;;  %v13442_v33 = vld [vmem:[%s14884_s12 + $0x6c8] ss:$16 sps:$4 sm:$0xff]   ;;  %v13447_v34 = vld [vmem:[%s14884_s12 + $0x4ac] ss:$16 sps:$4 sm:$0xff]  }
 0xa1f   : > { %4933 = vmatprep.subr.bf16.mxu0 %v13366_v35  ;;  %v13448_v35 = vld [vmem:[%s14884_s12 + $0x6a8] ss:$16 sps:$4 sm:$0xff]  }
 0xa21   : > { %4893 = vmatpush1.bf16.msra.mxu1 %v13361_v36  ;;  %v13456_v36 = vld [vmem:[%s14884_s12 + $0x68c] ss:$16 sps:$4 sm:$0xff]  }
 0xa22   : > { %4934 = vmatpush1.bf16.msra.mxu0 %v13364_v37  ;;  %4894 = vmatprep.subr.bf16.mxu1 %v13369_v38  ;;  %v13454_v37 = vld [vmem:[%s14884_s12 + $0x688] ss:$16 sps:$4 sm:$0xff]   ;;  %v13459_v38 = vld [vmem:[%s14884_s12 + $0x46c] ss:$16 sps:$4 sm:$0xff]  }
 0xa23   : > { %4935 = vmatprep.subr.bf16.mxu0 %v13372_v39  ;;  %v13462_v39 = vld [vmem:[%s14884_s12 + $0x66c] ss:$16 sps:$4 sm:$0xff]  }
 0xa25   : > { %4895 = vmatpush1.bf16.msra.mxu1 %v13367_v40  ;;  %v13457_v40 = vld [vmem:[%s14884_s12 + $0x468] ss:$16 sps:$4 sm:$0xff]  }
 0xa26   : > { %4936 = vmatpush1.bf16.msra.mxu0 %v13370_v41  ;;  %4896 = vmatprep.subr.bf16.mxu1 %v13375_v42  ;;  %v13460_v41 = vld [vmem:[%s14884_s12 + $0x668] ss:$16 sps:$4 sm:$0xff]   ;;  %v13465_v42 = vld [vmem:[%s14884_s12 + $0x44c] ss:$16 sps:$4 sm:$0xff]  }
 0xa27   : > { %4937 = vmatprep.subr.bf16.mxu0 %v13378_v43  ;;  %v13468_v43 = vld [vmem:[%s14884_s12 + $0x64c] ss:$16 sps:$4 sm:$0xff]  }
 0xa29   : > { %4897 = vmatpush1.bf16.msra.mxu1 %v13373_v51  ;;  %v13463_v51 = vld [vmem:[%s14884_s12 + $0x448] ss:$16 sps:$4 sm:$0xff]  }
 0xa2a   : > { %4938 = vmatpush1.bf16.msra.mxu0 %v13376_v52  ;;  %4898 = vmatprep.subr.bf16.mxu1 %v13381_v53  ;;  %v13466_v52 = vld [vmem:[%s14884_s12 + $0x648] ss:$16 sps:$4 sm:$0xff]   ;;  %v13471_v53 = vld [vmem:[%s14884_s12 + $0x42c] ss:$16 sps:$4 sm:$0xff]  }
 0xa2b   : > { %4939 = vmatprep.subr.bf16.mxu0 %v13384_v48  ;;  %v13474_v48 = vld [vmem:[%s14884_s12 + $0x62c] ss:$16 sps:$4 sm:$0xff]  }
 0xa2d   : > { %4899 = vmatpush1.bf16.msra.mxu1 %v13379_v54  ;;  %v13469_v54 = vld [vmem:[%s14884_s12 + $0x428] ss:$16 sps:$4 sm:$0xff]  }
 0xa2e   : > { %4940 = vmatpush1.bf16.msra.mxu0 %v13382_v46  ;;  %4900 = vmatprep.subr.bf16.mxu1 %v13387_v47  ;;  %v13472_v46 = vld [vmem:[%s14884_s12 + $0x628] ss:$16 sps:$4 sm:$0xff]   ;;  %v13477_v47 = vld [vmem:[%s14884_s12 + $0x40c] ss:$16 sps:$4 sm:$0xff]  }
 0xa2f   : > { %4941 = vmatprep.subr.bf16.mxu0 %v13390_v49  ;;  %v13480_v49 = vld [vmem:[%s14884_s12 + $0x60c] ss:$16 sps:$4 sm:$0xff]  }
 0xa31   : > { %4901 = vmatpush2.bf16.msra.mxu1 %v13385_v50  ;;  %v13475_v50 = vld [vmem:[%s14884_s12 + $0x408] ss:$16 sps:$4 sm:$0xff]  }
 0xa32   : > { %4942 = vmatpush2.bf16.msra.mxu0 %v13388_v45  ;;  %4902 = vmatprep.subr.bf16.mxu1 %v13393_v22  ;;  %v13478_v45 = vld [vmem:[%s14884_s12 + $0x608] ss:$16 sps:$4 sm:$0xff]   ;;  %v13483_v22 = vld [vmem:[%s14884_s12 + $0x5ec] ss:$16 sps:$4 sm:$0xff]  }
 0xa33   : > { %4943 = vmatprep.subr.bf16.mxu0 %v13396_v20  ;;  %v13486_v20 = vld [vmem:[%s14884_s12 + $0x7ec] ss:$16 sps:$4 sm:$0xff]  }
 0xa35   : > { %4903 = vmatpush2.bf16.msra.mxu1 %v13391_v56  ;;  %v13481_v56 = vld [vmem:[%s14884_s12 + $0x5e8] ss:$16 sps:$4 sm:$0xff]  }
 0xa36   : > { %4944 = vmatpush2.bf16.msra.mxu0 %v13394_v57  ;;  %4904 = vmatprep.subr.bf16.mxu1 %v13399_v58  ;;  %v13484_v57 = vld [vmem:[%s14884_s12 + $0x7e8] ss:$16 sps:$4 sm:$0xff]   ;;  %v13489_v58 = vld [vmem:[%s14884_s12 + $0x5cc] ss:$16 sps:$4 sm:$0xff]  }
 0xa37   : > { %4945 = vmatprep.subr.bf16.mxu0 %v13402_v59  ;;  %v13492_v59 = vld [vmem:[%s14884_s12 + $0x7cc] ss:$16 sps:$4 sm:$0xff]  }
 0xa39   : > { %4905 = vmatpush2.bf16.msra.mxu1 %v13397_v9  ;;  %v13487_v9 = vld [vmem:[%s14884_s12 + $0x5c8] ss:$16 sps:$4 sm:$0xff]  }
 0xa3a   : > { %4946 = vmatpush2.bf16.msra.mxu0 %v13400_v61  ;;  %4906 = vmatprep.subr.bf16.mxu1 %v13405_v62  ;;  %v13490_v61 = vld [vmem:[%s14884_s12 + $0x7c8] ss:$16 sps:$4 sm:$0xff]   ;;  %v13495_v62 = vld [vmem:[%s14884_s12 + $0x5ac] ss:$16 sps:$4 sm:$0xff]  }
 0xa3b   : > { %4947 = vmatprep.subr.bf16.mxu0 %v13408_v63  ;;  %v13498_v63 = vld [vmem:[%s14884_s12 + $0x7ac] ss:$16 sps:$4 sm:$0xff]  }
 0xa3d   : > { %4907 = vmatpush2.bf16.msra.mxu1 %v13403_v0  ;;  %v13493_v0 = vld [vmem:[%s14884_s12 + $0x5a8] ss:$16 sps:$4 sm:$0xff]  }
 0xa3e   : > { %4948 = vmatpush2.bf16.msra.mxu0 %v13406_v3  ;;  %4908 = vmatprep.subr.bf16.mxu1 %v13411_v4  ;;  %v13496_v3 = vld [vmem:[%s14884_s12 + $0x7a8] ss:$16 sps:$4 sm:$0xff]   ;;  %v13501_v4 = vld [vmem:[%s14884_s12 + $0x58c] ss:$16 sps:$4 sm:$0xff]  }
 0xa3f   : > { %4949 = vmatprep.subr.bf16.mxu0 %v13414_v5  ;;  %v13504_v5 = vld [vmem:[%s14884_s12 + $0x78c] ss:$16 sps:$4 sm:$0xff]  }
 0xa41   : > { %4909 = vmatpush2.bf16.msra.mxu1 %v13409_v8  ;;  %v13499_v8 = vld [vmem:[%s14884_s12 + $0x588] ss:$16 sps:$4 sm:$0xff]  }
 0xa42   : > { %4950 = vmatpush2.bf16.msra.mxu0 %v13412_v13  ;;  %4910 = vmatprep.subr.bf16.mxu1 %v13417_v14  ;;  %v13502_v13 = vld [vmem:[%s14884_s12 + $0x788] ss:$16 sps:$4 sm:$0xff]   ;;  %v13507_v14 = vld [vmem:[%s14884_s12 + $0x56c] ss:$16 sps:$4 sm:$0xff]  }
 0xa43   : > { %4951 = vmatprep.subr.bf16.mxu0 %v13420_v15  ;;  %v13510_v15 = vld [vmem:[%s14884_s12 + $0x76c] ss:$16 sps:$4 sm:$0xff]  }
 0xa45   : > { %4911 = vmatpush2.bf16.msra.mxu1 %v13415_v16  ;;  %v13505_v16 = vld [vmem:[%s14884_s12 + $0x568] ss:$16 sps:$4 sm:$0xff]  }
 0xa46   : > { %4952 = vmatpush2.bf16.msra.mxu0 %v13418_v10  ;;  %4912 = vmatprep.subr.bf16.mxu1 %v13423_v12  ;;  %v13508_v10 = vld [vmem:[%s14884_s12 + $0x768] ss:$16 sps:$4 sm:$0xff]   ;;  %v13513_v12 = vld [vmem:[%s14884_s12 + $0x54c] ss:$16 sps:$4 sm:$0xff]  }
 0xa47   : > { %4953 = vmatprep.subr.bf16.mxu0 %v13426_v17  ;;  %v13516_v17 = vld [vmem:[%s14884_s12 + $0x74c] ss:$16 sps:$4 sm:$0xff]  }
 0xa49   : > { %4913 = vmatpush2.bf16.msra.mxu1 %v13421_v18  ;;  %v13511_v18 = vld [vmem:[%s14884_s12 + $0x548] ss:$16 sps:$4 sm:$0xff]  }
 0xa4a   : > { %4954 = vmatpush2.bf16.msra.mxu0 %v13424_v25  ;;  %4914 = vmatprep.subr.bf16.mxu1 %v13429_v26  ;;  %v13514_v25 = vld [vmem:[%s14884_s12 + $0x748] ss:$16 sps:$4 sm:$0xff]   ;;  %v13519_v26 = vld [vmem:[%s14884_s12 + $0x52c] ss:$16 sps:$4 sm:$0xff]  }
 0xa4b   : > { %4955 = vmatprep.subr.bf16.mxu0 %v13432_v27  ;;  %v13522_v27 = vld [vmem:[%s14884_s12 + $0x72c] ss:$16 sps:$4 sm:$0xff]  }
 0xa4d   : > { %4915 = vmatpush2.bf16.msra.mxu1 %v13427_v55  ;;  %v13517_v55 = vld [vmem:[%s14884_s12 + $0x528] ss:$16 sps:$4 sm:$0xff]  }
 0xa4e   : > { %4956 = vmatpush2.bf16.msra.mxu0 %v13430_v44  ;;  %4966 = vmatprep.subr.bf16.mxu1 %v13435_v28  ;;  %v13520_v44 = vld [vmem:[%s14884_s12 + $0x728] ss:$16 sps:$4 sm:$0xff]   ;;  %v13525_v28 = vld [vmem:[%s14884_s12 + $0x50c] ss:$16 sps:$4 sm:$0xff]  }
 0xa4f   : > { %5007 = vmatprep.subr.bf16.mxu0 %v13438_v29  ;;  %v13528_v29 = vld [vmem:[%s14884_s12 + $0x70c] ss:$16 sps:$4 sm:$0xff]  }
 0xa50   : > { %4917 = vmatmul.mubr.bf16.vlgmr.msra.gmra.mxu1 %v15451_v60  ;;  %v13450_v60 = vld [vmem:[%s14884_s12 + $0x6ac] ss:$16 sps:$4 sm:$0xff]  }
 0xa51   : > { %4958 = vmatmul.mubr.bf16.vlgmr.msra.gmra.mxu0 %v15453_v19  ;;  %4967 = vmatpush1.bf16.msra.mxu1 %v13433_v30  ;;  %v13445_v19 = vld [vmem:[%s14884_s12 + $0x4a8] ss:$16 sps:$4 sm:$0xff]  }
 0xa52   : > { %4998 = vmatprep.mubr.bf16.mxu1 %v15461_v1  ;;  %5008 = vmatpush1.bf16.msra.mxu0 %v13436_v11  ;;  %v13453_v1 = vld [vmem:[%s14884_s12 + $0x48c] ss:$16 sps:$4 sm:$0xff]   ;;  %v13523_v30 = vld [vmem:[%s14884_s12 + $0x508] ss:$16 sps:$4 sm:$0xff]  }
 0xa53   : > { %5039 = vmatprep.mubr.bf16.mxu0 %v15466_v7  ;;  %4968 = vmatprep.subr.bf16.mxu1 %v13441_v31  ;;  %v13451_v7 = vld [vmem:[%s14884_s12 + $0x488] ss:$16 sps:$4 sm:$0xff]  }
 0xa54   : > { %5009 = vmatprep.subr.bf16.mxu0 %v13444_v32  ;;  %v13526_v11 = vld [vmem:[%s14884_s12 + $0x708] ss:$16 sps:$4 sm:$0xff]  }
 0xa55   : > { %4969 = vmatpush1.bf16.msra.mxu1 %v13439_v23 }
 0xa56   : > { %5010 = vmatpush1.bf16.msra.mxu0 %v13442_v33  ;;  %4970 = vmatprep.subr.bf16.mxu1 %v13447_v34 }
 0xa57   : > { %5011 = vmatprep.subr.bf16.mxu0 %v13450_v60 }
 0xa59   : > { %4971 = vmatpush1.bf16.msra.mxu1 %v13445_v19 }
 0xa5a   : > { %5012 = vmatpush1.bf16.msra.mxu0 %v13448_v35  ;;  %4972 = vmatprep.subr.bf16.mxu1 %v13453_v1 }
 0xa5b   : > { %5013 = vmatprep.subr.bf16.mxu0 %v13456_v36 }
 0xa5d   : > { %4973 = vmatpush1.bf16.msra.mxu1 %v13451_v7 }
 0xa5e   : > { %5014 = vmatpush1.bf16.msra.mxu0 %v13454_v37  ;;  %4974 = vmatprep.subr.bf16.mxu1 %v13459_v38 }
 0xa5f   : > { %5015 = vmatprep.subr.bf16.mxu0 %v13462_v39 }
 0xa61   : > { %4975 = vmatpush1.bf16.msra.mxu1 %v13457_v40 }
 0xa62   : > { %5016 = vmatpush1.bf16.msra.mxu0 %v13460_v41  ;;  %4976 = vmatprep.subr.bf16.mxu1 %v13465_v42 }
 0xa63   : > { %5017 = vmatprep.subr.bf16.mxu0 %v13468_v43 }
 0xa65   : > { %4977 = vmatpush1.bf16.msra.mxu1 %v13463_v51 }
 0xa66   : > { %5018 = vmatpush1.bf16.msra.mxu0 %v13466_v52  ;;  %4978 = vmatprep.subr.bf16.mxu1 %v13471_v53 }
 0xa67   : > { %5019 = vmatprep.subr.bf16.mxu0 %v13474_v48 }
 0xa69   : > { %4979 = vmatpush1.bf16.msra.mxu1 %v13469_v54 }
 0xa6a   : > { %5020 = vmatpush1.bf16.msra.mxu0 %v13472_v46  ;;  %4980 = vmatprep.subr.bf16.mxu1 %v13477_v47 }
 0xa6b   : > { %5021 = vmatprep.subr.bf16.mxu0 %v13480_v49 }
 0xa6d   : > { %4981 = vmatpush1.bf16.msra.mxu1 %v13475_v50 }
 0xa6e   : > { %5022 = vmatpush1.bf16.msra.mxu0 %v13478_v45  ;;  %4982 = vmatprep.subr.bf16.mxu1 %v13483_v22 }
 0xa6f   : > { %5023 = vmatprep.subr.bf16.mxu0 %v13486_v20 }
 0xa71   : > { %4983 = vmatpush2.bf16.msra.mxu1 %v13481_v56 }
 0xa72   : > { %5024 = vmatpush2.bf16.msra.mxu0 %v13484_v57  ;;  %4984 = vmatprep.subr.bf16.mxu1 %v13489_v58 }
 0xa73   : > { %5025 = vmatprep.subr.bf16.mxu0 %v13492_v59 }
 0xa75   : > { %4985 = vmatpush2.bf16.msra.mxu1 %v13487_v9 }
 0xa76   : > { %5026 = vmatpush2.bf16.msra.mxu0 %v13490_v61  ;;  %4986 = vmatprep.subr.bf16.mxu1 %v13495_v62 }
 0xa77   : > { %5027 = vmatprep.subr.bf16.mxu0 %v13498_v63 }
 0xa79   : > { %4987 = vmatpush2.bf16.msra.mxu1 %v13493_v0 }
 0xa7a   : > { %5028 = vmatpush2.bf16.msra.mxu0 %v13496_v3  ;;  %4988 = vmatprep.subr.bf16.mxu1 %v13501_v4 }
 0xa7b   : > { %5029 = vmatprep.subr.bf16.mxu0 %v13504_v5 }
 0xa7d   : > { %4989 = vmatpush2.bf16.msra.mxu1 %v13499_v8 }
 0xa7e   : > { %5030 = vmatpush2.bf16.msra.mxu0 %v13502_v13  ;;  %4990 = vmatprep.subr.bf16.mxu1 %v13507_v14 }
 0xa7f   : > { %5031 = vmatprep.subr.bf16.mxu0 %v13510_v15 }
 0xa81   : > { %4991 = vmatpush2.bf16.msra.mxu1 %v13505_v16 }
 0xa82   : > { %5032 = vmatpush2.bf16.msra.mxu0 %v13508_v10  ;;  %4992 = vmatprep.subr.bf16.mxu1 %v13513_v12 }
 0xa83   : > { %5033 = vmatprep.subr.bf16.mxu0 %v13516_v17 }
 0xa85   : > { %4993 = vmatpush2.bf16.msra.mxu1 %v13511_v18 }
 0xa86   : > { %5034 = vmatpush2.bf16.msra.mxu0 %v13514_v25  ;;  %4994 = vmatprep.subr.bf16.mxu1 %v13519_v26 }
 0xa87   : > { %5035 = vmatprep.subr.bf16.mxu0 %v13522_v27 }
 0xa89   : > { %4995 = vmatpush2.bf16.msra.mxu1 %v13517_v55 }
 0xa8a   : > { %5036 = vmatpush2.bf16.msra.mxu0 %v13520_v44  ;;  %4996 = vmatprep.subr.bf16.mxu1 %v13525_v28 }
 0xa8b   : > { %5037 = vmatprep.subr.bf16.mxu0 %v13528_v29 }
 0xa8d   : > { %4997 = vmatpush2.bf16.msra.mxu1 %v13523_v30 }
 0xa8e   : > { %5038 = vmatpush2.bf16.msra.mxu0 %v13526_v11 }
 0xa90   : > { %4999 = vmatmul.mubr.bf16.vlgmr.msra.gmra.mxu1 %v15534_v21  ;;  %v4754_v31 = vpop.f32.mrf.mxu1  ;;  %v4795_v32 = vpop.f32.mrf.mxu0 }
 0xa91   : > { %5040 = vmatmul.mubr.bf16.vlgmr.msra.gmra.mxu0 %v15536_v24  ;;  %v4796_v23 = vadd.f32 %v4795_v32, %v4754_v31 }
 0xa92   : > { %v4756_v33 = vpop.f32.mrf.mxu1  ;;  %v4797_v34 = vpop.f32.mrf.mxu0 }
 0xa93   : > { %v4798_v60 = vadd.f32 %v4797_v34, %v4756_v33 }
 0xa94   : > { %v4758_v19 = vpop.f32.mrf.mxu1  ;;  %v4799_v35 = vpop.f32.mrf.mxu0 }
 0xa96   : > { %v4759_v1 = vpop.f32.mrf.mxu1  ;;  %v4800_v36 = vpop.f32.mrf.mxu0 }
 0xad0   : > { %v4836_v7 = vpop.f32.mrf.mxu1  ;;  %v4877_v37 = vpop.f32.mrf.mxu0 }
 0xad1   : > { %v4837_v38 = vadd.f32 %v4836_v7, %v4796_v23 }
 0xad2   : > { %v4838_v39 = vpop.f32.mrf.mxu1  ;;  %v4879_v40 = vpop.f32.mrf.mxu0 }
 0xad3   : > { %v4878_v41 = vadd.f32 %v4877_v37, %v4837_v38  ;;  %v4839_v42 = vadd.f32 %v4838_v39, %v4798_v60  ;;  %v13529_v38 = vld [vmem:[%s14887_s13 + $0x70] ss:$8 sps:$4 sm:$0xff]   ;;  %v13531_v39 = vld [vmem:[%s14887_s13 + $0x74] ss:$8 sps:$4 sm:$0xff]  }
 0xad4   : > { %v4840_v21 = vpop.f32.mrf.mxu1  ;;  %v4881_v43 = vpop.f32.mrf.mxu0  ;;  %5509 = vmatprep.subr.bf16.mxu1 %v13531_v39 }
 0xad5   : > { %v4880_v51 = vadd.f32 %v4879_v40, %v4839_v42  ;;  %v5051_v61 = vsel %vm601_vm1, %v4878_v41, 0.0  ;;  %v13532_v40 = vld [vmem:[%s14887_s13 + $0x170] ss:$8 sps:$4 sm:$0xff]   ;;  %5510 = vmatpush1.bf16.msra.mxu1 %v13529_v38  ;;  %v13535_v42 = vld [vmem:[%s14887_s13 + $0x60] ss:$8 sps:$4 sm:$0xff]  }
 0xad6   : > { %v4841_v52 = vpop.f32.mrf.mxu1  ;;  %v4882_v24 = vpop.f32.mrf.mxu0  ;;  %v13537_v21 = vld [vmem:[%s14887_s13 + $0x64] ss:$8 sps:$4 sm:$0xff]   ;;  %v13538_v43 = vld [vmem:[%s14887_s13 + $0x160] ss:$8 sps:$4 sm:$0xff]  }
 0xad7   : > { %v5052_v56 = vsel %vm601_vm1, %v4880_v51, 0.0  ;;  %v13543_v52 = vld [vmem:[%s14887_s13 + $0x54] ss:$8 sps:$4 sm:$0xff]   ;;  %5511 = vmatprep.subr.bf16.mxu1 %v13537_v21  ;;  %v13612_v38 = vld [vmem:[%s14887_s13 + $0x1a4] ss:$8 sps:$4 sm:$0xff]  }
 0xad8   : > { %v5053_v3 = vadd.f32 %v5052_v56, %v5051_v61  ;;  %v13546_v24 = vld [vmem:[%s14887_s13 + $0x154] ss:$8 sps:$4 sm:$0xff]   ;;  %v13561_v56 = vld [vmem:[%s14887_s13 + $0x24] ss:$8 sps:$4 sm:$0xff]   ;;  %v13613_v21 = vld [vmem:[%s14887_s13 + $0x90] ss:$8 sps:$4 sm:$0xff]  }
 0xad9   : > { %5512 = vmatpush1.bf16.msra.mxu1 %v13535_v42  ;;  %v13570_v61 = vld [vmem:[%s14887_s13 + $0x114] ss:$8 sps:$4 sm:$0xff]  }
 0xada   : > { %5513 = vmatprep.subr.bf16.mxu1 %v13543_v52  ;;  %v13618_v52 = vld [vmem:[%s14887_s13 + $0x194] ss:$8 sps:$4 sm:$0xff]  }
 0xb10   : > { %v4918_v53 = vpop.f32.mrf.mxu1 }
 0xb11   : > { %v4959_v48 = vpop.f32.mrf.mxu0 }
 0xb12   : > { %v4920_v54 = vpop.f32.mrf.mxu1  ;;  %v4960_v22 = vadd.f32 %v4959_v48, %v4918_v53  ;;  %v13541_v53 = vld [vmem:[%s14887_s13 + $0x50] ss:$8 sps:$4 sm:$0xff]  }
 0xb13   : > { %v4961_v46 = vpop.f32.mrf.mxu0  ;;  %v13544_v48 = vld [vmem:[%s14887_s13 + $0x150] ss:$8 sps:$4 sm:$0xff]   ;;  %5514 = vmatpush1.bf16.msra.mxu1 %v13541_v53  ;;  %v13624_v53 = vld [vmem:[%s14887_s13 + $0x184] ss:$8 sps:$4 sm:$0xff]  }
 0xb14   : > { %v4922_v47 = vpop.f32.mrf.mxu1  ;;  %v4962_v57 = vadd.f32 %v4961_v46, %v4920_v54  ;;  %v13549_v54 = vld [vmem:[%s14887_s13 + $0x44] ss:$8 sps:$4 sm:$0xff]  }
 0xb15   : > { %v4963_v49 = vpop.f32.mrf.mxu0  ;;  %v13552_v46 = vld [vmem:[%s14887_s13 + $0x144] ss:$8 sps:$4 sm:$0xff]   ;;  %v13547_v47 = vld [vmem:[%s14887_s13 + $0x40] ss:$8 sps:$4 sm:$0xff]   ;;  %5515 = vmatprep.subr.bf16.mxu1 %v13549_v54 }
 0xb16   : > { %v4923_v50 = vpop.f32.mrf.mxu1  ;;  %v13550_v49 = vld [vmem:[%s14887_s13 + $0x140] ss:$8 sps:$4 sm:$0xff]  }
 0xb17   : > { %v4964_v45 = vpop.f32.mrf.mxu0  ;;  %v13555_v50 = vld [vmem:[%s14887_s13 + $0x34] ss:$8 sps:$4 sm:$0xff]   ;;  %5516 = vmatpush1.bf16.msra.mxu1 %v13547_v47  ;;  %v13622_v54 = vld [vmem:[%s14887_s13 + $0x180] ss:$8 sps:$4 sm:$0xff]  }
 0xb18   : > { %v13558_v45 = vld [vmem:[%s14887_s13 + $0x134] ss:$8 sps:$4 sm:$0xff]   ;;  %5517 = vmatprep.subr.bf16.mxu1 %v13555_v50 }
 0xb50   : > { %v5000_v20 = vpop.f32.mrf.mxu1 }
 0xb51   : > { %v5001_v58 = vadd.f32 %v5000_v20, %v4960_v22  ;;  %v5041_v59 = vpop.f32.mrf.mxu0  ;;  %v13553_v22 = vld [vmem:[%s14887_s13 + $0x30] ss:$8 sps:$4 sm:$0xff]  }
 0xb52   : > { %v5002_v9 = vpop.f32.mrf.mxu1  ;;  %v13556_v20 = vld [vmem:[%s14887_s13 + $0x130] ss:$8 sps:$4 sm:$0xff]   ;;  %5518 = vmatpush1.bf16.msra.mxu1 %v13553_v22 }
 0xb53   : > { %v5042_v62 = vadd.f32 %v5041_v59, %v5001_v58  ;;  %v5003_v63 = vadd.f32 %v5002_v9, %v4962_v57  ;;  %v5043_v0 = vpop.f32.mrf.mxu0  ;;  %v13564_v57 = vld [vmem:[%s14887_s13 + $0x124] ss:$8 sps:$4 sm:$0xff]   ;;  %v13559_v58 = vld [vmem:[%s14887_s13 + $0x20] ss:$8 sps:$4 sm:$0xff]   ;;  %5519 = vmatprep.subr.bf16.mxu1 %v13561_v56  ;;  %v13567_v9 = vld [vmem:[%s14887_s13 + $0x14] ss:$8 sps:$4 sm:$0xff]  }
 0xb54   : > { %v5004_v4 = vpop.f32.mrf.mxu1  ;;  %v13562_v59 = vld [vmem:[%s14887_s13 + $0x120] ss:$8 sps:$4 sm:$0xff]  }
 0xb55   : > { %v5054_v5 = vsel %vm601_vm1, %v5042_v62, 0.0  ;;  %v5044_v8 = vadd.f32 %v5043_v0, %v5003_v63  ;;  %v5045_v13 = vpop.f32.mrf.mxu0  ;;  %v13568_v63 = vld [vmem:[%s14887_s13 + $0x110] ss:$8 sps:$4 sm:$0xff]   ;;  %v13573_v0 = vld [vmem:[%s14887_s13 + $0x4] ss:$8 sps:$4 sm:$0xff]  }
 0xb56   : > { %v5005_v14 = vpop.f32.mrf.mxu1  ;;  %v5055_v15 = vadd.f32 %v5054_v5, %v5053_v3  ;;  %5520 = vmatpush1.bf16.msra.mxu1 %v13559_v58  ;;  %v13576_v3 = vld [vmem:[%s14887_s13 + $0x104] ss:$8 sps:$4 sm:$0xff]   ;;  %v13571_v4 = vld [vmem:[%s14887_s13] ss:$8 sps:$4 sm:$0xff]   ;;  %v13582_v13 = vld [vmem:[%s14887_s13 + $0x1f4] ss:$8 sps:$4 sm:$0xff]  }
 0xb57   : > { %v5046_v16 = vpop.f32.mrf.mxu0  ;;  %v5056_v10 = vsel %vm601_vm1, %v5044_v8, 0.0  ;;  %5521 = vmatprep.subr.bf16.mxu1 %v13567_v9  ;;  %v13574_v5 = vld [vmem:[%s14887_s13 + $0x100] ss:$8 sps:$4 sm:$0xff]   ;;  %v13577_v14 = vld [vmem:[%s14887_s13 + $0xf0] ss:$8 sps:$4 sm:$0xff]  }
 0xb58   : > { %v5057_v12 = vadd.f32 %v5056_v10, %v5055_v15  ;;  %v13580_v15 = vld [vmem:[%s14887_s13 + $0x1f0] ss:$8 sps:$4 sm:$0xff]   ;;  %v13585_v16 = vld [vmem:[%s14887_s13 + $0xe4] ss:$8 sps:$4 sm:$0xff]  }
 0xb59   : > { %v13588_v10 = vld [vmem:[%s14887_s13 + $0x1e4] ss:$8 sps:$4 sm:$0xff]  }
 0xb5a   : > { %5058 = vadd.xlane.f32.xlu0 %v5057_v12  ;;  %v13583_v12 = vld [vmem:[%s14887_s13 + $0xe0] ss:$8 sps:$4 sm:$0xff]  }
 0xbe3   : > { %v5059_v17 = vpop.xlane.xlu0 %5058 }
 0xbe4   : > { %v5060_v18 = vrot.slane %v5059_v17, 4 }
 0xbe6   : > { %v5061_v25 = vadd.f32 %v5060_v18, %v5059_v17  ;;  %v13586_v17 = vld [vmem:[%s14887_s13 + $0x1e0] ss:$8 sps:$4 sm:$0xff]   ;;  %v13591_v18 = vld [vmem:[%s14887_s13 + $0xd4] ss:$8 sps:$4 sm:$0xff]  }
 0xbe8   : > { %v5062_v26 = vrot.slane %v5061_v25, 2 }
 0xbea   : > { %v5063_v27 = vadd.f32 %v5062_v26, %v5061_v25  ;;  %v13594_v25 = vld [vmem:[%s14887_s13 + $0x1d4] ss:$8 sps:$4 sm:$0xff]   ;;  %v13589_v26 = vld [vmem:[%s14887_s13 + $0xd0] ss:$8 sps:$4 sm:$0xff]  }
 0xbec   : > { %v5064_v55 = vrot.slane %v5063_v27, 1 }
 0xbee   : > { %v5065_v44 = vadd.f32 %v5064_v55, %v5063_v27  ;;  %v13592_v27 = vld [vmem:[%s14887_s13 + $0x1d0] ss:$8 sps:$4 sm:$0xff]   ;;  %v13597_v55 = vld [vmem:[%s14887_s13 + $0xc4] ss:$8 sps:$4 sm:$0xff]  }
 0xbf0   : > { %12907 = vpush %v5065_v44  ;;  %v13600_v44 = vld [vmem:[%s14887_s13 + $0x1c4] ss:$8 sps:$4 sm:$0xff]  }
 0xc21   : > { %s12908_s10 = spop %12907 }
 0xc22   : > { %s5067_s9 = smul.f32 0.0009765625, %s12908_s10  ;;  %s15854_s10 = sadd.s32 128, %s14987_s29 }
 0xc24   : > { %v5068_v28 = vstv %s5067_s9  ;;  %s5673_s9 = sld [smem:[#allocation14 + %s15854_s10]] }
 0xc25   : > { %v15677_v29 = vsub.f32 %v4878_v41, %v5068_v28  ;;  %v15679_v30 = vsub.f32 %v4880_v51, %v5068_v28  ;;  %v15681_v11 = vsub.f32 %v5042_v62, %v5068_v28  ;;  %v15683_v31 = vsub.f32 %v5044_v8, %v5068_v28  ;;  %v13534_v41 = vld [vmem:[%s14887_s13 + $0x174] ss:$8 sps:$4 sm:$0xff]   ;;  %v13540_v51 = vld [vmem:[%s14887_s13 + $0x164] ss:$8 sps:$4 sm:$0xff]   ;;  %v13565_v62 = vld [vmem:[%s14887_s13 + $0x10] ss:$8 sps:$4 sm:$0xff]  }
 0xc26   : > { %5550 = vmatprep.subr.bf16.mxu0 %v13534_v41  ;;  %5522 = vmatpush1.bf16.msra.mxu1 %v13565_v62  ;;  %v13579_v8 = vld [vmem:[%s14887_s13 + $0xf4] ss:$8 sps:$4 sm:$0xff]   ;;  %v13595_v28 = vld [vmem:[%s14887_s13 + $0xc0] ss:$8 sps:$4 sm:$0xff]  }
 0xc27   : > { %v5073_v32 = vmul.f32 %v15677_v29, %v15677_v29  ;;  %v5074_v23 = vmul.f32 %v15679_v30, %v15679_v30  ;;  %v5075_v33 = vmul.f32 %v15681_v11, %v15681_v11  ;;  %v5076_v34 = vmul.f32 %v15683_v31, %v15683_v31  ;;  %5551 = vmatpush1.bf16.msra.mxu0 %v13532_v40  ;;  %v13607_v40 = vld [vmem:[%s14887_s13 + $0xa0] ss:$8 sps:$4 sm:$0xff]  }
 0xc28   : > { %5552 = vmatprep.subr.bf16.mxu0 %v13540_v51  ;;  %5523 = vmatprep.subr.bf16.mxu1 %v13573_v0  ;;  %v13610_v41 = vld [vmem:[%s14887_s13 + $0x1a0] ss:$8 sps:$4 sm:$0xff]   ;;  %v13616_v51 = vld [vmem:[%s14887_s13 + $0x190] ss:$8 sps:$4 sm:$0xff]  }
 0xc29   : > { %v5077_v60 = vsel %vm601_vm1, %v5073_v32, 0.0  ;;  %v5078_v19 = vsel %vm601_vm1, %v5074_v23, 0.0  ;;  %v5080_v1 = vsel %vm601_vm1, %v5075_v33, 0.0  ;;  %v5082_v7 = vsel %vm601_vm1, %v5076_v34, 0.0  ;;  %v13598_v32 = vld [vmem:[%s14887_s13 + $0x1c0] ss:$8 sps:$4 sm:$0xff]  }
 0xc2a   : > { %v5079_v35 = vadd.f32 %v5078_v19, %v5077_v60  ;;  %5524 = vmatpush1.bf16.msra.mxu1 %v13571_v4  ;;  %v13603_v23 = vld [vmem:[%s14887_s13 + $0xb4] ss:$8 sps:$4 sm:$0xff]   ;;  %v13601_v34 = vld [vmem:[%s14887_s13 + $0xb0] ss:$8 sps:$4 sm:$0xff]  }
 0xc2b   : > { %5553 = vmatpush1.bf16.msra.mxu0 %v13538_v43  ;;  %5525 = vmatprep.subr.bf16.mxu1 %v13579_v8  ;;  %v13606_v33 = vld [vmem:[%s14887_s13 + $0x1b4] ss:$8 sps:$4 sm:$0xff]   ;;  %v13604_v60 = vld [vmem:[%s14887_s13 + $0x1b0] ss:$8 sps:$4 sm:$0xff]  }
 0xc2c   : > { %v5081_v36 = vadd.f32 %v5080_v1, %v5079_v35  ;;  %5554 = vmatprep.subr.bf16.mxu0 %v13546_v24  ;;  %v13615_v43 = vld [vmem:[%s14887_s13 + $0x94] ss:$8 sps:$4 sm:$0xff]   ;;  %v13621_v24 = vld [vmem:[%s14887_s13 + $0x84] ss:$8 sps:$4 sm:$0xff]  }
 0xc2e   : > { %v5083_v37 = vadd.f32 %v5082_v7, %v5081_v36  ;;  %5526 = vmatpush2.bf16.msra.mxu1 %v13577_v14  ;;  %v13625_v14 = vld [vmem:[%s14868_s19 + $0x30] ss:$8 sps:$4 sm:$0xff]  }
 0xc2f   : > { %5555 = vmatpush1.bf16.msra.mxu0 %v13544_v48  ;;  %5527 = vmatprep.subr.bf16.mxu1 %v13585_v16  ;;  %v13619_v48 = vld [vmem:[%s14887_s13 + $0x80] ss:$8 sps:$4 sm:$0xff]  }
 0xc30   : > { %5084 = vadd.xlane.f32.xlu1 %v5083_v37  ;;  %5556 = vmatprep.subr.bf16.mxu0 %v13552_v46  ;;  %v13609_v37 = vld [vmem:[%s14887_s13 + $0xa4] ss:$8 sps:$4 sm:$0xff]   ;;  %v13627_v46 = vld [vmem:[%s14868_s19 + $0x34] ss:$8 sps:$4 sm:$0xff]   ;;  %v13628_v16 = vld [vmem:[%s14868_s19 + $0x20] ss:$8 sps:$4 sm:$0xff]  }
 0xc32   : > { %5528 = vmatpush2.bf16.msra.mxu1 %v13583_v12 }
 0xc33   : > { %5557 = vmatpush1.bf16.msra.mxu0 %v13550_v49  ;;  %5529 = vmatprep.subr.bf16.mxu1 %v13591_v18 }
 0xc34   : > { %5558 = vmatprep.subr.bf16.mxu0 %v13558_v45  ;;  %v5104_v45 = vstv %s5050_s20 }
 0xc36   : > { %5530 = vmatpush2.bf16.msra.mxu1 %v13589_v26 }
 0xc37   : > { %5559 = vmatpush1.bf16.msra.mxu0 %v13556_v20  ;;  %5531 = vmatprep.subr.bf16.mxu1 %v13597_v55 }
 0xc38   : > { %5560 = vmatprep.subr.bf16.mxu0 %v13564_v57 }
 0xc3a   : > { %5532 = vmatpush2.bf16.msra.mxu1 %v13595_v28 }
 0xc3b   : > { %5561 = vmatpush1.bf16.msra.mxu0 %v13562_v59  ;;  %5533 = vmatprep.subr.bf16.mxu1 %v13603_v23 }
 0xc3c   : > { %5562 = vmatprep.subr.bf16.mxu0 %v13570_v61 }
 0xc3e   : > { %5534 = vmatpush2.bf16.msra.mxu1 %v13601_v34 }
 0xc3f   : > { %5563 = vmatpush1.bf16.msra.mxu0 %v13568_v63  ;;  %5535 = vmatprep.subr.bf16.mxu1 %v13609_v37 }
 0xc40   : > { %5564 = vmatprep.subr.bf16.mxu0 %v13576_v3 }
 0xc42   : > { %5536 = vmatpush2.bf16.msra.mxu1 %v13607_v40 }
 0xc43   : > { %5565 = vmatpush1.bf16.msra.mxu0 %v13574_v5  ;;  %5537 = vmatprep.subr.bf16.mxu1 %v13615_v43 }
 0xc44   : > { %5566 = vmatprep.subr.bf16.mxu0 %v13582_v13 }
 0xc46   : > { %5538 = vmatpush2.bf16.msra.mxu1 %v13613_v21 }
 0xc47   : > { %5567 = vmatpush2.bf16.msra.mxu0 %v13580_v15  ;;  %5539 = vmatprep.subr.bf16.mxu1 %v13621_v24  ;;  %v13630_v15 = vld [vmem:[%s14868_s19 + $0x24] ss:$8 sps:$4 sm:$0xff]   ;;  %s10926_s19 = sshll.u32 %s14865_s22, 3 }
 0xc48   : > { %5568 = vmatprep.subr.bf16.mxu0 %v13588_v10  ;;  %s15776_s24 = scalar_lea.vmem [#allocation17], %s10926_s19 }
 0xc4a   : > { %5540 = vmatpush2.bf16.msra.mxu1 %v13619_v48 }
 0xc4b   : > { %5569 = vmatpush2.bf16.msra.mxu0 %v13586_v17  ;;  %5643 = vmatprep.subr.bf16.mxu1 %v13627_v46  ;;  %v13633_v46 = vld [vmem:[%s14876_s17 + $0x2e4] ss:$16 sps:$4 sm:$0xff]  }
 0xc4c   : > { %5570 = vmatprep.subr.bf16.mxu0 %v13594_v25 }
 0xc4f   : > { %5571 = vmatpush2.bf16.msra.mxu0 %v13592_v27 }
 0xc50   : > { %5572 = vmatprep.subr.bf16.mxu0 %v13600_v44 }
 0xc53   : > { %5573 = vmatpush2.bf16.msra.mxu0 %v13598_v32 }
 0xc54   : > { %5574 = vmatprep.subr.bf16.mxu0 %v13606_v33 }
 0xc57   : > { %5575 = vmatpush2.bf16.msra.mxu0 %v13604_v60 }
 0xc58   : > { %5576 = vmatprep.subr.bf16.mxu0 %v13612_v38 }
 0xc5b   : > { %5577 = vmatpush2.bf16.msra.mxu0 %v13610_v41 }
 0xc5c   : > { %5578 = vmatprep.subr.bf16.mxu0 %v13618_v52 }
 0xc5f   : > { %5579 = vmatpush2.bf16.msra.mxu0 %v13616_v51 }
 0xc60   : > { %5580 = vmatprep.subr.bf16.mxu0 %v13624_v53 }
 0xc63   : > { %5581 = vmatpush2.bf16.msra.mxu0 %v13622_v54  ;;  %v13631_v54 = vld [vmem:[%s14876_s17 + $0x2e0] ss:$16 sps:$4 sm:$0xff]  }
 0xc64   : > { %6110 = vmatprep.subr.bf16.mxu0 %v13633_v46  ;;  %v13715_v46 = vld [vmem:[%s14876_s17 + $0x320] ss:$16 sps:$4 sm:$0xff]  }
 0xcb9   : > { %v5085_v19 = vpop.xlane.xlu1 %5084 }
 0xcba   : > { %v5086_v35 = vrot.slane %v5085_v19, 4 }
 0xcbc   : > { %v5087_v1 = vadd.f32 %v5086_v35, %v5085_v19 }
 0xcbe   : > { %v5088_v36 = vrot.slane %v5087_v1, 2 }
 0xcc0   : > { %v5089_v7 = vadd.f32 %v5088_v36, %v5087_v1 }
 0xcc2   : > { %v5090_v39 = vrot.slane %v5089_v7, 1 }
 0xcc4   : > { %v5091_v42 = vadd.f32 %v5090_v39, %v5089_v7 }
 0xcc6   : > { %12909 = vpush %v5091_v42 }
 0xcf7   : > { %s12910_s1 = spop %12909 }
 0xcf8   : > { %s5093_s21 = smul.f32 0.0009765625, %s12910_s1  ;;  %s5674_s1 = sld [smem:[#allocation15 + %s15854_s10]] }
 0xcfa   : > { %s5094_s0 = sadd.f32 1e-05, %s5093_s21 }
 0xcfc   : > { %v5095_v47 = vstv %s5094_s0 }
 0xcfd   : > { %14213 = vrsqrt.f32 %v5095_v47  ;;  %v13634_v47 = vld [vmem:[%s14876_s17 + $0x2e8] ss:$16 sps:$4 sm:$0xff]  }
 0xd0a   : > { %v14214_v49 = vpop.eup %14213 }
 0xd0b   : > { %12911 = vpush %v14214_v49  ;;  %v13636_v49 = vld [vmem:[%s14876_s17 + $0x2ec] ss:$16 sps:$4 sm:$0xff]  }
 0xd3c   : > { %s12912_s23 = spop %12911 }
 0xd3d   : > { %s5098_s3 = smul.f32 %s12912_s23, %s5049_s14  ;;  %s6192_s23 = sadd.s32 1, %s15854_s10 }
 0xd3e   : > { %s6194_s19 = sld [smem:[#allocation15 + %s6192_s23]] }
 0xd3f   : > { %v5099_v50 = vstv %s5098_s3  ;;  %s6193_s3 = sld [smem:[#allocation14 + %s6192_s23]] }
 0xd40   : > { %v5100_v22 = vmul.f32 %v5099_v50, %v15677_v29  ;;  %v5101_v20 = vmul.f32 %v5099_v50, %v15679_v30  ;;  %v5102_v56 = vmul.f32 %v5099_v50, %v15681_v11  ;;  %v5103_v57 = vmul.f32 %v5099_v50, %v15683_v31  ;;  %v13637_v50 = vld [vmem:[%s14876_s17 + $0x2c0] ss:$16 sps:$4 sm:$0xff]  }
 0xd42   : > { %v5105_v58 = vadd.f32 %v5104_v45, %v5100_v22  ;;  %v5106_v59 = vadd.f32 %v5104_v45, %v5101_v20  ;;  %v5107_v9 = vadd.f32 %v5104_v45, %v5102_v56  ;;  %v5108_v61 = vadd.f32 %v5104_v45, %v5103_v57  ;;  %v13639_v45 = vld [vmem:[%s14876_s17 + $0x2c4] ss:$16 sps:$4 sm:$0xff]   ;;  %v13640_v22 = vld [vmem:[%s14876_s17 + $0x2c8] ss:$16 sps:$4 sm:$0xff]   ;;  %v13642_v20 = vld [vmem:[%s14876_s17 + $0x2cc] ss:$16 sps:$4 sm:$0xff]  }
 0xd43   : > { %v13645_v56 = vld [vmem:[%s14876_s17 + $0x2a4] ss:$16 sps:$4 sm:$0xff]   ;;  %v13648_v57 = vld [vmem:[%s14876_s17 + $0x2ac] ss:$16 sps:$4 sm:$0xff]  }
 0xd44   : > { %v5113_v62 = vmul.f32 0.2, %v5105_v58  ;;  %v5115_v63 = vmul.f32 0.2, %v5107_v9  ;;  %vm5110_vm2 = vcmp.gt.f32.partialorder %v5106_v59, 0.0  ;;  %vm5112_vm3 = vcmp.gt.f32.partialorder %v5108_v61, 0.0 }
 0xd45   : > { %v5114_v0 = vmul.f32 0.2, %v5106_v59  ;;  %v5116_v3 = vmul.f32 0.2, %v5108_v61  ;;  %vm5109_vm4 = vcmp.gt.f32.partialorder %v5105_v58, 0.0  ;;  %vm5111_vm5 = vcmp.gt.f32.partialorder %v5107_v9, 0.0 }
 0xd46   : > { %v5117_v29 = vsel %vm5109_vm4, %v5105_v58, %v5113_v62  ;;  %v5119_v30 = vsel %vm5111_vm5, %v5107_v9, %v5115_v63  ;;  %v13643_v58 = vld [vmem:[%s14876_s17 + $0x2a0] ss:$16 sps:$4 sm:$0xff]   ;;  %v13651_v9 = vld [vmem:[%s14876_s17 + $0x284] ss:$16 sps:$4 sm:$0xff]   ;;  %v13652_v63 = vld [vmem:[%s14876_s17 + $0x288] ss:$16 sps:$4 sm:$0xff]  }
 0xd47   : > { %v5118_v11 = vsel %vm5110_vm2, %v5106_v59, %v5114_v0  ;;  %v5120_v4 = vsel %vm5112_vm3, %v5108_v61, %v5116_v3  ;;  %v5121_v31 = vpack.c.bf16 %v5117_v29, %v5117_v29  ;;  %v5123_v5 = vpack.c.bf16 %v5119_v30, %v5119_v30  ;;  %v13646_v59 = vld [vmem:[%s14876_s17 + $0x2a8] ss:$16 sps:$4 sm:$0xff]   ;;  %v13654_v61 = vld [vmem:[%s14876_s17 + $0x28c] ss:$16 sps:$4 sm:$0xff]   ;;  %v13649_v62 = vld [vmem:[%s14876_s17 + $0x280] ss:$16 sps:$4 sm:$0xff]  }
 0xd48   : > { %v5122_v8 = vpack.c.bf16 %v5118_v11, %v5118_v11  ;;  %v5124_v13 = vpack.c.bf16 %v5120_v4, %v5120_v4  ;;  %v13657_v0 = vld [vmem:[%s14876_s17 + $0x264] ss:$16 sps:$4 sm:$0xff]   ;;  %v13660_v3 = vld [vmem:[%s14876_s17 + $0x26c] ss:$16 sps:$4 sm:$0xff]   ;;  %v13655_v29 = vld [vmem:[%s14876_s17 + $0x260] ss:$16 sps:$4 sm:$0xff]  }
 0xd49   : > { %v13658_v30 = vld [vmem:[%s14876_s17 + $0x268] ss:$16 sps:$4 sm:$0xff]   ;;  %v13663_v11 = vld [vmem:[%s14876_s17 + $0x244] ss:$16 sps:$4 sm:$0xff]   ;;  %v13666_v4 = vld [vmem:[%s14876_s17 + $0x24c] ss:$16 sps:$4 sm:$0xff]  }
 0xd4a   : > { %5541 = vmatprep.mubr.bf16.mxu1 %v5122_v8  ;;  %5582 = vmatprep.mubr.bf16.mxu0 %v5124_v13  ;;  %v13669_v8 = vld [vmem:[%s14876_s17 + $0x224] ss:$16 sps:$4 sm:$0xff]   ;;  %v13672_v13 = vld [vmem:[%s14876_s17 + $0x22c] ss:$16 sps:$4 sm:$0xff]  }
 0xd4b   : > { %5542 = vmatmul.mubr.bf16.vlgmr.msra.gmra.mxu1 %v5121_v31  ;;  %5583 = vmatmul.mubr.bf16.vlgmr.msra.gmra.mxu0 %v5123_v5  ;;  %v13661_v31 = vld [vmem:[%s14876_s17 + $0x240] ss:$16 sps:$4 sm:$0xff]   ;;  %v13664_v5 = vld [vmem:[%s14876_s17 + $0x248] ss:$16 sps:$4 sm:$0xff]  }
 0xd4c   : > { %5644 = vmatpush1.bf16.msra.mxu1 %v13625_v14  ;;  %5663 = vmatprep.mubr.bf16.mxu1 %v14519_v2  ;;  %v13667_v14 = vld [vmem:[%s14876_s17 + $0x220] ss:$16 sps:$4 sm:$0xff]  }
 0xd4d   : > { %5645 = vmatprep.subr.bf16.mxu1 %v13630_v15  ;;  %6111 = vmatpush1.bf16.msra.mxu0 %v13631_v54  ;;  %v13670_v15 = vld [vmem:[%s14876_s17 + $0x228] ss:$16 sps:$4 sm:$0xff]  }
 0xd4e   : > { %6112 = vmatprep.subr.bf16.mxu0 %v13639_v45  ;;  %v13723_v45 = vld [vmem:[%s14876_s17 + $0x304] ss:$16 sps:$4 sm:$0xff]  }
 0xd50   : > { %5646 = vmatpush1.bf16.msra.mxu1 %v13628_v16  ;;  %v13675_v16 = vld [vmem:[%s14876_s17 + $0x204] ss:$16 sps:$4 sm:$0xff]  }
 0xd51   : > { %6151 = vmatprep.subr.bf16.mxu1 %v13636_v49  ;;  %6113 = vmatpush1.bf16.msra.mxu0 %v13637_v50  ;;  %v13718_v49 = vld [vmem:[%s14876_s17 + $0x328] ss:$16 sps:$4 sm:$0xff]   ;;  %v13720_v50 = vld [vmem:[%s14876_s17 + $0x32c] ss:$16 sps:$4 sm:$0xff]  }
 0xd52   : > { %6114 = vmatprep.subr.bf16.mxu0 %v13645_v56  ;;  %v13724_v56 = vld [vmem:[%s14876_s17 + $0x308] ss:$16 sps:$4 sm:$0xff]  }
 0xd53   : > { %11583 = vmatmul.mubr.msk.bf16.vlgmr.msra.gmra.mxu1 %vm553_vm0, %v14906_v6 }
 0xd54   : > { %6152 = vmatpush1.bf16.msra.mxu1 %v13634_v47  ;;  %v13717_v47 = vld [vmem:[%s14876_s17 + $0x324] ss:$16 sps:$4 sm:$0xff]  }
 0xd55   : > { %6153 = vmatprep.subr.bf16.mxu1 %v13642_v20  ;;  %6115 = vmatpush1.bf16.msra.mxu0 %v13643_v58  ;;  %v13721_v20 = vld [vmem:[%s14876_s17 + $0x300] ss:$16 sps:$4 sm:$0xff]  }
 0xd56   : > { %6116 = vmatprep.subr.bf16.mxu0 %v13651_v9  ;;  %v5714_v9 = vstv %s5674_s1  ;;  %s8134_s1 = sadd.s32 2, %s15854_s10 }
 0xd58   : > { %6154 = vmatpush1.bf16.msra.mxu1 %v13640_v22  ;;  %v13726_v22 = vld [vmem:[%s14876_s17 + $0x30c] ss:$16 sps:$4 sm:$0xff]  }
 0xd59   : > { %6155 = vmatprep.subr.bf16.mxu1 %v13648_v57  ;;  %6117 = vmatpush1.bf16.msra.mxu0 %v13649_v62 }
 0xd5a   : > { %6118 = vmatprep.subr.bf16.mxu0 %v13657_v0 }
 0xd5c   : > { %6156 = vmatpush1.bf16.msra.mxu1 %v13646_v59 }
 0xd5d   : > { %6157 = vmatprep.subr.bf16.mxu1 %v13654_v61  ;;  %6119 = vmatpush1.bf16.msra.mxu0 %v13655_v29 }
 0xd5e   : > { %6120 = vmatprep.subr.bf16.mxu0 %v13663_v11 }
 0xd60   : > { %6158 = vmatpush1.bf16.msra.mxu1 %v13652_v63 }
 0xd61   : > { %6159 = vmatprep.subr.bf16.mxu1 %v13660_v3  ;;  %6121 = vmatpush1.bf16.msra.mxu0 %v13661_v31 }
 0xd62   : > { %6122 = vmatprep.subr.bf16.mxu0 %v13669_v8 }
 0xd64   : > { %6160 = vmatpush1.bf16.msra.mxu1 %v13658_v30 }
 0xd65   : > { %6161 = vmatprep.subr.bf16.mxu1 %v13666_v4  ;;  %6123 = vmatpush1.bf16.msra.mxu0 %v13667_v14 }
 0xd66   : > { %6124 = vmatprep.subr.bf16.mxu0 %v13675_v16 }
 0xd68   : > { %6162 = vmatpush1.bf16.msra.mxu1 %v13664_v5 }
 0xd69   : > { %6163 = vmatprep.subr.bf16.mxu1 %v13672_v13 }
 0xd6c   : > { %6164 = vmatpush1.bf16.msra.mxu1 %v13670_v15 }
 0xe0b   : > { %v5543_v10 = vpop.f32.mrf.mxu1  ;;  %v5584_v12 = vpop.f32.mrf.mxu0 }
 0xe0c   : > { %v5585_v17 = vadd.f32 %v5584_v12, %v5543_v10  ;;  %v13678_v10 = vld [vmem:[%s14876_s17 + $0x20c] ss:$16 sps:$4 sm:$0xff]   ;;  %v13673_v12 = vld [vmem:[%s14876_s17 + $0x200] ss:$16 sps:$4 sm:$0xff]  }
 0xe0d   : > { %v5545_v18 = vpop.f32.mrf.mxu1  ;;  %v5586_v25 = vpop.f32.mrf.mxu0  ;;  %6165 = vmatprep.subr.bf16.mxu1 %v13678_v10  ;;  %6125 = vmatpush1.bf16.msra.mxu0 %v13673_v12 }
 0xe0e   : > { %v5587_v26 = vadd.f32 %v5586_v25, %v5545_v18  ;;  %14215 = vtanh.f32 %v5585_v17  ;;  %v13676_v17 = vld [vmem:[%s14876_s17 + $0x208] ss:$16 sps:$4 sm:$0xff]   ;;  %v13681_v18 = vld [vmem:[%s14876_s17 + $0x3e4] ss:$16 sps:$4 sm:$0xff]   ;;  %v13684_v25 = vld [vmem:[%s14876_s17 + $0x3ec] ss:$16 sps:$4 sm:$0xff]  }
 0xe0f   : > { %v5547_v27 = vpop.f32.mrf.mxu1  ;;  %v5588_v55 = vpop.f32.mrf.mxu0  ;;  %6166 = vmatpush1.bf16.msra.mxu1 %v13676_v17  ;;  %6126 = vmatprep.subr.bf16.mxu0 %v13681_v18 }
 0xe10   : > { %14217 = vtanh.f32 %v5587_v26  ;;  %v13679_v26 = vld [vmem:[%s14876_s17 + $0x3e0] ss:$16 sps:$4 sm:$0xff]   ;;  %v13682_v27 = vld [vmem:[%s14876_s17 + $0x3e8] ss:$16 sps:$4 sm:$0xff]   ;;  %v13687_v55 = vld [vmem:[%s14876_s17 + $0x3c4] ss:$16 sps:$4 sm:$0xff]   ;;  %6167 = vmatprep.subr.bf16.mxu1 %v13684_v25 }
 0xe11   : > { %v5548_v44 = vpop.f32.mrf.mxu1  ;;  %v5589_v28 = vpop.f32.mrf.mxu0  ;;  %6127 = vmatpush2.bf16.msra.mxu0 %v13679_v26 }
 0xe12   : > { %v13690_v44 = vld [vmem:[%s14876_s17 + $0x3cc] ss:$16 sps:$4 sm:$0xff]   ;;  %v13685_v28 = vld [vmem:[%s14876_s17 + $0x3c0] ss:$16 sps:$4 sm:$0xff]   ;;  %6128 = vmatprep.subr.bf16.mxu0 %v13687_v55 }
 0xe13   : > { %v5665_v32 = vpop.f32.mrf.mxu1  ;;  %6168 = vmatpush2.bf16.msra.mxu1 %v13682_v27 }
 0xe14   : > { %v5675_v23 = vsel %vm601_vm1, %v5665_v32, 0.0  ;;  %6169 = vmatprep.subr.bf16.mxu1 %v13690_v44 }
 0xe15   : > { %v5667_v2 = vpop.f32.mrf.mxu1  ;;  %6129 = vmatpush2.bf16.msra.mxu0 %v13685_v28 }
 0xe16   : > { %v5676_v33 = vsel %vm601_vm1, %v5667_v2, 0.0 }
 0xe17   : > { %v5669_v6 = vpop.f32.mrf.mxu1  ;;  %v5677_v34 = vadd.f32 %v5676_v33, %v5675_v23  ;;  %v13696_v23 = vld [vmem:[%s14876_s17 + $0x3ac] ss:$16 sps:$4 sm:$0xff]   ;;  %v13691_v33 = vld [vmem:[%s14876_s17 + $0x3a0] ss:$16 sps:$4 sm:$0xff]  }
 0xe18   : > { %v13694_v6 = vld [vmem:[%s14876_s17 + $0x3a8] ss:$16 sps:$4 sm:$0xff]  }
 0xe19   : > { %5678 = vadd.xlane.f32.xlu0 %v5677_v34  ;;  %v5670_v60 = vpop.f32.mrf.mxu1  ;;  %v13699_v34 = vld [vmem:[%s14876_s17 + $0x384] ss:$16 sps:$4 sm:$0xff]  }
 0xe1a   : > { %v13702_v60 = vld [vmem:[%s14876_s17 + $0x38c] ss:$16 sps:$4 sm:$0xff]  }
 0xe1b   : > { %v14216_v19 = vpop.eup %14215 }
 0xe1d   : > { %v14218_v35 = vpop.eup %14217 }
 0xe1e   : > { %v5595_v1 = vcombine.low %v14216_v19, %v14218_v35  ;;  %v13697_v19 = vld [vmem:[%s14876_s17 + $0x380] ss:$16 sps:$4 sm:$0xff]   ;;  %v13700_v35 = vld [vmem:[%s14876_s17 + $0x388] ss:$16 sps:$4 sm:$0xff]  }
 0xe20   : > { %11574 = vst.sshfl [vmem:[%s15776_s24] sm:$0x33 pattern:$0x76325410] %v5595_v1  ;;  %v13705_v1 = vld [vmem:[%s14876_s17 + $0x364] ss:$16 sps:$4 sm:$0xff]  }
 0xea2   : > { %v5679_v36 = vpop.xlane.xlu0 %5678 }
 0xea3   : > { %v5680_v7 = vrot.slane %v5679_v36, 4 }
 0xea5   : > { %v5681_v37 = vadd.f32 %v5680_v7, %v5679_v36  ;;  %v13708_v36 = vld [vmem:[%s14876_s17 + $0x36c] ss:$16 sps:$4 sm:$0xff]   ;;  %v13703_v7 = vld [vmem:[%s14876_s17 + $0x360] ss:$16 sps:$4 sm:$0xff]  }
 0xea7   : > { %v5682_v38 = vrot.slane %v5681_v37, 2 }
 0xea9   : > { %v5683_v39 = vadd.f32 %v5682_v38, %v5681_v37  ;;  %v13706_v37 = vld [vmem:[%s14876_s17 + $0x368] ss:$16 sps:$4 sm:$0xff]  }
 0xeab   : > { %v5684_v40 = vrot.slane %v5683_v39, 1 }
 0xead   : > { %v5685_v41 = vadd.f32 %v5684_v40, %v5683_v39 }
 0xeaf   : > { %12913 = vpush %v5685_v41 }
 0xee0   : > { %s12914_s25 = spop %12913 }
 0xee1   : > { %s5687_s8 = smul.f32 0.001953125, %s12914_s25 }
 0xee3   : > { %v5688_v42 = vstv %s5687_s8 }
 0xee4   : > { %v15779_v21 = vsub.f32 %v5665_v32, %v5688_v42  ;;  %v15781_v43 = vsub.f32 %v5667_v2, %v5688_v42  ;;  %v13688_v32 = vld [vmem:[%s14876_s17 + $0x3c8] ss:$16 sps:$4 sm:$0xff]   ;;  %v13693_v2 = vld [vmem:[%s14876_s17 + $0x3a4] ss:$16 sps:$4 sm:$0xff]  }
 0xee5   : > { %6170 = vmatpush2.bf16.msra.mxu1 %v13688_v32  ;;  %6130 = vmatprep.subr.bf16.mxu0 %v13693_v2 }
 0xee6   : > { %v5691_v51 = vmul.f32 %v15779_v21, %v15779_v21  ;;  %v5692_v52 = vmul.f32 %v15781_v43, %v15781_v43  ;;  %6171 = vmatprep.subr.bf16.mxu1 %v13696_v23  ;;  %6131 = vmatpush2.bf16.msra.mxu0 %v13691_v33 }
 0xee7   : > { %6132 = vmatprep.subr.bf16.mxu0 %v13699_v34 }
 0xee8   : > { %v5693_v24 = vsel %vm601_vm1, %v5691_v51, 0.0  ;;  %v5694_v53 = vsel %vm601_vm1, %v5692_v52, 0.0  ;;  %v13711_v51 = vld [vmem:[%s14876_s17 + $0x344] ss:$16 sps:$4 sm:$0xff]   ;;  %v13714_v52 = vld [vmem:[%s14876_s17 + $0x34c] ss:$16 sps:$4 sm:$0xff]  }
 0xee9   : > { %v5695_v48 = vadd.f32 %v5694_v53, %v5693_v24  ;;  %6172 = vmatpush2.bf16.msra.mxu1 %v13694_v6  ;;  %v13709_v24 = vld [vmem:[%s14876_s17 + $0x340] ss:$16 sps:$4 sm:$0xff]   ;;  %v13712_v53 = vld [vmem:[%s14876_s17 + $0x348] ss:$16 sps:$4 sm:$0xff]  }
 0xeea   : > { %6173 = vmatprep.subr.bf16.mxu1 %v13702_v60  ;;  %6133 = vmatpush2.bf16.msra.mxu0 %v13697_v19 }
 0xeeb   : > { %5696 = vadd.xlane.f32.xlu1 %v5695_v48  ;;  %6134 = vmatprep.subr.bf16.mxu0 %v13705_v1 }
 0xeed   : > { %6174 = vmatpush2.bf16.msra.mxu1 %v13700_v35 }
 0xeee   : > { %6175 = vmatprep.subr.bf16.mxu1 %v13708_v36  ;;  %6135 = vmatpush2.bf16.msra.mxu0 %v13703_v7 }
 0xeef   : > { %6136 = vmatprep.subr.bf16.mxu0 %v13711_v51 }
 0xef1   : > { %6176 = vmatpush2.bf16.msra.mxu1 %v13706_v37 }
 0xef2   : > { %6177 = vmatprep.subr.bf16.mxu1 %v13714_v52  ;;  %6137 = vmatpush2.bf16.msra.mxu0 %v13709_v24  ;;  %v11769_v24 = vld [vmem:[%s14878_s18 + $0x9c0] sm:$0xff] }
 0xef3   : > { %6138 = vmatprep.subr.bf16.mxu0 %v13717_v47  ;;  %v11901_v47 = vld [vmem:[%s14878_s18 + $0xde0] sm:$0xff] }
 0xef5   : > { %6178 = vmatpush2.bf16.msra.mxu1 %v13712_v53  ;;  %v11773_v53 = vld [vmem:[%s14878_s18 + $0x9e0] sm:$0xff] }
 0xef6   : > { %6179 = vmatprep.subr.bf16.mxu1 %v13720_v50  ;;  %6139 = vmatpush2.bf16.msra.mxu0 %v13715_v46  ;;  %v12026_v46 = vcombine.high %v11769_v24, %v11773_v53 }
 0xef7   : > { %6140 = vmatprep.subr.bf16.mxu0 %v13723_v45  ;;  %v11761_v45 = vld [vmem:[%s14878_s18 + $0x980] sm:$0xff] }
 0xef9   : > { %6180 = vmatpush2.bf16.msra.mxu1 %v13718_v49 }
 0xefa   : > { %6181 = vmatprep.subr.bf16.mxu1 %v13726_v22  ;;  %6141 = vmatpush2.bf16.msra.mxu0 %v13721_v20  ;;  %v11765_v22 = vld [vmem:[%s14878_s18 + $0x9a0] sm:$0xff] }
 0xefb   : > { %7806 = vmatprep.subr.bf16.mxu0 %v12026_v46  ;;  %v11889_v20 = vld [vmem:[%s14878_s18 + $0xd80] sm:$0xff] }
 0xefc   : > { %v11961_v46 = vld [vmem:[%s14878_s18 + $0xfc0] sm:$0xff] }
 0xefd   : > { %6182 = vmatpush2.bf16.msra.mxu1 %v13724_v56  ;;  %v12017_v56 = vcombine.low %v11761_v45, %v11765_v22 }
 0xf74   : > { %v5697_v38 = vpop.xlane.xlu1 %5696 }
 0xf75   : > { %v5698_v39 = vrot.slane %v5697_v38, 4 }
 0xf77   : > { %v5699_v40 = vadd.f32 %v5698_v39, %v5697_v38 }
 0xf79   : > { %v5700_v41 = vrot.slane %v5699_v40, 2 }
 0xf7b   : > { %v5701_v42 = vadd.f32 %v5700_v41, %v5699_v40 }
 0xf7d   : > { %v5702_v48 = vrot.slane %v5701_v42, 1 }
 0xf7f   : > { %v5703_v54 = vadd.f32 %v5702_v48, %v5701_v42  ;;  %v11897_v48 = vld [vmem:[%s14878_s18 + $0xdc0] sm:$0xff] }
 0xf80   : > { %v12153_v49 = vcombine.low %v11897_v48, %v11901_v47  ;;  %v12154_v50 = vcombine.high %v11897_v48, %v11901_v47  ;;  %v11833_v48 = vld [vmem:[%s14878_s18 + $0xbc0] sm:$0xff] }
 0xf81   : > { %12915 = vpush %v5703_v54  ;;  %v12025_v54 = vcombine.low %v11769_v24, %v11773_v53  ;;  %v11965_v47 = vld [vmem:[%s14878_s18 + $0xfe0] sm:$0xff] }
 0xf82   : > { %7847 = vmatprep.subr.bf16.mxu1 %v12154_v50 }
 0xfb2   : > { %s12916_s27 = spop %12915 }
 0xfb3   : > { %s5705_s15 = smul.f32 0.001953125, %s12916_s27 }
 0xfb5   : > { %s5706_s26 = sadd.f32 1e-05, %s5705_s15 }
 0xfb7   : > { %v5707_v57 = vstv %s5706_s26 }
 0xfb8   : > { %14219 = vrsqrt.f32 %v5707_v57  ;;  %v12018_v57 = vcombine.high %v11761_v45, %v11765_v22  ;;  %v12218_v22 = vcombine.high %v11961_v46, %v11965_v47 }
 0xfc5   : > { %v14220_v58 = vpop.eup %14219 }
 0xfc6   : > { %12917 = vpush %v14220_v58  ;;  %v11893_v58 = vld [vmem:[%s14878_s18 + $0xda0] sm:$0xff] }
 0xff7   : > { %s12918_s21 = spop %12917 }
 0xff8   : > { %s5710_s0 = smul.f32 %s12918_s21, %s5673_s9  ;;  %s8135_s21 = sld [smem:[#allocation14 + %s8134_s1]] }
 0xffa   : > { %v5711_v59 = vstv %s5710_s0  ;;  %s8136_s0 = sld [smem:[#allocation15 + %s8134_s1]] }
 0xffb   : > { %v5712_v61 = vmul.f32 %v5711_v59, %v15779_v21  ;;  %v5713_v62 = vmul.f32 %v5711_v59, %v15781_v43  ;;  %v11753_v59 = vld [vmem:[%s14878_s18 + $0x940] sm:$0xff] }
 0xffd   : > { %v5715_v63 = vadd.f32 %v5714_v9, %v5712_v61  ;;  %v5716_v0 = vadd.f32 %v5714_v9, %v5713_v62  ;;  %v11757_v9 = vld [vmem:[%s14878_s18 + $0x960] sm:$0xff]  ;;  %v12145_v61 = vcombine.low %v11889_v20, %v11893_v58  ;;  %v12146_v62 = vcombine.high %v11889_v20, %v11893_v58 }
 0xffe   : > { %v11825_v20 = vld [vmem:[%s14878_s18 + $0xb80] sm:$0xff] }
 0xfff   : > { %vm5717_vm0 = vcmp.gt.f32.partialorder %v5715_v63, 0.0  ;;  %v5719_v3 = vmul.f32 0.2, %v5715_v63  ;;  %v5720_v29 = vmul.f32 0.2, %v5716_v0  ;;  %vm5718_vm6 = vcmp.gt.f32.partialorder %v5716_v0, 0.0 }
0x1000   : > { %v11957_v58 = vld [vmem:[%s14878_s18 + $0xfa0] sm:$0xff] }
0x1001   : > { %v5722_v30 = vsel %vm5718_vm6, %v5716_v0, %v5720_v29  ;;  %v5721_v11 = vsel %vm5717_vm0, %v5715_v63, %v5719_v3  ;;  %v12010_v63 = vcombine.high %v11753_v59, %v11757_v9  ;;  %v11881_v0 = vld [vmem:[%s14878_s18 + $0xd40] sm:$0xff] }
0x1002   : > { %v5724_v4 = vpack.c.bf16 %v5722_v30, %v5722_v30  ;;  %v5723_v31 = vpack.c.bf16 %v5721_v11, %v5721_v11  ;;  %v11885_v3 = vld [vmem:[%s14878_s18 + $0xd60] sm:$0xff] }
0x1003   : > { %v11745_v29 = vld [vmem:[%s14878_s18 + $0x900] sm:$0xff]  ;;  %v12138_v30 = vcombine.high %v11881_v0, %v11885_v3 }
0x1004   : > { %6142 = vmatprep.mubr.bf16.mxu0 %v5724_v4  ;;  %6183 = vmatprep.mubr.bf16.mxu1 %v5724_v4  ;;  %v11749_v11 = vld [vmem:[%s14878_s18 + $0x920] sm:$0xff] }
0x1005   : > { %6143 = vmatmul.mubr.bf16.vlgmr.msra.gmra.mxu0 %v5723_v31  ;;  %6184 = vmatmul.mubr.bf16.vlgmr.msra.gmra.mxu1 %v5723_v31  ;;  %v11873_v4 = vld [vmem:[%s14878_s18 + $0xd00] sm:$0xff] }
0x1006   : > { %7807 = vmatpush1.bf16.msra.mxu0 %v12025_v54  ;;  %7848 = vmatpush1.bf16.msra.mxu1 %v12153_v49  ;;  %v11877_v31 = vld [vmem:[%s14878_s18 + $0xd20] sm:$0xff] }
0x1007   : > { %7808 = vmatprep.subr.bf16.mxu0 %v12018_v57  ;;  %7849 = vmatprep.subr.bf16.mxu1 %v12146_v62  ;;  %v11837_v54 = vld [vmem:[%s14878_s18 + $0xbe0] sm:$0xff] }
0x1008   : > { %v12090_v45 = vcombine.high %v11833_v48, %v11837_v54  ;;  %v11953_v57 = vld [vmem:[%s14878_s18 + $0xf80] sm:$0xff] }
0x1009   : > { %v12210_v62 = vcombine.high %v11953_v57, %v11957_v58 }
0x100a   : > { %7809 = vmatpush1.bf16.msra.mxu0 %v12017_v56  ;;  %7850 = vmatpush1.bf16.msra.mxu1 %v12145_v61  ;;  %v11829_v56 = vld [vmem:[%s14878_s18 + $0xba0] sm:$0xff] }
0x100b   : > { %7810 = vmatprep.subr.bf16.mxu0 %v12010_v63  ;;  %7851 = vmatprep.subr.bf16.mxu1 %v12138_v30  ;;  %v12082_v61 = vcombine.high %v11825_v20, %v11829_v56  ;;  %v11817_v63 = vld [vmem:[%s14878_s18 + $0xb40] sm:$0xff]  ;;  %v12081_v30 = vcombine.low %v11825_v20, %v11829_v56 }
0x10c5   : > { %v6144_v5 = vpop.f32.mrf.mxu0  ;;  %v6185_v8 = vpop.f32.mrf.mxu1 }
0x10c6   : > { %v6195_v43 = vsel %vm601_vm1, %v6144_v5, 0.0  ;;  %v6198_v12 = vsel %vm601_vm1, %v6185_v8, 0.0 }
0x10c7   : > { %v6146_v13 = vpop.f32.mrf.mxu0  ;;  %v6187_v21 = vpop.f32.mrf.mxu1 }
0x10c8   : > { %v6196_v14 = vsel %vm601_vm1, %v6146_v13, 0.0  ;;  %v6200_v26 = vsel %vm601_vm1, %v6187_v21, 0.0 }
0x10c9   : > { %v6197_v15 = vadd.f32 %v6196_v14, %v6195_v43  ;;  %v6148_v16 = vpop.f32.mrf.mxu0  ;;  %v6189_v10 = vpop.f32.mrf.mxu1  ;;  %v11737_v43 = vld [vmem:[%s14878_s18 + $0x8c0] sm:$0xff] }
0x10ca   : > { %v11741_v14 = vld [vmem:[%s14878_s18 + $0x8e0] sm:$0xff]  ;;  %v12001_v10 = vcombine.low %v11745_v29, %v11749_v11 }
0x10cb   : > { %v6149_v17 = vpop.f32.mrf.mxu0  ;;  %v6190_v18 = vpop.f32.mrf.mxu1  ;;  %v6199_v25 = vadd.f32 %v6198_v12, %v6197_v15  ;;  %v11865_v15 = vld [vmem:[%s14878_s18 + $0xcc0] sm:$0xff]  ;;  %v12129_v12 = vcombine.low %v11873_v4, %v11877_v31 }
0x10cc   : > { %v11869_v16 = vld [vmem:[%s14878_s18 + $0xce0] sm:$0xff]  ;;  %v11994_v17 = vcombine.high %v11737_v43, %v11741_v14 }
0x10cd   : > { %v6201_v27 = vadd.f32 %v6200_v26, %v6199_v25  ;;  %v12122_v18 = vcombine.high %v11865_v15, %v11869_v16  ;;  %v11729_v25 = vld [vmem:[%s14878_s18 + $0x880] sm:$0xff] }
0x10ce   : > { %v11733_v26 = vld [vmem:[%s14878_s18 + $0x8a0] sm:$0xff] }
0x10cf   : > { %6202 = vadd.xlane.f32.xlu0 %v6201_v27  ;;  %v11857_v27 = vld [vmem:[%s14878_s18 + $0xc80] sm:$0xff] }
0x1158   : > { %v6203_v55 = vpop.xlane.xlu0 %6202 }
0x1159   : > { %v6204_v44 = vrot.slane %v6203_v55, 4 }
0x115b   : > { %v6205_v28 = vadd.f32 %v6204_v44, %v6203_v55  ;;  %v11861_v55 = vld [vmem:[%s14878_s18 + $0xca0] sm:$0xff]  ;;  %v11993_v44 = vcombine.low %v11737_v43, %v11741_v14 }
0x115d   : > { %v6206_v32 = vrot.slane %v6205_v28, 2 }
0x115f   : > { %v6207_v2 = vadd.f32 %v6206_v32, %v6205_v28  ;;  %v12121_v28 = vcombine.low %v11865_v15, %v11869_v16  ;;  %v11986_v32 = vcombine.high %v11729_v25, %v11733_v26 }
0x1161   : > { %v6208_v23 = vrot.slane %v6207_v2, 1 }
0x1163   : > { %v6209_v33 = vadd.f32 %v6208_v23, %v6207_v2  ;;  %v12114_v2 = vcombine.high %v11857_v27, %v11861_v55  ;;  %v11721_v23 = vld [vmem:[%s14878_s18 + $0x840] sm:$0xff] }
0x1165   : > { %12919 = vpush %v6209_v33  ;;  %v11725_v33 = vld [vmem:[%s14878_s18 + $0x860] sm:$0xff] }
0x1196   : > { %s12920_s17 = spop %12919 }
0x1197   : > { %s6211_s29 = smul.f32 0.0009765625, %s12920_s17 }
0x1199   : > { %v6212_v6 = vstv %s6211_s29 }
0x119a   : > { %v15864_v34 = vsub.f32 %v6144_v5, %v6212_v6  ;;  %v15866_v60 = vsub.f32 %v6146_v13, %v6212_v6  ;;  %v15868_v19 = vsub.f32 %v6185_v8, %v6212_v6  ;;  %v15870_v35 = vsub.f32 %v6187_v21, %v6212_v6  ;;  %v11849_v6 = vld [vmem:[%s14878_s18 + $0xc40] sm:$0xff] }
0x119b   : > { %v12009_v5 = vcombine.low %v11753_v59, %v11757_v9  ;;  %v12137_v8 = vcombine.low %v11881_v0, %v11885_v3  ;;  %v12002_v13 = vcombine.high %v11745_v29, %v11749_v11  ;;  %v12130_v21 = vcombine.high %v11873_v4, %v11877_v31  ;;  %v11821_v0 = vld [vmem:[%s14878_s18 + $0xb60] sm:$0xff] }
0x119c   : > { %v6217_v1 = vmul.f32 %v15864_v34, %v15864_v34  ;;  %v6218_v36 = vmul.f32 %v15866_v60, %v15866_v60  ;;  %v6219_v7 = vmul.f32 %v15868_v19, %v15868_v19  ;;  %v6220_v37 = vmul.f32 %v15870_v35, %v15870_v35  ;;  %v11945_v3 = vld [vmem:[%s14878_s18 + $0xf40] sm:$0xff] }
0x119d   : > { %7811 = vmatpush1.bf16.msra.mxu0 %v12009_v5  ;;  %7852 = vmatpush1.bf16.msra.mxu1 %v12137_v8  ;;  %v12089_v59 = vcombine.low %v11833_v48, %v11837_v54  ;;  %v12217_v9 = vcombine.low %v11961_v46, %v11965_v47  ;;  %v11949_v29 = vld [vmem:[%s14878_s18 + $0xf60] sm:$0xff]  ;;  %v12209_v11 = vcombine.low %v11953_v57, %v11957_v58 }
0x119e   : > { %v6221_v38 = vsel %vm601_vm1, %v6217_v1, 0.0  ;;  %v6222_v39 = vsel %vm601_vm1, %v6218_v36, 0.0  ;;  %v6224_v41 = vsel %vm601_vm1, %v6219_v7, 0.0  ;;  %v6226_v51 = vsel %vm601_vm1, %v6220_v37, 0.0  ;;  %7812 = vmatprep.subr.bf16.mxu0 %v12002_v13  ;;  %7853 = vmatprep.subr.bf16.mxu1 %v12130_v21  ;;  %v11853_v1 = vld [vmem:[%s14878_s18 + $0xc60] sm:$0xff] }
0x119f   : > { %v6223_v40 = vadd.f32 %v6222_v39, %v6221_v38  ;;  %v11985_v36 = vcombine.low %v11729_v25, %v11733_v26  ;;  %v12113_v7 = vcombine.low %v11857_v27, %v11861_v55  ;;  %v11978_v37 = vcombine.high %v11721_v23, %v11725_v33  ;;  %v11713_v39 = vld [vmem:[%s14878_s18 + $0x800] sm:$0xff] }
0x11a0   : > { %v12106_v38 = vcombine.high %v11849_v6, %v11853_v1  ;;  %v12074_v4 = vcombine.high %v11817_v63, %v11821_v0  ;;  %v12202_v31 = vcombine.high %v11945_v3, %v11949_v29  ;;  %v11809_v5 = vld [vmem:[%s14878_s18 + $0xb00] sm:$0xff]  ;;  %v12073_v43 = vcombine.low %v11817_v63, %v11821_v0 }
0x11a1   : > { %v6225_v42 = vadd.f32 %v6224_v41, %v6223_v40  ;;  %7813 = vmatpush1.bf16.msra.mxu0 %v12001_v10  ;;  %7854 = vmatpush1.bf16.msra.mxu1 %v12129_v12  ;;  %v11717_v40 = vld [vmem:[%s14878_s18 + $0x820] sm:$0xff]  ;;  %v12201_v14 = vcombine.low %v11945_v3, %v11949_v29  ;;  %v11902_v3 = vld [vmem:[%s14878_s18 + $0xde8] sm:$0xff] }
0x11a2   : > { %7814 = vmatprep.subr.bf16.mxu0 %v11994_v17  ;;  %7855 = vmatprep.subr.bf16.mxu1 %v12122_v18  ;;  %v11841_v41 = vld [vmem:[%s14878_s18 + $0xc00] sm:$0xff]  ;;  %v11970_v24 = vcombine.high %v11713_v39, %v11717_v40  ;;  %v11969_v49 = vcombine.low %v11713_v39, %v11717_v40 }
0x11a3   : > { %v6227_v52 = vadd.f32 %v6226_v51, %v6225_v42  ;;  %v11845_v42 = vld [vmem:[%s14878_s18 + $0xc20] sm:$0xff]  ;;  %v11977_v51 = vcombine.low %v11721_v23, %v11725_v33 }
0x11a4   : > { %v12098_v53 = vcombine.high %v11841_v41, %v11845_v42  ;;  %v12097_v50 = vcombine.low %v11841_v41, %v11845_v42  ;;  %v11813_v8 = vld [vmem:[%s14878_s18 + $0xb20] sm:$0xff] }
0x11a5   : > { %6228 = vadd.xlane.f32.xlu1 %v6227_v52  ;;  %7815 = vmatpush1.bf16.msra.mxu0 %v11993_v44  ;;  %v12105_v52 = vcombine.low %v11849_v6, %v11853_v1  ;;  %v11937_v13 = vld [vmem:[%s14878_s18 + $0xf00] sm:$0xff]  ;;  %v12066_v15 = vcombine.high %v11809_v5, %v11813_v8  ;;  %v12065_v25 = vcombine.low %v11809_v5, %v11813_v8  ;;  %v6248_v5 = vstv %s6194_s19 }
0x11a6   : > { %7856 = vmatpush1.bf16.msra.mxu1 %v12121_v28  ;;  %7816 = vmatprep.subr.bf16.mxu0 %v11986_v32  ;;  %v11941_v21 = vld [vmem:[%s14878_s18 + $0xf20] sm:$0xff] }
0x11a7   : > { %7857 = vmatprep.subr.bf16.mxu1 %v12114_v2  ;;  %v12194_v16 = vcombine.high %v11937_v13, %v11941_v21  ;;  %v11801_v10 = vld [vmem:[%s14878_s18 + $0xac0] sm:$0xff]  ;;  %v12193_v26 = vcombine.low %v11937_v13, %v11941_v21 }
0x11a8   : > { %v11805_v12 = vld [vmem:[%s14878_s18 + $0xae0] sm:$0xff] }
0x11a9   : > { %7817 = vmatpush1.bf16.msra.mxu0 %v11985_v36  ;;  %v11929_v17 = vld [vmem:[%s14878_s18 + $0xec0] sm:$0xff]  ;;  %v12058_v27 = vcombine.high %v11801_v10, %v11805_v12  ;;  %v12057_v44 = vcombine.low %v11801_v10, %v11805_v12 }
0x11aa   : > { %7858 = vmatpush1.bf16.msra.mxu1 %v12113_v7  ;;  %7818 = vmatprep.subr.bf16.mxu0 %v11978_v37  ;;  %v11933_v18 = vld [vmem:[%s14878_s18 + $0xee0] sm:$0xff] }
0x11ab   : > { %7859 = vmatprep.subr.bf16.mxu1 %v12106_v38  ;;  %v12186_v55 = vcombine.high %v11929_v17, %v11933_v18  ;;  %v12185_v28 = vcombine.low %v11929_v17, %v11933_v18  ;;  %v11793_v6 = vld [vmem:[%s14878_s18 + $0xa80] sm:$0xff] }
0x11ac   : > { %v11797_v1 = vld [vmem:[%s14878_s18 + $0xaa0] sm:$0xff] }
0x11ad   : > { %7819 = vmatpush1.bf16.msra.mxu0 %v11977_v51  ;;  %v11921_v36 = vld [vmem:[%s14878_s18 + $0xe80] sm:$0xff]  ;;  %v12050_v7 = vcombine.high %v11793_v6, %v11797_v1  ;;  %v12049_v39 = vcombine.low %v11793_v6, %v11797_v1  ;;  %v11754_v6 = vld [vmem:[%s14878_s18 + $0x948] sm:$0xff] }
0x11ae   : > { %7860 = vmatpush1.bf16.msra.mxu1 %v12105_v52  ;;  %7820 = vmatprep.subr.bf16.mxu0 %v11970_v24  ;;  %v11925_v37 = vld [vmem:[%s14878_s18 + $0xea0] sm:$0xff]  ;;  %v11758_v1 = vld [vmem:[%s14878_s18 + $0x968] sm:$0xff] }
0x11af   : > { %7861 = vmatprep.subr.bf16.mxu1 %v12098_v53  ;;  %v12177_v40 = vcombine.low %v11921_v36, %v11925_v37  ;;  %v12178_v41 = vcombine.high %v11921_v36, %v11925_v37  ;;  %v11785_v51 = vld [vmem:[%s14878_s18 + $0xa40] sm:$0xff]  ;;  %v11886_v37 = vld [vmem:[%s14878_s18 + $0xd68] sm:$0xff] }
0x11b0   : > { %v11789_v52 = vld [vmem:[%s14878_s18 + $0xa60] sm:$0xff] }
0x11b1   : > { %7821 = vmatpush1.bf16.msra.mxu0 %v11969_v49  ;;  %v11913_v24 = vld [vmem:[%s14878_s18 + $0xe40] sm:$0xff]  ;;  %v12042_v53 = vcombine.high %v11785_v51, %v11789_v52  ;;  %v12041_v46 = vcombine.low %v11785_v51, %v11789_v52  ;;  %v11750_v51 = vld [vmem:[%s14878_s18 + $0x928] sm:$0xff] }
0x11b2   : > { %7862 = vmatpush1.bf16.msra.mxu1 %v12097_v50  ;;  %7822 = vmatprep.subr.bf16.mxu0 %v12090_v45  ;;  %v11917_v48 = vld [vmem:[%s14878_s18 + $0xe60] sm:$0xff]  ;;  %v11874_v52 = vld [vmem:[%s14878_s18 + $0xd08] sm:$0xff] }
0x11b3   : > { %7863 = vmatprep.subr.bf16.mxu1 %v12218_v22  ;;  %v12169_v47 = vcombine.low %v11913_v24, %v11917_v48  ;;  %v12170_v49 = vcombine.high %v11913_v24, %v11917_v48  ;;  %v11777_v50 = vld [vmem:[%s14878_s18 + $0xa00] sm:$0xff]  ;;  %v11878_v24 = vld [vmem:[%s14878_s18 + $0xd28] sm:$0xff] }
0x11b4   : > { %v11781_v45 = vld [vmem:[%s14878_s18 + $0xa20] sm:$0xff] }
0x11b5   : > { %7823 = vmatpush2.bf16.msra.mxu0 %v12089_v59  ;;  %v11905_v22 = vld [vmem:[%s14878_s18 + $0xe00] sm:$0xff]  ;;  %v12033_v20 = vcombine.low %v11777_v50, %v11781_v45  ;;  %v12034_v56 = vcombine.high %v11777_v50, %v11781_v45  ;;  %v11866_v50 = vld [vmem:[%s14878_s18 + $0xcc8] sm:$0xff] }
0x11b6   : > { %7864 = vmatpush2.bf16.msra.mxu1 %v12217_v9  ;;  %7824 = vmatprep.subr.bf16.mxu0 %v12082_v61  ;;  %v11909_v57 = vld [vmem:[%s14878_s18 + $0xe20] sm:$0xff]  ;;  %v15949_v9 = vld [vmem:[%s14878_s18 + $0x9c8] sm:$0xff] }
0x11b7   : > { %7865 = vmatprep.subr.bf16.mxu1 %v12210_v62  ;;  %v12162_v58 = vcombine.high %v11905_v22, %v11909_v57  ;;  %v12161_v59 = vcombine.low %v11905_v22, %v11909_v57  ;;  %v11774_v61 = vld [vmem:[%s14878_s18 + $0x9e8] sm:$0xff] }
0x11b8   : > { %v15953_v62 = vld [vmem:[%s14878_s18 + $0xdc8] sm:$0xff]  ;;  %v12027_v63 = vcombine.low %v15949_v9, %v11774_v61  ;;  %v12028_v0 = vcombine.high %v15949_v9, %v11774_v61 }
0x11b9   : > { %7825 = vmatpush2.bf16.msra.mxu0 %v12081_v30  ;;  %v12155_v29 = vcombine.low %v15953_v62, %v11902_v3  ;;  %v12156_v30 = vcombine.high %v15953_v62, %v11902_v3  ;;  %v11870_v45 = vld [vmem:[%s14878_s18 + $0xce8] sm:$0xff] }
0x11ba   : > { %7866 = vmatpush2.bf16.msra.mxu1 %v12209_v11  ;;  %7826 = vmatprep.subr.bf16.mxu0 %v12074_v4  ;;  %v12124_v57 = vcombine.high %v11866_v50, %v11870_v45  ;;  %v11858_v9 = vld [vmem:[%s14878_s18 + $0xc88] sm:$0xff] }
0x11bb   : > { %7867 = vmatprep.subr.bf16.mxu1 %v12202_v31  ;;  %v11862_v61 = vld [vmem:[%s14878_s18 + $0xca8] sm:$0xff] }
0x11bc   : > { %v12116_v3 = vcombine.high %v11858_v9, %v11862_v61 }
0x11bd   : > { %7827 = vmatpush2.bf16.msra.mxu0 %v12073_v43 }
0x11be   : > { %7868 = vmatpush2.bf16.msra.mxu1 %v12201_v14  ;;  %7828 = vmatprep.subr.bf16.mxu0 %v12066_v15 }
0x11bf   : > { %7869 = vmatprep.subr.bf16.mxu1 %v12194_v16 }
0x11c1   : > { %7829 = vmatpush2.bf16.msra.mxu0 %v12065_v25 }
0x11c2   : > { %7870 = vmatpush2.bf16.msra.mxu1 %v12193_v26  ;;  %7830 = vmatprep.subr.bf16.mxu0 %v12058_v27 }
0x11c3   : > { %7871 = vmatprep.subr.bf16.mxu1 %v12186_v55 }
0x11c5   : > { %7831 = vmatpush2.bf16.msra.mxu0 %v12057_v44 }
0x11c6   : > { %7872 = vmatpush2.bf16.msra.mxu1 %v12185_v28  ;;  %7832 = vmatprep.subr.bf16.mxu0 %v12050_v7  ;;  %v11890_v28 = vld [vmem:[%s14878_s18 + $0xd88] sm:$0xff] }
0x11c7   : > { %7873 = vmatprep.subr.bf16.mxu1 %v12178_v41  ;;  %v11882_v7 = vld [vmem:[%s14878_s18 + $0xd48] sm:$0xff] }
0x11c8   : > { %v12140_v41 = vcombine.high %v11882_v7, %v11886_v37  ;;  %v12139_v48 = vcombine.low %v11882_v7, %v11886_v37 }
0x11c9   : > { %7833 = vmatpush2.bf16.msra.mxu0 %v12049_v39 }
0x11ca   : > { %7874 = vmatpush2.bf16.msra.mxu1 %v12177_v40  ;;  %7834 = vmatprep.subr.bf16.mxu0 %v12042_v53  ;;  %v12012_v40 = vcombine.high %v11754_v6, %v11758_v1  ;;  %v12011_v53 = vcombine.low %v11754_v6, %v11758_v1  ;;  %v11958_v6 = vld [vmem:[%s14878_s18 + $0xfa8] sm:$0xff] }
0x11cb   : > { %7875 = vmatprep.subr.bf16.mxu1 %v12170_v49  ;;  %v11742_v49 = vld [vmem:[%s14878_s18 + $0x8e8] sm:$0xff] }
0x11cd   : > { %7835 = vmatpush2.bf16.msra.mxu0 %v12041_v46  ;;  %v12132_v46 = vcombine.high %v11874_v52, %v11878_v24 }
0x11ce   : > { %7876 = vmatpush2.bf16.msra.mxu1 %v12169_v47  ;;  %7836 = vmatprep.subr.bf16.mxu0 %v12034_v56  ;;  %v11738_v47 = vld [vmem:[%s14878_s18 + $0x8c8] sm:$0xff] }
0x11cf   : > { %7877 = vmatprep.subr.bf16.mxu1 %v12162_v58  ;;  %v11996_v56 = vcombine.high %v11738_v47, %v11742_v49  ;;  %v11730_v58 = vld [vmem:[%s14878_s18 + $0x888] sm:$0xff]  ;;  %v11995_v62 = vcombine.low %v11738_v47, %v11742_v49 }
0x11d1   : > { %7837 = vmatpush2.bf16.msra.mxu0 %v12033_v20  ;;  %v12131_v20 = vcombine.low %v11874_v52, %v11878_v24 }
0x11d2   : > { %7878 = vmatpush2.bf16.msra.mxu1 %v12161_v59  ;;  %7888 = vmatprep.subr.bf16.mxu0 %v12028_v0  ;;  %v11734_v59 = vld [vmem:[%s14878_s18 + $0x8a8] sm:$0xff] }
0x11d3   : > { %7929 = vmatprep.subr.bf16.mxu1 %v12156_v30  ;;  %v11988_v0 = vcombine.high %v11730_v58, %v11734_v59  ;;  %v11726_v30 = vld [vmem:[%s14878_s18 + $0x868] sm:$0xff] }
0x122e   : > { %v6229_v32 = vpop.xlane.xlu1 %6228 }
0x122f   : > { %v6230_v2 = vrot.slane %v6229_v32, 4 }
0x1231   : > { %v6231_v23 = vadd.f32 %v6230_v2, %v6229_v32  ;;  %v11894_v32 = vld [vmem:[%s14878_s18 + $0xda8] sm:$0xff] }
0x1232   : > { %v12148_v36 = vcombine.high %v11890_v28, %v11894_v32  ;;  %v12147_v39 = vcombine.low %v11890_v28, %v11894_v32  ;;  %v11826_v28 = vld [vmem:[%s14878_s18 + $0xb88] sm:$0xff] }
0x1233   : > { %v6232_v33 = vrot.slane %v6231_v23, 2  ;;  %v11830_v32 = vld [vmem:[%s14878_s18 + $0xba8] sm:$0xff] }
0x1234   : > { %v12084_v7 = vcombine.high %v11826_v28, %v11830_v32 }
0x1235   : > { %v6233_v38 = vadd.f32 %v6232_v33, %v6231_v23 }
0x1237   : > { %v6234_v42 = vrot.slane %v6233_v38, 1 }
0x1239   : > { %v6235_v54 = vadd.f32 %v6234_v42, %v6233_v38  ;;  %v11746_v42 = vld [vmem:[%s14878_s18 + $0x908] sm:$0xff] }
0x123a   : > { %v12003_v22 = vcombine.low %v11746_v42, %v11750_v51 }
0x123b   : > { %12921 = vpush %v6235_v54  ;;  %v12004_v54 = vcombine.high %v11746_v42, %v11750_v51  ;;  %v12083_v42 = vcombine.low %v11826_v28, %v11830_v32 }
0x126c   : > { %s12922_s11 = spop %12921 }
0x126d   : > { %s6237_s14 = smul.f32 0.0009765625, %s12922_s11 }
0x126f   : > { %s6238_s20 = sadd.f32 1e-05, %s6237_s14 }
0x1271   : > { %v6239_v11 = vstv %s6238_s20 }
0x1272   : > { %14221 = vrsqrt.f32 %v6239_v11  ;;  %v11850_v11 = vld [vmem:[%s14878_s18 + $0xc48] sm:$0xff] }
0x127f   : > { %v14222_v4 = vpop.eup %14221 }
0x1280   : > { %12923 = vpush %v14222_v4  ;;  %v11854_v4 = vld [vmem:[%s14878_s18 + $0xc68] sm:$0xff] }
0x12b1   : > { %s12924_s25 = spop %12923 }
0x12b2   : > { %s6242_s8 = smul.f32 %s12924_s25, %s6193_s3  ;;  %s10124_s3 = sadd.s32 3, %s15854_s10 }
0x12b3   : > { %s10125_s19 = sld [smem:[#allocation14 + %s10124_s3]]  ;;  %s12887_s10 = sshll.u32 %s14706_s16, 7 }
0x12b4   : > { %v6243_v31 = vstv %s6242_s8  ;;  %s10126_s25 = sld [smem:[#allocation15 + %s10124_s3]]  ;;  %s14520_s16 = smov [#allocation17]  }
0x12b5   : > { %v6244_v8 = vmul.f32 %v6243_v31, %v15864_v34  ;;  %v6245_v13 = vmul.f32 %v6243_v31, %v15866_v60  ;;  %v6246_v21 = vmul.f32 %v6243_v31, %v15868_v19  ;;  %v6247_v43 = vmul.f32 %v6243_v31, %v15870_v35  ;;  %v11762_v19 = vld [vmem:[%s14878_s18 + $0x988] sm:$0xff] }
0x12b6   : > { %v11766_v35 = vld [vmem:[%s14878_s18 + $0x9a8] sm:$0xff]  ;;  %v11987_v31 = vcombine.low %v11730_v58, %v11734_v59 }
0x12b7   : > { %v6249_v14 = vadd.f32 %v6248_v5, %v6244_v8  ;;  %v6250_v15 = vadd.f32 %v6248_v5, %v6245_v13  ;;  %v6251_v16 = vadd.f32 %v6248_v5, %v6246_v21  ;;  %v6252_v10 = vadd.f32 %v6248_v5, %v6247_v43  ;;  %v11714_v21 = vld [vmem:[%s14878_s18 + $0x808] sm:$0xff] }
0x12b8   : > { %v12020_v33 = vcombine.high %v11762_v19, %v11766_v35  ;;  %v12019_v38 = vcombine.low %v11762_v19, %v11766_v35  ;;  %v12115_v5 = vcombine.low %v11858_v9, %v11862_v61  ;;  %v12108_v13 = vcombine.high %v11850_v11, %v11854_v4  ;;  %v11718_v43 = vld [vmem:[%s14878_s18 + $0x828] sm:$0xff] }
0x12b9   : > { %v6257_v12 = vmul.f32 0.2, %v6249_v14  ;;  %v6258_v17 = vmul.f32 0.2, %v6250_v15  ;;  %v6259_v18 = vmul.f32 0.2, %v6251_v16  ;;  %v11971_v19 = vcombine.low %v11714_v21, %v11718_v43 }
0x12ba   : > { %v6260_v25 = vmul.f32 0.2, %v6252_v10  ;;  %vm6254_vm7 = vcmp.gt.f32.partialorder %v6250_v15, 0.0  ;;  %vm6256_vm8 = vcmp.gt.f32.partialorder %v6252_v10, 0.0  ;;  %vm6253_vm9 = vcmp.gt.f32.partialorder %v6249_v14, 0.0 }
0x12bb   : > { %v6262_v34 = vsel %vm6254_vm7, %v6250_v15, %v6258_v17  ;;  %v6261_v60 = vsel %vm6253_vm9, %v6249_v14, %v6257_v12  ;;  %vm6255_vm10 = vcmp.gt.f32.partialorder %v6251_v16, 0.0  ;;  %v11842_v14 = vld [vmem:[%s14878_s18 + $0xc08] sm:$0xff]  ;;  %v11972_v12 = vcombine.high %v11714_v21, %v11718_v43 }
0x12bc   : > { %v15967_v26 = vpack.c.bf16 %v6262_v34, %v6262_v34  ;;  %v6264_v27 = vsel %vm6256_vm8, %v6252_v10, %v6260_v25  ;;  %v15969_v55 = vpack.c.bf16 %v6261_v60, %v6261_v60  ;;  %v6263_v44 = vsel %vm6255_vm10, %v6251_v16, %v6259_v18  ;;  %v11846_v15 = vld [vmem:[%s14878_s18 + $0xc28] sm:$0xff] }
0x12bd   : > { %v15973_v2 = vpack.c.bf16 %v6264_v27, %v6264_v27  ;;  %v15975_v23 = vpack.c.bf16 %v6263_v44, %v6263_v44  ;;  %v12107_v10 = vcombine.low %v11850_v11, %v11854_v4  ;;  %v12100_v17 = vcombine.high %v11842_v14, %v11846_v15  ;;  %v11834_v18 = vld [vmem:[%s14878_s18 + $0xbc8] sm:$0xff] }
0x12be   : > { %7838 = vmatprep.mubr.bf16.mxu0 %v15967_v26  ;;  %v11838_v25 = vld [vmem:[%s14878_s18 + $0xbe8] sm:$0xff]  ;;  %v12099_v35 = vcombine.low %v11842_v14, %v11846_v15 }
0x12bf   : > { %7879 = vmatprep.mubr.bf16.mxu1 %v15973_v2  ;;  %7839 = vmatmul.mubr.bf16.vlgmr.msra.gmra.mxu0 %v15969_v55  ;;  %v11962_v34 = vld [vmem:[%s14878_s18 + $0xfc8] sm:$0xff]  ;;  %v12092_v27 = vcombine.high %v11834_v18, %v11838_v25  ;;  %v12091_v1 = vcombine.low %v11834_v18, %v11838_v25 }
0x12c0   : > { %7880 = vmatmul.mubr.bf16.vlgmr.msra.gmra.mxu1 %v15975_v23  ;;  %7889 = vmatpush1.bf16.msra.mxu0 %v12027_v63  ;;  %v12123_v63 = vcombine.low %v11866_v50, %v11870_v45  ;;  %v11966_v60 = vld [vmem:[%s14878_s18 + $0xfe8] sm:$0xff] }
0x12c1   : > { %7930 = vmatpush1.bf16.msra.mxu1 %v12155_v29  ;;  %7920 = vmatprep.mubr.bf16.mxu0 %v15967_v26  ;;  %v11722_v29 = vld [vmem:[%s14878_s18 + $0x848] sm:$0xff]  ;;  %v12220_v44 = vcombine.high %v11962_v34, %v11966_v60 }
0x12c2   : > { %7961 = vmatprep.mubr.bf16.mxu1 %v15973_v2  ;;  %7890 = vmatprep.subr.bf16.mxu0 %v12020_v33  ;;  %v11980_v8 = vcombine.high %v11722_v29, %v11726_v30  ;;  %v11979_v16 = vcombine.low %v11722_v29, %v11726_v30  ;;  %v11954_v33 = vld [vmem:[%s14878_s18 + $0xf88] sm:$0xff] }
0x12c3   : > { %7931 = vmatprep.subr.bf16.mxu1 %v12148_v36  ;;  %v12219_v36 = vcombine.low %v11962_v34, %v11966_v60  ;;  %v12212_v37 = vcombine.high %v11954_v33, %v11958_v6  ;;  %v12211_v51 = vcombine.low %v11954_v33, %v11958_v6 }
0x12c4   : > { %7891 = vmatpush1.bf16.msra.mxu0 %v12019_v38  ;;  %v11818_v38 = vld [vmem:[%s14878_s18 + $0xb48] sm:$0xff] }
0x12c5   : > { %7932 = vmatpush1.bf16.msra.mxu1 %v12147_v39  ;;  %7892 = vmatprep.subr.bf16.mxu0 %v12012_v40  ;;  %v11822_v39 = vld [vmem:[%s14878_s18 + $0xb68] sm:$0xff] }
0x12c6   : > { %7933 = vmatprep.subr.bf16.mxu1 %v12140_v41  ;;  %v11946_v40 = vld [vmem:[%s14878_s18 + $0xf48] sm:$0xff]  ;;  %v12076_v52 = vcombine.high %v11818_v38, %v11822_v39  ;;  %v12075_v47 = vcombine.low %v11818_v38, %v11822_v39  ;;  %v11895_v38 = vld [vmem:[%s14878_s18 + $0xdb0] sm:$0xff] }
0x12c7   : > { %v11950_v41 = vld [vmem:[%s14878_s18 + $0xf68] sm:$0xff] }
0x12c8   : > { %7893 = vmatpush1.bf16.msra.mxu0 %v12011_v53  ;;  %v12204_v24 = vcombine.high %v11946_v40, %v11950_v41  ;;  %v11810_v53 = vld [vmem:[%s14878_s18 + $0xb08] sm:$0xff]  ;;  %v12203_v49 = vcombine.low %v11946_v40, %v11950_v41  ;;  %v11755_v41 = vld [vmem:[%s14878_s18 + $0x950] sm:$0xff] }
0x12c9   : > { %7934 = vmatpush1.bf16.msra.mxu1 %v12139_v48  ;;  %7894 = vmatprep.subr.bf16.mxu0 %v12004_v54  ;;  %v11814_v48 = vld [vmem:[%s14878_s18 + $0xb28] sm:$0xff] }
0x12ca   : > { %7935 = vmatprep.subr.bf16.mxu1 %v12132_v46  ;;  %v11938_v54 = vld [vmem:[%s14878_s18 + $0xf08] sm:$0xff]  ;;  %v12068_v50 = vcombine.high %v11810_v53, %v11814_v48  ;;  %v12067_v58 = vcombine.low %v11810_v53, %v11814_v48 }
0x12cb   : > { %v11942_v46 = vld [vmem:[%s14878_s18 + $0xf28] sm:$0xff] }
0x12cc   : > { %7895 = vmatpush1.bf16.msra.mxu0 %v12003_v22  ;;  %v12196_v45 = vcombine.high %v11938_v54, %v11942_v46  ;;  %v11802_v22 = vld [vmem:[%s14878_s18 + $0xac8] sm:$0xff]  ;;  %v12195_v59 = vcombine.low %v11938_v54, %v11942_v46 }
0x12cd   : > { %7936 = vmatpush1.bf16.msra.mxu1 %v12131_v20  ;;  %7896 = vmatprep.subr.bf16.mxu0 %v11996_v56  ;;  %v11806_v20 = vld [vmem:[%s14878_s18 + $0xae8] sm:$0xff] }
0x12ce   : > { %7937 = vmatprep.subr.bf16.mxu1 %v12124_v57  ;;  %v11930_v56 = vld [vmem:[%s14878_s18 + $0xec8] sm:$0xff]  ;;  %v12060_v9 = vcombine.high %v11802_v22, %v11806_v20  ;;  %v12059_v29 = vcombine.low %v11802_v22, %v11806_v20 }
0x12cf   : > { %v11934_v57 = vld [vmem:[%s14878_s18 + $0xee8] sm:$0xff] }
0x12d0   : > { %7897 = vmatpush1.bf16.msra.mxu0 %v11995_v62  ;;  %v12188_v61 = vcombine.high %v11930_v56, %v11934_v57  ;;  %v11794_v62 = vld [vmem:[%s14878_s18 + $0xa88] sm:$0xff]  ;;  %v12187_v30 = vcombine.low %v11930_v56, %v11934_v57 }
0x12d1   : > { %7938 = vmatpush1.bf16.msra.mxu1 %v12123_v63  ;;  %7898 = vmatprep.subr.bf16.mxu0 %v11988_v0  ;;  %v11798_v63 = vld [vmem:[%s14878_s18 + $0xaa8] sm:$0xff] }
0x12d2   : > { %7939 = vmatprep.subr.bf16.mxu1 %v12116_v3  ;;  %v11922_v0 = vld [vmem:[%s14878_s18 + $0xe88] sm:$0xff]  ;;  %v12052_v11 = vcombine.high %v11794_v62, %v11798_v63  ;;  %v12051_v21 = vcombine.low %v11794_v62, %v11798_v63 }
0x12d3   : > { %v11926_v3 = vld [vmem:[%s14878_s18 + $0xea8] sm:$0xff] }
0x12d4   : > { %7899 = vmatpush1.bf16.msra.mxu0 %v11987_v31  ;;  %v12180_v4 = vcombine.high %v11922_v0, %v11926_v3  ;;  %v11786_v31 = vld [vmem:[%s14878_s18 + $0xa48] sm:$0xff]  ;;  %v12179_v43 = vcombine.low %v11922_v0, %v11926_v3 }
0x12d5   : > { %7940 = vmatpush1.bf16.msra.mxu1 %v12115_v5  ;;  %7900 = vmatprep.subr.bf16.mxu0 %v11980_v8  ;;  %v11790_v5 = vld [vmem:[%s14878_s18 + $0xa68] sm:$0xff] }
0x12d6   : > { %7941 = vmatprep.subr.bf16.mxu1 %v12108_v13  ;;  %v11914_v8 = vld [vmem:[%s14878_s18 + $0xe48] sm:$0xff]  ;;  %v12044_v14 = vcombine.high %v11786_v31, %v11790_v5  ;;  %v12043_v18 = vcombine.low %v11786_v31, %v11790_v5 }
0x12d7   : > { %v11918_v13 = vld [vmem:[%s14878_s18 + $0xe68] sm:$0xff] }
0x12d8   : > { %7901 = vmatpush1.bf16.msra.mxu0 %v11979_v16  ;;  %v12172_v15 = vcombine.high %v11914_v8, %v11918_v13  ;;  %v11778_v16 = vld [vmem:[%s14878_s18 + $0xa08] sm:$0xff]  ;;  %v12171_v25 = vcombine.low %v11914_v8, %v11918_v13 }
0x12d9   : > { %7942 = vmatpush1.bf16.msra.mxu1 %v12107_v10  ;;  %7902 = vmatprep.subr.bf16.mxu0 %v11972_v12  ;;  %v11782_v10 = vld [vmem:[%s14878_s18 + $0xa28] sm:$0xff] }
0x12da   : > { %7943 = vmatprep.subr.bf16.mxu1 %v12100_v17  ;;  %v11906_v12 = vld [vmem:[%s14878_s18 + $0xe08] sm:$0xff]  ;;  %v12036_v34 = vcombine.high %v11778_v16, %v11782_v10  ;;  %v12035_v28 = vcombine.low %v11778_v16, %v11782_v10 }
0x12db   : > { %v11910_v17 = vld [vmem:[%s14878_s18 + $0xe28] sm:$0xff] }
0x12dc   : > { %7903 = vmatpush1.bf16.msra.mxu0 %v11971_v19  ;;  %v12164_v60 = vcombine.high %v11906_v12, %v11910_v17  ;;  %v11771_v19 = vld [vmem:[%s14878_s18 + $0x9d0] sm:$0xff]  ;;  %v12163_v32 = vcombine.low %v11906_v12, %v11910_v17 }
0x12dd   : > { %7944 = vmatpush1.bf16.msra.mxu1 %v12099_v35  ;;  %7904 = vmatprep.subr.bf16.mxu0 %v12092_v27  ;;  %v11775_v35 = vld [vmem:[%s14878_s18 + $0x9f0] sm:$0xff] }
0x12de   : > { %7945 = vmatprep.subr.bf16.mxu1 %v12220_v44  ;;  %v11899_v27 = vld [vmem:[%s14878_s18 + $0xdd0] sm:$0xff]  ;;  %v12030_v33 = vcombine.high %v11771_v19, %v11775_v35 }
0x12df   : > { %v11903_v44 = vld [vmem:[%s14878_s18 + $0xdf0] sm:$0xff] }
0x12e0   : > { %7905 = vmatpush2.bf16.msra.mxu0 %v12091_v1  ;;  %v12158_v6 = vcombine.high %v11899_v27, %v11903_v44  ;;  %v11763_v1 = vld [vmem:[%s14878_s18 + $0x990] sm:$0xff]  ;;  %v12157_v39 = vcombine.low %v11899_v27, %v11903_v44 }
0x12e1   : > { %7946 = vmatpush2.bf16.msra.mxu1 %v12219_v36  ;;  %7906 = vmatprep.subr.bf16.mxu0 %v12084_v7  ;;  %v11767_v36 = vld [vmem:[%s14878_s18 + $0x9b0] sm:$0xff]  ;;  %v12029_v7 = vcombine.low %v11771_v19, %v11775_v35 }
0x12e2   : > { %7947 = vmatprep.subr.bf16.mxu1 %v12212_v37  ;;  %v11891_v37 = vld [vmem:[%s14878_s18 + $0xd90] sm:$0xff]  ;;  %v12022_v40 = vcombine.high %v11763_v1, %v11767_v36  ;;  %v12021_v53 = vcombine.low %v11763_v1, %v11767_v36 }
0x12e3   : > { %v12149_v48 = vcombine.low %v11891_v37, %v11895_v38 }
0x12e4   : > { %7907 = vmatpush2.bf16.msra.mxu0 %v12083_v42  ;;  %v11759_v42 = vld [vmem:[%s14878_s18 + $0x970] sm:$0xff] }
0x12e5   : > { %7948 = vmatpush2.bf16.msra.mxu1 %v12211_v51  ;;  %7908 = vmatprep.subr.bf16.mxu0 %v12076_v52  ;;  %v12150_v51 = vcombine.high %v11891_v37, %v11895_v38  ;;  %v11883_v52 = vld [vmem:[%s14878_s18 + $0xd50] sm:$0xff]  ;;  %v12014_v54 = vcombine.high %v11755_v41, %v11759_v42  ;;  %v12013_v22 = vcombine.low %v11755_v41, %v11759_v42 }
0x12e6   : > { %7949 = vmatprep.subr.bf16.mxu1 %v12204_v24  ;;  %v11887_v24 = vld [vmem:[%s14878_s18 + $0xd70] sm:$0xff] }
0x12e7   : > { %v12142_v46 = vcombine.high %v11883_v52, %v11887_v24  ;;  %v12141_v20 = vcombine.low %v11883_v52, %v11887_v24  ;;  %v11827_v38 = vld [vmem:[%s14878_s18 + $0xb90] sm:$0xff] }
0x12e8   : > { %7909 = vmatpush2.bf16.msra.mxu0 %v12075_v47  ;;  %v11747_v47 = vld [vmem:[%s14878_s18 + $0x910] sm:$0xff] }
0x12e9   : > { %7950 = vmatpush2.bf16.msra.mxu1 %v12203_v49  ;;  %7910 = vmatprep.subr.bf16.mxu0 %v12068_v50  ;;  %v11751_v49 = vld [vmem:[%s14878_s18 + $0x930] sm:$0xff] }
0x12ea   : > { %7951 = vmatprep.subr.bf16.mxu1 %v12196_v45  ;;  %v11875_v50 = vld [vmem:[%s14878_s18 + $0xd10] sm:$0xff]  ;;  %v12006_v56 = vcombine.high %v11747_v47, %v11751_v49  ;;  %v12005_v62 = vcombine.low %v11747_v47, %v11751_v49 }
0x12eb   : > { %v11879_v45 = vld [vmem:[%s14878_s18 + $0xd30] sm:$0xff] }
0x12ec   : > { %7911 = vmatpush2.bf16.msra.mxu0 %v12067_v58  ;;  %v12134_v57 = vcombine.high %v11875_v50, %v11879_v45  ;;  %v11739_v58 = vld [vmem:[%s14878_s18 + $0x8d0] sm:$0xff]  ;;  %v12133_v63 = vcombine.low %v11875_v50, %v11879_v45 }
0x12ed   : > { %7952 = vmatpush2.bf16.msra.mxu1 %v12195_v59  ;;  %7912 = vmatprep.subr.bf16.mxu0 %v12060_v9  ;;  %v11743_v59 = vld [vmem:[%s14878_s18 + $0x8f0] sm:$0xff] }
0x12ee   : > { %7953 = vmatprep.subr.bf16.mxu1 %v12188_v61  ;;  %v11867_v9 = vld [vmem:[%s14878_s18 + $0xcd0] sm:$0xff]  ;;  %v11998_v0 = vcombine.high %v11739_v58, %v11743_v59  ;;  %v11997_v31 = vcombine.low %v11739_v58, %v11743_v59 }
0x12ef   : > { %v11871_v61 = vld [vmem:[%s14878_s18 + $0xcf0] sm:$0xff] }
0x12f0   : > { %7913 = vmatpush2.bf16.msra.mxu0 %v12059_v29  ;;  %v12126_v3 = vcombine.high %v11867_v9, %v11871_v61  ;;  %v11731_v29 = vld [vmem:[%s14878_s18 + $0x890] sm:$0xff]  ;;  %v12125_v5 = vcombine.low %v11867_v9, %v11871_v61 }
0x12f1   : > { %7954 = vmatpush2.bf16.msra.mxu1 %v12187_v30  ;;  %7914 = vmatprep.subr.bf16.mxu0 %v12052_v11  ;;  %v11735_v30 = vld [vmem:[%s14878_s18 + $0x8b0] sm:$0xff] }
0x12f2   : > { %7955 = vmatprep.subr.bf16.mxu1 %v12180_v4  ;;  %v11859_v11 = vld [vmem:[%s14878_s18 + $0xc90] sm:$0xff]  ;;  %v11990_v8 = vcombine.high %v11731_v29, %v11735_v30  ;;  %v11989_v16 = vcombine.low %v11731_v29, %v11735_v30 }
0x12f3   : > { %v11863_v4 = vld [vmem:[%s14878_s18 + $0xcb0] sm:$0xff] }
0x12f4   : > { %7915 = vmatpush2.bf16.msra.mxu0 %v12051_v21  ;;  %v12118_v13 = vcombine.high %v11859_v11, %v11863_v4  ;;  %v11723_v21 = vld [vmem:[%s14878_s18 + $0x850] sm:$0xff]  ;;  %v12117_v10 = vcombine.low %v11859_v11, %v11863_v4 }
0x12f5   : > { %7956 = vmatpush2.bf16.msra.mxu1 %v12179_v43  ;;  %7916 = vmatprep.subr.bf16.mxu0 %v12044_v14  ;;  %v11727_v43 = vld [vmem:[%s14878_s18 + $0x870] sm:$0xff] }
0x12f6   : > { %7957 = vmatprep.subr.bf16.mxu1 %v12172_v15  ;;  %v11851_v14 = vld [vmem:[%s14878_s18 + $0xc50] sm:$0xff]  ;;  %v11982_v12 = vcombine.high %v11723_v21, %v11727_v43  ;;  %v11981_v19 = vcombine.low %v11723_v21, %v11727_v43 }
0x12f7   : > { %v11855_v15 = vld [vmem:[%s14878_s18 + $0xc70] sm:$0xff] }
0x12f8   : > { %7917 = vmatpush2.bf16.msra.mxu0 %v12043_v18  ;;  %v12110_v17 = vcombine.high %v11851_v14, %v11855_v15  ;;  %v11715_v18 = vld [vmem:[%s14878_s18 + $0x810] sm:$0xff]  ;;  %v12109_v35 = vcombine.low %v11851_v14, %v11855_v15 }
0x12f9   : > { %7958 = vmatpush2.bf16.msra.mxu1 %v12171_v25  ;;  %7918 = vmatprep.subr.bf16.mxu0 %v12036_v34  ;;  %v11719_v25 = vld [vmem:[%s14878_s18 + $0x830] sm:$0xff] }
0x12fa   : > { %7959 = vmatprep.subr.bf16.mxu1 %v12164_v60  ;;  %v11843_v34 = vld [vmem:[%s14878_s18 + $0xc10] sm:$0xff]  ;;  %v11974_v27 = vcombine.high %v11715_v18, %v11719_v25  ;;  %v11973_v1 = vcombine.low %v11715_v18, %v11719_v25 }
0x12fb   : > { %v11847_v60 = vld [vmem:[%s14878_s18 + $0xc30] sm:$0xff] }
0x12fc   : > { %7919 = vmatpush2.bf16.msra.mxu0 %v12035_v28  ;;  %v12102_v44 = vcombine.high %v11843_v34, %v11847_v60  ;;  %v11835_v28 = vld [vmem:[%s14878_s18 + $0xbd0] sm:$0xff]  ;;  %v12101_v36 = vcombine.low %v11843_v34, %v11847_v60 }
0x12fd   : > { %7960 = vmatpush2.bf16.msra.mxu1 %v12163_v32  ;;  %7970 = vmatprep.subr.bf16.mxu0 %v12030_v33  ;;  %v11839_v32 = vld [vmem:[%s14878_s18 + $0xbf0] sm:$0xff] }
0x12fe   : > { %8011 = vmatprep.subr.bf16.mxu1 %v12158_v6  ;;  %v11963_v33 = vld [vmem:[%s14878_s18 + $0xfd0] sm:$0xff]  ;;  %v12093_v42 = vcombine.low %v11835_v28, %v11839_v32 }
0x12ff   : > { %7921 = vmatmul.mubr.bf16.vlgmr.msra.gmra.mxu0 %v15969_v55  ;;  %v11967_v6 = vld [vmem:[%s14878_s18 + $0xff0] sm:$0xff] }
0x1300   : > { %7962 = vmatmul.mubr.bf16.vlgmr.msra.gmra.mxu1 %v15975_v23  ;;  %7971 = vmatpush1.bf16.msra.mxu0 %v12029_v7  ;;  %v12094_v7 = vcombine.high %v11835_v28, %v11839_v32  ;;  %v12222_v37 = vcombine.high %v11963_v33, %v11967_v6  ;;  %v11959_v41 = vld [vmem:[%s14878_s18 + $0xfb0] sm:$0xff] }
0x1301   : > { %8002 = vmatprep.mubr.bf16.mxu0 %v15967_v26  ;;  %8012 = vmatpush1.bf16.msra.mxu1 %v12157_v39  ;;  %v11831_v39 = vld [vmem:[%s14878_s18 + $0xbb0] sm:$0xff] }
0x1302   : > { %8043 = vmatprep.mubr.bf16.mxu1 %v15973_v2  ;;  %7972 = vmatprep.subr.bf16.mxu0 %v12022_v40  ;;  %v11955_v40 = vld [vmem:[%s14878_s18 + $0xf90] sm:$0xff]  ;;  %v12086_v52 = vcombine.high %v11827_v38, %v11831_v39  ;;  %v12085_v47 = vcombine.low %v11827_v38, %v11831_v39 }
0x1303   : > { %8013 = vmatprep.subr.bf16.mxu1 %v12150_v51  ;;  %v12221_v51 = vcombine.low %v11963_v33, %v11967_v6  ;;  %v12214_v24 = vcombine.high %v11955_v40, %v11959_v41  ;;  %v12213_v49 = vcombine.low %v11955_v40, %v11959_v41 }
0x1304   : > { %7973 = vmatpush1.bf16.msra.mxu0 %v12021_v53  ;;  %v11819_v53 = vld [vmem:[%s14878_s18 + $0xb50] sm:$0xff] }
0x1305   : > { %8014 = vmatpush1.bf16.msra.mxu1 %v12149_v48  ;;  %7974 = vmatprep.subr.bf16.mxu0 %v12014_v54  ;;  %v11823_v48 = vld [vmem:[%s14878_s18 + $0xb70] sm:$0xff] }
0x1306   : > { %8015 = vmatprep.subr.bf16.mxu1 %v12142_v46  ;;  %v11947_v54 = vld [vmem:[%s14878_s18 + $0xf50] sm:$0xff]  ;;  %v12078_v50 = vcombine.high %v11819_v53, %v11823_v48  ;;  %v12077_v58 = vcombine.low %v11819_v53, %v11823_v48  ;;  %v11896_v53 = vld [vmem:[%s14878_s18 + $0xdb8] sm:$0xff] }
0x1307   : > { %v11951_v46 = vld [vmem:[%s14878_s18 + $0xf70] sm:$0xff] }
0x1308   : > { %7975 = vmatpush1.bf16.msra.mxu0 %v12013_v22  ;;  %v12206_v45 = vcombine.high %v11947_v54, %v11951_v46  ;;  %v11811_v22 = vld [vmem:[%s14878_s18 + $0xb10] sm:$0xff]  ;;  %v12205_v59 = vcombine.low %v11947_v54, %v11951_v46  ;;  %v11756_v46 = vld [vmem:[%s14878_s18 + $0x958] sm:$0xff] }
0x1309   : > { %8016 = vmatpush1.bf16.msra.mxu1 %v12141_v20  ;;  %7976 = vmatprep.subr.bf16.mxu0 %v12006_v56  ;;  %v11815_v20 = vld [vmem:[%s14878_s18 + $0xb30] sm:$0xff] }
0x130a   : > { %8017 = vmatprep.subr.bf16.mxu1 %v12134_v57  ;;  %v11939_v56 = vld [vmem:[%s14878_s18 + $0xf10] sm:$0xff]  ;;  %v12070_v9 = vcombine.high %v11811_v22, %v11815_v20  ;;  %v12069_v29 = vcombine.low %v11811_v22, %v11815_v20 }
0x130b   : > { %v11943_v57 = vld [vmem:[%s14878_s18 + $0xf30] sm:$0xff] }
0x130c   : > { %7977 = vmatpush1.bf16.msra.mxu0 %v12005_v62  ;;  %v12198_v61 = vcombine.high %v11939_v56, %v11943_v57  ;;  %v11803_v62 = vld [vmem:[%s14878_s18 + $0xad0] sm:$0xff]  ;;  %v12197_v30 = vcombine.low %v11939_v56, %v11943_v57 }
0x130d   : > { %8018 = vmatpush1.bf16.msra.mxu1 %v12133_v63  ;;  %7978 = vmatprep.subr.bf16.mxu0 %v11998_v0  ;;  %v11807_v63 = vld [vmem:[%s14878_s18 + $0xaf0] sm:$0xff] }
0x130e   : > { %8019 = vmatprep.subr.bf16.mxu1 %v12126_v3  ;;  %v11931_v0 = vld [vmem:[%s14878_s18 + $0xed0] sm:$0xff]  ;;  %v12062_v11 = vcombine.high %v11803_v62, %v11807_v63  ;;  %v12061_v21 = vcombine.low %v11803_v62, %v11807_v63 }
0x130f   : > { %v11935_v3 = vld [vmem:[%s14878_s18 + $0xef0] sm:$0xff] }
0x1310   : > { %7979 = vmatpush1.bf16.msra.mxu0 %v11997_v31  ;;  %v12190_v4 = vcombine.high %v11931_v0, %v11935_v3  ;;  %v11795_v31 = vld [vmem:[%s14878_s18 + $0xa90] sm:$0xff]  ;;  %v12189_v43 = vcombine.low %v11931_v0, %v11935_v3  ;;  %v11740_v0 = vld [vmem:[%s14878_s18 + $0x8d8] sm:$0xff] }
0x1311   : > { %8020 = vmatpush1.bf16.msra.mxu1 %v12125_v5  ;;  %7980 = vmatprep.subr.bf16.mxu0 %v11990_v8  ;;  %v11799_v5 = vld [vmem:[%s14878_s18 + $0xab0] sm:$0xff]  ;;  %v11744_v3 = vld [vmem:[%s14878_s18 + $0x8f8] sm:$0xff] }
0x1312   : > { %8021 = vmatprep.subr.bf16.mxu1 %v12118_v13  ;;  %v11923_v8 = vld [vmem:[%s14878_s18 + $0xe90] sm:$0xff]  ;;  %v12054_v14 = vcombine.high %v11795_v31, %v11799_v5  ;;  %v12053_v18 = vcombine.low %v11795_v31, %v11799_v5  ;;  %v12000_v31 = vcombine.high %v11740_v0, %v11744_v3 }
0x1313   : > { %v11927_v13 = vld [vmem:[%s14878_s18 + $0xeb0] sm:$0xff] }
0x1314   : > { %7981 = vmatpush1.bf16.msra.mxu0 %v11989_v16  ;;  %v12182_v15 = vcombine.high %v11923_v8, %v11927_v13  ;;  %v11787_v16 = vld [vmem:[%s14878_s18 + $0xa50] sm:$0xff]  ;;  %v12181_v25 = vcombine.low %v11923_v8, %v11927_v13  ;;  %v11732_v8 = vld [vmem:[%s14878_s18 + $0x898] sm:$0xff] }
0x1315   : > { %8022 = vmatpush1.bf16.msra.mxu1 %v12117_v10  ;;  %7982 = vmatprep.subr.bf16.mxu0 %v11982_v12  ;;  %v11791_v10 = vld [vmem:[%s14878_s18 + $0xa70] sm:$0xff]  ;;  %v11736_v13 = vld [vmem:[%s14878_s18 + $0x8b8] sm:$0xff] }
0x1316   : > { %8023 = vmatprep.subr.bf16.mxu1 %v12110_v17  ;;  %v11915_v12 = vld [vmem:[%s14878_s18 + $0xe50] sm:$0xff]  ;;  %v12046_v34 = vcombine.high %v11787_v16, %v11791_v10  ;;  %v12045_v28 = vcombine.low %v11787_v16, %v11791_v10  ;;  %v11992_v16 = vcombine.high %v11732_v8, %v11736_v13 }
0x1317   : > { %v11919_v17 = vld [vmem:[%s14878_s18 + $0xe70] sm:$0xff] }
0x1318   : > { %7983 = vmatpush1.bf16.msra.mxu0 %v11981_v19  ;;  %v12174_v60 = vcombine.high %v11915_v12, %v11919_v17  ;;  %v11779_v19 = vld [vmem:[%s14878_s18 + $0xa10] sm:$0xff]  ;;  %v12173_v32 = vcombine.low %v11915_v12, %v11919_v17  ;;  %v11724_v12 = vld [vmem:[%s14878_s18 + $0x858] sm:$0xff] }
0x1319   : > { %8024 = vmatpush1.bf16.msra.mxu1 %v12109_v35  ;;  %7984 = vmatprep.subr.bf16.mxu0 %v11974_v27  ;;  %v11783_v35 = vld [vmem:[%s14878_s18 + $0xa30] sm:$0xff]  ;;  %v11728_v17 = vld [vmem:[%s14878_s18 + $0x878] sm:$0xff] }
0x131a   : > { %8025 = vmatprep.subr.bf16.mxu1 %v12102_v44  ;;  %v11907_v27 = vld [vmem:[%s14878_s18 + $0xe10] sm:$0xff]  ;;  %v12038_v33 = vcombine.high %v11779_v19, %v11783_v35  ;;  %v12037_v38 = vcombine.low %v11779_v19, %v11783_v35  ;;  %v11984_v19 = vcombine.high %v11724_v12, %v11728_v17 }
0x131b   : > { %v11911_v44 = vld [vmem:[%s14878_s18 + $0xe30] sm:$0xff] }
0x131c   : > { %7985 = vmatpush1.bf16.msra.mxu0 %v11973_v1  ;;  %v12166_v6 = vcombine.high %v11907_v27, %v11911_v44  ;;  %v11772_v1 = vld [vmem:[%s14878_s18 + $0x9d8] sm:$0xff]  ;;  %v12165_v39 = vcombine.low %v11907_v27, %v11911_v44 }
0x131d   : > { %8026 = vmatpush1.bf16.msra.mxu1 %v12101_v36  ;;  %7986 = vmatprep.subr.bf16.mxu0 %v12094_v7  ;;  %v11776_v36 = vld [vmem:[%s14878_s18 + $0x9f8] sm:$0xff] }
0x131e   : > { %8027 = vmatprep.subr.bf16.mxu1 %v12222_v37  ;;  %v11900_v7 = vld [vmem:[%s14878_s18 + $0xdd8] sm:$0xff]  ;;  %v12032_v40 = vcombine.high %v11772_v1, %v11776_v36 }
0x131f   : > { %v11904_v37 = vld [vmem:[%s14878_s18 + $0xdf8] sm:$0xff] }
0x1320   : > { %7987 = vmatpush2.bf16.msra.mxu0 %v12093_v42  ;;  %v12160_v41 = vcombine.high %v11900_v7, %v11904_v37  ;;  %v11764_v42 = vld [vmem:[%s14878_s18 + $0x998] sm:$0xff]  ;;  %v12159_v48 = vcombine.low %v11900_v7, %v11904_v37 }
0x1321   : > { %8028 = vmatpush2.bf16.msra.mxu1 %v12221_v51  ;;  %7988 = vmatprep.subr.bf16.mxu0 %v12086_v52  ;;  %v11768_v51 = vld [vmem:[%s14878_s18 + $0x9b8] sm:$0xff]  ;;  %v12031_v52 = vcombine.low %v11772_v1, %v11776_v36 }
0x1322   : > { %8029 = vmatprep.subr.bf16.mxu1 %v12214_v24  ;;  %v11892_v24 = vld [vmem:[%s14878_s18 + $0xd98] sm:$0xff]  ;;  %v12024_v54 = vcombine.high %v11764_v42, %v11768_v51  ;;  %v12023_v22 = vcombine.low %v11764_v42, %v11768_v51 }
0x1323   : > { %v12151_v20 = vcombine.low %v11892_v24, %v11896_v53  ;;  %v11716_v27 = vld [vmem:[%s14878_s18 + $0x818] sm:$0xff] }
0x1324   : > { %7989 = vmatpush2.bf16.msra.mxu0 %v12085_v47  ;;  %v11760_v47 = vld [vmem:[%s14878_s18 + $0x978] sm:$0xff] }
0x1325   : > { %8030 = vmatpush2.bf16.msra.mxu1 %v12213_v49  ;;  %7990 = vmatprep.subr.bf16.mxu0 %v12078_v50  ;;  %v12152_v49 = vcombine.high %v11892_v24, %v11896_v53  ;;  %v11884_v50 = vld [vmem:[%s14878_s18 + $0xd58] sm:$0xff]  ;;  %v12016_v56 = vcombine.high %v11756_v46, %v11760_v47  ;;  %v12015_v62 = vcombine.low %v11756_v46, %v11760_v47 }
0x1326   : > { %8031 = vmatprep.subr.bf16.mxu1 %v12206_v45  ;;  %v11888_v45 = vld [vmem:[%s14878_s18 + $0xd78] sm:$0xff] }
0x1327   : > { %v12144_v57 = vcombine.high %v11884_v50, %v11888_v45  ;;  %v11720_v44 = vld [vmem:[%s14878_s18 + $0x838] sm:$0xff] }
0x1328   : > { %7991 = vmatpush2.bf16.msra.mxu0 %v12077_v58  ;;  %v11748_v58 = vld [vmem:[%s14878_s18 + $0x918] sm:$0xff]  ;;  %v11976_v1 = vcombine.high %v11716_v27, %v11720_v44 }
0x1329   : > { %8032 = vmatpush2.bf16.msra.mxu1 %v12205_v59  ;;  %7992 = vmatprep.subr.bf16.mxu0 %v12070_v9  ;;  %v11752_v59 = vld [vmem:[%s14878_s18 + $0x938] sm:$0xff] }
0x132a   : > { %8033 = vmatprep.subr.bf16.mxu1 %v12198_v61  ;;  %v11876_v9 = vld [vmem:[%s14878_s18 + $0xd18] sm:$0xff]  ;;  %v12008_v63 = vcombine.high %v11748_v58, %v11752_v59 }
0x132b   : > { %v11880_v61 = vld [vmem:[%s14878_s18 + $0xd38] sm:$0xff] }
0x132c   : > { %7993 = vmatpush2.bf16.msra.mxu0 %v12069_v29  ;;  %v11868_v29 = vld [vmem:[%s14878_s18 + $0xcd8] sm:$0xff] }
0x132d   : > { %8034 = vmatpush2.bf16.msra.mxu1 %v12197_v30  ;;  %7994 = vmatprep.subr.bf16.mxu0 %v12062_v11  ;;  %v11872_v30 = vld [vmem:[%s14878_s18 + $0xcf8] sm:$0xff]  ;;  %v12007_v11 = vcombine.low %v11748_v58, %v11752_v59 }
0x132e   : > { %8035 = vmatprep.subr.bf16.mxu1 %v12190_v4  ;;  %v12135_v4 = vcombine.low %v11876_v9, %v11880_v61  ;;  %v12128_v5 = vcombine.high %v11868_v29, %v11872_v30  ;;  %v11836_v7 = vld [vmem:[%s14878_s18 + $0xbd8] sm:$0xff] }
0x132f   : > { %v11840_v37 = vld [vmem:[%s14878_s18 + $0xbf8] sm:$0xff] }
0x1330   : > { %7995 = vmatpush2.bf16.msra.mxu0 %v12061_v21  ;;  %v11860_v21 = vld [vmem:[%s14878_s18 + $0xc98] sm:$0xff]  ;;  %v12096_v42 = vcombine.high %v11836_v7, %v11840_v37 }
0x1331   : > { %8036 = vmatpush2.bf16.msra.mxu1 %v12189_v43  ;;  %7996 = vmatprep.subr.bf16.mxu0 %v12054_v14  ;;  %v11864_v43 = vld [vmem:[%s14878_s18 + $0xcb8] sm:$0xff]  ;;  %v11999_v14 = vcombine.low %v11740_v0, %v11744_v3 }
0x1332   : > { %8037 = vmatprep.subr.bf16.mxu1 %v12182_v15  ;;  %v12127_v15 = vcombine.low %v11868_v29, %v11872_v30  ;;  %v12120_v10 = vcombine.high %v11860_v21, %v11864_v43  ;;  %v11832_v24 = vld [vmem:[%s14878_s18 + $0xbb8] sm:$0xff] }
0x1333   : > { %v11956_v53 = vld [vmem:[%s14878_s18 + $0xf98] sm:$0xff] }
0x1334   : > { %7997 = vmatpush2.bf16.msra.mxu0 %v12053_v18  ;;  %v11852_v18 = vld [vmem:[%s14878_s18 + $0xc58] sm:$0xff] }
0x1335   : > { %8038 = vmatpush2.bf16.msra.mxu1 %v12181_v25  ;;  %7998 = vmatprep.subr.bf16.mxu0 %v12046_v34  ;;  %v11856_v25 = vld [vmem:[%s14878_s18 + $0xc78] sm:$0xff]  ;;  %v11991_v34 = vcombine.low %v11732_v8, %v11736_v13 }
0x1336   : > { %8039 = vmatprep.subr.bf16.mxu1 %v12174_v60  ;;  %v12119_v60 = vcombine.low %v11860_v21, %v11864_v43  ;;  %v12112_v35 = vcombine.high %v11852_v18, %v11856_v25  ;;  %v11804_v29 = vld [vmem:[%s14878_s18 + $0xad8] sm:$0xff] }
0x1337   : > { %v11808_v30 = vld [vmem:[%s14878_s18 + $0xaf8] sm:$0xff] }
0x1338   : > { %7999 = vmatpush2.bf16.msra.mxu0 %v12045_v28  ;;  %v11844_v28 = vld [vmem:[%s14878_s18 + $0xc18] sm:$0xff]  ;;  %v12064_v8 = vcombine.high %v11804_v29, %v11808_v30 }
0x1339   : > { %8040 = vmatpush2.bf16.msra.mxu1 %v12173_v32  ;;  %8000 = vmatprep.subr.bf16.mxu0 %v12038_v33  ;;  %v11848_v32 = vld [vmem:[%s14878_s18 + $0xc38] sm:$0xff]  ;;  %v11983_v33 = vcombine.low %v11724_v12, %v11728_v17 }
0x133a   : > { %8041 = vmatprep.subr.bf16.mxu1 %v12166_v6  ;;  %v12111_v6 = vcombine.low %v11852_v18, %v11856_v25  ;;  %v12104_v36 = vcombine.high %v11844_v28, %v11848_v32  ;;  %v11796_v21 = vld [vmem:[%s14878_s18 + $0xa98] sm:$0xff] }
0x133b   : > { %v11800_v43 = vld [vmem:[%s14878_s18 + $0xab8] sm:$0xff] }
0x133c   : > { %8001 = vmatpush2.bf16.msra.mxu0 %v12037_v38  ;;  %v11964_v38 = vld [vmem:[%s14878_s18 + $0xfd8] sm:$0xff]  ;;  %v12056_v12 = vcombine.high %v11796_v21, %v11800_v43 }
0x133d   : > { %8042 = vmatpush2.bf16.msra.mxu1 %v12165_v39  ;;  %8052 = vmatprep.subr.bf16.mxu0 %v12032_v40  ;;  %v11968_v39 = vld [vmem:[%s14878_s18 + $0xff8] sm:$0xff]  ;;  %v11975_v40 = vcombine.low %v11716_v27, %v11720_v44 }
0x133e   : > { %8093 = vmatprep.subr.bf16.mxu1 %v12160_v41  ;;  %v12103_v41 = vcombine.low %v11844_v28, %v11848_v32  ;;  %v12224_v51 = vcombine.high %v11964_v38, %v11968_v39  ;;  %v12223_v46 = vcombine.low %v11964_v38, %v11968_v39  ;;  %v11788_v18 = vld [vmem:[%s14878_s18 + $0xa58] sm:$0xff] }
0x133f   : > { %8003 = vmatmul.mubr.bf16.vlgmr.msra.gmra.mxu0 %v15969_v55  ;;  %v11792_v25 = vld [vmem:[%s14878_s18 + $0xa78] sm:$0xff] }
0x1340   : > { %8044 = vmatmul.mubr.bf16.vlgmr.msra.gmra.mxu1 %v15975_v23  ;;  %8053 = vmatpush1.bf16.msra.mxu0 %v12031_v52  ;;  %v11828_v52 = vld [vmem:[%s14878_s18 + $0xb98] sm:$0xff]  ;;  %v12048_v27 = vcombine.high %v11788_v18, %v11792_v25 }
0x1341   : > { %8084 = vmatprep.mubr.bf16.mxu0 %v15967_v26  ;;  %8094 = vmatpush1.bf16.msra.mxu1 %v12159_v48  ;;  %v12143_v26 = vcombine.low %v11884_v50, %v11888_v45  ;;  %v11960_v48 = vld [vmem:[%s14878_s18 + $0xfb8] sm:$0xff]  ;;  %v12088_v47 = vcombine.high %v11828_v52, %v11832_v24 }
0x1342   : > { %8125 = vmatprep.mubr.bf16.mxu1 %v15973_v2  ;;  %8054 = vmatprep.subr.bf16.mxu0 %v12024_v54  ;;  %v12136_v2 = vcombine.high %v11876_v9, %v11880_v61  ;;  %v12095_v54 = vcombine.low %v11836_v7, %v11840_v37  ;;  %v11820_v50 = vld [vmem:[%s14878_s18 + $0xb58] sm:$0xff] }
0x1343   : > { %8095 = vmatprep.subr.bf16.mxu1 %v12152_v49  ;;  %v12216_v49 = vcombine.high %v11956_v53, %v11960_v48  ;;  %v11824_v45 = vld [vmem:[%s14878_s18 + $0xb78] sm:$0xff] }
0x1344   : > { %8055 = vmatpush1.bf16.msra.mxu0 %v12023_v22  ;;  %v11948_v22 = vld [vmem:[%s14878_s18 + $0xf58] sm:$0xff]  ;;  %v12080_v58 = vcombine.high %v11820_v50, %v11824_v45 }
0x1345   : > { %8096 = vmatpush1.bf16.msra.mxu1 %v12151_v20  ;;  %8056 = vmatprep.subr.bf16.mxu0 %v12016_v56  ;;  %v11952_v20 = vld [vmem:[%s14878_s18 + $0xf78] sm:$0xff]  ;;  %v12087_v56 = vcombine.low %v11828_v52, %v11832_v24 }
0x1346   : > { %8097 = vmatprep.subr.bf16.mxu1 %v12144_v57  ;;  %v12215_v57 = vcombine.low %v11956_v53, %v11960_v48  ;;  %v12208_v59 = vcombine.high %v11948_v22, %v11952_v20  ;;  %v11812_v9 = vld [vmem:[%s14878_s18 + $0xb18] sm:$0xff] }
0x1347   : > { %v11816_v61 = vld [vmem:[%s14878_s18 + $0xb38] sm:$0xff] }
0x1348   : > { %8057 = vmatpush1.bf16.msra.mxu0 %v12015_v62  ;;  %v11940_v62 = vld [vmem:[%s14878_s18 + $0xf18] sm:$0xff]  ;;  %v12072_v0 = vcombine.high %v11812_v9, %v11816_v61 }
0x1349   : > { %8098 = vmatpush1.bf16.msra.mxu1 %v12143_v26  ;;  %8058 = vmatprep.subr.bf16.mxu0 %v12008_v63  ;;  %v11944_v26 = vld [vmem:[%s14878_s18 + $0xf38] sm:$0xff]  ;;  %v12079_v63 = vcombine.low %v11820_v50, %v11824_v45 }
0x134a   : > { %8099 = vmatprep.subr.bf16.mxu1 %v12136_v2  ;;  %v12207_v2 = vcombine.low %v11948_v22, %v11952_v20  ;;  %v12200_v3 = vcombine.high %v11940_v62, %v11944_v26  ;;  %v11780_v28 = vld [vmem:[%s14878_s18 + $0xa18] sm:$0xff] }
0x134b   : > { %v11784_v32 = vld [vmem:[%s14878_s18 + $0xa38] sm:$0xff] }
0x134c   : > { %8059 = vmatpush1.bf16.msra.mxu0 %v12007_v11  ;;  %v11932_v11 = vld [vmem:[%s14878_s18 + $0xed8] sm:$0xff]  ;;  %v12040_v7 = vcombine.high %v11780_v28, %v11784_v32  ;;  %v12039_v38 = vcombine.low %v11780_v28, %v11784_v32 }
0x134d   : > { %8100 = vmatpush1.bf16.msra.mxu1 %v12135_v4  ;;  %8060 = vmatprep.subr.bf16.mxu0 %v12000_v31  ;;  %v11936_v4 = vld [vmem:[%s14878_s18 + $0xef8] sm:$0xff]  ;;  %v12071_v31 = vcombine.low %v11812_v9, %v11816_v61 }
0x134e   : > { %8101 = vmatprep.subr.bf16.mxu1 %v12128_v5  ;;  %v12199_v5 = vcombine.low %v11940_v62, %v11944_v26  ;;  %v12192_v13 = vcombine.high %v11932_v11, %v11936_v4 }
0x1350   : > { %8061 = vmatpush1.bf16.msra.mxu0 %v11999_v14  ;;  %v11924_v14 = vld [vmem:[%s14878_s18 + $0xe98] sm:$0xff] }
0x1351   : > { %8102 = vmatpush1.bf16.msra.mxu1 %v12127_v15  ;;  %8062 = vmatprep.subr.bf16.mxu0 %v11992_v16  ;;  %v11928_v15 = vld [vmem:[%s14878_s18 + $0xeb8] sm:$0xff]  ;;  %v12063_v16 = vcombine.low %v11804_v29, %v11808_v30 }
0x1352   : > { %8103 = vmatprep.subr.bf16.mxu1 %v12120_v10  ;;  %v12191_v10 = vcombine.low %v11932_v11, %v11936_v4  ;;  %v12184_v17 = vcombine.high %v11924_v14, %v11928_v15 }
0x1354   : > { %8063 = vmatpush1.bf16.msra.mxu0 %v11991_v34  ;;  %v11916_v34 = vld [vmem:[%s14878_s18 + $0xe58] sm:$0xff] }
0x1355   : > { %8104 = vmatpush1.bf16.msra.mxu1 %v12119_v60  ;;  %8064 = vmatprep.subr.bf16.mxu0 %v11984_v19  ;;  %v11920_v60 = vld [vmem:[%s14878_s18 + $0xe78] sm:$0xff]  ;;  %v12055_v19 = vcombine.low %v11796_v21, %v11800_v43 }
0x1356   : > { %8105 = vmatprep.subr.bf16.mxu1 %v12112_v35  ;;  %v12183_v35 = vcombine.low %v11924_v14, %v11928_v15  ;;  %v12176_v44 = vcombine.high %v11916_v34, %v11920_v60 }
0x1358   : > { %8065 = vmatpush1.bf16.msra.mxu0 %v11983_v33  ;;  %v11908_v33 = vld [vmem:[%s14878_s18 + $0xe18] sm:$0xff] }
0x1359   : > { %8106 = vmatpush1.bf16.msra.mxu1 %v12111_v6  ;;  %8066 = vmatprep.subr.bf16.mxu0 %v11976_v1  ;;  %v11912_v6 = vld [vmem:[%s14878_s18 + $0xe38] sm:$0xff]  ;;  %v12047_v1 = vcombine.low %v11788_v18, %v11792_v25 }
0x135a   : > { %8107 = vmatprep.subr.bf16.mxu1 %v12104_v36  ;;  %v12175_v36 = vcombine.low %v11916_v34, %v11920_v60  ;;  %v12168_v37 = vcombine.high %v11908_v33, %v11912_v6  ;;  %v12167_v39 = vcombine.low %v11908_v33, %v11912_v6 }
0x135c   : > { %8067 = vmatpush1.bf16.msra.mxu0 %v11975_v40 }
0x135d   : > { %8108 = vmatpush1.bf16.msra.mxu1 %v12103_v41  ;;  %8068 = vmatprep.subr.bf16.mxu0 %v12096_v42 }
0x135e   : > { %8109 = vmatprep.subr.bf16.mxu1 %v12224_v51 }
0x1360   : > { %8069 = vmatpush2.bf16.msra.mxu0 %v12095_v54 }
0x1361   : > { %8110 = vmatpush2.bf16.msra.mxu1 %v12223_v46  ;;  %8070 = vmatprep.subr.bf16.mxu0 %v12088_v47 }
0x1362   : > { %8111 = vmatprep.subr.bf16.mxu1 %v12216_v49 }
0x1364   : > { %8071 = vmatpush2.bf16.msra.mxu0 %v12087_v56 }
0x1365   : > { %8112 = vmatpush2.bf16.msra.mxu1 %v12215_v57  ;;  %8072 = vmatprep.subr.bf16.mxu0 %v12080_v58 }
0x1366   : > { %8113 = vmatprep.subr.bf16.mxu1 %v12208_v59 }
0x1368   : > { %8073 = vmatpush2.bf16.msra.mxu0 %v12079_v63 }
0x1369   : > { %8114 = vmatpush2.bf16.msra.mxu1 %v12207_v2  ;;  %8074 = vmatprep.subr.bf16.mxu0 %v12072_v0 }
0x136a   : > { %8115 = vmatprep.subr.bf16.mxu1 %v12200_v3 }
0x136c   : > { %8075 = vmatpush2.bf16.msra.mxu0 %v12071_v31 }
0x136d   : > { %8116 = vmatpush2.bf16.msra.mxu1 %v12199_v5  ;;  %8076 = vmatprep.subr.bf16.mxu0 %v12064_v8 }
0x136e   : > { %8117 = vmatprep.subr.bf16.mxu1 %v12192_v13 }
0x1370   : > { %8077 = vmatpush2.bf16.msra.mxu0 %v12063_v16 }
0x1371   : > { %8118 = vmatpush2.bf16.msra.mxu1 %v12191_v10  ;;  %8078 = vmatprep.subr.bf16.mxu0 %v12056_v12 }
0x1372   : > { %8119 = vmatprep.subr.bf16.mxu1 %v12184_v17 }
0x1374   : > { %8079 = vmatpush2.bf16.msra.mxu0 %v12055_v19 }
0x1375   : > { %8120 = vmatpush2.bf16.msra.mxu1 %v12183_v35  ;;  %8080 = vmatprep.subr.bf16.mxu0 %v12048_v27 }
0x1376   : > { %8121 = vmatprep.subr.bf16.mxu1 %v12176_v44 }
0x1378   : > { %8081 = vmatpush2.bf16.msra.mxu0 %v12047_v1 }
0x1379   : > { %8122 = vmatpush2.bf16.msra.mxu1 %v12175_v36  ;;  %8082 = vmatprep.subr.bf16.mxu0 %v12040_v7 }
0x137a   : > { %8123 = vmatprep.subr.bf16.mxu1 %v12168_v37 }
0x137c   : > { %8083 = vmatpush2.bf16.msra.mxu0 %v12039_v38 }
0x137d   : > { %8124 = vmatpush2.bf16.msra.mxu1 %v12167_v39 }
0x137f   : > { %8085 = vmatmul.mubr.bf16.vlgmr.msra.gmra.mxu0 %v15969_v55  ;;  %v7840_v40 = vpop.f32.mrf.mxu0 }
0x1380   : > { %8126 = vmatmul.mubr.bf16.vlgmr.msra.gmra.mxu1 %v15975_v23  ;;  %v7881_v41 = vpop.f32.mrf.mxu1 }
0x1381   : > { %v16177_v42 = vadd.f32 %v7881_v41, %v7840_v40  ;;  %v7842_v51 = vpop.f32.mrf.mxu0 }
0x1382   : > { %v7883_v52 = vpop.f32.mrf.mxu1 }
0x1383   : > { %v16179_v24 = vadd.f32 %v7883_v52, %v7842_v51  ;;  %v7844_v53 = vpop.f32.mrf.mxu0  ;;  %v8137_v3 = vsel %vm601_vm1, %v16177_v42, 0.0 }
0x1384   : > { %v7885_v48 = vpop.f32.mrf.mxu1 }
0x1385   : > { %v7845_v54 = vpop.f32.mrf.mxu0  ;;  %v8138_v0 = vsel %vm601_vm1, %v16179_v24, 0.0 }
0x1386   : > { %v7886_v46 = vpop.f32.mrf.mxu1  ;;  %v8139_v30 = vadd.f32 %v8138_v0, %v8137_v3 }
0x13bf   : > { %v7922_v47 = vpop.f32.mrf.mxu0 }
0x13c0   : > { %v7963_v49 = vpop.f32.mrf.mxu1 }
0x13c1   : > { %v7964_v50 = vadd.f32 %v7963_v49, %v7922_v47  ;;  %v7924_v45 = vpop.f32.mrf.mxu0 }
0x13c2   : > { %v7965_v22 = vpop.f32.mrf.mxu1 }
0x13c3   : > { %v7966_v55 = vadd.f32 %v7965_v22, %v7924_v45  ;;  %v7926_v20 = vpop.f32.mrf.mxu0  ;;  %v8140_v29 = vsel %vm601_vm1, %v7964_v50, 0.0 }
0x13c4   : > { %v7967_v56 = vpop.f32.mrf.mxu1  ;;  %v8141_v4 = vadd.f32 %v8140_v29, %v8139_v30  ;;  %v13727_v29 = vld [vmem:[%s14884_s12 + $0x8e0] ss:$16 sps:$4 sm:$0xff]   ;;  %v13729_v30 = vld [vmem:[%s14884_s12 + $0x8e4] ss:$16 sps:$4 sm:$0xff]  }
0x13c5   : > { %v7927_v23 = vpop.f32.mrf.mxu0  ;;  %v8142_v31 = vsel %vm601_vm1, %v7966_v55, 0.0  ;;  %9796 = vmatprep.subr.bf16.mxu0 %v13729_v30 }
0x13c6   : > { %v7968_v57 = vpop.f32.mrf.mxu1  ;;  %v8143_v13 = vadd.f32 %v8142_v31, %v8141_v4  ;;  %v13732_v4 = vld [vmem:[%s14884_s12 + $0xae4] ss:$16 sps:$4 sm:$0xff]   ;;  %9797 = vmatpush1.bf16.msra.mxu0 %v13727_v29  ;;  %v13733_v31 = vld [vmem:[%s14884_s12 + $0x8c0] ss:$16 sps:$4 sm:$0xff]  }
0x13c7   : > { %9837 = vmatprep.subr.bf16.mxu1 %v13732_v4  ;;  %v13810_v29 = vld [vmem:[%s14884_s12 + $0xb44] ss:$16 sps:$4 sm:$0xff]   ;;  %v13808_v4 = vld [vmem:[%s14884_s12 + $0xb40] ss:$16 sps:$4 sm:$0xff]  }
0x13ff   : > { %v8004_v58 = vpop.f32.mrf.mxu0 }
0x1400   : > { %v8045_v59 = vpop.f32.mrf.mxu1 }
0x1401   : > { %v8006_v9 = vpop.f32.mrf.mxu0  ;;  %v8046_v11 = vadd.f32 %v8045_v59, %v8004_v58 }
0x1402   : > { %v8047_v61 = vpop.f32.mrf.mxu1 }
0x1403   : > { %v8008_v62 = vpop.f32.mrf.mxu0  ;;  %v8144_v5 = vsel %vm601_vm1, %v8046_v11, 0.0  ;;  %v8048_v8 = vadd.f32 %v8047_v61, %v8006_v9 }
0x1404   : > { %v8049_v26 = vpop.f32.mrf.mxu1  ;;  %v8145_v21 = vadd.f32 %v8144_v5, %v8143_v13  ;;  %v13735_v5 = vld [vmem:[%s14884_s12 + $0x8c4] ss:$16 sps:$4 sm:$0xff]  }
0x1405   : > { %v8009_v63 = vpop.f32.mrf.mxu0  ;;  %v8146_v43 = vsel %vm601_vm1, %v8048_v8, 0.0  ;;  %v13738_v13 = vld [vmem:[%s14884_s12 + $0xac4] ss:$16 sps:$4 sm:$0xff]   ;;  %9798 = vmatprep.subr.bf16.mxu0 %v13735_v5 }
0x1406   : > { %v8050_v2 = vpop.f32.mrf.mxu1  ;;  %v8147_v12 = vadd.f32 %v8146_v43, %v8145_v21  ;;  %v13741_v21 = vld [vmem:[%s14884_s12 + $0x8a4] ss:$16 sps:$4 sm:$0xff]   ;;  %9799 = vmatpush1.bf16.msra.mxu0 %v13733_v31 }
0x1407   : > { %v13744_v43 = vld [vmem:[%s14884_s12 + $0xaa4] ss:$16 sps:$4 sm:$0xff]   ;;  %9800 = vmatprep.subr.bf16.mxu0 %v13741_v21 }
0x1408   : > { %v13813_v31 = vld [vmem:[%s14884_s12 + $0x924] ss:$16 sps:$4 sm:$0xff]  }
0x1409   : > { %v13816_v21 = vld [vmem:[%s14884_s12 + $0xb24] ss:$16 sps:$4 sm:$0xff]  }
0x143f   : > { %v8086_v14 = vpop.f32.mrf.mxu0 }
0x1440   : > { %v8127_v15 = vpop.f32.mrf.mxu1 }
0x1441   : > { %v8128_v16 = vadd.f32 %v8127_v15, %v8086_v14  ;;  %v8088_v10 = vpop.f32.mrf.mxu0  ;;  %v13739_v14 = vld [vmem:[%s14884_s12 + $0x8a0] ss:$16 sps:$4 sm:$0xff]  }
0x1442   : > { %v8129_v17 = vpop.f32.mrf.mxu1  ;;  %v13742_v15 = vld [vmem:[%s14884_s12 + $0xaa0] ss:$16 sps:$4 sm:$0xff]   ;;  %9801 = vmatpush1.bf16.msra.mxu0 %v13739_v14  ;;  %v13822_v14 = vld [vmem:[%s14884_s12 + $0xb04] ss:$16 sps:$4 sm:$0xff]  }
0x1443   : > { %v8148_v18 = vsel %vm601_vm1, %v8128_v16, 0.0  ;;  %v8130_v25 = vadd.f32 %v8129_v17, %v8088_v10  ;;  %v8090_v34 = vpop.f32.mrf.mxu0  ;;  %v13750_v10 = vld [vmem:[%s14884_s12 + $0xa84] ss:$16 sps:$4 sm:$0xff]   ;;  %v13748_v17 = vld [vmem:[%s14884_s12 + $0xa80] ss:$16 sps:$4 sm:$0xff]  }
0x1444   : > { %v8131_v60 = vpop.f32.mrf.mxu1  ;;  %v8149_v19 = vadd.f32 %v8148_v18, %v8147_v12  ;;  %v13745_v12 = vld [vmem:[%s14884_s12 + $0x880] ss:$16 sps:$4 sm:$0xff]   ;;  %v13753_v18 = vld [vmem:[%s14884_s12 + $0x864] ss:$16 sps:$4 sm:$0xff]  }
0x1445   : > { %v8091_v35 = vpop.f32.mrf.mxu0  ;;  %v8150_v27 = vsel %vm601_vm1, %v8130_v25, 0.0  ;;  %v13751_v34 = vld [vmem:[%s14884_s12 + $0x860] ss:$16 sps:$4 sm:$0xff]  }
0x1446   : > { %v8132_v44 = vpop.f32.mrf.mxu1  ;;  %v8151_v28 = vadd.f32 %v8150_v27, %v8149_v19  ;;  %v13754_v60 = vld [vmem:[%s14884_s12 + $0xa60] ss:$16 sps:$4 sm:$0xff]   ;;  %v13759_v19 = vld [vmem:[%s14884_s12 + $0x844] ss:$16 sps:$4 sm:$0xff]  }
0x1447   : > { %v13762_v35 = vld [vmem:[%s14884_s12 + $0xa44] ss:$16 sps:$4 sm:$0xff]   ;;  %v13757_v27 = vld [vmem:[%s14884_s12 + $0x840] ss:$16 sps:$4 sm:$0xff]  }
0x1448   : > { %8152 = vadd.xlane.f32.xlu0 %v8151_v28  ;;  %v13760_v44 = vld [vmem:[%s14884_s12 + $0xa40] ss:$16 sps:$4 sm:$0xff]   ;;  %v13765_v28 = vld [vmem:[%s14884_s12 + $0x824] ss:$16 sps:$4 sm:$0xff]  }
0x14d1   : > { %v8153_v32 = vpop.xlane.xlu0 %8152 }
0x14d2   : > { %v8154_v33 = vrot.slane %v8153_v32, 4 }
0x14d4   : > { %v8155_v6 = vadd.f32 %v8154_v33, %v8153_v32  ;;  %v13768_v32 = vld [vmem:[%s14884_s12 + $0xa24] ss:$16 sps:$4 sm:$0xff]   ;;  %v13763_v33 = vld [vmem:[%s14884_s12 + $0x820] ss:$16 sps:$4 sm:$0xff]  }
0x14d6   : > { %v8156_v1 = vrot.slane %v8155_v6, 2 }
0x14d8   : > { %v8157_v36 = vadd.f32 %v8156_v1, %v8155_v6  ;;  %v13766_v6 = vld [vmem:[%s14884_s12 + $0xa20] ss:$16 sps:$4 sm:$0xff]   ;;  %v13771_v1 = vld [vmem:[%s14884_s12 + $0x804] ss:$16 sps:$4 sm:$0xff]  }
0x14da   : > { %v8158_v7 = vrot.slane %v8157_v36, 1 }
0x14dc   : > { %v8159_v37 = vadd.f32 %v8158_v7, %v8157_v36  ;;  %v13774_v36 = vld [vmem:[%s14884_s12 + $0xa04] ss:$16 sps:$4 sm:$0xff]   ;;  %v13769_v7 = vld [vmem:[%s14884_s12 + $0x800] ss:$16 sps:$4 sm:$0xff]  }
0x14de   : > { %12925 = vpush %v8159_v37  ;;  %v13772_v37 = vld [vmem:[%s14884_s12 + $0xa00] ss:$16 sps:$4 sm:$0xff]  }
0x150f   : > { %s12926_s18 = spop %12925 }
0x1510   : > { %s8161_s27 = smul.f32 0.00048828125, %s12926_s18 }
0x1512   : > { %v8162_v38 = vstv %s8161_s27  ;;  %s10698_s27 = sshll.u32 %s15776_s24, 4  ;;  %s16640_s27 = int_to_ptr.vmem [resolvable:$true] %s10698_s27 }
0x1513   : > { %v16192_v39 = vsub.f32 %v16177_v42, %v8162_v38  ;;  %v16195_v40 = vsub.f32 %v16179_v24, %v8162_v38  ;;  %v16197_v41 = vsub.f32 %v7964_v50, %v8162_v38  ;;  %v16199_v51 = vsub.f32 %v7966_v55, %v8162_v38 }
0x1514   : > { %v16201_v52 = vsub.f32 %v8046_v11, %v8162_v38  ;;  %v16209_v42 = vsub.f32 %v8048_v8, %v8162_v38  ;;  %v16215_v50 = vsub.f32 %v8128_v16, %v8162_v38  ;;  %v16220_v20 = vsub.f32 %v8130_v25, %v8162_v38  ;;  %v13730_v11 = vld [vmem:[%s14884_s12 + $0xae0] ss:$16 sps:$4 sm:$0xff]   ;;  %v13747_v16 = vld [vmem:[%s14884_s12 + $0x884] ss:$16 sps:$4 sm:$0xff]  }
0x1515   : > { %v8171_v53 = vmul.f32 %v16192_v39, %v16192_v39  ;;  %v8172_v48 = vmul.f32 %v16195_v40, %v16195_v40  ;;  %v8173_v54 = vmul.f32 %v16197_v41, %v16197_v41  ;;  %v8174_v24 = vmul.f32 %v16199_v51, %v16199_v51  ;;  %9838 = vmatpush1.bf16.msra.mxu1 %v13730_v11  ;;  %v13736_v8 = vld [vmem:[%s14884_s12 + $0xac0] ss:$16 sps:$4 sm:$0xff]   ;;  %v13756_v25 = vld [vmem:[%s14884_s12 + $0xa64] ss:$16 sps:$4 sm:$0xff]  }
0x1516   : > { %v8175_v45 = vmul.f32 %v16201_v52, %v16201_v52  ;;  %v8176_v56 = vmul.f32 %v16209_v42, %v16209_v42  ;;  %v8177_v58 = vmul.f32 %v16215_v50, %v16215_v50  ;;  %v8178_v61 = vmul.f32 %v16220_v20, %v16220_v20  ;;  %9839 = vmatprep.subr.bf16.mxu1 %v13738_v13  ;;  %v13777_v38 = vld [vmem:[%s14884_s12 + $0x9e4] ss:$16 sps:$4 sm:$0xff]   ;;  %v13805_v11 = vld [vmem:[%s14884_s12 + $0x940] ss:$16 sps:$4 sm:$0xff]  }
0x1517   : > { %v8179_v46 = vsel %vm601_vm1, %v8171_v53, 0.0  ;;  %v8180_v47 = vsel %vm601_vm1, %v8172_v48, 0.0  ;;  %v8182_v22 = vsel %vm601_vm1, %v8173_v54, 0.0  ;;  %v8184_v23 = vsel %vm601_vm1, %v8174_v24, 0.0  ;;  %9802 = vmatprep.subr.bf16.mxu0 %v13747_v16  ;;  %v13780_v53 = vld [vmem:[%s14884_s12 + $0xbe4] ss:$16 sps:$4 sm:$0xff]  }
0x1518   : > { %v8181_v49 = vadd.f32 %v8180_v47, %v8179_v46  ;;  %v8186_v59 = vsel %vm601_vm1, %v8175_v45, 0.0  ;;  %v8188_v62 = vsel %vm601_vm1, %v8176_v56, 0.0  ;;  %v8190_v63 = vsel %vm601_vm1, %v8177_v58, 0.0  ;;  %9803 = vmatpush1.bf16.msra.mxu0 %v13745_v12  ;;  %v13775_v48 = vld [vmem:[%s14884_s12 + $0x9e0] ss:$16 sps:$4 sm:$0xff]  }
0x1519   : > { %v8192_v0 = vsel %vm601_vm1, %v8178_v61, 0.0  ;;  %9840 = vmatpush1.bf16.msra.mxu1 %v13736_v8  ;;  %9804 = vmatprep.subr.bf16.mxu0 %v13753_v18  ;;  %v13778_v54 = vld [vmem:[%s14884_s12 + $0xbe0] ss:$16 sps:$4 sm:$0xff]   ;;  %v13783_v24 = vld [vmem:[%s14884_s12 + $0x9c4] ss:$16 sps:$4 sm:$0xff]  }
0x151a   : > { %v8183_v55 = vadd.f32 %v8182_v22, %v8181_v49  ;;  %9841 = vmatprep.subr.bf16.mxu1 %v13744_v43  ;;  %v13786_v46 = vld [vmem:[%s14884_s12 + $0xbc4] ss:$16 sps:$4 sm:$0xff]   ;;  %v13781_v47 = vld [vmem:[%s14884_s12 + $0x9c0] ss:$16 sps:$4 sm:$0xff]  }
0x151b   : > { %v13784_v49 = vld [vmem:[%s14884_s12 + $0xbc0] ss:$16 sps:$4 sm:$0xff]   ;;  %v13789_v45 = vld [vmem:[%s14884_s12 + $0x9a4] ss:$16 sps:$4 sm:$0xff]  }
0x151c   : > { %v8185_v57 = vadd.f32 %v8184_v23, %v8183_v55  ;;  %9805 = vmatpush1.bf16.msra.mxu0 %v13751_v34  ;;  %v13792_v22 = vld [vmem:[%s14884_s12 + $0xba4] ss:$16 sps:$4 sm:$0xff]   ;;  %v13787_v55 = vld [vmem:[%s14884_s12 + $0x9a0] ss:$16 sps:$4 sm:$0xff]  }
0x151d   : > { %9842 = vmatpush1.bf16.msra.mxu1 %v13742_v15  ;;  %9806 = vmatprep.subr.bf16.mxu0 %v13759_v19  ;;  %v13790_v56 = vld [vmem:[%s14884_s12 + $0xba0] ss:$16 sps:$4 sm:$0xff]   ;;  %v13795_v23 = vld [vmem:[%s14884_s12 + $0x984] ss:$16 sps:$4 sm:$0xff]   ;;  %v8218_v19 = vstv %s8136_s0  ;;  %s14419_s0 = scalar_lea.vmem %s16640_s27, 128 }
0x151e   : > { %v8187_v9 = vadd.f32 %v8186_v59, %v8185_v57  ;;  %9843 = vmatprep.subr.bf16.mxu1 %v13750_v10  ;;  %v13798_v57 = vld [vmem:[%s14884_s12 + $0xb84] ss:$16 sps:$4 sm:$0xff]   ;;  %v13793_v58 = vld [vmem:[%s14884_s12 + $0x980] ss:$16 sps:$4 sm:$0xff]   ;;  %p14420_p11 = scmp.ne.s32.totalorder %s16640_s27, %s14419_s0 }
0x151f   : > { %v13796_v59 = vld [vmem:[%s14884_s12 + $0xb80] ss:$16 sps:$4 sm:$0xff]   ;;  %v13804_v61 = vld [vmem:[%s14884_s12 + $0xb64] ss:$16 sps:$4 sm:$0xff]  }
0x1520   : > { %v8189_v26 = vadd.f32 %v8188_v62, %v8187_v9  ;;  %9807 = vmatpush1.bf16.msra.mxu0 %v13757_v27  ;;  %v13801_v9 = vld [vmem:[%s14884_s12 + $0x964] ss:$16 sps:$4 sm:$0xff]   ;;  %v13799_v62 = vld [vmem:[%s14884_s12 + $0x960] ss:$16 sps:$4 sm:$0xff]  }
0x1521   : > { %9844 = vmatpush1.bf16.msra.mxu1 %v13748_v17  ;;  %9808 = vmatprep.subr.bf16.mxu0 %v13765_v28  ;;  %v13811_v8 = vld [vmem:[%s14884_s12 + $0x920] ss:$16 sps:$4 sm:$0xff]   ;;  %v13819_v43 = vld [vmem:[%s14884_s12 + $0x904] ss:$16 sps:$4 sm:$0xff]  }
0x1522   : > { %v8191_v2 = vadd.f32 %v8190_v63, %v8189_v26  ;;  %9845 = vmatprep.subr.bf16.mxu1 %v13756_v25  ;;  %v13802_v26 = vld [vmem:[%s14884_s12 + $0xb60] ss:$16 sps:$4 sm:$0xff]   ;;  %v13825_v17 = vld [vmem:[%s14884_s12 + $0xce4] ss:$16 sps:$4 sm:$0xff]  }
0x1523   : > { %v13814_v13 = vld [vmem:[%s14884_s12 + $0xb20] ss:$16 sps:$4 sm:$0xff]   ;;  %v13828_v18 = vld [vmem:[%s14884_s12 + $0xee4] ss:$16 sps:$4 sm:$0xff]  }
0x1524   : > { %v8193_v3 = vadd.f32 %v8192_v0, %v8191_v2  ;;  %9809 = vmatpush1.bf16.msra.mxu0 %v13763_v33  ;;  %v13817_v10 = vld [vmem:[%s14884_s12 + $0x900] ss:$16 sps:$4 sm:$0xff]  }
0x1525   : > { %9846 = vmatpush1.bf16.msra.mxu1 %v13754_v60  ;;  %9810 = vmatprep.subr.bf16.mxu0 %v13771_v1  ;;  %v13820_v12 = vld [vmem:[%s14884_s12 + $0xb00] ss:$16 sps:$4 sm:$0xff]  }
0x1526   : > { %8194 = vadd.xlane.f32.xlu1 %v8193_v3  ;;  %9847 = vmatprep.subr.bf16.mxu1 %v13762_v35  ;;  %v13807_v3 = vld [vmem:[%s14884_s12 + $0x944] ss:$16 sps:$4 sm:$0xff]  }
0x1528   : > { %9811 = vmatpush1.bf16.msra.mxu0 %v13769_v7 }
0x1529   : > { %9848 = vmatpush1.bf16.msra.mxu1 %v13760_v44  ;;  %9812 = vmatprep.subr.bf16.mxu0 %v13777_v38 }
0x152a   : > { %9849 = vmatprep.subr.bf16.mxu1 %v13768_v32 }
0x152c   : > { %9813 = vmatpush2.bf16.msra.mxu0 %v13775_v48 }
0x152d   : > { %9850 = vmatpush1.bf16.msra.mxu1 %v13766_v6  ;;  %9814 = vmatprep.subr.bf16.mxu0 %v13783_v24 }
0x152e   : > { %9851 = vmatprep.subr.bf16.mxu1 %v13774_v36 }
0x1530   : > { %9815 = vmatpush2.bf16.msra.mxu0 %v13781_v47  ;;  %v13823_v47 = vld [vmem:[%s14884_s12 + $0xce0] ss:$16 sps:$4 sm:$0xff]  }
0x1531   : > { %9852 = vmatpush1.bf16.msra.mxu1 %v13772_v37  ;;  %9816 = vmatprep.subr.bf16.mxu0 %v13789_v45 }
0x1532   : > { %9853 = vmatprep.subr.bf16.mxu1 %v13780_v53 }
0x1534   : > { %9817 = vmatpush2.bf16.msra.mxu0 %v13787_v55 }
0x1535   : > { %9854 = vmatpush2.bf16.msra.mxu1 %v13778_v54  ;;  %9818 = vmatprep.subr.bf16.mxu0 %v13795_v23 }
0x1536   : > { %9855 = vmatprep.subr.bf16.mxu1 %v13786_v46 }
0x1538   : > { %9819 = vmatpush2.bf16.msra.mxu0 %v13793_v58 }
0x1539   : > { %9856 = vmatpush2.bf16.msra.mxu1 %v13784_v49  ;;  %9820 = vmatprep.subr.bf16.mxu0 %v13801_v9  ;;  %v13826_v49 = vld [vmem:[%s14884_s12 + $0xee0] ss:$16 sps:$4 sm:$0xff]  }
0x153a   : > { %9857 = vmatprep.subr.bf16.mxu1 %v13792_v22 }
0x153c   : > { %9821 = vmatpush2.bf16.msra.mxu0 %v13799_v62  ;;  %v13829_v62 = vld [vmem:[%s14884_s12 + $0xcc0] ss:$16 sps:$4 sm:$0xff]  }
0x153d   : > { %9858 = vmatpush2.bf16.msra.mxu1 %v13790_v56  ;;  %9822 = vmatprep.subr.bf16.mxu0 %v13807_v3  ;;  %v13835_v3 = vld [vmem:[%s14884_s12 + $0xca0] ss:$16 sps:$4 sm:$0xff]  }
0x153e   : > { %9859 = vmatprep.subr.bf16.mxu1 %v13798_v57  ;;  %v13831_v57 = vld [vmem:[%s14884_s12 + $0xcc4] ss:$16 sps:$4 sm:$0xff]  }
0x1540   : > { %9823 = vmatpush2.bf16.msra.mxu0 %v13805_v11  ;;  %v13846_v11 = vld [vmem:[%s14884_s12 + $0xe84] ss:$16 sps:$4 sm:$0xff]  }
0x1541   : > { %9860 = vmatpush2.bf16.msra.mxu1 %v13796_v59  ;;  %9824 = vmatprep.subr.bf16.mxu0 %v13813_v31  ;;  %v13834_v59 = vld [vmem:[%s14884_s12 + $0xec4] ss:$16 sps:$4 sm:$0xff]   ;;  %v13844_v31 = vld [vmem:[%s14884_s12 + $0xe80] ss:$16 sps:$4 sm:$0xff]  }
0x1542   : > { %9861 = vmatprep.subr.bf16.mxu1 %v13804_v61 }
0x1544   : > { %9825 = vmatpush2.bf16.msra.mxu0 %v13811_v8  ;;  %v13852_v8 = vld [vmem:[%s14884_s12 + $0xe64] ss:$16 sps:$4 sm:$0xff]  }
0x1545   : > { %9862 = vmatpush2.bf16.msra.mxu1 %v13802_v26  ;;  %9826 = vmatprep.subr.bf16.mxu0 %v13819_v43  ;;  %v13832_v26 = vld [vmem:[%s14884_s12 + $0xec0] ss:$16 sps:$4 sm:$0xff]   ;;  %v13855_v43 = vld [vmem:[%s14884_s12 + $0xc44] ss:$16 sps:$4 sm:$0xff]  }
0x1546   : > { %9863 = vmatprep.subr.bf16.mxu1 %v13810_v29  ;;  %v13838_v29 = vld [vmem:[%s14884_s12 + $0xea0] ss:$16 sps:$4 sm:$0xff]  }
0x1548   : > { %9827 = vmatpush2.bf16.msra.mxu0 %v13817_v10  ;;  %v13861_v10 = vld [vmem:[%s14884_s12 + $0xc24] ss:$16 sps:$4 sm:$0xff]  }
0x1549   : > { %9864 = vmatpush2.bf16.msra.mxu1 %v13808_v4  ;;  %9878 = vmatprep.subr.bf16.mxu0 %v13825_v17  ;;  %v13841_v4 = vld [vmem:[%s14884_s12 + $0xc80] ss:$16 sps:$4 sm:$0xff]  }
0x154a   : > { %9865 = vmatprep.subr.bf16.mxu1 %v13816_v21  ;;  %v13850_v21 = vld [vmem:[%s14884_s12 + $0xe60] ss:$16 sps:$4 sm:$0xff]  }
0x154b   : > { %v13859_v17 = vld [vmem:[%s14884_s12 + $0xc20] ss:$16 sps:$4 sm:$0xff]  }
0x154d   : > { %9866 = vmatpush2.bf16.msra.mxu1 %v13814_v13  ;;  %v13847_v13 = vld [vmem:[%s14884_s12 + $0xc60] ss:$16 sps:$4 sm:$0xff]  }
0x154e   : > { %9867 = vmatprep.subr.bf16.mxu1 %v13822_v14  ;;  %v13858_v14 = vld [vmem:[%s14884_s12 + $0xe44] ss:$16 sps:$4 sm:$0xff]  }
0x1551   : > { %9868 = vmatpush2.bf16.msra.mxu1 %v13820_v12  ;;  %v13864_v12 = vld [vmem:[%s14884_s12 + $0xe24] ss:$16 sps:$4 sm:$0xff]  }
0x1552   : > { %9919 = vmatprep.subr.bf16.mxu1 %v13828_v18  ;;  %v13862_v18 = vld [vmem:[%s14884_s12 + $0xe20] ss:$16 sps:$4 sm:$0xff]  }
0x15af   : > { %v8195_v63 = vpop.xlane.xlu1 %8194 }
0x15b0   : > { %v8196_v2 = vrot.slane %v8195_v63, 4 }
0x15b2   : > { %v8197_v0 = vadd.f32 %v8196_v2, %v8195_v63  ;;  %v13837_v2 = vld [vmem:[%s14884_s12 + $0xca4] ss:$16 sps:$4 sm:$0xff]  }
0x15b4   : > { %v8198_v30 = vrot.slane %v8197_v0, 2 }
0x15b6   : > { %v8199_v5 = vadd.f32 %v8198_v30, %v8197_v0  ;;  %v13840_v0 = vld [vmem:[%s14884_s12 + $0xea4] ss:$16 sps:$4 sm:$0xff]  }
0x15b7   : > { %v13843_v30 = vld [vmem:[%s14884_s12 + $0xc84] ss:$16 sps:$4 sm:$0xff]  }
0x15b8   : > { %v8200_v15 = vrot.slane %v8199_v5, 1 }
0x15ba   : > { %v8201_v16 = vadd.f32 %v8200_v15, %v8199_v5  ;;  %v13849_v5 = vld [vmem:[%s14884_s12 + $0xc64] ss:$16 sps:$4 sm:$0xff]   ;;  %v13853_v15 = vld [vmem:[%s14884_s12 + $0xc40] ss:$16 sps:$4 sm:$0xff]  }
0x15bc   : > { %12927 = vpush %v8201_v16  ;;  %v13856_v16 = vld [vmem:[%s14884_s12 + $0xe40] ss:$16 sps:$4 sm:$0xff]  }
0x15ed   : > { %s12928_s15 = spop %12927 }
0x15ee   : > { %s8203_s26 = smul.f32 0.00048828125, %s12928_s15 }
0x15f0   : > { %s8204_s9 = sadd.f32 1e-05, %s8203_s26 }
0x15f2   : > { %v8205_v25 = vstv %s8204_s9  ;;  %s16748_s9 = sld [smem:[#allocation35_spill]] }
0x15f3   : > { %14223 = vrsqrt.f32 %v8205_v25  ;;  %v13867_v25 = vld [vmem:[%s14884_s12 + $0xc04] ss:$16 sps:$4 sm:$0xff]  }
0x15f8   : > { %s16638_s1 = scalar_lea.hbm %s16748_s9, %s12887_s10 }
0x1600   : > { %v14224_v34 = vpop.eup %14223 }
0x1601   : > { %12929 = vpush %v14224_v34  ;;  %v13870_v34 = vld [vmem:[%s14884_s12 + $0xe04] ss:$16 sps:$4 sm:$0xff]  }
0x1632   : > { %s12930_s17 = spop %12929 }
0x1633   : > { %s8208_s29 = smul.f32 %s12930_s17, %s8135_s21  ;;  %s10684_s21 = scalar_lea.sflag [#allocation4], %s14865_s22 }
0x1634   : > { %s14423_s17 = sshll.u32 %s14520_s16, 4  ;;  %s14424_s17 = int_to_ptr.vmem [resolvable:$false] %s14423_s17 }
0x1635   : > { %v8209_v60 = vstv %s8208_s29  ;;  %s14425_s29 = scalar_lea.vmem %s14424_s17, 256  ;;  %p14426_p5 = scmp.lt.s32.totalorder %s16640_s27, %s14424_s17 }
0x1636   : > { %v8211_v35 = vmul.f32 %v8209_v60, %v16195_v40  ;;  %v8213_v27 = vmul.f32 %v8209_v60, %v16199_v51  ;;  %v8210_v44 = vmul.f32 %v8209_v60, %v16192_v39  ;;  %v8212_v28 = vmul.f32 %v8209_v60, %v16197_v41  ;;  %p14427_p0 = scmp.lt.s32.totalorder %s14425_s29, %s14419_s0 }
0x1637   : > { %v8215_v32 = vmul.f32 %v8209_v60, %v16209_v42  ;;  %v8217_v33 = vmul.f32 %v8209_v60, %v16220_v20  ;;  %v8214_v6 = vmul.f32 %v8209_v60, %v16201_v52  ;;  %v8216_v1 = vmul.f32 %v8209_v60, %v16215_v50  ;;  %v13865_v60 = vld [vmem:[%s14884_s12 + $0xc00] ss:$16 sps:$4 sm:$0xff]  }
0x1638   : > { %v8220_v36 = vadd.f32 %v8218_v19, %v8211_v35  ;;  %v8222_v7 = vadd.f32 %v8218_v19, %v8213_v27  ;;  %v8219_v37 = vadd.f32 %v8218_v19, %v8210_v44  ;;  %v8221_v38 = vadd.f32 %v8218_v19, %v8212_v28  ;;  %v13873_v35 = vld [vmem:[%s14884_s12 + $0xde4] ss:$16 sps:$4 sm:$0xff]   ;;  %v13871_v44 = vld [vmem:[%s14884_s12 + $0xde0] ss:$16 sps:$4 sm:$0xff]   ;;  %p14428_p8 = por %p14427_p0, %p14426_p5 }
0x1639   : > { %v8224_v53 = vadd.f32 %v8218_v19, %v8215_v32  ;;  %v8226_v40 = vadd.f32 %v8218_v19, %v8217_v33  ;;  %v16308_v48 = vadd.f32 %v8218_v19, %v8214_v6  ;;  %v16310_v39 = vadd.f32 %v8218_v19, %v8216_v1  ;;  %v13868_v19 = vld [vmem:[%s14884_s12 + $0xe00] ss:$16 sps:$4 sm:$0xff]   ;;  %v13876_v27 = vld [vmem:[%s14884_s12 + $0xfe4] ss:$16 sps:$4 sm:$0xff]  }
0x163a   : > { %vm8228_vm11 = vcmp.gt.f32.partialorder %v8220_v36, 0.0  ;;  %v8236_v41 = vmul.f32 0.2, %v8220_v36  ;;  %vm8230_vm12 = vcmp.gt.f32.partialorder %v8222_v7, 0.0  ;;  %v8238_v51 = vmul.f32 0.2, %v8222_v7 }
0x163b   : > { %vm8227_vm13 = vcmp.gt.f32.partialorder %v8219_v37, 0.0  ;;  %v8235_v52 = vmul.f32 0.2, %v8219_v37  ;;  %vm8229_vm14 = vcmp.gt.f32.partialorder %v8221_v38, 0.0  ;;  %v8237_v42 = vmul.f32 0.2, %v8221_v38 }
0x163c   : > { %v8244_v50 = vsel %vm8228_vm11, %v8220_v36, %v8236_v41  ;;  %v8246_v20 = vsel %vm8230_vm12, %v8222_v7, %v8238_v51  ;;  %vm8232_vm15 = vcmp.gt.f32.partialorder %v8224_v53, 0.0  ;;  %v8240_v54 = vmul.f32 0.2, %v8224_v53  ;;  %v13874_v28 = vld [vmem:[%s14884_s12 + $0xfe0] ss:$16 sps:$4 sm:$0xff]  }
0x163d   : > { %v16312_v24 = vpack.c.bf16 %v8244_v50, %v8244_v50  ;;  %v16314_v46 = vpack.c.bf16 %v8246_v20, %v8246_v20  ;;  %v8243_v45 = vsel %vm8227_vm13, %v8219_v37, %v8235_v52  ;;  %v8245_v22 = vsel %vm8229_vm14, %v8221_v38, %v8237_v42  ;;  %v13879_v32 = vld [vmem:[%s14884_s12 + $0xdc4] ss:$16 sps:$4 sm:$0xff]   ;;  %v13877_v6 = vld [vmem:[%s14884_s12 + $0xdc0] ss:$16 sps:$4 sm:$0xff]  }
0x163e   : > { %v16318_v55 = vpack.c.bf16 %v8243_v45, %v8243_v45  ;;  %v16320_v56 = vpack.c.bf16 %v8245_v22, %v8245_v22  ;;  %v8248_v23 = vsel %vm8232_vm15, %v8224_v53, %v8240_v54  ;;  %vm8234_vm2 = vcmp.gt.f32.partialorder %v8226_v40, 0.0  ;;  %v13882_v33 = vld [vmem:[%s14884_s12 + $0xfc4] ss:$16 sps:$4 sm:$0xff]   ;;  %v13880_v1 = vld [vmem:[%s14884_s12 + $0xfc0] ss:$16 sps:$4 sm:$0xff]  }
0x163f   : > { %9828 = vmatprep.mubr.bf16.mxu0 %v16312_v24  ;;  %9869 = vmatprep.mubr.bf16.mxu1 %v16314_v46  ;;  %v8242_v58 = vmul.f32 0.2, %v8226_v40  ;;  %v16328_v9 = vpack.c.bf16 %v8248_v23, %v8248_v23  ;;  %v13885_v36 = vld [vmem:[%s14884_s12 + $0xda4] ss:$16 sps:$4 sm:$0xff]   ;;  %v13883_v37 = vld [vmem:[%s14884_s12 + $0xda0] ss:$16 sps:$4 sm:$0xff]  }
0x1640   : > { %9829 = vmatmul.mubr.bf16.vlgmr.msra.gmra.mxu0 %v16318_v55  ;;  %9870 = vmatmul.mubr.bf16.vlgmr.msra.gmra.mxu1 %v16320_v56  ;;  %v13888_v7 = vld [vmem:[%s14884_s12 + $0xfa4] ss:$16 sps:$4 sm:$0xff]   ;;  %v13886_v38 = vld [vmem:[%s14884_s12 + $0xfa0] ss:$16 sps:$4 sm:$0xff]   ;;  %vm8231_vm3 = vcmp.gt.f32.partialorder %v16308_v48, 0.0  ;;  %vm8233_vm4 = vcmp.gt.f32.partialorder %v16310_v39, 0.0 }
0x1641   : > { %9879 = vmatpush1.bf16.msra.mxu0 %v13823_v47  ;;  %9920 = vmatpush1.bf16.msra.mxu1 %v13826_v49  ;;  %v8250_v61 = vsel %vm8234_vm2, %v8226_v40, %v8242_v58  ;;  %v13891_v53 = vld [vmem:[%s14884_s12 + $0xd84] ss:$16 sps:$4 sm:$0xff]   ;;  %v13889_v41 = vld [vmem:[%s14884_s12 + $0xd80] ss:$16 sps:$4 sm:$0xff]  }
0x1642   : > { %9910 = vmatprep.mubr.bf16.mxu0 %v16328_v9  ;;  %v16333_v63 = vpack.c.bf16 %v8250_v61, %v8250_v61  ;;  %9880 = vmatprep.subr.bf16.mxu0 %v13831_v57  ;;  %v13894_v40 = vld [vmem:[%s14884_s12 + $0xf84] ss:$16 sps:$4 sm:$0xff]   ;;  %v13892_v51 = vld [vmem:[%s14884_s12 + $0xf80] ss:$16 sps:$4 sm:$0xff]  }
0x1643   : > { %9921 = vmatprep.subr.bf16.mxu1 %v13834_v59  ;;  %v13897_v52 = vld [vmem:[%s14884_s12 + $0xd64] ss:$16 sps:$4 sm:$0xff]   ;;  %v13895_v50 = vld [vmem:[%s14884_s12 + $0xd60] ss:$16 sps:$4 sm:$0xff]  }
0x1644   : > { %9951 = vmatprep.mubr.bf16.mxu1 %v16333_v63  ;;  %v13900_v42 = vld [vmem:[%s14884_s12 + $0xf64] ss:$16 sps:$4 sm:$0xff]   ;;  %v13898_v20 = vld [vmem:[%s14884_s12 + $0xf60] ss:$16 sps:$4 sm:$0xff]  }
0x1645   : > { %9881 = vmatpush1.bf16.msra.mxu0 %v13829_v62  ;;  %9922 = vmatpush1.bf16.msra.mxu1 %v13832_v26  ;;  %v13903_v54 = vld [vmem:[%s14884_s12 + $0xd44] ss:$16 sps:$4 sm:$0xff]   ;;  %v13901_v49 = vld [vmem:[%s14884_s12 + $0xd40] ss:$16 sps:$4 sm:$0xff]   ;;  %v8239_v62 = vmul.f32 0.2, %v16308_v48 }
0x1646   : > { %9882 = vmatprep.subr.bf16.mxu0 %v13837_v2  ;;  %9923 = vmatprep.subr.bf16.mxu1 %v13840_v0  ;;  %v13906_v47 = vld [vmem:[%s14884_s12 + $0xf44] ss:$16 sps:$4 sm:$0xff]   ;;  %v13904_v45 = vld [vmem:[%s14884_s12 + $0xf40] ss:$16 sps:$4 sm:$0xff]   ;;  %v8241_v26 = vmul.f32 0.2, %v16310_v39 }
0x1647   : > { %v13909_v22 = vld [vmem:[%s14884_s12 + $0xd24] ss:$16 sps:$4 sm:$0xff]   ;;  %v13907_v57 = vld [vmem:[%s14884_s12 + $0xd20] ss:$16 sps:$4 sm:$0xff]  }
0x1648   : > { %v13912_v23 = vld [vmem:[%s14884_s12 + $0xf24] ss:$16 sps:$4 sm:$0xff]   ;;  %v13910_v58 = vld [vmem:[%s14884_s12 + $0xf20] ss:$16 sps:$4 sm:$0xff]  }
0x1649   : > { %9883 = vmatpush1.bf16.msra.mxu0 %v13835_v3  ;;  %9924 = vmatpush1.bf16.msra.mxu1 %v13838_v29  ;;  %v13915_v59 = vld [vmem:[%s14884_s12 + $0xd04] ss:$16 sps:$4 sm:$0xff]   ;;  %v13913_v2 = vld [vmem:[%s14884_s12 + $0xd00] ss:$16 sps:$4 sm:$0xff]   ;;  %v13921_v3 = vld [vmem:[%s14884_s12 + $0x8ec] ss:$16 sps:$4 sm:$0xff]  }
0x164a   : > { %9884 = vmatprep.subr.bf16.mxu0 %v13843_v30  ;;  %9925 = vmatprep.subr.bf16.mxu1 %v13846_v11  ;;  %v13918_v61 = vld [vmem:[%s14884_s12 + $0xf04] ss:$16 sps:$4 sm:$0xff]   ;;  %v13916_v0 = vld [vmem:[%s14884_s12 + $0xf00] ss:$16 sps:$4 sm:$0xff]   ;;  %v13924_v29 = vld [vmem:[%s14884_s12 + $0xaec] ss:$16 sps:$4 sm:$0xff]   ;;  %v8247_v30 = vsel %vm8231_vm3, %v16308_v48, %v8239_v62  ;;  %v8249_v11 = vsel %vm8233_vm4, %v16310_v39, %v8241_v26 }
0x164b   : > { %v13925_v48 = vld [vmem:[%s14884_s12 + $0x8c8] ss:$16 sps:$4 sm:$0xff]   ;;  %v13999_v62 = vld [vmem:[%s14884_s12 + $0x94c] ss:$16 sps:$4 sm:$0xff]  }
0x164c   : > { %v13928_v39 = vld [vmem:[%s14884_s12 + $0xac8] ss:$16 sps:$4 sm:$0xff]   ;;  %v14002_v26 = vld [vmem:[%s14884_s12 + $0xb4c] ss:$16 sps:$4 sm:$0xff]  }
0x164d   : > { %9885 = vmatpush1.bf16.msra.mxu0 %v13841_v4  ;;  %9926 = vmatpush1.bf16.msra.mxu1 %v13844_v31  ;;  %v13919_v4 = vld [vmem:[%s14884_s12 + $0x8e8] ss:$16 sps:$4 sm:$0xff]   ;;  %v16401_v31 = vpack.c.bf16 %v8247_v30, %v8247_v30 }
0x164e   : > { %9886 = vmatprep.subr.bf16.mxu0 %v13849_v5  ;;  %9927 = vmatprep.subr.bf16.mxu1 %v13852_v8  ;;  %v16403_v5 = vpack.c.bf16 %v8249_v11, %v8249_v11  ;;  %v13922_v8 = vld [vmem:[%s14884_s12 + $0xae8] ss:$16 sps:$4 sm:$0xff]  }
0x164f   : > { %v14003_v30 = vld [vmem:[%s14884_s12 + $0x928] ss:$16 sps:$4 sm:$0xff]  }
0x1650   : > { %v14006_v11 = vld [vmem:[%s14884_s12 + $0xb28] ss:$16 sps:$4 sm:$0xff]  }
0x1651   : > { %9887 = vmatpush1.bf16.msra.mxu0 %v13847_v13  ;;  %9928 = vmatpush1.bf16.msra.mxu1 %v13850_v21  ;;  %v13927_v13 = vld [vmem:[%s14884_s12 + $0x8cc] ss:$16 sps:$4 sm:$0xff]  }
0x1652   : > { %9888 = vmatprep.subr.bf16.mxu0 %v13855_v43  ;;  %9929 = vmatprep.subr.bf16.mxu1 %v13858_v14  ;;  %v13930_v21 = vld [vmem:[%s14884_s12 + $0xacc] ss:$16 sps:$4 sm:$0xff]  }
0x1653   : > { %v13933_v43 = vld [vmem:[%s14884_s12 + $0x8ac] ss:$16 sps:$4 sm:$0xff]  }
0x1654   : > { %v13936_v14 = vld [vmem:[%s14884_s12 + $0xaac] ss:$16 sps:$4 sm:$0xff]  }
0x1655   : > { %9889 = vmatpush1.bf16.msra.mxu0 %v13853_v15  ;;  %9930 = vmatpush1.bf16.msra.mxu1 %v13856_v16  ;;  %v13931_v15 = vld [vmem:[%s14884_s12 + $0x8a8] ss:$16 sps:$4 sm:$0xff]   ;;  %v13939_v16 = vld [vmem:[%s14884_s12 + $0x88c] ss:$16 sps:$4 sm:$0xff]  }
0x1656   : > { %9890 = vmatprep.subr.bf16.mxu0 %v13861_v10  ;;  %9931 = vmatprep.subr.bf16.mxu1 %v13864_v12  ;;  %v13942_v10 = vld [vmem:[%s14884_s12 + $0xa8c] ss:$16 sps:$4 sm:$0xff]   ;;  %v13940_v12 = vld [vmem:[%s14884_s12 + $0xa88] ss:$16 sps:$4 sm:$0xff]  }
0x1659   : > { %9891 = vmatpush1.bf16.msra.mxu0 %v13859_v17  ;;  %9932 = vmatpush1.bf16.msra.mxu1 %v13862_v18  ;;  %v13945_v17 = vld [vmem:[%s14884_s12 + $0x86c] ss:$16 sps:$4 sm:$0xff]  }
0x165a   : > { %9892 = vmatprep.subr.bf16.mxu0 %v13867_v25  ;;  %9933 = vmatprep.subr.bf16.mxu1 %v13870_v34  ;;  %v13948_v18 = vld [vmem:[%s14884_s12 + $0xa6c] ss:$16 sps:$4 sm:$0xff]   ;;  %v13943_v25 = vld [vmem:[%s14884_s12 + $0x868] ss:$16 sps:$4 sm:$0xff]  }
0x165b   : > { %v13946_v34 = vld [vmem:[%s14884_s12 + $0xa68] ss:$16 sps:$4 sm:$0xff]  }
0x165d   : > { %9893 = vmatpush1.bf16.msra.mxu0 %v13865_v60  ;;  %9934 = vmatpush1.bf16.msra.mxu1 %v13868_v19  ;;  %v13951_v60 = vld [vmem:[%s14884_s12 + $0x84c] ss:$16 sps:$4 sm:$0xff]  }
0x165e   : > { %9894 = vmatprep.subr.bf16.mxu0 %v13873_v35  ;;  %9935 = vmatprep.subr.bf16.mxu1 %v13876_v27  ;;  %v13954_v19 = vld [vmem:[%s14884_s12 + $0xa4c] ss:$16 sps:$4 sm:$0xff]   ;;  %v13949_v35 = vld [vmem:[%s14884_s12 + $0x848] ss:$16 sps:$4 sm:$0xff]  }
0x165f   : > { %v13952_v27 = vld [vmem:[%s14884_s12 + $0xa48] ss:$16 sps:$4 sm:$0xff]  }
0x1661   : > { %9895 = vmatpush2.bf16.msra.mxu0 %v13871_v44  ;;  %9936 = vmatpush2.bf16.msra.mxu1 %v13874_v28  ;;  %v13957_v44 = vld [vmem:[%s14884_s12 + $0x82c] ss:$16 sps:$4 sm:$0xff]  }
0x1662   : > { %9896 = vmatprep.subr.bf16.mxu0 %v13879_v32  ;;  %9937 = vmatprep.subr.bf16.mxu1 %v13882_v33  ;;  %v13960_v28 = vld [vmem:[%s14884_s12 + $0xa2c] ss:$16 sps:$4 sm:$0xff]   ;;  %v13955_v32 = vld [vmem:[%s14884_s12 + $0x828] ss:$16 sps:$4 sm:$0xff]  }
0x1663   : > { %v13958_v33 = vld [vmem:[%s14884_s12 + $0xa28] ss:$16 sps:$4 sm:$0xff]  }
0x1665   : > { %9897 = vmatpush2.bf16.msra.mxu0 %v13877_v6  ;;  %9938 = vmatpush2.bf16.msra.mxu1 %v13880_v1  ;;  %v13963_v6 = vld [vmem:[%s14884_s12 + $0x80c] ss:$16 sps:$4 sm:$0xff]  }
0x1666   : > { %9898 = vmatprep.subr.bf16.mxu0 %v13885_v36  ;;  %9939 = vmatprep.subr.bf16.mxu1 %v13888_v7  ;;  %v13966_v1 = vld [vmem:[%s14884_s12 + $0xa0c] ss:$16 sps:$4 sm:$0xff]   ;;  %v13961_v36 = vld [vmem:[%s14884_s12 + $0x808] ss:$16 sps:$4 sm:$0xff]  }
0x1667   : > { %v13964_v7 = vld [vmem:[%s14884_s12 + $0xa08] ss:$16 sps:$4 sm:$0xff]  }
0x1669   : > { %9899 = vmatpush2.bf16.msra.mxu0 %v13883_v37  ;;  %9940 = vmatpush2.bf16.msra.mxu1 %v13886_v38  ;;  %v13969_v37 = vld [vmem:[%s14884_s12 + $0x9ec] ss:$16 sps:$4 sm:$0xff]  }
0x166a   : > { %9900 = vmatprep.subr.bf16.mxu0 %v13891_v53  ;;  %9941 = vmatprep.subr.bf16.mxu1 %v13894_v40  ;;  %v13972_v38 = vld [vmem:[%s14884_s12 + $0xbec] ss:$16 sps:$4 sm:$0xff]   ;;  %v13967_v53 = vld [vmem:[%s14884_s12 + $0x9e8] ss:$16 sps:$4 sm:$0xff]  }
0x166b   : > { %v13970_v40 = vld [vmem:[%s14884_s12 + $0xbe8] ss:$16 sps:$4 sm:$0xff]  }
0x166d   : > { %9901 = vmatpush2.bf16.msra.mxu0 %v13889_v41  ;;  %9942 = vmatpush2.bf16.msra.mxu1 %v13892_v51  ;;  %v13975_v41 = vld [vmem:[%s14884_s12 + $0x9cc] ss:$16 sps:$4 sm:$0xff]  }
0x166e   : > { %9902 = vmatprep.subr.bf16.mxu0 %v13897_v52  ;;  %9943 = vmatprep.subr.bf16.mxu1 %v13900_v42  ;;  %v13978_v51 = vld [vmem:[%s14884_s12 + $0xbcc] ss:$16 sps:$4 sm:$0xff]   ;;  %v13973_v52 = vld [vmem:[%s14884_s12 + $0x9c8] ss:$16 sps:$4 sm:$0xff]  }
0x166f   : > { %v13976_v42 = vld [vmem:[%s14884_s12 + $0xbc8] ss:$16 sps:$4 sm:$0xff]  }
0x1671   : > { %9903 = vmatpush2.bf16.msra.mxu0 %v13895_v50  ;;  %9944 = vmatpush2.bf16.msra.mxu1 %v13898_v20  ;;  %v13981_v50 = vld [vmem:[%s14884_s12 + $0x9ac] ss:$16 sps:$4 sm:$0xff]  }
0x1672   : > { %9904 = vmatprep.subr.bf16.mxu0 %v13903_v54  ;;  %9945 = vmatprep.subr.bf16.mxu1 %v13906_v47  ;;  %v13984_v20 = vld [vmem:[%s14884_s12 + $0xbac] ss:$16 sps:$4 sm:$0xff]   ;;  %v13979_v54 = vld [vmem:[%s14884_s12 + $0x9a8] ss:$16 sps:$4 sm:$0xff]  }
0x1673   : > { %v13982_v47 = vld [vmem:[%s14884_s12 + $0xba8] ss:$16 sps:$4 sm:$0xff]  }
0x1675   : > { %9905 = vmatpush2.bf16.msra.mxu0 %v13901_v49  ;;  %9946 = vmatpush2.bf16.msra.mxu1 %v13904_v45  ;;  %v13987_v49 = vld [vmem:[%s14884_s12 + $0x98c] ss:$16 sps:$4 sm:$0xff]  }
0x1676   : > { %9906 = vmatprep.subr.bf16.mxu0 %v13909_v22  ;;  %9947 = vmatprep.subr.bf16.mxu1 %v13912_v23  ;;  %v13990_v45 = vld [vmem:[%s14884_s12 + $0xb8c] ss:$16 sps:$4 sm:$0xff]   ;;  %v13985_v22 = vld [vmem:[%s14884_s12 + $0x988] ss:$16 sps:$4 sm:$0xff]  }
0x1677   : > { %v13988_v23 = vld [vmem:[%s14884_s12 + $0xb88] ss:$16 sps:$4 sm:$0xff]  }
0x1679   : > { %9907 = vmatpush2.bf16.msra.mxu0 %v13907_v57  ;;  %9948 = vmatpush2.bf16.msra.mxu1 %v13910_v58  ;;  %v13993_v57 = vld [vmem:[%s14884_s12 + $0x96c] ss:$16 sps:$4 sm:$0xff]  }
0x167a   : > { %9908 = vmatprep.subr.bf16.mxu0 %v13915_v59  ;;  %9949 = vmatprep.subr.bf16.mxu1 %v13918_v61  ;;  %v13996_v58 = vld [vmem:[%s14884_s12 + $0xb6c] ss:$16 sps:$4 sm:$0xff]   ;;  %v13991_v59 = vld [vmem:[%s14884_s12 + $0x968] ss:$16 sps:$4 sm:$0xff]  }
0x167b   : > { %v13994_v61 = vld [vmem:[%s14884_s12 + $0xb68] ss:$16 sps:$4 sm:$0xff]  }
0x167d   : > { %9909 = vmatpush2.bf16.msra.mxu0 %v13913_v2  ;;  %9950 = vmatpush2.bf16.msra.mxu1 %v13916_v0  ;;  %v13997_v2 = vld [vmem:[%s14884_s12 + $0x948] ss:$16 sps:$4 sm:$0xff]  }
0x167e   : > { %9960 = vmatprep.subr.bf16.mxu0 %v13921_v3  ;;  %10001 = vmatprep.subr.bf16.mxu1 %v13924_v29  ;;  %v14000_v0 = vld [vmem:[%s14884_s12 + $0xb48] ss:$16 sps:$4 sm:$0xff]   ;;  %v14005_v3 = vld [vmem:[%s14884_s12 + $0x92c] ss:$16 sps:$4 sm:$0xff]  }
0x167f   : > { %v14008_v29 = vld [vmem:[%s14884_s12 + $0xb2c] ss:$16 sps:$4 sm:$0xff]  }
0x1680   : > { %9911 = vmatmul.mubr.bf16.vlgmr.msra.gmra.mxu0 %v16401_v31  ;;  %9952 = vmatmul.mubr.bf16.vlgmr.msra.gmra.mxu1 %v16403_v5 }
0x1681   : > { %9961 = vmatpush1.bf16.msra.mxu0 %v13919_v4  ;;  %9992 = vmatprep.mubr.bf16.mxu0 %v16312_v24  ;;  %v13934_v24 = vld [vmem:[%s14884_s12 + $0xaa8] ss:$16 sps:$4 sm:$0xff]   ;;  %v14011_v4 = vld [vmem:[%s14884_s12 + $0x90c] ss:$16 sps:$4 sm:$0xff]  }
0x1682   : > { %10002 = vmatpush1.bf16.msra.mxu1 %v13922_v8  ;;  %10033 = vmatprep.mubr.bf16.mxu1 %v16314_v46  ;;  %v13937_v46 = vld [vmem:[%s14884_s12 + $0x888] ss:$16 sps:$4 sm:$0xff]   ;;  %v14014_v8 = vld [vmem:[%s14884_s12 + $0xb0c] ss:$16 sps:$4 sm:$0xff]  }
0x1683   : > { %9962 = vmatprep.subr.bf16.mxu0 %v13927_v13  ;;  %10003 = vmatprep.subr.bf16.mxu1 %v13930_v21  ;;  %v14009_v13 = vld [vmem:[%s14884_s12 + $0x908] ss:$16 sps:$4 sm:$0xff]  }
0x1684   : > { %v14012_v21 = vld [vmem:[%s14884_s12 + $0xb08] ss:$16 sps:$4 sm:$0xff]  }
0x1685   : > { %9963 = vmatpush1.bf16.msra.mxu0 %v13925_v48  ;;  %v14017_v48 = vld [vmem:[%s14884_s12 + $0xcec] ss:$16 sps:$4 sm:$0xff]  }
0x1686   : > { %10004 = vmatpush1.bf16.msra.mxu1 %v13928_v39  ;;  %9964 = vmatprep.subr.bf16.mxu0 %v13933_v43  ;;  %v14020_v39 = vld [vmem:[%s14884_s12 + $0xeec] ss:$16 sps:$4 sm:$0xff]   ;;  %v14015_v43 = vld [vmem:[%s14884_s12 + $0xce8] ss:$16 sps:$4 sm:$0xff]  }
0x1687   : > { %10005 = vmatprep.subr.bf16.mxu1 %v13936_v14  ;;  %v14018_v14 = vld [vmem:[%s14884_s12 + $0xee8] ss:$16 sps:$4 sm:$0xff]  }
0x1689   : > { %9965 = vmatpush1.bf16.msra.mxu0 %v13931_v15  ;;  %v14023_v15 = vld [vmem:[%s14884_s12 + $0xccc] ss:$16 sps:$4 sm:$0xff]  }
0x168a   : > { %10006 = vmatpush1.bf16.msra.mxu1 %v13934_v24  ;;  %9966 = vmatprep.subr.bf16.mxu0 %v13939_v16  ;;  %v14026_v24 = vld [vmem:[%s14884_s12 + $0xecc] ss:$16 sps:$4 sm:$0xff]   ;;  %v14021_v16 = vld [vmem:[%s14884_s12 + $0xcc8] ss:$16 sps:$4 sm:$0xff]  }
0x168b   : > { %10007 = vmatprep.subr.bf16.mxu1 %v13942_v10  ;;  %v14024_v10 = vld [vmem:[%s14884_s12 + $0xec8] ss:$16 sps:$4 sm:$0xff]  }
0x168d   : > { %9967 = vmatpush1.bf16.msra.mxu0 %v13937_v46  ;;  %v14029_v46 = vld [vmem:[%s14884_s12 + $0xcac] ss:$16 sps:$4 sm:$0xff]  }
0x168e   : > { %10008 = vmatpush1.bf16.msra.mxu1 %v13940_v12  ;;  %9968 = vmatprep.subr.bf16.mxu0 %v13945_v17  ;;  %v14030_v12 = vld [vmem:[%s14884_s12 + $0xea8] ss:$16 sps:$4 sm:$0xff]   ;;  %v14038_v17 = vld [vmem:[%s14884_s12 + $0xe8c] ss:$16 sps:$4 sm:$0xff]  }
0x168f   : > { %10009 = vmatprep.subr.bf16.mxu1 %v13948_v18  ;;  %v14036_v18 = vld [vmem:[%s14884_s12 + $0xe88] ss:$16 sps:$4 sm:$0xff]  }
0x1691   : > { %9969 = vmatpush1.bf16.msra.mxu0 %v13943_v25  ;;  %v14041_v25 = vld [vmem:[%s14884_s12 + $0xc6c] ss:$16 sps:$4 sm:$0xff]  }
0x1692   : > { %10010 = vmatpush1.bf16.msra.mxu1 %v13946_v34  ;;  %9970 = vmatprep.subr.bf16.mxu0 %v13951_v60  ;;  %v14044_v34 = vld [vmem:[%s14884_s12 + $0xe6c] ss:$16 sps:$4 sm:$0xff]   ;;  %v14039_v60 = vld [vmem:[%s14884_s12 + $0xc68] ss:$16 sps:$4 sm:$0xff]  }
0x1693   : > { %10011 = vmatprep.subr.bf16.mxu1 %v13954_v19  ;;  %v14042_v19 = vld [vmem:[%s14884_s12 + $0xe68] ss:$16 sps:$4 sm:$0xff]  }
0x1695   : > { %9971 = vmatpush1.bf16.msra.mxu0 %v13949_v35  ;;  %v14047_v35 = vld [vmem:[%s14884_s12 + $0xc4c] ss:$16 sps:$4 sm:$0xff]  }
0x1696   : > { %10012 = vmatpush1.bf16.msra.mxu1 %v13952_v27  ;;  %9972 = vmatprep.subr.bf16.mxu0 %v13957_v44  ;;  %v14050_v27 = vld [vmem:[%s14884_s12 + $0xe4c] ss:$16 sps:$4 sm:$0xff]   ;;  %v14045_v44 = vld [vmem:[%s14884_s12 + $0xc48] ss:$16 sps:$4 sm:$0xff]  }
0x1697   : > { %10013 = vmatprep.subr.bf16.mxu1 %v13960_v28  ;;  %v14048_v28 = vld [vmem:[%s14884_s12 + $0xe48] ss:$16 sps:$4 sm:$0xff]  }
0x1699   : > { %9973 = vmatpush1.bf16.msra.mxu0 %v13955_v32  ;;  %v14053_v32 = vld [vmem:[%s14884_s12 + $0xc2c] ss:$16 sps:$4 sm:$0xff]  }
0x169a   : > { %10014 = vmatpush1.bf16.msra.mxu1 %v13958_v33  ;;  %9974 = vmatprep.subr.bf16.mxu0 %v13963_v6  ;;  %v14056_v33 = vld [vmem:[%s14884_s12 + $0xe2c] ss:$16 sps:$4 sm:$0xff]   ;;  %v14051_v6 = vld [vmem:[%s14884_s12 + $0xc28] ss:$16 sps:$4 sm:$0xff]  }
0x169b   : > { %10015 = vmatprep.subr.bf16.mxu1 %v13966_v1  ;;  %v14054_v1 = vld [vmem:[%s14884_s12 + $0xe28] ss:$16 sps:$4 sm:$0xff]  }
0x169d   : > { %9975 = vmatpush1.bf16.msra.mxu0 %v13961_v36  ;;  %v14059_v36 = vld [vmem:[%s14884_s12 + $0xc0c] ss:$16 sps:$4 sm:$0xff]  }
0x169e   : > { %10016 = vmatpush1.bf16.msra.mxu1 %v13964_v7  ;;  %9976 = vmatprep.subr.bf16.mxu0 %v13969_v37  ;;  %v14062_v7 = vld [vmem:[%s14884_s12 + $0xe0c] ss:$16 sps:$4 sm:$0xff]   ;;  %v14057_v37 = vld [vmem:[%s14884_s12 + $0xc08] ss:$16 sps:$4 sm:$0xff]  }
0x169f   : > { %10017 = vmatprep.subr.bf16.mxu1 %v13972_v38  ;;  %v14060_v38 = vld [vmem:[%s14884_s12 + $0xe08] ss:$16 sps:$4 sm:$0xff]  }
0x16a1   : > { %9977 = vmatpush2.bf16.msra.mxu0 %v13967_v53  ;;  %v14065_v53 = vld [vmem:[%s14884_s12 + $0xdec] ss:$16 sps:$4 sm:$0xff]  }
0x16a2   : > { %10018 = vmatpush2.bf16.msra.mxu1 %v13970_v40  ;;  %9978 = vmatprep.subr.bf16.mxu0 %v13975_v41  ;;  %v14068_v40 = vld [vmem:[%s14884_s12 + $0xfec] ss:$16 sps:$4 sm:$0xff]   ;;  %v14063_v41 = vld [vmem:[%s14884_s12 + $0xde8] ss:$16 sps:$4 sm:$0xff]  }
0x16a3   : > { %10019 = vmatprep.subr.bf16.mxu1 %v13978_v51  ;;  %v14066_v51 = vld [vmem:[%s14884_s12 + $0xfe8] ss:$16 sps:$4 sm:$0xff]  }
0x16a5   : > { %9979 = vmatpush2.bf16.msra.mxu0 %v13973_v52  ;;  %v14071_v52 = vld [vmem:[%s14884_s12 + $0xdcc] ss:$16 sps:$4 sm:$0xff]  }
0x16a6   : > { %10020 = vmatpush2.bf16.msra.mxu1 %v13976_v42  ;;  %9980 = vmatprep.subr.bf16.mxu0 %v13981_v50  ;;  %v14074_v42 = vld [vmem:[%s14884_s12 + $0xfcc] ss:$16 sps:$4 sm:$0xff]   ;;  %v14069_v50 = vld [vmem:[%s14884_s12 + $0xdc8] ss:$16 sps:$4 sm:$0xff]  }
0x16a7   : > { %10021 = vmatprep.subr.bf16.mxu1 %v13984_v20  ;;  %v14072_v20 = vld [vmem:[%s14884_s12 + $0xfc8] ss:$16 sps:$4 sm:$0xff]  }
0x16a9   : > { %9981 = vmatpush2.bf16.msra.mxu0 %v13979_v54  ;;  %v14077_v54 = vld [vmem:[%s14884_s12 + $0xdac] ss:$16 sps:$4 sm:$0xff]  }
0x16aa   : > { %10022 = vmatpush2.bf16.msra.mxu1 %v13982_v47  ;;  %9982 = vmatprep.subr.bf16.mxu0 %v13987_v49  ;;  %v14080_v47 = vld [vmem:[%s14884_s12 + $0xfac] ss:$16 sps:$4 sm:$0xff]   ;;  %v14075_v49 = vld [vmem:[%s14884_s12 + $0xda8] ss:$16 sps:$4 sm:$0xff]  }
0x16ab   : > { %10023 = vmatprep.subr.bf16.mxu1 %v13990_v45  ;;  %v14078_v45 = vld [vmem:[%s14884_s12 + $0xfa8] ss:$16 sps:$4 sm:$0xff]  }
0x16ad   : > { %9983 = vmatpush2.bf16.msra.mxu0 %v13985_v22  ;;  %v14083_v22 = vld [vmem:[%s14884_s12 + $0xd8c] ss:$16 sps:$4 sm:$0xff]  }
0x16ae   : > { %10024 = vmatpush2.bf16.msra.mxu1 %v13988_v23  ;;  %9984 = vmatprep.subr.bf16.mxu0 %v13993_v57  ;;  %v14086_v23 = vld [vmem:[%s14884_s12 + $0xf8c] ss:$16 sps:$4 sm:$0xff]   ;;  %v14081_v57 = vld [vmem:[%s14884_s12 + $0xd88] ss:$16 sps:$4 sm:$0xff]  }
0x16af   : > { %10025 = vmatprep.subr.bf16.mxu1 %v13996_v58  ;;  %v14084_v58 = vld [vmem:[%s14884_s12 + $0xf88] ss:$16 sps:$4 sm:$0xff]  }
0x16b1   : > { %9985 = vmatpush2.bf16.msra.mxu0 %v13991_v59  ;;  %v14089_v59 = vld [vmem:[%s14884_s12 + $0xd6c] ss:$16 sps:$4 sm:$0xff]  }
0x16b2   : > { %10026 = vmatpush2.bf16.msra.mxu1 %v13994_v61  ;;  %9986 = vmatprep.subr.bf16.mxu0 %v13999_v62  ;;  %v14092_v61 = vld [vmem:[%s14884_s12 + $0xf6c] ss:$16 sps:$4 sm:$0xff]   ;;  %v14087_v62 = vld [vmem:[%s14884_s12 + $0xd68] ss:$16 sps:$4 sm:$0xff]  }
0x16b3   : > { %10027 = vmatprep.subr.bf16.mxu1 %v14002_v26  ;;  %v14090_v26 = vld [vmem:[%s14884_s12 + $0xf68] ss:$16 sps:$4 sm:$0xff]  }
0x16b5   : > { %9987 = vmatpush2.bf16.msra.mxu0 %v13997_v2  ;;  %v14095_v2 = vld [vmem:[%s14884_s12 + $0xd4c] ss:$16 sps:$4 sm:$0xff]  }
0x16b6   : > { %10028 = vmatpush2.bf16.msra.mxu1 %v14000_v0  ;;  %9988 = vmatprep.subr.bf16.mxu0 %v14005_v3  ;;  %v14098_v0 = vld [vmem:[%s14884_s12 + $0xf4c] ss:$16 sps:$4 sm:$0xff]   ;;  %v14093_v3 = vld [vmem:[%s14884_s12 + $0xd48] ss:$16 sps:$4 sm:$0xff]  }
0x16b7   : > { %10029 = vmatprep.subr.bf16.mxu1 %v14008_v29  ;;  %v14096_v29 = vld [vmem:[%s14884_s12 + $0xf48] ss:$16 sps:$4 sm:$0xff]  }
0x16b9   : > { %9989 = vmatpush2.bf16.msra.mxu0 %v14003_v30  ;;  %v14101_v30 = vld [vmem:[%s14884_s12 + $0xd2c] ss:$16 sps:$4 sm:$0xff]  }
0x16ba   : > { %10030 = vmatpush2.bf16.msra.mxu1 %v14006_v11  ;;  %9990 = vmatprep.subr.bf16.mxu0 %v14011_v4  ;;  %v14104_v11 = vld [vmem:[%s14884_s12 + $0xf2c] ss:$16 sps:$4 sm:$0xff]   ;;  %v14099_v4 = vld [vmem:[%s14884_s12 + $0xd28] ss:$16 sps:$4 sm:$0xff]  }
0x16bb   : > { %10031 = vmatprep.subr.bf16.mxu1 %v14014_v8  ;;  %v14102_v8 = vld [vmem:[%s14884_s12 + $0xf28] ss:$16 sps:$4 sm:$0xff]  }
0x16bd   : > { %9991 = vmatpush2.bf16.msra.mxu0 %v14009_v13  ;;  %v14107_v13 = vld [vmem:[%s14884_s12 + $0xd0c] ss:$16 sps:$4 sm:$0xff]  }
0x16be   : > { %10032 = vmatpush2.bf16.msra.mxu1 %v14012_v21  ;;  %10042 = vmatprep.subr.bf16.mxu0 %v14017_v48  ;;  %v14110_v21 = vld [vmem:[%s14884_s12 + $0xf0c] ss:$16 sps:$4 sm:$0xff]   ;;  %v14105_v48 = vld [vmem:[%s14884_s12 + $0xd08] ss:$16 sps:$4 sm:$0xff]  }
0x16bf   : > { %10083 = vmatprep.subr.bf16.mxu1 %v14020_v39  ;;  %v14108_v39 = vld [vmem:[%s14884_s12 + $0xf08] ss:$16 sps:$4 sm:$0xff]  }
0x16c0   : > { %9993 = vmatmul.mubr.bf16.vlgmr.msra.gmra.mxu0 %v16318_v55  ;;  %v14032_v55 = vld [vmem:[%s14884_s12 + $0xeac] ss:$16 sps:$4 sm:$0xff]  }
0x16c1   : > { %10034 = vmatmul.mubr.bf16.vlgmr.msra.gmra.mxu1 %v16320_v56  ;;  %10043 = vmatpush1.bf16.msra.mxu0 %v14015_v43  ;;  %v14027_v56 = vld [vmem:[%s14884_s12 + $0xca8] ss:$16 sps:$4 sm:$0xff]  }
0x16c2   : > { %10074 = vmatprep.mubr.bf16.mxu0 %v16328_v9  ;;  %10084 = vmatpush1.bf16.msra.mxu1 %v14018_v14  ;;  %v14035_v9 = vld [vmem:[%s14884_s12 + $0xc8c] ss:$16 sps:$4 sm:$0xff]  }
0x16c3   : > { %10115 = vmatprep.mubr.bf16.mxu1 %v16333_v63  ;;  %10044 = vmatprep.subr.bf16.mxu0 %v14023_v15  ;;  %v14033_v63 = vld [vmem:[%s14884_s12 + $0xc88] ss:$16 sps:$4 sm:$0xff]  }
0x16c4   : > { %10085 = vmatprep.subr.bf16.mxu1 %v14026_v24 }
0x16c5   : > { %10045 = vmatpush1.bf16.msra.mxu0 %v14021_v16 }
0x16c6   : > { %10086 = vmatpush1.bf16.msra.mxu1 %v14024_v10  ;;  %10046 = vmatprep.subr.bf16.mxu0 %v14029_v46 }
0x16c7   : > { %10087 = vmatprep.subr.bf16.mxu1 %v14032_v55 }
0x16c9   : > { %10047 = vmatpush1.bf16.msra.mxu0 %v14027_v56 }
0x16ca   : > { %10088 = vmatpush1.bf16.msra.mxu1 %v14030_v12  ;;  %10048 = vmatprep.subr.bf16.mxu0 %v14035_v9 }
0x16cb   : > { %10089 = vmatprep.subr.bf16.mxu1 %v14038_v17 }
0x16cd   : > { %10049 = vmatpush1.bf16.msra.mxu0 %v14033_v63 }
0x16ce   : > { %10090 = vmatpush1.bf16.msra.mxu1 %v14036_v18  ;;  %10050 = vmatprep.subr.bf16.mxu0 %v14041_v25 }
0x16cf   : > { %10091 = vmatprep.subr.bf16.mxu1 %v14044_v34 }
0x16d1   : > { %10051 = vmatpush1.bf16.msra.mxu0 %v14039_v60 }
0x16d2   : > { %10092 = vmatpush1.bf16.msra.mxu1 %v14042_v19  ;;  %10052 = vmatprep.subr.bf16.mxu0 %v14047_v35 }
0x16d3   : > { %10093 = vmatprep.subr.bf16.mxu1 %v14050_v27 }
0x16d5   : > { %10053 = vmatpush1.bf16.msra.mxu0 %v14045_v44 }
0x16d6   : > { %10094 = vmatpush1.bf16.msra.mxu1 %v14048_v28  ;;  %10054 = vmatprep.subr.bf16.mxu0 %v14053_v32 }
0x16d7   : > { %10095 = vmatprep.subr.bf16.mxu1 %v14056_v33 }
0x16d9   : > { %10055 = vmatpush1.bf16.msra.mxu0 %v14051_v6 }
0x16da   : > { %10096 = vmatpush1.bf16.msra.mxu1 %v14054_v1  ;;  %10056 = vmatprep.subr.bf16.mxu0 %v14059_v36 }
0x16db   : > { %10097 = vmatprep.subr.bf16.mxu1 %v14062_v7 }
0x16dd   : > { %10057 = vmatpush1.bf16.msra.mxu0 %v14057_v37 }
0x16de   : > { %10098 = vmatpush1.bf16.msra.mxu1 %v14060_v38  ;;  %10058 = vmatprep.subr.bf16.mxu0 %v14065_v53 }
0x16df   : > { %10099 = vmatprep.subr.bf16.mxu1 %v14068_v40 }
0x16e1   : > { %10059 = vmatpush2.bf16.msra.mxu0 %v14063_v41 }
0x16e2   : > { %10100 = vmatpush2.bf16.msra.mxu1 %v14066_v51  ;;  %10060 = vmatprep.subr.bf16.mxu0 %v14071_v52 }
0x16e3   : > { %10101 = vmatprep.subr.bf16.mxu1 %v14074_v42 }
0x16e5   : > { %10061 = vmatpush2.bf16.msra.mxu0 %v14069_v50 }
0x16e6   : > { %10102 = vmatpush2.bf16.msra.mxu1 %v14072_v20  ;;  %10062 = vmatprep.subr.bf16.mxu0 %v14077_v54 }
0x16e7   : > { %10103 = vmatprep.subr.bf16.mxu1 %v14080_v47 }
0x16e9   : > { %10063 = vmatpush2.bf16.msra.mxu0 %v14075_v49 }
0x16ea   : > { %10104 = vmatpush2.bf16.msra.mxu1 %v14078_v45  ;;  %10064 = vmatprep.subr.bf16.mxu0 %v14083_v22 }
0x16eb   : > { %10105 = vmatprep.subr.bf16.mxu1 %v14086_v23 }
0x16ed   : > { %10065 = vmatpush2.bf16.msra.mxu0 %v14081_v57 }
0x16ee   : > { %10106 = vmatpush2.bf16.msra.mxu1 %v14084_v58  ;;  %10066 = vmatprep.subr.bf16.mxu0 %v14089_v59 }
0x16ef   : > { %10107 = vmatprep.subr.bf16.mxu1 %v14092_v61 }
0x16f1   : > { %10067 = vmatpush2.bf16.msra.mxu0 %v14087_v62 }
0x16f2   : > { %10108 = vmatpush2.bf16.msra.mxu1 %v14090_v26  ;;  %10068 = vmatprep.subr.bf16.mxu0 %v14095_v2 }
0x16f3   : > { %10109 = vmatprep.subr.bf16.mxu1 %v14098_v0 }
0x16f5   : > { %10069 = vmatpush2.bf16.msra.mxu0 %v14093_v3 }
0x16f6   : > { %10110 = vmatpush2.bf16.msra.mxu1 %v14096_v29  ;;  %10070 = vmatprep.subr.bf16.mxu0 %v14101_v30 }
0x16f7   : > { %10111 = vmatprep.subr.bf16.mxu1 %v14104_v11 }
0x16f9   : > { %10071 = vmatpush2.bf16.msra.mxu0 %v14099_v4 }
0x16fa   : > { %10112 = vmatpush2.bf16.msra.mxu1 %v14102_v8  ;;  %10072 = vmatprep.subr.bf16.mxu0 %v14107_v13 }
0x16fb   : > { %10113 = vmatprep.subr.bf16.mxu1 %v14110_v21 }
0x16fd   : > { %10073 = vmatpush2.bf16.msra.mxu0 %v14105_v48 }
0x16fe   : > { %10114 = vmatpush2.bf16.msra.mxu1 %v14108_v39 }
0x1700   : > { %10075 = vmatmul.mubr.bf16.vlgmr.msra.gmra.mxu0 %v16401_v31  ;;  %v9830_v43 = vpop.f32.mrf.mxu0  ;;  %v9871_v14 = vpop.f32.mrf.mxu1 }
0x1701   : > { %10116 = vmatmul.mubr.bf16.vlgmr.msra.gmra.mxu1 %v16403_v5  ;;  %v9872_v15 = vadd.f32 %v9871_v14, %v9830_v43 }
0x1702   : > { %v9832_v24 = vpop.f32.mrf.mxu0  ;;  %v9873_v16 = vpop.f32.mrf.mxu1 }
0x1703   : > { %v9874_v10 = vadd.f32 %v9873_v16, %v9832_v24 }
0x1704   : > { %v9834_v46 = vpop.f32.mrf.mxu0  ;;  %v9875_v55 = vpop.f32.mrf.mxu1 }
0x1706   : > { %v9835_v56 = vpop.f32.mrf.mxu0  ;;  %v9876_v12 = vpop.f32.mrf.mxu1 }
0x1740   : > { %v9912_v9 = vpop.f32.mrf.mxu0  ;;  %v9953_v17 = vpop.f32.mrf.mxu1 }
0x1741   : > { %v9913_v63 = vadd.f32 %v9912_v9, %v9872_v15  ;;  %v14111_v9 = vld [vmem:[%s14887_s13 + $0x270] ss:$8 sps:$4 sm:$0xff]  }
0x1742   : > { %v9914_v18 = vpop.f32.mrf.mxu0  ;;  %v9955_v25 = vpop.f32.mrf.mxu1 }
0x1743   : > { %v9954_v34 = vadd.f32 %v9953_v17, %v9913_v63  ;;  %v9915_v60 = vadd.f32 %v9914_v18, %v9874_v10  ;;  %v14113_v17 = vld [vmem:[%s14887_s13 + $0x274] ss:$8 sps:$4 sm:$0xff]   ;;  %v14114_v63 = vld [vmem:[%s14887_s13 + $0x370] ss:$8 sps:$4 sm:$0xff]  }
0x1744   : > { %v9916_v31 = vpop.f32.mrf.mxu0  ;;  %v9957_v19 = vpop.f32.mrf.mxu1  ;;  %v14116_v18 = vld [vmem:[%s14887_s13 + $0x374] ss:$8 sps:$4 sm:$0xff]   ;;  %10586 = vmatprep.subr.bf16.mxu0 %v14113_v17  ;;  %v14192_v17 = vld [vmem:[%s14887_s13 + $0x3a0] ss:$8 sps:$4 sm:$0xff]  }
0x1745   : > { %v9956_v35 = vadd.f32 %v9955_v25, %v9915_v60  ;;  %v10127_v42 = vsel %vm601_vm1, %v9954_v34, 0.0  ;;  %10627 = vmatprep.subr.bf16.mxu1 %v14116_v18  ;;  %10587 = vmatpush1.bf16.msra.mxu0 %v14111_v9  ;;  %v14117_v25 = vld [vmem:[%s14887_s13 + $0x260] ss:$8 sps:$4 sm:$0xff]   ;;  %v14122_v31 = vld [vmem:[%s14887_s13 + $0x364] ss:$8 sps:$4 sm:$0xff]  }
0x1746   : > { %v9917_v27 = vpop.f32.mrf.mxu0  ;;  %v9958_v5 = vpop.f32.mrf.mxu1  ;;  %10628 = vmatpush1.bf16.msra.mxu1 %v14114_v63  ;;  %v14120_v60 = vld [vmem:[%s14887_s13 + $0x360] ss:$8 sps:$4 sm:$0xff]   ;;  %v14125_v19 = vld [vmem:[%s14887_s13 + $0x254] ss:$8 sps:$4 sm:$0xff]   ;;  %v14195_v18 = vld [vmem:[%s14887_s13 + $0x290] ss:$8 sps:$4 sm:$0xff]  }
0x1747   : > { %v10128_v53 = vsel %vm601_vm1, %v9956_v35, 0.0  ;;  %10629 = vmatprep.subr.bf16.mxu1 %v14122_v31  ;;  %v14123_v27 = vld [vmem:[%s14887_s13 + $0x250] ss:$8 sps:$4 sm:$0xff]   ;;  %v14189_v9 = vld [vmem:[%s14887_s13 + $0x2a0] ss:$8 sps:$4 sm:$0xff]  }
0x1748   : > { %v10129_v47 = vadd.f32 %v10128_v53, %v10127_v42  ;;  %v14126_v5 = vld [vmem:[%s14887_s13 + $0x350] ss:$8 sps:$4 sm:$0xff]   ;;  %v14141_v53 = vld [vmem:[%s14887_s13 + $0x220] ss:$8 sps:$4 sm:$0xff]   ;;  %v14203_v31 = vld [vmem:[%s14887_s13 + $0x284] ss:$8 sps:$4 sm:$0xff]  }
0x1749   : > { %v14150_v42 = vld [vmem:[%s14887_s13 + $0x310] ss:$8 sps:$4 sm:$0xff]  }
0x174a   : > { %10630 = vmatpush1.bf16.msra.mxu1 %v14120_v60  ;;  %v14200_v60 = vld [vmem:[%s14887_s13 + $0x394] ss:$8 sps:$4 sm:$0xff]  }
0x1780   : > { %v9994_v44 = vpop.f32.mrf.mxu0 }
0x1781   : > { %v10035_v28 = vpop.f32.mrf.mxu1 }
0x1782   : > { %v9996_v32 = vpop.f32.mrf.mxu0  ;;  %v10036_v37 = vadd.f32 %v10035_v28, %v9994_v44  ;;  %v14131_v44 = vld [vmem:[%s14887_s13 + $0x244] ss:$8 sps:$4 sm:$0xff]  }
0x1783   : > { %v10037_v33 = vpop.f32.mrf.mxu1  ;;  %v14134_v28 = vld [vmem:[%s14887_s13 + $0x344] ss:$8 sps:$4 sm:$0xff]  }
0x1784   : > { %v9998_v6 = vpop.f32.mrf.mxu0  ;;  %v10038_v40 = vadd.f32 %v10037_v33, %v9996_v32  ;;  %v14129_v32 = vld [vmem:[%s14887_s13 + $0x240] ss:$8 sps:$4 sm:$0xff]  }
0x1785   : > { %v10039_v1 = vpop.f32.mrf.mxu1  ;;  %v14132_v33 = vld [vmem:[%s14887_s13 + $0x340] ss:$8 sps:$4 sm:$0xff]   ;;  %v14137_v6 = vld [vmem:[%s14887_s13 + $0x234] ss:$8 sps:$4 sm:$0xff]  }
0x1786   : > { %v9999_v36 = vpop.f32.mrf.mxu0  ;;  %v14140_v1 = vld [vmem:[%s14887_s13 + $0x334] ss:$8 sps:$4 sm:$0xff]  }
0x1787   : > { %v10040_v7 = vpop.f32.mrf.mxu1  ;;  %v14135_v36 = vld [vmem:[%s14887_s13 + $0x230] ss:$8 sps:$4 sm:$0xff]  }
0x1788   : > { %v14138_v7 = vld [vmem:[%s14887_s13 + $0x330] ss:$8 sps:$4 sm:$0xff]  }
0x17c0   : > { %v10076_v38 = vpop.f32.mrf.mxu0 }
0x17c1   : > { %v10077_v41 = vadd.f32 %v10076_v38, %v10036_v37  ;;  %v10117_v51 = vpop.f32.mrf.mxu1  ;;  %v14143_v37 = vld [vmem:[%s14887_s13 + $0x224] ss:$8 sps:$4 sm:$0xff]  }
0x17c2   : > { %v10078_v52 = vpop.f32.mrf.mxu0  ;;  %v14146_v38 = vld [vmem:[%s14887_s13 + $0x324] ss:$8 sps:$4 sm:$0xff]  }
0x17c3   : > { %v10118_v50 = vadd.f32 %v10117_v51, %v10077_v41  ;;  %v10079_v20 = vadd.f32 %v10078_v52, %v10038_v40  ;;  %v10119_v54 = vpop.f32.mrf.mxu1  ;;  %v14144_v40 = vld [vmem:[%s14887_s13 + $0x320] ss:$8 sps:$4 sm:$0xff]   ;;  %v14149_v41 = vld [vmem:[%s14887_s13 + $0x214] ss:$8 sps:$4 sm:$0xff]   ;;  %v14147_v52 = vld [vmem:[%s14887_s13 + $0x210] ss:$8 sps:$4 sm:$0xff]  }
0x17c4   : > { %v10080_v49 = vpop.f32.mrf.mxu0  ;;  %v14152_v51 = vld [vmem:[%s14887_s13 + $0x314] ss:$8 sps:$4 sm:$0xff]  }
0x17c5   : > { %v10130_v45 = vsel %vm601_vm1, %v10118_v50, 0.0  ;;  %v10120_v22 = vadd.f32 %v10119_v54, %v10079_v20  ;;  %v10121_v23 = vpop.f32.mrf.mxu1  ;;  %v14158_v20 = vld [vmem:[%s14887_s13 + $0x304] ss:$8 sps:$4 sm:$0xff]   ;;  %v14153_v54 = vld [vmem:[%s14887_s13 + $0x200] ss:$8 sps:$4 sm:$0xff]  }
0x17c6   : > { %v10081_v57 = vpop.f32.mrf.mxu0  ;;  %v10131_v58 = vadd.f32 %v10130_v45, %v10129_v47  ;;  %v14156_v47 = vld [vmem:[%s14887_s13 + $0x300] ss:$8 sps:$4 sm:$0xff]   ;;  %v14161_v49 = vld [vmem:[%s14887_s13 + $0x2f4] ss:$8 sps:$4 sm:$0xff]   ;;  %v14162_v23 = vld [vmem:[%s14887_s13 + $0x3f0] ss:$8 sps:$4 sm:$0xff]  }
0x17c7   : > { %v10122_v59 = vpop.f32.mrf.mxu1  ;;  %v10132_v61 = vsel %vm601_vm1, %v10120_v22, 0.0  ;;  %v14164_v45 = vld [vmem:[%s14887_s13 + $0x3f4] ss:$8 sps:$4 sm:$0xff]   ;;  %v14167_v57 = vld [vmem:[%s14887_s13 + $0x2e4] ss:$8 sps:$4 sm:$0xff]  }
0x17c8   : > { %v10133_v62 = vadd.f32 %v10132_v61, %v10131_v58  ;;  %v14170_v58 = vld [vmem:[%s14887_s13 + $0x3e4] ss:$8 sps:$4 sm:$0xff]   ;;  %v14165_v59 = vld [vmem:[%s14887_s13 + $0x2e0] ss:$8 sps:$4 sm:$0xff]  }
0x17c9   : > { %v14168_v61 = vld [vmem:[%s14887_s13 + $0x3e0] ss:$8 sps:$4 sm:$0xff]  }
0x17ca   : > { %10134 = vadd.xlane.f32.xlu0 %v10133_v62  ;;  %v14173_v62 = vld [vmem:[%s14887_s13 + $0x2d4] ss:$8 sps:$4 sm:$0xff]  }
0x1853   : > { %v10135_v26 = vpop.xlane.xlu0 %10134 }
0x1854   : > { %v10136_v2 = vrot.slane %v10135_v26, 4 }
0x1856   : > { %v10137_v0 = vadd.f32 %v10136_v2, %v10135_v26  ;;  %v14176_v26 = vld [vmem:[%s14887_s13 + $0x3d4] ss:$8 sps:$4 sm:$0xff]   ;;  %v14171_v2 = vld [vmem:[%s14887_s13 + $0x2d0] ss:$8 sps:$4 sm:$0xff]  }
0x1858   : > { %v10138_v3 = vrot.slane %v10137_v0, 2 }
0x185a   : > { %v10139_v29 = vadd.f32 %v10138_v3, %v10137_v0  ;;  %v14174_v0 = vld [vmem:[%s14887_s13 + $0x3d0] ss:$8 sps:$4 sm:$0xff]   ;;  %v14179_v3 = vld [vmem:[%s14887_s13 + $0x2c4] ss:$8 sps:$4 sm:$0xff]  }
0x185c   : > { %v10140_v30 = vrot.slane %v10139_v29, 1 }
0x185e   : > { %v10141_v11 = vadd.f32 %v10140_v30, %v10139_v29  ;;  %v14182_v29 = vld [vmem:[%s14887_s13 + $0x3c4] ss:$8 sps:$4 sm:$0xff]   ;;  %v14177_v30 = vld [vmem:[%s14887_s13 + $0x2c0] ss:$8 sps:$4 sm:$0xff]  }
0x1860   : > { %12931 = vpush %v10141_v11  ;;  %v14180_v11 = vld [vmem:[%s14887_s13 + $0x3c0] ss:$8 sps:$4 sm:$0xff]  }
0x1891   : > { %s12932_s12 = spop %12931 }
0x1892   : > { %s10143_s11 = smul.f32 0.0009765625, %s12932_s12 }
0x1894   : > { %v10144_v4 = vstv %s10143_s11 }
0x1895   : > { %v16544_v8 = vsub.f32 %v9954_v34, %v10144_v4  ;;  %v16546_v13 = vsub.f32 %v9956_v35, %v10144_v4  ;;  %v16548_v21 = vsub.f32 %v10118_v50, %v10144_v4  ;;  %v16550_v48 = vsub.f32 %v10120_v22, %v10144_v4  ;;  %v14119_v34 = vld [vmem:[%s14887_s13 + $0x264] ss:$8 sps:$4 sm:$0xff]   ;;  %v14128_v35 = vld [vmem:[%s14887_s13 + $0x354] ss:$8 sps:$4 sm:$0xff]   ;;  %v14159_v22 = vld [vmem:[%s14887_s13 + $0x2f0] ss:$8 sps:$4 sm:$0xff]  }
0x1896   : > { %10588 = vmatprep.subr.bf16.mxu0 %v14119_v34  ;;  %10631 = vmatprep.subr.bf16.mxu1 %v14128_v35  ;;  %v14155_v50 = vld [vmem:[%s14887_s13 + $0x204] ss:$8 sps:$4 sm:$0xff]   ;;  %v14185_v4 = vld [vmem:[%s14887_s13 + $0x2b4] ss:$8 sps:$4 sm:$0xff]   ;;  %v14198_v34 = vld [vmem:[%s14887_s13 + $0x390] ss:$8 sps:$4 sm:$0xff]  }
0x1897   : > { %v10149_v39 = vmul.f32 %v16544_v8, %v16544_v8  ;;  %v10150_v43 = vmul.f32 %v16546_v13, %v16546_v13  ;;  %v10151_v14 = vmul.f32 %v16548_v21, %v16548_v21  ;;  %v10152_v15 = vmul.f32 %v16550_v48, %v16550_v48  ;;  %10589 = vmatpush1.bf16.msra.mxu0 %v14117_v25  ;;  %v14197_v25 = vld [vmem:[%s14887_s13 + $0x294] ss:$8 sps:$4 sm:$0xff]   ;;  %v14201_v35 = vld [vmem:[%s14887_s13 + $0x280] ss:$8 sps:$4 sm:$0xff]  }
0x1898   : > { %10590 = vmatprep.subr.bf16.mxu0 %v14125_v19  ;;  %10632 = vmatpush1.bf16.msra.mxu1 %v14126_v5  ;;  %v14206_v19 = vld [vmem:[%s14887_s13 + $0x384] ss:$8 sps:$4 sm:$0xff]  }
0x1899   : > { %v10153_v24 = vsel %vm601_vm1, %v10149_v39, 0.0  ;;  %v10154_v16 = vsel %vm601_vm1, %v10150_v43, 0.0  ;;  %v10156_v46 = vsel %vm601_vm1, %v10151_v14, 0.0  ;;  %v10158_v56 = vsel %vm601_vm1, %v10152_v15, 0.0  ;;  %10633 = vmatprep.subr.bf16.mxu1 %v14134_v28  ;;  %v14188_v39 = vld [vmem:[%s14887_s13 + $0x3b4] ss:$8 sps:$4 sm:$0xff]  }
0x189a   : > { %v10155_v10 = vadd.f32 %v10154_v16, %v10153_v24  ;;  %v14183_v43 = vld [vmem:[%s14887_s13 + $0x2b0] ss:$8 sps:$4 sm:$0xff]  }
0x189b   : > { %10591 = vmatpush1.bf16.msra.mxu0 %v14123_v27  ;;  %v14186_v14 = vld [vmem:[%s14887_s13 + $0x3b0] ss:$8 sps:$4 sm:$0xff]   ;;  %v14204_v27 = vld [vmem:[%s14887_s13 + $0x380] ss:$8 sps:$4 sm:$0xff]  }
0x189c   : > { %v10157_v55 = vadd.f32 %v10156_v46, %v10155_v10  ;;  %10592 = vmatprep.subr.bf16.mxu0 %v14131_v44  ;;  %10634 = vmatpush1.bf16.msra.mxu1 %v14132_v33 }
0x189d   : > { %10635 = vmatprep.subr.bf16.mxu1 %v14140_v1 }
0x189e   : > { %v10159_v12 = vadd.f32 %v10158_v56, %v10157_v55  ;;  %v14191_v55 = vld [vmem:[%s14887_s13 + $0x2a4] ss:$8 sps:$4 sm:$0xff]  }
0x189f   : > { %10593 = vmatpush1.bf16.msra.mxu0 %v14129_v32  ;;  %v14194_v56 = vld [vmem:[%s14887_s13 + $0x3a4] ss:$8 sps:$4 sm:$0xff]   ;;  %v10180_v32 = vstv %s10126_s25  ;;  %s16747_s13 = sld [smem:[#allocation30_spill]] }
0x18a0   : > { %10160 = vadd.xlane.f32.xlu1 %v10159_v12  ;;  %10594 = vmatprep.subr.bf16.mxu0 %v14137_v6 }
0x18a1   : > { %10636 = vmatpush1.bf16.msra.mxu1 %v14138_v7 }
0x18a2   : > { %10637 = vmatprep.subr.bf16.mxu1 %v14146_v38 }
0x18a3   : > { %10595 = vmatpush1.bf16.msra.mxu0 %v14135_v36 }
0x18a4   : > { %10596 = vmatprep.subr.bf16.mxu0 %v14143_v37 }
0x18a5   : > { %10638 = vmatpush1.bf16.msra.mxu1 %v14144_v40  ;;  %p16749_p7 = scmp.ne.s32.totalorder %s16747_s13, 0 }
0x18a6   : > { %10639 = vmatprep.subr.bf16.mxu1 %v14152_v51 }
0x18a7   : > { %10597 = vmatpush1.bf16.msra.mxu0 %v14141_v53  ;;  %p14421_p10 = pnand %p14420_p11, %p16749_p7 }
0x18a8   : > { %10598 = vmatprep.subr.bf16.mxu0 %v14149_v41 }
0x18a9   : > { %10640 = vmatpush1.bf16.msra.mxu1 %v14150_v42  ;;  %p14422_p2 = pneg %p14421_p10 }
0x18aa   : > { %10641 = vmatprep.subr.bf16.mxu1 %v14158_v20 }
0x18ab   : > { %10599 = vmatpush1.bf16.msra.mxu0 %v14147_v52  ;;  %p14429_p13 = pnand %p14428_p8, %p14422_p2 }
0x18ac   : > { %10600 = vmatprep.subr.bf16.mxu0 %v14155_v50 }
0x18ad   : > { %10642 = vmatpush1.bf16.msra.mxu1 %v14156_v47 }
0x18ae   : > { %10643 = vmatprep.subr.bf16.mxu1 %v14164_v45 }
0x18af   : > { %10601 = vmatpush1.bf16.msra.mxu0 %v14153_v54 }
0x18b0   : > { %10602 = vmatprep.subr.bf16.mxu0 %v14161_v49 }
0x18b1   : > { %10644 = vmatpush2.bf16.msra.mxu1 %v14162_v23 }
0x18b2   : > { %10645 = vmatprep.subr.bf16.mxu1 %v14170_v58 }
0x18b3   : > { %10603 = vmatpush2.bf16.msra.mxu0 %v14159_v22 }
0x18b4   : > { %10604 = vmatprep.subr.bf16.mxu0 %v14167_v57 }
0x18b5   : > { %10646 = vmatpush2.bf16.msra.mxu1 %v14168_v61 }
0x18b6   : > { %10647 = vmatprep.subr.bf16.mxu1 %v14176_v26 }
0x18b7   : > { %10605 = vmatpush2.bf16.msra.mxu0 %v14165_v59 }
0x18b8   : > { %10606 = vmatprep.subr.bf16.mxu0 %v14173_v62 }
0x18b9   : > { %10648 = vmatpush2.bf16.msra.mxu1 %v14174_v0 }
0x18ba   : > { %10649 = vmatprep.subr.bf16.mxu1 %v14182_v29 }
0x18bb   : > { %10607 = vmatpush2.bf16.msra.mxu0 %v14171_v2 }
0x18bc   : > { %10608 = vmatprep.subr.bf16.mxu0 %v14179_v3 }
0x18bd   : > { %10650 = vmatpush2.bf16.msra.mxu1 %v14180_v11 }
0x18be   : > { %10651 = vmatprep.subr.bf16.mxu1 %v14188_v39 }
0x18bf   : > { %10609 = vmatpush2.bf16.msra.mxu0 %v14177_v30 }
0x18c0   : > { %10610 = vmatprep.subr.bf16.mxu0 %v14185_v4 }
0x18c1   : > { %10652 = vmatpush2.bf16.msra.mxu1 %v14186_v14 }
0x18c2   : > { %10653 = vmatprep.subr.bf16.mxu1 %v14194_v56 }
0x18c3   : > { %10611 = vmatpush2.bf16.msra.mxu0 %v14183_v43 }
0x18c4   : > { %10612 = vmatprep.subr.bf16.mxu0 %v14191_v55 }
0x18c5   : > { %10654 = vmatpush2.bf16.msra.mxu1 %v14192_v17 }
0x18c6   : > { %10655 = vmatprep.subr.bf16.mxu1 %v14200_v60 }
0x18c7   : > { %10613 = vmatpush2.bf16.msra.mxu0 %v14189_v9 }
0x18c8   : > { %10614 = vmatprep.subr.bf16.mxu0 %v14197_v25 }
0x18c9   : > { %10656 = vmatpush2.bf16.msra.mxu1 %v14198_v34 }
0x18ca   : > { %10657 = vmatprep.subr.bf16.mxu1 %v14206_v19 }
0x18cb   : > { %10615 = vmatpush2.bf16.msra.mxu0 %v14195_v18 }
0x18cc   : > { %10616 = vmatprep.subr.bf16.mxu0 %v14203_v31 }
0x18cd   : > { %10658 = vmatpush2.bf16.msra.mxu1 %v14204_v27 }
0x18cf   : > { %10617 = vmatpush2.bf16.msra.mxu0 %v14201_v35 }
0x1929   : > { %v10161_v15 = vpop.xlane.xlu1 %10160 }
0x192a   : > { %v10162_v24 = vrot.slane %v10161_v15, 4 }
0x192c   : > { %v10163_v16 = vadd.f32 %v10162_v24, %v10161_v15 }
0x192e   : > { %v10164_v10 = vrot.slane %v10163_v16, 2 }
0x1930   : > { %v10165_v46 = vadd.f32 %v10164_v10, %v10163_v16 }
0x1932   : > { %v10166_v12 = vrot.slane %v10165_v46, 1 }
0x1934   : > { %v10167_v63 = vadd.f32 %v10166_v12, %v10165_v46 }
0x1936   : > { %12933 = vpush %v10167_v63 }
0x1967   : > { %s12934_s14 = spop %12933 }
0x1968   : > { %s10169_s20 = smul.f32 0.0009765625, %s12934_s14 }
0x196a   : > { %s10170_s23 = sadd.f32 1e-05, %s10169_s20 }
0x196c   : > { %v10171_v5 = vstv %s10170_s23 }
0x196d   : > { %14225 = vrsqrt.f32 %v10171_v5 }
0x197a   : > { %v14226_v44 = vpop.eup %14225 }
0x197b   : > { %12935 = vpush %v14226_v44 }
0x19ac   : > { %s12936_s8 = spop %12935 }
0x19ad   : > { %s10174_s18 = smul.f32 %s12936_s8, %s10125_s19 }
0x19af   : > { %v10175_v28 = vstv %s10174_s18 }
0x19b0   : > { %v10176_v33 = vmul.f32 %v10175_v28, %v16544_v8  ;;  %v10177_v6 = vmul.f32 %v10175_v28, %v16546_v13  ;;  %v10178_v1 = vmul.f32 %v10175_v28, %v16548_v21  ;;  %v10179_v36 = vmul.f32 %v10175_v28, %v16550_v48 }
0x19b2   : > { %v10181_v7 = vadd.f32 %v10180_v32, %v10176_v33  ;;  %v10182_v37 = vadd.f32 %v10180_v32, %v10177_v6  ;;  %v10183_v38 = vadd.f32 %v10180_v32, %v10178_v1  ;;  %v10184_v53 = vadd.f32 %v10180_v32, %v10179_v36 }
0x19b4   : > { %v10189_v40 = vmul.f32 0.2, %v10181_v7  ;;  %v10191_v41 = vmul.f32 0.2, %v10183_v38  ;;  %vm10186_vm1 = vcmp.gt.f32.partialorder %v10182_v37, 0.0  ;;  %vm10188_vm5 = vcmp.gt.f32.partialorder %v10184_v53, 0.0 }
0x19b5   : > { %v10190_v51 = vmul.f32 0.2, %v10182_v37  ;;  %v10192_v52 = vmul.f32 0.2, %v10184_v53  ;;  %vm10185_vm0 = vcmp.gt.f32.partialorder %v10181_v7, 0.0  ;;  %vm10187_vm6 = vcmp.gt.f32.partialorder %v10183_v38, 0.0 }
0x19b6   : > { %v10193_v42 = vsel %vm10185_vm0, %v10181_v7, %v10189_v40  ;;  %v10195_v8 = vsel %vm10187_vm6, %v10183_v38, %v10191_v41 }
0x19b7   : > { %v10194_v50 = vsel %vm10186_vm1, %v10182_v37, %v10190_v51  ;;  %v10196_v13 = vsel %vm10188_vm5, %v10184_v53, %v10192_v52  ;;  %v10197_v20 = vpack.c.bf16 %v10193_v42, %v10193_v42  ;;  %v10199_v21 = vpack.c.bf16 %v10195_v8, %v10195_v8 }
0x19b8   : > { %v10198_v54 = vpack.c.bf16 %v10194_v50, %v10194_v50  ;;  %v10200_v48 = vpack.c.bf16 %v10196_v13, %v10196_v13 }
0x19ba   : > { %10618 = vmatprep.mubr.bf16.mxu0 %v10198_v54  ;;  %10659 = vmatprep.mubr.bf16.mxu1 %v10200_v48 }
0x19bb   : > { %10619 = vmatmul.mubr.bf16.vlgmr.msra.gmra.mxu0 %v10197_v20  ;;  %10660 = vmatmul.mubr.bf16.vlgmr.msra.gmra.mxu1 %v10199_v21 }
0x1a7b   : > { %v10620_v47 = vpop.f32.mrf.mxu0  ;;  %v10661_v49 = vpop.f32.mrf.mxu1 }
0x1a7c   : > { %v10662_v45 = vadd.f32 %v10661_v49, %v10620_v47 }
0x1a7d   : > { %v10622_v22 = vpop.f32.mrf.mxu0  ;;  %v10663_v23 = vpop.f32.mrf.mxu1 }
0x1a7e   : > { %v10664_v57 = vadd.f32 %v10663_v23, %v10622_v22  ;;  %14227 = vtanh.f32 %v10662_v45 }
0x1a7f   : > { %v10624_v58 = vpop.f32.mrf.mxu0  ;;  %v10665_v59 = vpop.f32.mrf.mxu1 }
0x1a80   : > { %14229 = vtanh.f32 %v10664_v57 }
0x1a81   : > { %v10625_v61 = vpop.f32.mrf.mxu0  ;;  %v10666_v62 = vpop.f32.mrf.mxu1 }
0x1a8b   : > { %v14228_v26 = vpop.eup %14227 }
0x1a8d   : > { %v14230_v2 = vpop.eup %14229 }
0x1a8e   : > { %v10672_v0 = vcombine.low %v14228_v26, %v14230_v2 }
0x1a90   : > { %12885 = vst.sshfl [vmem:[%s15776_s24 + $0x4] sm:$0x33 pattern:$0x76325410] %v10672_v0 }
0x1a91   : > { %14432 = shalt.err (!%p14429_p13)
}
0x1a92   : > { %s14433_s24 = scalar_lea.hbm %s16638_s1, 128  ;;  %s14437_s14 = scalar_lea.hbm %s16748_s9, 256 }
0x1a93   : > { %p14434_p1 = scmp.ne.s32.totalorder %s16638_s1, %s14433_s24  ;;  %p14438_p9 = scmp.lt.s32.totalorder %s16638_s1, %s16748_s9 }
0x1a94   : > { %p14439_p12 = scmp.lt.s32.totalorder %s14437_s14, %s14433_s24 }
0x1a95   : > { %p14435_p6 = pnand %p14434_p1, %p16749_p7 }
0x1a96   : > { %p14440_p3 = por %p14439_p12, %p14438_p9 }
0x1a97   : > { %p14436_p4 = pneg %p14435_p6 }
0x1a99   : > { %p14441_p11 = pnand %p14440_p3, %p14436_p4 }
0x1a9b   : > { %14444 = shalt.err (!%p14441_p11)
}
0x1a9c   : > { %s14521_s3 = smov 64   ;;  %s14522_s19 = smov 4  }
0x1a9d   : > { %12959 = dma.vmem_to_hbm [thread:$0]  (%p16749_p7), %s16640_s27, 128, %s16638_s1, %s10684_s21, %s14521_s3, %s14521_s3, %s14522_s19  }
0x1a9e PF: > { %s16750_s25 = sld [smem:[#allocation25_spill]]  ;;  %p16753_p2 = scmp.ge.s32.totalorder %s14503_s30, 2 }
0x1a9f   : > { %s16751_s8 = sld [smem:[#allocation31_spill]] }
0x1aa4   : > { %s10713_s18 = sand.u32 1, %s16750_s25  }
0x1aa5   : > { %p16752_p10 = scmp.ne.s32.totalorder %s16751_s8, 0  ;;  %s10714_s10 = scalar_lea.sflag [#allocation4], %s10713_s18 }
0x1aa7   : > { %p12988_p5 = pnand %p16753_p2, %p16752_p10 }
0x1aa9   : > { %p12989_p0 = pneg %p12988_p5 }
0x1aab   : > { %14486 = dma.done.wait (%p12989_p0), %s10714_s10, 128  }
0x1aac   : > { %14488 = vsyncadd (%p12989_p0), %s10714_s10, 4294967168  ;;  %s16754_s30 = sld [smem:[#allocation27_spill]]  ;;  %s16757_s27 = smov %s14495_s28 }
0x1aad   : > { %s16755_s15 = sld [smem:[#allocation26_spill]] }
0x1aae   : > { %s16756_s29 = sld [smem:[#allocation28_spill]] }
0x1ab2   : > { %p30_p8 = scmp.ge.s32.totalorder %s16754_s30, 4  }
0x1ab3   : > { %s16758_s28 = smov %s16755_s15 }
0x1ab4   :  { %32 = sbr.rel (!%p30_p8) target bundleno = 17 (0x11), region = 165 }
0x1ab9   :  { %10719 = vsyncpa [#allocation3], 1 }
0x1aba   :  { %10721 = vsyncpa [#allocation3 + $0x1], 1 }
0x1abb   :  { %10722 = vsyncpa [#allocation7], 1 }
0x1abc   :  { %10724 = vsyncpa [#allocation7 + $0x1], 1 }
0x1abd   :  { %10725 = vsyncpa [#allocation10], 1 }
0x1abe   :  { %10727 = vsyncpa [#allocation10 + $0x1], 1 }
0x1abf   :  { %10728 = vsyncpa [#allocation13], 1 }
0x1ac0   :  { %10730 = vsyncpa [#allocation13 + $0x1], 1 }
0x1ac1   :  { %10731 = vsyncpa [#allocation4], 1 }
0x1ac2   :  { %10733 = vsyncpa [#allocation4 + $0x1], 1 }
0x1ac3   :  { %10734 = vsyncpa [#allocation5], 1 }
0x1ac4   :  { %10736 = vsyncpa [#allocation5 + $0x1], 1 }
0x1ac5   :  { %10737 = vsyncpa [#allocation16], 1 }

</bundles_post_ra>
